<compile_context>
chip_gen: v6e
topology: v6e:2x2x1
jax: 0.10.0
libtpu: 0.0.40
codegen_flags: <defaults>
</compile_context>

<pallas_src>
import functools

import jax
import jax.numpy as jnp
from jax.experimental import pallas as pl
from jax.experimental.pallas import tpu as pltpu

LEAKY_SLOPE = 0.1
BN_EPS = 1e-5
CDT = jnp.bfloat16                      # MXU operand dtype
VMEM_LIMIT = 32 * 1024 * 1024           # explicit scoped-VMEM limit (>= v5e default)


def _leaky(y):
    return jnp.where(y >= 0, y, LEAKY_SLOPE * y)


def _pick_row_tile(rows):
    """Largest row tile dividing `rows` that still leaves >=2 grid steps (both
    v7x TensorCores fed); fall back to any divisor, then 128 (+padding)."""
    for tm in (1024, 512, 256, 128):
        if rows % tm == 0 and rows // tm >= 2:
            return tm
    for tm in (1024, 512, 256, 128):
        if rows % tm == 0:
            return tm
    return 128


# ---------------------------------------------------------------------------
# Kernels
# ---------------------------------------------------------------------------
def _conv1x1_kernel(x_ref, w_ref, s_ref, b_ref, o_ref):
    y = jnp.dot(x_ref[...].astype(CDT), w_ref[...],
                preferred_element_type=jnp.float32)
    o_ref[...] = _leaky(y * s_ref[...] + b_ref[...]).astype(o_ref.dtype)


def _bottleneck_chain_kernel(y1_ref, w1_ref, s1_ref, b1_ref,
                             w2_ref, s2_ref, b2_ref, o_ref,
                             *, h, w, hdim, hd2, n_blocks, shortcut):
    wp = w + 2
    rows_c = h * wp          # the 3x3 conv is evaluated on the width-padded grid

    y1 = y1_ref[0].astype(jnp.float32)          # (h*w, hdim) residual, f32 in VMEM
    for j in range(n_blocks):
        # --- 1x1 conv + folded BN + LeakyReLU (channel contraction, K = hdim)
        hid = jnp.dot(y1.astype(CDT), w1_ref[j],
                      preferred_element_type=jnp.float32)        # (h*w, hd2)
        hid = _leaky(hid * s1_ref[j] + b1_ref[j])

        # --- spatial zero padding for the 3x3 conv, built entirely in VMEM
        hid3 = hid.reshape(h, w, hd2)
        zrow = jnp.zeros((1, w, hd2), jnp.float32)
        zcol = jnp.zeros((h + 2, 1, hd2), jnp.float32)
        hp = jnp.concatenate([zrow, hid3, zrow], axis=0)          # (h+2, w, hd2)
        hp = jnp.concatenate([zcol, hp, zcol], axis=1)            # (h+2, w+2, hd2)
        hp = hp.reshape((h + 2) * wp, hd2)
        # two extra zero rows so every tap window below stays in bounds
        hp = jnp.concatenate([hp, jnp.zeros((2, hd2), jnp.float32)], axis=0)

        # --- im2col in VMEM: 9 contiguous row-shifted windows of the flat padded
        #     slab, concatenated on lanes -> single matmul with K = 9*hd2
        taps = [hp[dy * wp + dx: dy * wp + dx + rows_c]
                for dy in range(3) for dx in range(3)]
        patches = jnp.concatenate(taps, axis=-1).astype(CDT)      # (h*(w+2), 9*hd2)

        conv = jnp.dot(patches, w2_ref[j],
                       preferred_element_type=jnp.float32)        # (h*(w+2), hdim)
        conv = _leaky(conv * s2_ref[j] + b2_ref[j])
        # drop the width-pad output columns -> (h*w, hdim)
        conv = conv.reshape(h, wp, hdim)[:, :w, :].reshape(h * w, hdim)

        y1 = y1 + conv if shortcut else conv
    o_ref[0] = y1.astype(o_ref.dtype)


def _csp_tail_kernel(y1_ref, x_ref, w3_ref, w2_ref, w4a_ref, w4b_ref,
                     sa_ref, ba_ref, sb_ref, bb_ref, s4_ref, b4_ref, o_ref):
    a1 = jnp.dot(y1_ref[...].astype(CDT), w3_ref[...],
                 preferred_element_type=jnp.float32)
    a1 = _leaky(a1 * sa_ref[...] + ba_ref[...])
    a2 = jnp.dot(x_ref[...].astype(CDT), w2_ref[...],
                 preferred_element_type=jnp.float32)
    a2 = _leaky(a2 * sb_ref[...] + bb_ref[...])
    # conv4(cat([a1, a2])) == a1 @ W4[:hdim] + a2 @ W4[hdim:]
    y = (jnp.dot(a1.astype(CDT), w4a_ref[...], preferred_element_type=jnp.float32)
         + jnp.dot(a2.astype(CDT), w4b_ref[...], preferred_element_type=jnp.float32))
    o_ref[...] = _leaky(y * s4_ref[...] + b4_ref[...]).astype(o_ref.dtype)


# ---------------------------------------------------------------------------
# Pallas-call wrappers
# ---------------------------------------------------------------------------
def conv1x1_bn_act(x2, w, scale, shift, out_dtype=CDT):
    rows, cin = x2.shape
    cdim = w.shape[1]
    tm = _pick_row_tile(rows)
    rows_p = pl.cdiv(rows, tm) * tm
    xp = x2 if rows_p == rows else jnp.pad(x2, ((0, rows_p - rows), (0, 0)))
    out = pl.pallas_call(
        _conv1x1_kernel,
        grid=(rows_p // tm,),
        in_specs=[pl.BlockSpec((tm, cin), lambda i: (i, 0)),
                  pl.BlockSpec((cin, cdim), lambda i: (0, 0)),
                  pl.BlockSpec((1, cdim), lambda i: (0, 0)),
                  pl.BlockSpec((1, cdim), lambda i: (0, 0))],
        out_specs=pl.BlockSpec((tm, cdim), lambda i: (i, 0)),
        out_shape=jax.ShapeDtypeStruct((rows_p, cdim), out_dtype),
        compiler_params=pltpu.CompilerParams(
            dimension_semantics=("parallel",), vmem_limit_bytes=VMEM_LIMIT),
        cost_estimate=pl.CostEstimate(
            flops=2 * rows_p * cin * cdim, transcendentals=0,
            bytes_accessed=4 * rows_p * cin + 2 * rows_p * cdim
                           + 2 * cin * cdim + 8 * cdim),
    )(xp, w.astype(CDT),
      scale.reshape(1, cdim).astype(jnp.float32),
      shift.reshape(1, cdim).astype(jnp.float32))
    return out if rows_p == rows else out[:rows]


def bottleneck_chain(y1_seq, blocks, *, h, w, shortcut=True):
    """All bottleneck blocks fused in one pallas_call. y1_seq: (n, h*w, hdim)."""
    n, hw, hdim = y1_seq.shape
    nb = len(blocks)
    if nb == 0:
        return y1_seq
    hd2 = blocks[0]["c1_w"].shape[1]

    # Stacked per-block weights (KiB-scale, resident once in VMEM).
    w1 = jnp.stack([b["c1_w"] for b in blocks]).astype(CDT)               # (nb,hdim,hd2)
    s1 = jnp.stack([b["c1_scale"].reshape(1, hd2) for b in blocks]).astype(jnp.float32)
    b1 = jnp.stack([b["c1_shift"].reshape(1, hd2) for b in blocks]).astype(jnp.float32)
    w2 = jnp.stack([b["c2_w"].reshape(9 * hd2, hdim) for b in blocks]).astype(CDT)
    s2 = jnp.stack([b["c2_scale"].reshape(1, hdim) for b in blocks]).astype(jnp.float32)
    b2 = jnp.stack([b["c2_shift"].reshape(1, hdim) for b in blocks]).astype(jnp.float32)

    kernel = functools.partial(_bottleneck_chain_kernel, h=h, w=w, hdim=hdim,
                               hd2=hd2, n_blocks=nb, shortcut=shortcut)
    flops = n * nb * (2 * hw * hdim * hd2 + 2 * h * (w + 2) * 9 * hd2 * hdim)
    bytes_acc = (4 * n * hw * hdim
                 + 2 * nb * (hdim * hd2 + 9 * hd2 * hdim)
                 + 8 * nb * (hd2 + hdim))

    full = lambda shape: pl.BlockSpec(shape, lambda b: (0,) * len(shape))
    # TODO(synk): for large images the whole per-batch image must fit VMEM; a
    # halo-tiled variant over H would be needed beyond that.
    out = pl.pallas_call(
        kernel,
        grid=(n,),
        in_specs=[pl.BlockSpec((1, hw, hdim), lambda b: (b, 0, 0)),
                  full((nb, hdim, hd2)),
                  full((nb, 1, hd2)), full((nb, 1, hd2)),
                  full((nb, 9 * hd2, hdim)),
                  full((nb, 1, hdim)), full((nb, 1, hdim))],
        out_specs=pl.BlockSpec((1, hw, hdim), lambda b: (b, 0, 0)),
        out_shape=jax.ShapeDtypeStruct((n, hw, hdim), CDT),
        compiler_params=pltpu.CompilerParams(
            dimension_semantics=("parallel",), vmem_limit_bytes=VMEM_LIMIT),
        cost_estimate=pl.CostEstimate(flops=flops, transcendentals=0,
                                      bytes_accessed=bytes_acc),
    )(y1_seq, w1, s1, b1, w2, s2, b2)
    return out


def csp_tail(y1, x2, p):
    rows, hdim = y1.shape
    cin = x2.shape[1]
    cout = p["cout"]
    tm = _pick_row_tile(rows)
    rows_p = pl.cdiv(rows, tm) * tm
    if rows_p != rows:
        y1 = jnp.pad(y1, ((0, rows_p - rows), (0, 0)))
        x2 = jnp.pad(x2, ((0, rows_p - rows), (0, 0)))
    row = lambda c: pl.BlockSpec((tm, c), lambda i: (i, 0))
    full = lambda shape: pl.BlockSpec(shape, lambda i: (0,) * len(shape))
    out = pl.pallas_call(
        _csp_tail_kernel,
        grid=(rows_p // tm,),
        in_specs=[row(hdim), row(cin),
                  full((hdim, hdim)), full((cin, hdim)),
                  full((hdim, cout)), full((hdim, cout)),
                  full((1, hdim)), full((1, hdim)),
                  full((1, hdim)), full((1, hdim)),
                  full((1, cout)), full((1, cout))],
        out_specs=row(cout),
        out_shape=jax.ShapeDtypeStruct((rows_p, cout), jnp.float32),
        compiler_params=pltpu.CompilerParams(
            dimension_semantics=("parallel",), vmem_limit_bytes=VMEM_LIMIT),
        cost_estimate=pl.CostEstimate(
            flops=2 * rows_p * (hdim * hdim + cin * hdim + 2 * hdim * cout),
            transcendentals=0,
            bytes_accessed=2 * rows_p * hdim + 4 * rows_p * cin + 4 * rows_p * cout),
    )(y1, x2,
      p["conv3_w"].astype(CDT), p["conv2_w"].astype(CDT),
      p["conv4_w"][:hdim].astype(CDT), p["conv4_w"][hdim:].astype(CDT),
      p["bn_scale"][:hdim].reshape(1, hdim), p["bn_shift"][:hdim].reshape(1, hdim),
      p["bn_scale"][hdim:].reshape(1, hdim), p["bn_shift"][hdim:].reshape(1, hdim),
      p["conv4_scale"].reshape(1, cout), p["conv4_shift"].reshape(1, cout))
    return out if rows_p == rows else out[:rows]


# ---------------------------------------------------------------------------
# Deterministic parameter construction (synthetic; BN folded eval-mode)
# ---------------------------------------------------------------------------
def _bn_params(key, c):
    k1, k2, k3, k4 = jax.random.split(key, 4)
    gamma = 1.0 + 0.1 * jax.random.normal(k1, (c,), jnp.float32)
    beta = 0.1 * jax.random.normal(k2, (c,), jnp.float32)
    mean = 0.1 * jax.random.normal(k3, (c,), jnp.float32)
    var = 1.0 + 0.1 * jnp.abs(jax.random.normal(k4, (c,), jnp.float32))
    return gamma, beta, mean, var


def _fold_bn(gamma, beta, mean, var, bias=None):
    scale = gamma / jnp.sqrt(var + BN_EPS)
    shift = beta - mean * scale
    if bias is not None:
        shift = shift + bias * scale
    return scale, shift


def init_params(key, cin, cout, n=1, e=0.5):
    hdim = int(cout * e)
    hd2 = int(hdim * e)
    ks = iter(jax.random.split(key, 16 + 8 * n))
    nxt = lambda: next(ks)
    w_init = lambda k, shape, fan_in: jax.random.normal(k, shape, jnp.float32) / jnp.sqrt(fan_in)

    p = {"hdim": hdim, "hd2": hd2, "cout": cout}

    p["conv1_w"] = w_init(nxt(), (cin, hdim), cin)
    b1 = 0.1 * jax.random.normal(nxt(), (hdim,), jnp.float32)
    p["conv1_scale"], p["conv1_shift"] = _fold_bn(*_bn_params(nxt(), hdim), bias=b1)

    p["conv2_w"] = w_init(nxt(), (cin, hdim), cin)
    p["conv3_w"] = w_init(nxt(), (hdim, hdim), hdim)

    p["bn_scale"], p["bn_shift"] = _fold_bn(*_bn_params(nxt(), 2 * hdim))

    p["conv4_w"] = w_init(nxt(), (2 * hdim, cout), 2 * hdim)
    b4 = 0.1 * jax.random.normal(nxt(), (cout,), jnp.float32)
    p["conv4_scale"], p["conv4_shift"] = _fold_bn(*_bn_params(nxt(), cout), bias=b4)

    blocks = []
    for _ in range(n):
        bw1 = w_init(nxt(), (hdim, hd2), hdim)
        bb1 = 0.1 * jax.random.normal(nxt(), (hd2,), jnp.float32)
        s1, sh1 = _fold_bn(*_bn_params(nxt(), hd2), bias=bb1)
        bw2 = w_init(nxt(), (3, 3, hd2, hdim), 9 * hd2)  # HWIO
        bb2 = 0.1 * jax.random.normal(nxt(), (hdim,), jnp.float32)
        s2, sh2 = _fold_bn(*_bn_params(nxt(), hdim), bias=bb2)
        blocks.append(dict(c1_w=bw1, c1_scale=s1, c1_shift=sh1,
                           c2_w=bw2, c2_scale=s2, c2_shift=sh2))
    p["blocks"] = blocks
    return p


# ---------------------------------------------------------------------------
# CSPBottleneck forward (Pallas-backed)
# ---------------------------------------------------------------------------
def csp_bottleneck(x_nchw, p, shortcut=True):
    n, c, h, w = x_nchw.shape
    hdim, cout = p["hdim"], p["cout"]
    x = jnp.transpose(x_nchw, (0, 2, 3, 1)).astype(jnp.float32)   # NHWC
    rows = n * h * w
    x2 = x.reshape(rows, c)

    # y1 = conv1(x)
    y1 = conv1x1_bn_act(x2, p["conv1_w"], p["conv1_scale"], p["conv1_shift"])

    # y1 = bottleblock(y1): all blocks in one fused pallas_call
    y1 = bottleneck_chain(y1.reshape(n, h * w, hdim), p["blocks"],
                          h=h, w=w, shortcut=shortcut)

    # conv3 / conv2 / concat / BN / act / conv4 fused in one call
    out = csp_tail(y1.reshape(rows, hdim), x2, p)
    return out.reshape(n, h, w, cout).transpose(0, 3, 1, 2)        # back to NCHW


# ---------------------------------------------------------------------------
# Plain-JAX reference (same folded-BN semantics)
# ---------------------------------------------------------------------------
def csp_bottleneck_ref(x_nchw, p, shortcut=True):
    hdim = p["hdim"]
    x = jnp.transpose(x_nchw, (0, 2, 3, 1)).astype(jnp.float32)
    leaky = lambda z: jnp.where(z >= 0, z, LEAKY_SLOPE * z)

    def pw(z, w_, s_, b_):
        return leaky(jnp.einsum("nhwc,cd->nhwd", z, w_) * s_ + b_)

    y1 = pw(x, p["conv1_w"], p["conv1_scale"], p["conv1_shift"])
    for blk in p["blocks"]:
        hdn = pw(y1, blk["c1_w"], blk["c1_scale"], blk["c1_shift"])
        conv = jax.lax.conv_general_dilated(
            hdn, blk["c2_w"], (1, 1), "SAME",
            dimension_numbers=("NHWC", "HWIO", "NHWC"))
        conv = leaky(conv * blk["c2_scale"] + blk["c2_shift"])
        y1 = y1 + conv if shortcut else conv
    a1 = pw(y1, p["conv3_w"], p["bn_scale"][:hdim], p["bn_shift"][:hdim])
    a2 = pw(x, p["conv2_w"], p["bn_scale"][hdim:], p["bn_shift"][hdim:])
    y = jnp.concatenate([a1, a2], axis=-1)
    out = pw(y, p["conv4_w"], p["conv4_scale"], p["conv4_shift"])
    return out.transpose(0, 3, 1, 2)


if __name__ == "__main__":
    N, CIN, COUT, H, W = 2, 4, 8, 16, 16  # hdim = 4, bottleneck hidden = 2

    params = init_params(jax.random.PRNGKey(42), CIN, COUT, n=1)
    x = jax.random.normal(jax.random.PRNGKey(0), (N, CIN, H, W), jnp.float32)

    fwd = jax.jit(lambda xx: csp_bottleneck(xx, params, shortcut=True))
    out = jax.block_until_ready(fwd(x))
    assert out.shape == (N, COUT, H, W)

    ref = csp_bottleneck_ref(x, params, shortcut=True)
    rel_err = float(jnp.max(jnp.abs(out - ref)) / (jnp.max(jnp.abs(ref)) + 1e-6))
    assert rel_err < 5e-2, f"relative error too large: {rel_err}"

    # TODO(synk): BatchNorm uses eval-mode (running-stats) semantics folded into
    # per-channel scale/shift; training-mode batch statistics are not computed.
    print("KERNEL_OK")
</pallas_src>

<mosaic_0001>
module attributes {stable_mosaic.version = 11 : i64} {
  func.func @_conv1x1_kernel(%arg0: i32, %arg1: memref<256x4xf32, #tpu.memory_space<vmem>>, %arg2: memref<4x4xbf16, #tpu.memory_space<vmem>>, %arg3: memref<1x4xf32, #tpu.memory_space<vmem>>, %arg4: memref<1x4xf32, #tpu.memory_space<vmem>>, %arg5: memref<256x4xbf16, #tpu.memory_space<vmem>>) attributes {dimension_semantics = [#tpu.dimension_semantics<parallel>], iteration_bounds = array<i64: 2>, scalar_prefetch = 0 : i64, scratch_operands = 0 : i64, tpu.core_type = #tpu.core_type<tc>, window_params = [{transform_indices = @transform_0, window_bounds = array<i64: 256, 4>}, {pipeline_mode = #tpu.pipeline_mode<synchronous>, transform_indices = @transform_1, window_bounds = array<i64: 4, 4>}, {pipeline_mode = #tpu.pipeline_mode<synchronous>, transform_indices = @transform_2, window_bounds = array<i64: 1, 4>}, {pipeline_mode = #tpu.pipeline_mode<synchronous>, transform_indices = @transform_3, window_bounds = array<i64: 1, 4>}, {transform_indices = @transform_4, window_bounds = array<i64: 256, 4>}]} {
    %c0 = arith.constant 0 : index
    %c0_0 = arith.constant 0 : index
    %0 = vector.load %arg1[%c0, %c0_0] : memref<256x4xf32, #tpu.memory_space<vmem>>, vector<256x4xf32>
    %1 = arith.truncf %0 : vector<256x4xf32> to vector<256x4xbf16>
    %c0_1 = arith.constant 0 : index
    %c0_2 = arith.constant 0 : index
    %2 = vector.load %arg2[%c0_1, %c0_2] : memref<4x4xbf16, #tpu.memory_space<vmem>>, vector<4x4xbf16>
    %cst = arith.constant dense<0.000000e+00> : vector<256x4xf32>
    %3 = tpu.matmul %1, %2, %cst {dimension_numbers = #tpu.dot_dimension_numbers<[1], [0], [0], [1], [0, 0, 1, 1], [], []>} : vector<256x4xbf16>, vector<4x4xbf16>, vector<256x4xf32> -> vector<256x4xf32>
    %c0_3 = arith.constant 0 : index
    %c0_4 = arith.constant 0 : index
    %4 = vector.load %arg3[%c0_3, %c0_4] : memref<1x4xf32, #tpu.memory_space<vmem>>, vector<1x4xf32>
    %5 = vector.broadcast %4 : vector<1x4xf32> to vector<256x4xf32>
    %6 = arith.mulf %3, %5 : vector<256x4xf32>
    %c0_5 = arith.constant 0 : index
    %c0_6 = arith.constant 0 : index
    %7 = vector.load %arg4[%c0_5, %c0_6] : memref<1x4xf32, #tpu.memory_space<vmem>>, vector<1x4xf32>
    %8 = vector.broadcast %7 : vector<1x4xf32> to vector<256x4xf32>
    %9 = arith.addf %6, %8 : vector<256x4xf32>
    %cst_7 = arith.constant 0.000000e+00 : f32
    %10 = vector.broadcast %cst_7 : f32 to vector<256x4xf32>
    %11 = arith.cmpf oge, %9, %10 : vector<256x4xf32>
    %cst_8 = arith.constant 1.000000e-01 : f32
    %12 = vector.broadcast %cst_8 : f32 to vector<256x4xf32>
    %13 = arith.mulf %12, %9 : vector<256x4xf32>
    %14 = arith.select %11, %9, %13 : vector<256x4xi1>, vector<256x4xf32>
    %15 = arith.truncf %14 : vector<256x4xf32> to vector<256x4xbf16>
    %c0_9 = arith.constant 0 : index
    %c0_10 = arith.constant 0 : index
    %16 = vector.load %arg5[%c0_9, %c0_10] : memref<256x4xbf16, #tpu.memory_space<vmem>>, vector<256x4xbf16>
    tpu.vector_store %arg5[%c0_9, %c0_10], %15 {strides = array<i32>} : memref<256x4xbf16, #tpu.memory_space<vmem>>, vector<256x4xbf16>,
    return
  }
  func.func @transform_0(%arg0: i32) -> (i32, i32) {
    %c0_i32 = arith.constant 0 : i32
    %c0_i32_0 = arith.constant 0 : i32
    return %arg0, %c0_i32 : i32, i32
  }
  func.func @transform_1(%arg0: i32) -> (i32, i32) {
    %c0_i32 = arith.constant 0 : i32
    %c0_i32_0 = arith.constant 0 : i32
    %c0_i32_1 = arith.constant 0 : i32
    return %c0_i32, %c0_i32_0 : i32, i32
  }
  func.func @transform_2(%arg0: i32) -> (i32, i32) {
    %c0_i32 = arith.constant 0 : i32
    %c0_i32_0 = arith.constant 0 : i32
    %c0_i32_1 = arith.constant 0 : i32
    return %c0_i32, %c0_i32_0 : i32, i32
  }
  func.func @transform_3(%arg0: i32) -> (i32, i32) {
    %c0_i32 = arith.constant 0 : i32
    %c0_i32_0 = arith.constant 0 : i32
    %c0_i32_1 = arith.constant 0 : i32
    return %c0_i32, %c0_i32_0 : i32, i32
  }
  func.func @transform_4(%arg0: i32) -> (i32, i32) {
    %c0_i32 = arith.constant 0 : i32
    %c0_i32_0 = arith.constant 0 : i32
    return %arg0, %c0_i32 : i32, i32
  }
}

module attributes {stable_mosaic.version = 11 : i64} {
  func.func @_bottleneck_chain_kernel(%arg0: i32, %arg1: memref<1x256x4xbf16, #tpu.memory_space<vmem>>, %arg2: memref<1x4x2xbf16, #tpu.memory_space<vmem>>, %arg3: memref<1x1x2xf32, #tpu.memory_space<vmem>>, %arg4: memref<1x1x2xf32, #tpu.memory_space<vmem>>, %arg5: memref<1x18x4xbf16, #tpu.memory_space<vmem>>, %arg6: memref<1x1x4xf32, #tpu.memory_space<vmem>>, %arg7: memref<1x1x4xf32, #tpu.memory_space<vmem>>, %arg8: memref<1x256x4xbf16, #tpu.memory_space<vmem>>) attributes {dimension_semantics = [#tpu.dimension_semantics<parallel>], iteration_bounds = array<i64: 2>, scalar_prefetch = 0 : i64, scratch_operands = 0 : i64, tpu.core_type = #tpu.core_type<tc>, window_params = [{transform_indices = @transform_0, window_bounds = array<i64: 1, 256, 4>}, {pipeline_mode = #tpu.pipeline_mode<synchronous>, transform_indices = @transform_1, window_bounds = array<i64: 1, 4, 2>}, {pipeline_mode = #tpu.pipeline_mode<synchronous>, transform_indices = @transform_2, window_bounds = array<i64: 1, 1, 2>}, {pipeline_mode = #tpu.pipeline_mode<synchronous>, transform_indices = @transform_3, window_bounds = array<i64: 1, 1, 2>}, {pipeline_mode = #tpu.pipeline_mode<synchronous>, transform_indices = @transform_4, window_bounds = array<i64: 1, 18, 4>}, {pipeline_mode = #tpu.pipeline_mode<synchronous>, transform_indices = @transform_5, window_bounds = array<i64: 1, 1, 4>}, {pipeline_mode = #tpu.pipeline_mode<synchronous>, transform_indices = @transform_6, window_bounds = array<i64: 1, 1, 4>}, {transform_indices = @transform_7, window_bounds = array<i64: 1, 256, 4>}]} {
    %c0 = arith.constant 0 : index
    %c0_0 = arith.constant 0 : index
    %c0_1 = arith.constant 0 : index
    %0 = vector.load %arg1[%c0, %c0_0, %c0_1] : memref<1x256x4xbf16, #tpu.memory_space<vmem>>, vector<1x256x4xbf16>
    %1 = vector.shape_cast %0 : vector<1x256x4xbf16> to vector<256x4xbf16>
    %2 = arith.extf %1 : vector<256x4xbf16> to vector<256x4xf32>
    %3 = arith.truncf %2 : vector<256x4xf32> to vector<256x4xbf16>
    %c0_2 = arith.constant 0 : index
    %c0_3 = arith.constant 0 : index
    %c0_4 = arith.constant 0 : index
    %4 = vector.load %arg2[%c0_2, %c0_3, %c0_4] : memref<1x4x2xbf16, #tpu.memory_space<vmem>>, vector<1x4x2xbf16>
    %5 = vector.shape_cast %4 : vector<1x4x2xbf16> to vector<4x2xbf16>
    %cst = arith.constant dense<0.000000e+00> : vector<256x2xf32>
    %6 = tpu.matmul %3, %5, %cst {dimension_numbers = #tpu.dot_dimension_numbers<[1], [0], [0], [1], [0, 0, 1, 1], [], []>} : vector<256x4xbf16>, vector<4x2xbf16>, vector<256x2xf32> -> vector<256x2xf32>
    %c0_5 = arith.constant 0 : index
    %c0_6 = arith.constant 0 : index
    %c0_7 = arith.constant 0 : index
    %7 = vector.load %arg3[%c0_5, %c0_6, %c0_7] : memref<1x1x2xf32, #tpu.memory_space<vmem>>, vector<1x1x2xf32>
    %8 = vector.shape_cast %7 : vector<1x1x2xf32> to vector<1x2xf32>
    %9 = vector.broadcast %8 : vector<1x2xf32> to vector<256x2xf32>
    %10 = arith.mulf %6, %9 : vector<256x2xf32>
    %c0_8 = arith.constant 0 : index
    %c0_9 = arith.constant 0 : index
    %c0_10 = arith.constant 0 : index
    %11 = vector.load %arg4[%c0_8, %c0_9, %c0_10] : memref<1x1x2xf32, #tpu.memory_space<vmem>>, vector<1x1x2xf32>
    %12 = vector.shape_cast %11 : vector<1x1x2xf32> to vector<1x2xf32>
    %13 = vector.broadcast %12 : vector<1x2xf32> to vector<256x2xf32>
    %14 = arith.addf %10, %13 : vector<256x2xf32>
    %cst_11 = arith.constant 0.000000e+00 : f32
    %15 = vector.broadcast %cst_11 : f32 to vector<256x2xf32>
    %16 = arith.cmpf oge, %14, %15 : vector<256x2xf32>
    %cst_12 = arith.constant 1.000000e-01 : f32
    %17 = vector.broadcast %cst_12 : f32 to vector<256x2xf32>
    %18 = arith.mulf %17, %14 : vector<256x2xf32>
    %19 = arith.select %16, %14, %18 : vector<256x2xi1>, vector<256x2xf32>
    %20 = vector.shape_cast %19 : vector<256x2xf32> to vector<16x16x2xf32>
    %cst_13 = arith.constant 0.000000e+00 : f32
    %21 = vector.broadcast %cst_13 : f32 to vector<1x16x2xf32>
    %cst_14 = arith.constant 0.000000e+00 : f32
    %22 = vector.broadcast %cst_14 : f32 to vector<18x1x2xf32>
    %23 = tpu.concatenate %21, %20, %21 in 0 : vector<1x16x2xf32>, vector<16x16x2xf32>, vector<1x16x2xf32> -> vector<18x16x2xf32>
    %24 = tpu.concatenate %22, %23, %22 in 1 : vector<18x1x2xf32>, vector<18x16x2xf32>, vector<18x1x2xf32> -> vector<18x18x2xf32>
    %25 = vector.shape_cast %24 : vector<18x18x2xf32> to vector<324x2xf32>
    %cst_15 = arith.constant 0.000000e+00 : f32
    %26 = vector.broadcast %cst_15 : f32 to vector<2x2xf32>
    %27 = tpu.concatenate %25, %26 in 0 : vector<324x2xf32>, vector<2x2xf32> -> vector<326x2xf32>
    %28 = vector.extract_strided_slice %27 {offsets = [0, 0], sizes = [288, 2], strides = [1, 1]} : vector<326x2xf32> to vector<288x2xf32>
    %29 = vector.extract_strided_slice %27 {offsets = [1, 0], sizes = [288, 2], strides = [1, 1]} : vector<326x2xf32> to vector<288x2xf32>
    %30 = vector.extract_strided_slice %27 {offsets = [2, 0], sizes = [288, 2], strides = [1, 1]} : vector<326x2xf32> to vector<288x2xf32>
    %31 = vector.extract_strided_slice %27 {offsets = [18, 0], sizes = [288, 2], strides = [1, 1]} : vector<326x2xf32> to vector<288x2xf32>
    %32 = vector.extract_strided_slice %27 {offsets = [19, 0], sizes = [288, 2], strides = [1, 1]} : vector<326x2xf32> to vector<288x2xf32>
    %33 = vector.extract_strided_slice %27 {offsets = [20, 0], sizes = [288, 2], strides = [1, 1]} : vector<326x2xf32> to vector<288x2xf32>
    %34 = vector.extract_strided_slice %27 {offsets = [36, 0], sizes = [288, 2], strides = [1, 1]} : vector<326x2xf32> to vector<288x2xf32>
    %35 = vector.extract_strided_slice %27 {offsets = [37, 0], sizes = [288, 2], strides = [1, 1]} : vector<326x2xf32> to vector<288x2xf32>
    %36 = vector.extract_strided_slice %27 {offsets = [38, 0], sizes = [288, 2], strides = [1, 1]} : vector<326x2xf32> to vector<288x2xf32>
    %37 = tpu.concatenate %28, %29, %30, %31, %32, %33, %34, %35, %36 in 1 : vector<288x2xf32>, vector<288x2xf32>, vector<288x2xf32>, vector<288x2xf32>, vector<288x2xf32>, vector<288x2xf32>, vector<288x2xf32>, vector<288x2xf32>, vector<288x2xf32> -> vector<288x18xf32>
    %38 = arith.truncf %37 : vector<288x18xf32> to vector<288x18xbf16>
    %c0_16 = arith.constant 0 : index
    %c0_17 = arith.constant 0 : index
    %c0_18 = arith.constant 0 : index
    %39 = vector.load %arg5[%c0_16, %c0_17, %c0_18] : memref<1x18x4xbf16, #tpu.memory_space<vmem>>, vector<1x18x4xbf16>
    %40 = vector.shape_cast %39 : vector<1x18x4xbf16> to vector<18x4xbf16>
    %cst_19 = arith.constant dense<0.000000e+00> : vector<288x4xf32>
    %41 = tpu.matmul %38, %40, %cst_19 {dimension_numbers = #tpu.dot_dimension_numbers<[1], [0], [0], [1], [0, 0, 1, 1], [], []>} : vector<288x18xbf16>, vector<18x4xbf16>, vector<288x4xf32> -> vector<288x4xf32>
    %c0_20 = arith.constant 0 : index
    %c0_21 = arith.constant 0 : index
    %c0_22 = arith.constant 0 : index
    %42 = vector.load %arg6[%c0_20, %c0_21, %c0_22] : memref<1x1x4xf32, #tpu.memory_space<vmem>>, vector<1x1x4xf32>
    %43 = vector.shape_cast %42 : vector<1x1x4xf32> to vector<1x4xf32>
    %44 = vector.broadcast %43 : vector<1x4xf32> to vector<288x4xf32>
    %45 = arith.mulf %41, %44 : vector<288x4xf32>
    %c0_23 = arith.constant 0 : index
    %c0_24 = arith.constant 0 : index
    %c0_25 = arith.constant 0 : index
    %46 = vector.load %arg7[%c0_23, %c0_24, %c0_25] : memref<1x1x4xf32, #tpu.memory_space<vmem>>, vector<1x1x4xf32>
    %47 = vector.shape_cast %46 : vector<1x1x4xf32> to vector<1x4xf32>
    %48 = vector.broadcast %47 : vector<1x4xf32> to vector<288x4xf32>
    %49 = arith.addf %45, %48 : vector<288x4xf32>
    %cst_26 = arith.constant 0.000000e+00 : f32
    %50 = vector.broadcast %cst_26 : f32 to vector<288x4xf32>
    %51 = arith.cmpf oge, %49, %50 : vector<288x4xf32>
    %cst_27 = arith.constant 1.000000e-01 : f32
    %52 = vector.broadcast %cst_27 : f32 to vector<288x4xf32>
    %53 = arith.mulf %52, %49 : vector<288x4xf32>
    %54 = arith.select %51, %49, %53 : vector<288x4xi1>, vector<288x4xf32>
    %55 = vector.shape_cast %54 : vector<288x4xf32> to vector<16x18x4xf32>
    %56 = vector.extract_strided_slice %55 {offsets = [0, 0, 0], sizes = [16, 16, 4], strides = [1, 1, 1]} : vector<16x18x4xf32> to vector<16x16x4xf32>
    %57 = vector.shape_cast %56 : vector<16x16x4xf32> to vector<256x4xf32>
    %58 = arith.addf %2, %57 : vector<256x4xf32>
    %59 = arith.truncf %58 : vector<256x4xf32> to vector<256x4xbf16>
    %c0_28 = arith.constant 0 : index
    %c0_29 = arith.constant 0 : index
    %c0_30 = arith.constant 0 : index
    %60 = vector.load %arg8[%c0_28, %c0_29, %c0_30] : memref<1x256x4xbf16, #tpu.memory_space<vmem>>, vector<1x256x4xbf16>
    %61 = vector.shape_cast %60 : vector<1x256x4xbf16> to vector<256x4xbf16>
    %62 = vector.shape_cast %59 : vector<256x4xbf16> to vector<1x256x4xbf16>
    tpu.vector_store %arg8[%c0_28, %c0_29, %c0_30], %62 {strides = array<i32>} : memref<1x256x4xbf16, #tpu.memory_space<vmem>>, vector<1x256x4xbf16>,
    return
  }
  func.func @transform_0(%arg0: i32) -> (i32, i32, i32) {
    %c0_i32 = arith.constant 0 : i32
    %c0_i32_0 = arith.constant 0 : i32
    %c0_i32_1 = arith.constant 0 : i32
    return %arg0, %c0_i32, %c0_i32_0 : i32, i32, i32
  }
  func.func @transform_1(%arg0: i32) -> (i32, i32, i32) {
    %c0_i32 = arith.constant 0 : i32
    %c0_i32_0 = arith.constant 0 : i32
    %c0_i32_1 = arith.constant 0 : i32
    %c0_i32_2 = arith.constant 0 : i32
    return %c0_i32, %c0_i32_0, %c0_i32_1 : i32, i32, i32
  }
  func.func @transform_2(%arg0: i32) -> (i32, i32, i32) {
    %c0_i32 = arith.constant 0 : i32
    %c0_i32_0 = arith.constant 0 : i32
    %c0_i32_1 = arith.constant 0 : i32
    %c0_i32_2 = arith.constant 0 : i32
    return %c0_i32, %c0_i32_0, %c0_i32_1 : i32, i32, i32
  }
  func.func @transform_3(%arg0: i32) -> (i32, i32, i32) {
    %c0_i32 = arith.constant 0 : i32
    %c0_i32_0 = arith.constant 0 : i32
    %c0_i32_1 = arith.constant 0 : i32
    %c0_i32_2 = arith.constant 0 : i32
    return %c0_i32, %c0_i32_0, %c0_i32_1 : i32, i32, i32
  }
  func.func @transform_4(%arg0: i32) -> (i32, i32, i32) {
    %c0_i32 = arith.constant 0 : i32
    %c0_i32_0 = arith.constant 0 : i32
    %c0_i32_1 = arith.constant 0 : i32
    %c0_i32_2 = arith.constant 0 : i32
    return %c0_i32, %c0_i32_0, %c0_i32_1 : i32, i32, i32
  }
  func.func @transform_5(%arg0: i32) -> (i32, i32, i32) {
    %c0_i32 = arith.constant 0 : i32
    %c0_i32_0 = arith.constant 0 : i32
    %c0_i32_1 = arith.constant 0 : i32
    %c0_i32_2 = arith.constant 0 : i32
    return %c0_i32, %c0_i32_0, %c0_i32_1 : i32, i32, i32
  }
  func.func @transform_6(%arg0: i32) -> (i32, i32, i32) {
    %c0_i32 = arith.constant 0 : i32
    %c0_i32_0 = arith.constant 0 : i32
    %c0_i32_1 = arith.constant 0 : i32
    %c0_i32_2 = arith.constant 0 : i32
    return %c0_i32, %c0_i32_0, %c0_i32_1 : i32, i32, i32
  }
  func.func @transform_7(%arg0: i32) -> (i32, i32, i32) {
    %c0_i32 = arith.constant 0 : i32
    %c0_i32_0 = arith.constant 0 : i32
    %c0_i32_1 = arith.constant 0 : i32
    return %arg0, %c0_i32, %c0_i32_0 : i32, i32, i32
  }
}

module attributes {stable_mosaic.version = 11 : i64} {
  func.func @_csp_tail_kernel(%arg0: i32, %arg1: memref<256x4xbf16, #tpu.memory_space<vmem>>, %arg2: memref<256x4xf32, #tpu.memory_space<vmem>>, %arg3: memref<4x4xbf16, #tpu.memory_space<vmem>>, %arg4: memref<4x4xbf16, #tpu.memory_space<vmem>>, %arg5: memref<4x8xbf16, #tpu.memory_space<vmem>>, %arg6: memref<4x8xbf16, #tpu.memory_space<vmem>>, %arg7: memref<1x4xf32, #tpu.memory_space<vmem>>, %arg8: memref<1x4xf32, #tpu.memory_space<vmem>>, %arg9: memref<1x4xf32, #tpu.memory_space<vmem>>, %arg10: memref<1x4xf32, #tpu.memory_space<vmem>>, %arg11: memref<1x8xf32, #tpu.memory_space<vmem>>, %arg12: memref<1x8xf32, #tpu.memory_space<vmem>>, %arg13: memref<256x8xf32, #tpu.memory_space<vmem>>) attributes {dimension_semantics = [#tpu.dimension_semantics<parallel>], iteration_bounds = array<i64: 2>, scalar_prefetch = 0 : i64, scratch_operands = 0 : i64, tpu.core_type = #tpu.core_type<tc>, window_params = [{transform_indices = @transform_0, window_bounds = array<i64: 256, 4>}, {transform_indices = @transform_1, window_bounds = array<i64: 256, 4>}, {pipeline_mode = #tpu.pipeline_mode<synchronous>, transform_indices = @transform_2, window_bounds = array<i64: 4, 4>}, {pipeline_mode = #tpu.pipeline_mode<synchronous>, transform_indices = @transform_3, window_bounds = array<i64: 4, 4>}, {pipeline_mode = #tpu.pipeline_mode<synchronous>, transform_indices = @transform_4, window_bounds = array<i64: 4, 8>}, {pipeline_mode = #tpu.pipeline_mode<synchronous>, transform_indices = @transform_5, window_bounds = array<i64: 4, 8>}, {pipeline_mode = #tpu.pipeline_mode<synchronous>, transform_indices = @transform_6, window_bounds = array<i64: 1, 4>}, {pipeline_mode = #tpu.pipeline_mode<synchronous>, transform_indices = @transform_7, window_bounds = array<i64: 1, 4>}, {pipeline_mode = #tpu.pipeline_mode<synchronous>, transform_indices = @transform_8, window_bounds = array<i64: 1, 4>}, {pipeline_mode = #tpu.pipeline_mode<synchronous>, transform_indices = @transform_9, window_bounds = array<i64: 1, 4>}, {pipeline_mode = #tpu.pipeline_mode<synchronous>, transform_indices = @transform_10, window_bounds = array<i64: 1, 8>}, {pipeline_mode = #tpu.pipeline_mode<synchronous>, transform_indices = @transform_11, window_bounds = array<i64: 1, 8>}, {transform_indices = @transform_12, window_bounds = array<i64: 256, 8>}]} {
    %c0 = arith.constant 0 : index
    %c0_0 = arith.constant 0 : index
    %0 = vector.load %arg1[%c0, %c0_0] : memref<256x4xbf16, #tpu.memory_space<vmem>>, vector<256x4xbf16>
    %c0_1 = arith.constant 0 : index
    %c0_2 = arith.constant 0 : index
    %1 = vector.load %arg3[%c0_1, %c0_2] : memref<4x4xbf16, #tpu.memory_space<vmem>>, vector<4x4xbf16>
    %cst = arith.constant dense<0.000000e+00> : vector<256x4xf32>
    %2 = tpu.matmul %0, %1, %cst {dimension_numbers = #tpu.dot_dimension_numbers<[1], [0], [0], [1], [0, 0, 1, 1], [], []>} : vector<256x4xbf16>, vector<4x4xbf16>, vector<256x4xf32> -> vector<256x4xf32>
    %c0_3 = arith.constant 0 : index
    %c0_4 = arith.constant 0 : index
    %3 = vector.load %arg7[%c0_3, %c0_4] : memref<1x4xf32, #tpu.memory_space<vmem>>, vector<1x4xf32>
    %4 = vector.broadcast %3 : vector<1x4xf32> to vector<256x4xf32>
    %5 = arith.mulf %2, %4 : vector<256x4xf32>
    %c0_5 = arith.constant 0 : index
    %c0_6 = arith.constant 0 : index
    %6 = vector.load %arg8[%c0_5, %c0_6] : memref<1x4xf32, #tpu.memory_space<vmem>>, vector<1x4xf32>
    %7 = vector.broadcast %6 : vector<1x4xf32> to vector<256x4xf32>
    %8 = arith.addf %5, %7 : vector<256x4xf32>
    %cst_7 = arith.constant 0.000000e+00 : f32
    %9 = vector.broadcast %cst_7 : f32 to vector<256x4xf32>
    %10 = arith.cmpf oge, %8, %9 : vector<256x4xf32>
    %cst_8 = arith.constant 1.000000e-01 : f32
    %11 = vector.broadcast %cst_8 : f32 to vector<256x4xf32>
    %12 = arith.mulf %11, %8 : vector<256x4xf32>
    %13 = arith.select %10, %8, %12 : vector<256x4xi1>, vector<256x4xf32>
    %c0_9 = arith.constant 0 : index
    %c0_10 = arith.constant 0 : index
    %14 = vector.load %arg2[%c0_9, %c0_10] : memref<256x4xf32, #tpu.memory_space<vmem>>, vector<256x4xf32>
    %15 = arith.truncf %14 : vector<256x4xf32> to vector<256x4xbf16>
    %c0_11 = arith.constant 0 : index
    %c0_12 = arith.constant 0 : index
    %16 = vector.load %arg4[%c0_11, %c0_12] : memref<4x4xbf16, #tpu.memory_space<vmem>>, vector<4x4xbf16>
    %cst_13 = arith.constant dense<0.000000e+00> : vector<256x4xf32>
    %17 = tpu.matmul %15, %16, %cst_13 {dimension_numbers = #tpu.dot_dimension_numbers<[1], [0], [0], [1], [0, 0, 1, 1], [], []>} : vector<256x4xbf16>, vector<4x4xbf16>, vector<256x4xf32> -> vector<256x4xf32>
    %c0_14 = arith.constant 0 : index
    %c0_15 = arith.constant 0 : index
    %18 = vector.load %arg9[%c0_14, %c0_15] : memref<1x4xf32, #tpu.memory_space<vmem>>, vector<1x4xf32>
    %19 = vector.broadcast %18 : vector<1x4xf32> to vector<256x4xf32>
    %20 = arith.mulf %17, %19 : vector<256x4xf32>
    %c0_16 = arith.constant 0 : index
    %c0_17 = arith.constant 0 : index
    %21 = vector.load %arg10[%c0_16, %c0_17] : memref<1x4xf32, #tpu.memory_space<vmem>>, vector<1x4xf32>
    %22 = vector.broadcast %21 : vector<1x4xf32> to vector<256x4xf32>
    %23 = arith.addf %20, %22 : vector<256x4xf32>
    %cst_18 = arith.constant 0.000000e+00 : f32
    %24 = vector.broadcast %cst_18 : f32 to vector<256x4xf32>
    %25 = arith.cmpf oge, %23, %24 : vector<256x4xf32>
    %cst_19 = arith.constant 1.000000e-01 : f32
    %26 = vector.broadcast %cst_19 : f32 to vector<256x4xf32>
    %27 = arith.mulf %26, %23 : vector<256x4xf32>
    %28 = arith.select %25, %23, %27 : vector<256x4xi1>, vector<256x4xf32>
    %29 = arith.truncf %13 : vector<256x4xf32> to vector<256x4xbf16>
    %c0_20 = arith.constant 0 : index
    %c0_21 = arith.constant 0 : index
    %30 = vector.load %arg5[%c0_20, %c0_21] : memref<4x8xbf16, #tpu.memory_space<vmem>>, vector<4x8xbf16>
    %cst_22 = arith.constant dense<0.000000e+00> : vector<256x8xf32>
    %31 = tpu.matmul %29, %30, %cst_22 {dimension_numbers = #tpu.dot_dimension_numbers<[1], [0], [0], [1], [0, 0, 1, 1], [], []>} : vector<256x4xbf16>, vector<4x8xbf16>, vector<256x8xf32> -> vector<256x8xf32>
    %32 = arith.truncf %28 : vector<256x4xf32> to vector<256x4xbf16>
    %c0_23 = arith.constant 0 : index
    %c0_24 = arith.constant 0 : index
    %33 = vector.load %arg6[%c0_23, %c0_24] : memref<4x8xbf16, #tpu.memory_space<vmem>>, vector<4x8xbf16>
    %cst_25 = arith.constant dense<0.000000e+00> : vector<256x8xf32>
    %34 = tpu.matmul %32, %33, %cst_25 {dimension_numbers = #tpu.dot_dimension_numbers<[1], [0], [0], [1], [0, 0, 1, 1], [], []>} : vector<256x4xbf16>, vector<4x8xbf16>, vector<256x8xf32> -> vector<256x8xf32>
    %35 = arith.addf %31, %34 : vector<256x8xf32>
    %c0_26 = arith.constant 0 : index
    %c0_27 = arith.constant 0 : index
    %36 = vector.load %arg11[%c0_26, %c0_27] : memref<1x8xf32, #tpu.memory_space<vmem>>, vector<1x8xf32>
    %37 = vector.broadcast %36 : vector<1x8xf32> to vector<256x8xf32>
    %38 = arith.mulf %35, %37 : vector<256x8xf32>
    %c0_28 = arith.constant 0 : index
    %c0_29 = arith.constant 0 : index
    %39 = vector.load %arg12[%c0_28, %c0_29] : memref<1x8xf32, #tpu.memory_space<vmem>>, vector<1x8xf32>
    %40 = vector.broadcast %39 : vector<1x8xf32> to vector<256x8xf32>
    %41 = arith.addf %38, %40 : vector<256x8xf32>
    %cst_30 = arith.constant 0.000000e+00 : f32
    %42 = vector.broadcast %cst_30 : f32 to vector<256x8xf32>
    %43 = arith.cmpf oge, %41, %42 : vector<256x8xf32>
    %cst_31 = arith.constant 1.000000e-01 : f32
    %44 = vector.broadcast %cst_31 : f32 to vector<256x8xf32>
    %45 = arith.mulf %44, %41 : vector<256x8xf32>
    %46 = arith.select %43, %41, %45 : vector<256x8xi1>, vector<256x8xf32>
    %c0_32 = arith.constant 0 : index
    %c0_33 = arith.constant 0 : index
    %47 = vector.load %arg13[%c0_32, %c0_33] : memref<256x8xf32, #tpu.memory_space<vmem>>, vector<256x8xf32>
    tpu.vector_store %arg13[%c0_32, %c0_33], %46 {strides = array<i32>} : memref<256x8xf32, #tpu.memory_space<vmem>>, vector<256x8xf32>,
    return
  }
  func.func @transform_0(%arg0: i32) -> (i32, i32) {
    %c0_i32 = arith.constant 0 : i32
    %c0_i32_0 = arith.constant 0 : i32
    return %arg0, %c0_i32 : i32, i32
  }
  func.func @transform_1(%arg0: i32) -> (i32, i32) {
    %c0_i32 = arith.constant 0 : i32
    %c0_i32_0 = arith.constant 0 : i32
    return %arg0, %c0_i32 : i32, i32
  }
  func.func @transform_2(%arg0: i32) -> (i32, i32) {
    %c0_i32 = arith.constant 0 : i32
    %c0_i32_0 = arith.constant 0 : i32
    %c0_i32_1 = arith.constant 0 : i32
    return %c0_i32, %c0_i32_0 : i32, i32
  }
  func.func @transform_3(%arg0: i32) -> (i32, i32) {
    %c0_i32 = arith.constant 0 : i32
    %c0_i32_0 = arith.constant 0 : i32
    %c0_i32_1 = arith.constant 0 : i32
    return %c0_i32, %c0_i32_0 : i32, i32
  }
  func.func @transform_4(%arg0: i32) -> (i32, i32) {
    %c0_i32 = arith.constant 0 : i32
    %c0_i32_0 = arith.constant 0 : i32
    %c0_i32_1 = arith.constant 0 : i32
    return %c0_i32, %c0_i32_0 : i32, i32
  }
  func.func @transform_5(%arg0: i32) -> (i32, i32) {
    %c0_i32 = arith.constant 0 : i32
    %c0_i32_0 = arith.constant 0 : i32
    %c0_i32_1 = arith.constant 0 : i32
    return %c0_i32, %c0_i32_0 : i32, i32
  }
  func.func @transform_6(%arg0: i32) -> (i32, i32) {
    %c0_i32 = arith.constant 0 : i32
    %c0_i32_0 = arith.constant 0 : i32
    %c0_i32_1 = arith.constant 0 : i32
    return %c0_i32, %c0_i32_0 : i32, i32
  }
  func.func @transform_7(%arg0: i32) -> (i32, i32) {
    %c0_i32 = arith.constant 0 : i32
    %c0_i32_0 = arith.constant 0 : i32
    %c0_i32_1 = arith.constant 0 : i32
    return %c0_i32, %c0_i32_0 : i32, i32
  }
  func.func @transform_8(%arg0: i32) -> (i32, i32) {
    %c0_i32 = arith.constant 0 : i32
    %c0_i32_0 = arith.constant 0 : i32
    %c0_i32_1 = arith.constant 0 : i32
    return %c0_i32, %c0_i32_0 : i32, i32
  }
  func.func @transform_9(%arg0: i32) -> (i32, i32) {
    %c0_i32 = arith.constant 0 : i32
    %c0_i32_0 = arith.constant 0 : i32
    %c0_i32_1 = arith.constant 0 : i32
    return %c0_i32, %c0_i32_0 : i32, i32
  }
  func.func @transform_10(%arg0: i32) -> (i32, i32) {
    %c0_i32 = arith.constant 0 : i32
    %c0_i32_0 = arith.constant 0 : i32
    %c0_i32_1 = arith.constant 0 : i32
    return %c0_i32, %c0_i32_0 : i32, i32
  }
  func.func @transform_11(%arg0: i32) -> (i32, i32) {
    %c0_i32 = arith.constant 0 : i32
    %c0_i32_0 = arith.constant 0 : i32
    %c0_i32_1 = arith.constant 0 : i32
    return %c0_i32, %c0_i32_0 : i32, i32
  }
  func.func @transform_12(%arg0: i32) -> (i32, i32) {
    %c0_i32 = arith.constant 0 : i32
    %c0_i32_0 = arith.constant 0 : i32
    return %arg0, %c0_i32 : i32, i32
  }
}

</mosaic_0001>

<bundles_post_ra>
// kernel: _lambda_.3
= control target key start
LH: loop header
LB: loop body
LE: loop exit
PB: predicated region body
PF: predicated region fallthrough
CT: control target
= control target key end

     0   :  { %s1045_s15 = smov 0   ;;  %s1259_s0 = inlined_call_operand.vmem [shape: f32[512,4], index: 0, kind: input, shape index: {}]   ;;  %s1260_s1 = inlined_call_operand.vmem [shape: bf16[4,4], index: 1, kind: input, shape index: {}]   ;;  %s1261_s2 = inlined_call_operand.vmem [shape: f32[1,4], index: 2, kind: input, shape index: {}]   ;;  %s1262_s3 = inlined_call_operand.vmem [shape: f32[1,4], index: 3, kind: input, shape index: {}]   ;;  %s1263_s4 = inlined_call_operand.vmem [shape: bf16[512,4], index: 4, kind: output, shape index: {}]  }
   0x1 LB: > { %s856_s16 = sadd.s32 4294967295, %s1018_s15   ;;  %p860_p0 = scmp.ge.s32.totalorder %s1018_s15, 1  ;;  %s1018_s15 = sphi %s1045_s15, %s14_s15  }
   0x2   : > { %p163_p1 = scmp.lt.s32.totalorder %s1018_s15, 3 }
   0x4   : > { %p164_p2 = pnand %p860_p0, %p163_p1 }
   0x5   : > { %s861_s19 = sshll.u32 (!%p164_p2), %s856_s16, 5 }
   0x6   : > { %167 = sbr.rel (%p164_p2) target bundleno = 267 (0x10b), region = 36  ;;  %p190_p3 = scmp.lt.s32.totalorder (!%p164_p2), %s861_s19, 63 }
   0xb   : > { %v250_v0 = vld [vmem:[%s1260_s1] sm:$0x3]  ;;  %vm300_vm0 = vcmask 1041408   ;;  %s1265_s19 = smov (!%p190_p3, %s861_s19), 63  ;;  %vm251_vm1 = vcmask 31744   ;;  %vm767_vm2 = vcmask 27648  }
   0xc   : > { %1002 = vmatprep.subr.msk.bf16.mxu0 %vm300_vm0, %v250_v0  ;;  %1003 = vmatprep.subr.msk.bf16.mxu1 %vm300_vm0, %v250_v0  ;;  %v302_v1 = vsel %vm300_vm0, %v250_v0, 0  ;;  %s862_s20 = sshll.u32 %s1265_s19, 3  ;;  %v1115_v50 = vld [vmem:[%s1261_s2] ss:$0 sm:$0xff]  ;;  %s864_s28 = sshll.u32 %s1265_s19, 2 }
   0xd   : > { %967 = vmatpush3.bf16.msra.mxu0 %v302_v1  ;;  %1001 = vmatpush3.bf16.msra.mxu1 %v302_v1  ;;  %s1062_s23 = scalar_lea.vmem %s1259_s0, %s862_s20  ;;  %v1120_v52 = vld [vmem:[%s1262_s3] ss:$0 sm:$0xff]  ;;  %s1136_s5 = scalar_lea.vmem %s1263_s4, %s864_s28 }
   0xe   : > { %v202_v2 = vld [vmem:[%s1062_s23] sm:$0xff]  ;;  %v203_v3 = vld [vmem:[%s1062_s23 + $0x8] sm:$0xff]  ;;  %v204_v7 = vld [vmem:[%s1062_s23 + $0x10] sm:$0xff] }
   0xf   : > { %v218_v4 = vld [vmem:[%s1062_s23 + $0x80] sm:$0xff]  ;;  %v234_v5 = vpack.c.bf16 %v203_v3, %v202_v2  ;;  %v219_v6 = vld [vmem:[%s1062_s23 + $0x88] sm:$0xff]  ;;  %v205_v8 = vld [vmem:[%s1062_s23 + $0x18] sm:$0xff] }
  0x10   : > { %v242_v9 = vpack.c.bf16 %v219_v6, %v218_v4  ;;  %v235_v10 = vpack.c.bf16 %v205_v8, %v204_v7  ;;  %v220_v11 = vld [vmem:[%s1062_s23 + $0x90] sm:$0xff]  ;;  %v221_v12 = vld [vmem:[%s1062_s23 + $0x98] sm:$0xff]  ;;  %v206_v13 = vld [vmem:[%s1062_s23 + $0x20] sm:$0xff] }
  0x11   : > { %968 = vmatprep.mubr.msk.bf16.mxu0 %vm251_vm1, %v234_v5  ;;  %v243_v14 = vpack.c.bf16 %v221_v12, %v220_v11  ;;  %v207_v15 = vld [vmem:[%s1062_s23 + $0x28] sm:$0xff]  ;;  %v222_v16 = vld [vmem:[%s1062_s23 + $0xa0] sm:$0xff]  ;;  %v208_v20 = vld [vmem:[%s1062_s23 + $0x30] sm:$0xff] }
  0x12   : > { %v223_v17 = vld [vmem:[%s1062_s23 + $0xa8] sm:$0xff]  ;;  %984 = vmatprep.mubr.msk.bf16.mxu1 %vm251_vm1, %v242_v9  ;;  %969 = vmatmul.mubr.msk.bf16.vlgmr.msra.gmra.mxu0 %vm251_vm1, %v235_v10  ;;  %v236_v18 = vpack.c.bf16 %v207_v15, %v206_v13  ;;  %v209_v21 = vld [vmem:[%s1062_s23 + $0x38] sm:$0xff]  ;;  %v224_v22 = vld [vmem:[%s1062_s23 + $0xb0] sm:$0xff] }
  0x13   : > { %v244_v19 = vpack.c.bf16 %v223_v17, %v222_v16  ;;  %985 = vmatmul.mubr.msk.bf16.vlgmr.msra.gmra.mxu1 %vm251_vm1, %v243_v14  ;;  %v225_v23 = vld [vmem:[%s1062_s23 + $0xb8] sm:$0xff]  ;;  %v210_v24 = vld [vmem:[%s1062_s23 + $0x40] sm:$0xff]  ;;  %v211_v25 = vld [vmem:[%s1062_s23 + $0x48] sm:$0xff]  ;;  %v237_v28 = vpack.c.bf16 %v209_v21, %v208_v20 }
  0x14   : > { %972 = vmatprep.mubr.msk.bf16.mxu0 %vm251_vm1, %v236_v18  ;;  %v226_v26 = vld [vmem:[%s1062_s23 + $0xc0] sm:$0xff]  ;;  %v227_v27 = vld [vmem:[%s1062_s23 + $0xc8] sm:$0xff]  ;;  %v245_v29 = vpack.c.bf16 %v225_v23, %v224_v22  ;;  %v238_v30 = vpack.c.bf16 %v211_v25, %v210_v24  ;;  %v212_v32 = vld [vmem:[%s1062_s23 + $0x50] sm:$0xff] }
  0x15   : > { %988 = vmatprep.mubr.msk.bf16.mxu1 %vm251_vm1, %v244_v19  ;;  %v246_v31 = vpack.c.bf16 %v227_v27, %v226_v26  ;;  %v213_v33 = vld [vmem:[%s1062_s23 + $0x58] sm:$0xff]  ;;  %v228_v34 = vld [vmem:[%s1062_s23 + $0xd0] sm:$0xff]  ;;  %v214_v36 = vld [vmem:[%s1062_s23 + $0x60] sm:$0xff] }
  0x16   : > { %v229_v35 = vld [vmem:[%s1062_s23 + $0xd8] sm:$0xff]  ;;  %v215_v37 = vld [vmem:[%s1062_s23 + $0x68] sm:$0xff]  ;;  %v230_v38 = vld [vmem:[%s1062_s23 + $0xe0] sm:$0xff]  ;;  %v239_v40 = vpack.c.bf16 %v213_v33, %v212_v32 }
  0x17   : > { %v231_v39 = vld [vmem:[%s1062_s23 + $0xe8] sm:$0xff]  ;;  %v247_v41 = vpack.c.bf16 %v229_v35, %v228_v34  ;;  %v240_v42 = vpack.c.bf16 %v215_v37, %v214_v36  ;;  %v216_v44 = vld [vmem:[%s1062_s23 + $0x70] sm:$0xff]  ;;  %v217_v45 = vld [vmem:[%s1062_s23 + $0x78] sm:$0xff] }
  0x18   : > { %v248_v43 = vpack.c.bf16 %v231_v39, %v230_v38  ;;  %v232_v46 = vld [vmem:[%s1062_s23 + $0xf0] sm:$0xff]  ;;  %v233_v47 = vld [vmem:[%s1062_s23 + $0xf8] sm:$0xff]  ;;  %v241_v48 = vpack.c.bf16 %v217_v45, %v216_v44 }
  0x19   : > { %v249_v49 = vpack.c.bf16 %v233_v47, %v232_v46 }
  0x1a   : > { %973 = vmatmul.mubr.msk.bf16.gmra.mxu0 %vm251_vm1, %v237_v28 }
  0x1b   : > { %989 = vmatmul.mubr.msk.bf16.gmra.mxu1 %vm251_vm1, %v245_v29  ;;  %976 = vmatprep.mubr.msk.bf16.mxu0 %vm251_vm1, %v238_v30 }
  0x1c   : > { %992 = vmatprep.mubr.msk.bf16.mxu1 %vm251_vm1, %v246_v31 }
  0x22   : > { %977 = vmatmul.mubr.msk.bf16.gmra.mxu0 %vm251_vm1, %v239_v40 }
  0x23   : > { %993 = vmatmul.mubr.msk.bf16.gmra.mxu1 %vm251_vm1, %v247_v41  ;;  %980 = vmatprep.mubr.msk.bf16.mxu0 %vm251_vm1, %v240_v42 }
  0x24   : > { %996 = vmatprep.mubr.msk.bf16.mxu1 %vm251_vm1, %v248_v43 }
  0x2a   : > { %981 = vmatmul.mubr.msk.bf16.gmra.mxu0 %vm251_vm1, %v241_v48 }
  0x2b   : > { %997 = vmatmul.mubr.msk.bf16.gmra.mxu1 %vm251_vm1, %v249_v49 }
  0xd2   : > { %v970_v51 = vpop.f32.mrf.mxu0 }
  0xd3   : > { %v474_v53 = vmul.f32 %v970_v51, %v1115_v50  ;;  %v986_v54 = vpop.f32.mrf.mxu1 }
  0xd4   : > { %v490_v55 = vmul.f32 %v986_v54, %v1115_v50  ;;  %v338_v56 = vpop.f32.mrf.mxu0 }
  0xd5   : > { %v513_v57 = vadd.f32 %v1120_v52, %v474_v53  ;;  %v472_v58 = vmul.f32 %v1115_v50, %v338_v56  ;;  %v402_v59 = vpop.f32.mrf.mxu1 }
  0xd6   : > { %v529_v60 = vadd.f32 %v1120_v52, %v490_v55  ;;  %v488_v61 = vmul.f32 %v1115_v50, %v402_v59  ;;  %v971_v62 = vpop.f32.mrf.mxu0 }
  0xd7   : > { %vm545_vm3 = vcmp.ge.f32.partialorder %v513_v57, 0.0  ;;  %v577_v63 = vmul.f32 0.1, %v513_v57  ;;  %v511_v0 = vadd.f32 %v1120_v52, %v472_v58  ;;  %v475_v1 = vmul.f32 %v971_v62, %v1115_v50  ;;  %v987_v2 = vpop.f32.mrf.mxu1 }
  0xd8   : > { %vm561_vm4 = vcmp.ge.f32.partialorder %v529_v60, 0.0  ;;  %v593_v3 = vmul.f32 0.1, %v529_v60  ;;  %v527_v4 = vadd.f32 %v1120_v52, %v488_v61  ;;  %v491_v5 = vmul.f32 %v987_v2, %v1115_v50  ;;  %v341_v6 = vpop.f32.mrf.mxu0 }
  0xd9   : > { %v609_v7 = vsel %vm545_vm3, %v513_v57, %v577_v63  ;;  %vm543_vm5 = vcmp.ge.f32.partialorder %v511_v0, 0.0  ;;  %v575_v8 = vmul.f32 0.1, %v511_v0  ;;  %v514_v9 = vadd.f32 %v1120_v52, %v475_v1  ;;  %v405_v10 = vpop.f32.mrf.mxu1 }
  0xda   : > { %v919_v11 = vpack.c.bf16 %v609_v7, %v609_v7  ;;  %v625_v12 = vsel %vm561_vm4, %v529_v60, %v593_v3  ;;  %vm559_vm6 = vcmp.ge.f32.partialorder %v527_v4, 0.0  ;;  %v591_v13 = vmul.f32 0.1, %v527_v4  ;;  %v974_v14 = vpop.f32.mrf.mxu0 }
  0xdb   : > { %v935_v15 = vpack.c.bf16 %v625_v12, %v625_v12  ;;  %v607_v16 = vsel %vm543_vm5, %v511_v0, %v575_v8  ;;  %vm546_vm7 = vcmp.ge.f32.partialorder %v514_v9, 0.0  ;;  %v578_v17 = vmul.f32 0.1, %v514_v9  ;;  %v990_v18 = vpop.f32.mrf.mxu1 }
  0xdc   : > { %770 = vst.msk [vmem:[%s1136_s5 + $0x8] sm:$0xf] %vm767_vm2, %v919_v11  ;;  %v917_v19 = vpack.c.bf16 %v607_v16, %v607_v16  ;;  %v623_v20 = vsel %vm559_vm6, %v527_v4, %v591_v13  ;;  %v530_v21 = vadd.f32 %v1120_v52, %v491_v5  ;;  %v473_v22 = vmul.f32 %v1115_v50, %v341_v6  ;;  %v354_v23 = vpop.f32.mrf.mxu0 }
  0xdd   : > { %786 = vst.msk [vmem:[%s1136_s5 + $0x48] sm:$0xf] %vm767_vm2, %v935_v15  ;;  %v933_v24 = vpack.c.bf16 %v623_v20, %v623_v20  ;;  %v610_v25 = vsel %vm546_vm7, %v514_v9, %v578_v17  ;;  %v489_v26 = vmul.f32 %v1115_v50, %v405_v10  ;;  %v478_v27 = vmul.f32 %v974_v14, %v1115_v50  ;;  %v418_v28 = vpop.f32.mrf.mxu1 }
  0xde   : > { %768 = vst.msk [vmem:[%s1136_s5] sm:$0xf] %vm767_vm2, %v917_v19  ;;  %v920_v29 = vpack.c.bf16 %v610_v25, %v610_v25  ;;  %vm562_vm8 = vcmp.ge.f32.partialorder %v530_v21, 0.0  ;;  %v594_v30 = vmul.f32 0.1, %v530_v21  ;;  %v512_v31 = vadd.f32 %v1120_v52, %v473_v22  ;;  %v975_v32 = vpop.f32.mrf.mxu0 }
  0xdf   : > { %784 = vst.msk [vmem:[%s1136_s5 + $0x40] sm:$0xf] %vm767_vm2, %v933_v24  ;;  %v528_v33 = vadd.f32 %v1120_v52, %v489_v26  ;;  %v517_v34 = vadd.f32 %v1120_v52, %v478_v27  ;;  %v494_v35 = vmul.f32 %v990_v18, %v1115_v50  ;;  %v476_v36 = vmul.f32 %v1115_v50, %v354_v23  ;;  %v991_v37 = vpop.f32.mrf.mxu1 }
  0xe0   : > { %771 = vst.msk [vmem:[%s1136_s5 + $0xc] sm:$0xf] %vm767_vm2, %v920_v29  ;;  %v626_v38 = vsel %vm562_vm8, %v530_v21, %v594_v30  ;;  %vm544_vm9 = vcmp.ge.f32.partialorder %v512_v31, 0.0  ;;  %v576_v39 = vmul.f32 0.1, %v512_v31  ;;  %v492_v40 = vmul.f32 %v1115_v50, %v418_v28  ;;  %v357_v41 = vpop.f32.mrf.mxu0 }
  0xe1   : > { %v936_v42 = vpack.c.bf16 %v626_v38, %v626_v38  ;;  %vm560_vm10 = vcmp.ge.f32.partialorder %v528_v33, 0.0  ;;  %v592_v43 = vmul.f32 0.1, %v528_v33  ;;  %vm549_vm11 = vcmp.ge.f32.partialorder %v517_v34, 0.0  ;;  %v421_v44 = vpop.f32.mrf.mxu1 }
  0xe2   : > { %v608_v45 = vsel %vm544_vm9, %v512_v31, %v576_v39  ;;  %v581_v46 = vmul.f32 0.1, %v517_v34  ;;  %v533_v47 = vadd.f32 %v1120_v52, %v494_v35  ;;  %v515_v48 = vadd.f32 %v1120_v52, %v476_v36  ;;  %v978_v49 = vpop.f32.mrf.mxu0 }
  0xe3   : > { %787 = vst.msk [vmem:[%s1136_s5 + $0x4c] sm:$0xf] %vm767_vm2, %v936_v42  ;;  %v918_v51 = vpack.c.bf16 %v608_v45, %v608_v45  ;;  %v624_v53 = vsel %vm560_vm10, %v528_v33, %v592_v43  ;;  %v531_v54 = vadd.f32 %v1120_v52, %v492_v40  ;;  %v479_v55 = vmul.f32 %v975_v32, %v1115_v50  ;;  %v994_v56 = vpop.f32.mrf.mxu1 }
  0xe4   : > { %v934_v57 = vpack.c.bf16 %v624_v53, %v624_v53  ;;  %v613_v58 = vsel %vm549_vm11, %v517_v34, %v581_v46  ;;  %vm565_vm12 = vcmp.ge.f32.partialorder %v533_v47, 0.0  ;;  %v597_v59 = vmul.f32 0.1, %v533_v47  ;;  %v370_v60 = vpop.f32.mrf.mxu0 }
  0xe5   : > { %769 = vst.msk [vmem:[%s1136_s5 + $0x4] sm:$0xf] %vm767_vm2, %v918_v51  ;;  %v923_v61 = vpack.c.bf16 %v613_v58, %v613_v58  ;;  %vm547_vm13 = vcmp.ge.f32.partialorder %v515_v48, 0.0  ;;  %v579_v62 = vmul.f32 0.1, %v515_v48  ;;  %vm563_vm14 = vcmp.ge.f32.partialorder %v531_v54, 0.0  ;;  %v434_v63 = vpop.f32.mrf.mxu1 }
  0xe6   : > { %785 = vst.msk [vmem:[%s1136_s5 + $0x44] sm:$0xf] %vm767_vm2, %v934_v57  ;;  %v629_v0 = vsel %vm565_vm12, %v533_v47, %v597_v59  ;;  %v595_v1 = vmul.f32 0.1, %v531_v54  ;;  %v518_v2 = vadd.f32 %v1120_v52, %v479_v55  ;;  %v495_v3 = vmul.f32 %v991_v37, %v1115_v50  ;;  %v979_v11 = vpop.f32.mrf.mxu0 }
  0xe7   : > { %774 = vst.msk [vmem:[%s1136_s5 + $0x18] sm:$0xf] %vm767_vm2, %v923_v61  ;;  %v939_v4 = vpack.c.bf16 %v629_v0, %v629_v0  ;;  %v611_v5 = vsel %vm547_vm13, %v515_v48, %v579_v62  ;;  %v477_v6 = vmul.f32 %v1115_v50, %v357_v41  ;;  %v493_v7 = vmul.f32 %v1115_v50, %v421_v44  ;;  %v995_v12 = vpop.f32.mrf.mxu1 }
  0xe8   : > { %v921_v8 = vpack.c.bf16 %v611_v5, %v611_v5  ;;  %v627_v9 = vsel %vm563_vm14, %v531_v54, %v595_v1  ;;  %vm550_vm15 = vcmp.ge.f32.partialorder %v518_v2, 0.0  ;;  %v582_v10 = vmul.f32 0.1, %v518_v2  ;;  %v373_v26 = vpop.f32.mrf.mxu0 }
  0xe9   : > { %790 = vst.msk [vmem:[%s1136_s5 + $0x58] sm:$0xf] %vm767_vm2, %v939_v4  ;;  %v937_v13 = vpack.c.bf16 %v627_v9, %v627_v9  ;;  %v534_v14 = vadd.f32 %v1120_v52, %v495_v3  ;;  %v516_v15 = vadd.f32 %v1120_v52, %v477_v6  ;;  %v532_v16 = vadd.f32 %v1120_v52, %v493_v7  ;;  %v437_v27 = vpop.f32.mrf.mxu1 }
  0xea   : > { %772 = vst.msk [vmem:[%s1136_s5 + $0x10] sm:$0xf] %vm767_vm2, %v921_v8  ;;  %v614_v17 = vsel %vm550_vm15, %v518_v2, %v582_v10  ;;  %v482_v18 = vmul.f32 %v978_v49, %v1115_v50  ;;  %v498_v19 = vmul.f32 %v994_v56, %v1115_v50  ;;  %v480_v20 = vmul.f32 %v1115_v50, %v370_v60  ;;  %v982_v41 = vpop.f32.mrf.mxu0 }
  0xeb   : > { %788 = vst.msk [vmem:[%s1136_s5 + $0x50] sm:$0xf] %vm767_vm2, %v937_v13  ;;  %v924_v21 = vpack.c.bf16 %v614_v17, %v614_v17  ;;  %vm566_vm0 = vcmp.ge.f32.partialorder %v534_v14, 0.0  ;;  %v598_v22 = vmul.f32 0.1, %v534_v14  ;;  %vm548_vm1 = vcmp.ge.f32.partialorder %v516_v15, 0.0  ;;  %v998_v42 = vpop.f32.mrf.mxu1 }
  0xec   : > { %v580_v23 = vmul.f32 0.1, %v516_v15  ;;  %vm564_vm3 = vcmp.ge.f32.partialorder %v532_v16, 0.0  ;;  %v596_v24 = vmul.f32 0.1, %v532_v16  ;;  %v521_v25 = vadd.f32 %v1120_v52, %v482_v18  ;;  %v386_v60 = vpop.f32.mrf.mxu0 }
  0xed   : > { %775 = vst.msk [vmem:[%s1136_s5 + $0x1c] sm:$0xf] %vm767_vm2, %v924_v21  ;;  %v630_v28 = vsel %vm566_vm0, %v534_v14, %v598_v22  ;;  %v537_v29 = vadd.f32 %v1120_v52, %v498_v19  ;;  %v519_v30 = vadd.f32 %v1120_v52, %v480_v20  ;;  %v496_v31 = vmul.f32 %v1115_v50, %v434_v63  ;;  %v450_v61 = vpop.f32.mrf.mxu1 }
  0xee   : > { %v940_v32 = vpack.c.bf16 %v630_v28, %v630_v28  ;;  %v612_v33 = vsel %vm548_vm1, %v516_v15, %v580_v23  ;;  %v628_v34 = vsel %vm564_vm3, %v532_v16, %v596_v24  ;;  %vm553_vm4 = vcmp.ge.f32.partialorder %v521_v25, 0.0 }
  0xef   : > { %v922_v35 = vpack.c.bf16 %v612_v33, %v612_v33  ;;  %v938_v36 = vpack.c.bf16 %v628_v34, %v628_v34  ;;  %v585_v37 = vmul.f32 0.1, %v521_v25  ;;  %vm569_vm5 = vcmp.ge.f32.partialorder %v537_v29, 0.0 }
  0xf0   : > { %791 = vst.msk [vmem:[%s1136_s5 + $0x5c] sm:$0xf] %vm767_vm2, %v940_v32  ;;  %v601_v38 = vmul.f32 0.1, %v537_v29  ;;  %vm551_vm6 = vcmp.ge.f32.partialorder %v519_v30, 0.0  ;;  %v535_v40 = vadd.f32 %v1120_v52, %v496_v31  ;;  %v483_v44 = vmul.f32 %v979_v11, %v1115_v50  ;;  %v983_v11 = vpop.f32.mrf.mxu0 }
  0xf1   : > { %v583_v39 = vmul.f32 0.1, %v519_v30  ;;  %773 = vst.msk [vmem:[%s1136_s5 + $0x14] sm:$0xf] %vm767_vm2, %v922_v35  ;;  %789 = vst.msk [vmem:[%s1136_s5 + $0x54] sm:$0xf] %vm767_vm2, %v938_v36  ;;  %v617_v43 = vsel %vm553_vm4, %v521_v25, %v585_v37  ;;  %v499_v45 = vmul.f32 %v995_v12, %v1115_v50  ;;  %v481_v46 = vmul.f32 %v1115_v50, %v373_v26  ;;  %v999_v12 = vpop.f32.mrf.mxu1 }
  0xf2   : > { %v927_v47 = vpack.c.bf16 %v617_v43, %v617_v43  ;;  %v633_v48 = vsel %vm569_vm5, %v537_v29, %v601_v38  ;;  %vm567_vm7 = vcmp.ge.f32.partialorder %v535_v40, 0.0  ;;  %v599_v54 = vmul.f32 0.1, %v535_v40  ;;  %v389_v26 = vpop.f32.mrf.mxu0 }
  0xf3   : > { %v615_v49 = vsel %vm551_vm6, %v519_v30, %v583_v39  ;;  %v943_v51 = vpack.c.bf16 %v633_v48, %v633_v48  ;;  %v522_v55 = vadd.f32 %v1120_v52, %v483_v44  ;;  %v538_v56 = vadd.f32 %v1120_v52, %v499_v45 }
  0xf4   : > { %v925_v53 = vpack.c.bf16 %v615_v49, %v615_v49  ;;  %778 = vst.msk [vmem:[%s1136_s5 + $0x28] sm:$0xf] %vm767_vm2, %v927_v47  ;;  %v520_v57 = vadd.f32 %v1120_v52, %v481_v46  ;;  %v497_v58 = vmul.f32 %v1115_v50, %v437_v27  ;;  %v486_v59 = vmul.f32 %v982_v41, %v1115_v50  ;;  %v453_v27 = vpop.f32.mrf.mxu1 }
  0xf5   : > { %794 = vst.msk [vmem:[%s1136_s5 + $0x68] sm:$0xf] %vm767_vm2, %v943_v51  ;;  %v631_v62 = vsel %vm567_vm7, %v535_v40, %v599_v54  ;;  %vm554_vm8 = vcmp.ge.f32.partialorder %v522_v55, 0.0  ;;  %v586_v63 = vmul.f32 0.1, %v522_v55  ;;  %v502_v0 = vmul.f32 %v998_v42, %v1115_v50 }
  0xf6   : > { %776 = vst.msk [vmem:[%s1136_s5 + $0x20] sm:$0xf] %vm767_vm2, %v925_v53  ;;  %v941_v1 = vpack.c.bf16 %v631_v62, %v631_v62  ;;  %vm570_vm9 = vcmp.ge.f32.partialorder %v538_v56, 0.0  ;;  %v602_v2 = vmul.f32 0.1, %v538_v56  ;;  %vm552_vm10 = vcmp.ge.f32.partialorder %v520_v57, 0.0 }
  0xf7   : > { %v618_v3 = vsel %vm554_vm8, %v522_v55, %v586_v63  ;;  %v584_v4 = vmul.f32 0.1, %v520_v57  ;;  %v536_v5 = vadd.f32 %v1120_v52, %v497_v58  ;;  %v525_v6 = vadd.f32 %v1120_v52, %v486_v59 }
  0xf8   : > { %792 = vst.msk [vmem:[%s1136_s5 + $0x60] sm:$0xf] %vm767_vm2, %v941_v1  ;;  %v928_v7 = vpack.c.bf16 %v618_v3, %v618_v3  ;;  %v634_v8 = vsel %vm570_vm9, %v538_v56, %v602_v2  ;;  %v541_v9 = vadd.f32 %v1120_v52, %v502_v0  ;;  %v484_v10 = vmul.f32 %v1115_v50, %v386_v60 }
  0xf9   : > { %v944_v13 = vpack.c.bf16 %v634_v8, %v634_v8  ;;  %v616_v14 = vsel %vm552_vm10, %v520_v57, %v584_v4  ;;  %vm568_vm11 = vcmp.ge.f32.partialorder %v536_v5, 0.0  ;;  %v600_v15 = vmul.f32 0.1, %v536_v5 }
  0xfa   : > { %779 = vst.msk [vmem:[%s1136_s5 + $0x2c] sm:$0xf] %vm767_vm2, %v928_v7  ;;  %v926_v16 = vpack.c.bf16 %v616_v14, %v616_v14  ;;  %vm557_vm12 = vcmp.ge.f32.partialorder %v525_v6, 0.0  ;;  %v589_v17 = vmul.f32 0.1, %v525_v6  ;;  %vm573_vm13 = vcmp.ge.f32.partialorder %v541_v9, 0.0 }
  0xfb   : > { %795 = vst.msk [vmem:[%s1136_s5 + $0x6c] sm:$0xf] %vm767_vm2, %v944_v13  ;;  %v632_v18 = vsel %vm568_vm11, %v536_v5, %v600_v15  ;;  %v605_v19 = vmul.f32 0.1, %v541_v9  ;;  %v523_v20 = vadd.f32 %v1120_v52, %v484_v10  ;;  %v500_v21 = vmul.f32 %v1115_v50, %v450_v61 }
  0xfc   : > { %777 = vst.msk [vmem:[%s1136_s5 + $0x24] sm:$0xf] %vm767_vm2, %v926_v16  ;;  %v942_v22 = vpack.c.bf16 %v632_v18, %v632_v18  ;;  %v621_v23 = vsel %vm557_vm12, %v525_v6, %v589_v17  ;;  %v487_v24 = vmul.f32 %v983_v11, %v1115_v50  ;;  %v503_v25 = vmul.f32 %v999_v12, %v1115_v50 }
  0xfd   : > { %v931_v28 = vpack.c.bf16 %v621_v23, %v621_v23  ;;  %v637_v29 = vsel %vm573_vm13, %v541_v9, %v605_v19  ;;  %vm555_vm14 = vcmp.ge.f32.partialorder %v523_v20, 0.0  ;;  %v587_v30 = vmul.f32 0.1, %v523_v20 }
  0xfe   : > { %793 = vst.msk [vmem:[%s1136_s5 + $0x64] sm:$0xf] %vm767_vm2, %v942_v22  ;;  %v947_v31 = vpack.c.bf16 %v637_v29, %v637_v29  ;;  %v539_v32 = vadd.f32 %v1120_v52, %v500_v21  ;;  %v526_v33 = vadd.f32 %v1120_v52, %v487_v24  ;;  %v542_v34 = vadd.f32 %v1120_v52, %v503_v25 }
  0xff   : > { %782 = vst.msk [vmem:[%s1136_s5 + $0x38] sm:$0xf] %vm767_vm2, %v931_v28  ;;  %v619_v35 = vsel %vm555_vm14, %v523_v20, %v587_v30  ;;  %v485_v36 = vmul.f32 %v1115_v50, %v389_v26  ;;  %v501_v37 = vmul.f32 %v1115_v50, %v453_v27 }
 0x100   : > { %798 = vst.msk [vmem:[%s1136_s5 + $0x78] sm:$0xf] %vm767_vm2, %v947_v31  ;;  %v929_v38 = vpack.c.bf16 %v619_v35, %v619_v35  ;;  %vm571_vm15 = vcmp.ge.f32.partialorder %v539_v32, 0.0  ;;  %v603_v39 = vmul.f32 0.1, %v539_v32  ;;  %vm558_vm0 = vcmp.ge.f32.partialorder %v526_v33, 0.0 }
 0x101   : > { %v590_v40 = vmul.f32 0.1, %v526_v33  ;;  %vm574_vm1 = vcmp.ge.f32.partialorder %v542_v34, 0.0  ;;  %v606_v41 = vmul.f32 0.1, %v542_v34  ;;  %v524_v42 = vadd.f32 %v1120_v52, %v485_v36 }
 0x102   : > { %780 = vst.msk [vmem:[%s1136_s5 + $0x30] sm:$0xf] %vm767_vm2, %v929_v38  ;;  %v635_v43 = vsel %vm571_vm15, %v539_v32, %v603_v39  ;;  %v540_v44 = vadd.f32 %v1120_v52, %v501_v37 }
 0x103   : > { %v945_v50 = vpack.c.bf16 %v635_v43, %v635_v43  ;;  %v622_v45 = vsel %vm558_vm0, %v526_v33, %v590_v40  ;;  %v638_v46 = vsel %vm574_vm1, %v542_v34, %v606_v41  ;;  %vm556_vm3 = vcmp.ge.f32.partialorder %v524_v42, 0.0 }
 0x104   : > { %v932_v47 = vpack.c.bf16 %v622_v45, %v622_v45  ;;  %v948_v48 = vpack.c.bf16 %v638_v46, %v638_v46  ;;  %v588_v49 = vmul.f32 0.1, %v524_v42  ;;  %vm572_vm4 = vcmp.ge.f32.partialorder %v540_v44, 0.0 }
 0x105   : > { %796 = vst.msk [vmem:[%s1136_s5 + $0x70] sm:$0xf] %vm767_vm2, %v945_v50  ;;  %v604_v51 = vmul.f32 0.1, %v540_v44 }
 0x106   : > { %783 = vst.msk [vmem:[%s1136_s5 + $0x3c] sm:$0xf] %vm767_vm2, %v932_v47  ;;  %799 = vst.msk [vmem:[%s1136_s5 + $0x7c] sm:$0xf] %vm767_vm2, %v948_v48  ;;  %v620_v53 = vsel %vm556_vm3, %v524_v42, %v588_v49 }
 0x107   : > { %v930_v54 = vpack.c.bf16 %v620_v53, %v620_v53  ;;  %v636_v52 = vsel %vm572_vm4, %v540_v44, %v604_v51 }
 0x108   : > { %v946_v55 = vpack.c.bf16 %v636_v52, %v636_v52 }
 0x109   : > { %781 = vst.msk [vmem:[%s1136_s5 + $0x34] sm:$0xf] %vm767_vm2, %v930_v54 }
 0x10a   : > { %797 = vst.msk [vmem:[%s1136_s5 + $0x74] sm:$0xf] %vm767_vm2, %v946_v55 }
 0x10b PF: > { %s14_s15 = sadd.s32 1, %s1018_s15  }
 0x10c   : > { %p11_p4 = scmp.ge.s32.totalorder %s14_s15, 4  }
 0x10e   :  { %13 = sbr.rel (!%p11_p4) target bundleno = 1 (0x1), region = 66 }

// kernel: _lambda_.5
= control target key start
LH: loop header
LB: loop body
LE: loop exit
PB: predicated region body
PF: predicated region fallthrough
CT: control target
= control target key end

     0   :  { %s2513_s21 = smov 0   ;;  %s3099_s0 = inlined_call_operand.vmem [shape: bf16[512,4], index: 0, kind: input, shape index: {}]   ;;  %s3100_s1 = inlined_call_operand.vmem [shape: f32[512,4], index: 1, kind: input, shape index: {}]   ;;  %s3101_s2 = inlined_call_operand.vmem [shape: bf16[4,4], index: 2, kind: input, shape index: {}]   ;;  %s3102_s3 = inlined_call_operand.vmem [shape: bf16[4,4], index: 3, kind: input, shape index: {}]   ;;  %s3103_s4 = inlined_call_operand.vmem [shape: bf16[4,8], index: 4, kind: input, shape index: {}]   ;;  %s3104_s5 = inlined_call_operand.vmem [shape: bf16[4,8], index: 5, kind: input, shape index: {}]   ;;  %s3105_s6 = inlined_call_operand.vmem [shape: f32[1,4], index: 6, kind: input, shape index: {}]   ;;  %s3106_s7 = inlined_call_operand.vmem [shape: f32[1,4], index: 7, kind: input, shape index: {}]   ;;  %s3107_s8 = inlined_call_operand.vmem [shape: f32[1,4], index: 8, kind: input, shape index: {}]   ;;  %s3108_s9 = inlined_call_operand.vmem [shape: f32[1,4], index: 9, kind: input, shape index: {}]   ;;  %s3109_s10 = inlined_call_operand.vmem [shape: f32[1,8], index: 10, kind: input, shape index: {}]   ;;  %s3110_s11 = inlined_call_operand.vmem [shape: f32[1,8], index: 11, kind: input, shape index: {}]   ;;  %s3111_s12 = inlined_call_operand.vmem [shape: f32[512,8], index: 12, kind: output, shape index: {}]  }
   0x1 LB: > { %s2109_s22 = sadd.s32 4294967295, %s2446_s21   ;;  %p2113_p0 = scmp.ge.s32.totalorder %s2446_s21, 1  ;;  %s2446_s21 = sphi %s2513_s21, %s22_s21  }
   0x2   : > { %p374_p1 = scmp.lt.s32.totalorder %s2446_s21, 3 }
   0x4   : > { %p375_p2 = pnand %p2113_p0, %p374_p1 }
   0x5   : > { %s2114_s27 = sshll.u32 (!%p375_p2), %s2109_s22, 5 }
   0x6   : > { %378 = sbr.rel (%p375_p2) target bundleno = 516 (0x204), region = 68  ;;  %p422_p3 = scmp.lt.s32.totalorder (!%p375_p2), %s2114_s27, 63 }
   0xb   : > { %v472_v0 = vld [vmem:[%s3101_s2] sm:$0x3]  ;;  %vm602_vm0 = vcmask 1041408   ;;  %s3113_s27 = smov (!%p422_p3, %s2114_s27), 63  ;;  %vm553_vm1 = vcmask 31744  }
   0xc   : > { %v989_v1 = vld [vmem:[%s3102_s3] sm:$0x3]  ;;  %2412 = vmatprep.subr.msk.bf16.mxu0 %vm602_vm0, %v472_v0  ;;  %v604_v2 = vsel %vm602_vm0, %v472_v0, 0  ;;  %s2115_s14 = sshll.u32 %s3113_s27, 2  ;;  %s2117_s15 = sshll.u32 %s3113_s27, 3 }
   0xd   : > { %2413 = vmatprep.subr.msk.bf16.mxu1 %vm602_vm0, %v989_v1  ;;  %v1039_v3 = vsel %vm602_vm0, %v989_v1, 0  ;;  %v1409_v4 = vld [vmem:[%s3104_s5] sm:$0x3]  ;;  %2277 = vmatpush3.bf16.msra.mxu0 %v604_v2  ;;  %s2546_s18 = scalar_lea.vmem %s3099_s0, %s2115_s14  ;;  %s2553_s22 = scalar_lea.vmem %s3100_s1, %s2117_s15 }
   0xe   : > { %2311 = vmatpush3.bf16.msra.mxu1 %v1039_v3  ;;  %v1392_v5 = vld [vmem:[%s3103_s4] sm:$0x3]  ;;  %2414 = vmatprep.subr.msk.bf16.mxu0 %vm602_vm0, %v1409_v4  ;;  %v942_v8 = vld [vmem:[%s2553_s22 + $0x8] sm:$0xff]  ;;  %v943_v11 = vld [vmem:[%s2553_s22 + $0x10] sm:$0xff]  ;;  %v1459_v12 = vsel %vm602_vm0, %v1409_v4, 0 }
   0xf   : > { %2415 = vmatprep.subr.msk.bf16.mxu1 %vm602_vm0, %v1392_v5  ;;  %v2424_v6 = vld [vmem:[%s2546_s18] sm:$0xff]   ;;  %v2425_v10 = vld [vmem:[%s2546_s18 + $0x8] sm:$0xff]   ;;  %v944_v13 = vld [vmem:[%s2553_s22 + $0x18] sm:$0xff]  ;;  %v1671_v18 = vsel %vm602_vm0, %v1392_v5, 0 }
  0x10   : > { %v941_v7 = vld [vmem:[%s2553_s22] sm:$0xff]  ;;  %2278 = vmatprep.mubr.msk.bf16.mxu0 %vm553_vm1, %v2424_v6  ;;  %v974_v14 = vpack.c.bf16 %v944_v13, %v943_v11  ;;  %v2426_v15 = vld [vmem:[%s2546_s18 + $0x10] sm:$0xff]   ;;  %v946_v17 = vld [vmem:[%s2553_s22 + $0x28] sm:$0xff] }
  0x11   : > { %v973_v9 = vpack.c.bf16 %v942_v8, %v941_v7  ;;  %2279 = vmatmul.mubr.msk.bf16.vlgmr.msra.gmra.mxu0 %vm553_vm1, %v2425_v10  ;;  %v945_v16 = vld [vmem:[%s2553_s22 + $0x20] sm:$0xff]  ;;  %v2427_v20 = vld [vmem:[%s2546_s18 + $0x18] sm:$0xff]   ;;  %v947_v21 = vld [vmem:[%s2553_s22 + $0x30] sm:$0xff] }
  0x12   : > { %v975_v19 = vpack.c.bf16 %v946_v17, %v945_v16  ;;  %2345 = vmatpush3.bf16.msra.mxu0 %v1459_v12  ;;  %2282 = vmatprep.mubr.msk.bf16.mxu0 %vm553_vm1, %v2426_v15  ;;  %v948_v22 = vld [vmem:[%s2553_s22 + $0x38] sm:$0xff]  ;;  %v949_v23 = vld [vmem:[%s2553_s22 + $0x40] sm:$0xff]  ;;  %v950_v24 = vld [vmem:[%s2553_s22 + $0x48] sm:$0xff] }
  0x13   : > { %2312 = vmatprep.mubr.msk.bf16.mxu1 %vm553_vm1, %v973_v9  ;;  %v2428_v25 = vld [vmem:[%s2546_s18 + $0x20] sm:$0xff]   ;;  %v976_v26 = vpack.c.bf16 %v948_v22, %v947_v21  ;;  %v977_v27 = vpack.c.bf16 %v950_v24, %v949_v23  ;;  %v2429_v28 = vld [vmem:[%s2546_s18 + $0x28] sm:$0xff]   ;;  %v951_v29 = vld [vmem:[%s2553_s22 + $0x50] sm:$0xff] }
  0x14   : > { %2313 = vmatmul.mubr.msk.bf16.vlgmr.msra.gmra.mxu1 %vm553_vm1, %v974_v14  ;;  %v952_v30 = vld [vmem:[%s2553_s22 + $0x58] sm:$0xff]  ;;  %v953_v31 = vld [vmem:[%s2553_s22 + $0x60] sm:$0xff]  ;;  %v954_v32 = vld [vmem:[%s2553_s22 + $0x68] sm:$0xff] }
  0x15   : > { %2316 = vmatprep.mubr.msk.bf16.mxu1 %vm553_vm1, %v975_v19  ;;  %2379 = vmatpush3.bf16.msra.mxu1 %v1671_v18  ;;  %v2430_v33 = vld [vmem:[%s2546_s18 + $0x30] sm:$0xff]   ;;  %v978_v34 = vpack.c.bf16 %v952_v30, %v951_v29  ;;  %v979_v35 = vpack.c.bf16 %v954_v32, %v953_v31  ;;  %v956_v37 = vld [vmem:[%s2553_s22 + $0x78] sm:$0xff]  ;;  %v957_v39 = vld [vmem:[%s2553_s22 + $0x80] sm:$0xff] }
  0x16   : > { %v955_v36 = vld [vmem:[%s2553_s22 + $0x70] sm:$0xff]  ;;  %v2431_v38 = vld [vmem:[%s2546_s18 + $0x38] sm:$0xff]   ;;  %v958_v40 = vld [vmem:[%s2553_s22 + $0x88] sm:$0xff] }
  0x17   : > { %v2432_v41 = vld [vmem:[%s2546_s18 + $0x40] sm:$0xff]   ;;  %v980_v42 = vpack.c.bf16 %v956_v37, %v955_v36  ;;  %v981_v43 = vpack.c.bf16 %v958_v40, %v957_v39  ;;  %v959_v44 = vld [vmem:[%s2553_s22 + $0x90] sm:$0xff]  ;;  %v960_v45 = vld [vmem:[%s2553_s22 + $0x98] sm:$0xff] }
  0x18   : > { %v2433_v46 = vld [vmem:[%s2546_s18 + $0x48] sm:$0xff]   ;;  %v961_v47 = vld [vmem:[%s2553_s22 + $0xa0] sm:$0xff]  ;;  %v2434_v49 = vld [vmem:[%s2546_s18 + $0x50] sm:$0xff]   ;;  %v982_v50 = vpack.c.bf16 %v960_v45, %v959_v44 }
  0x19   : > { %2283 = vmatmul.mubr.msk.bf16.gmra.mxu0 %vm553_vm1, %v2427_v20  ;;  %v962_v48 = vld [vmem:[%s2553_s22 + $0xa8] sm:$0xff]  ;;  %v963_v52 = vld [vmem:[%s2553_s22 + $0xb0] sm:$0xff]  ;;  %v964_v53 = vld [vmem:[%s2553_s22 + $0xb8] sm:$0xff] }
  0x1a   : > { %2286 = vmatprep.mubr.msk.bf16.mxu0 %vm553_vm1, %v2428_v25  ;;  %v983_v51 = vpack.c.bf16 %v962_v48, %v961_v47  ;;  %v2435_v54 = vld [vmem:[%s2546_s18 + $0x58] sm:$0xff]   ;;  %v965_v55 = vld [vmem:[%s2553_s22 + $0xc0] sm:$0xff]  ;;  %v966_v56 = vld [vmem:[%s2553_s22 + $0xc8] sm:$0xff]  ;;  %v984_v58 = vpack.c.bf16 %v964_v53, %v963_v52 }
  0x1b   : > { %v2436_v57 = vld [vmem:[%s2546_s18 + $0x60] sm:$0xff]   ;;  %v985_v59 = vpack.c.bf16 %v966_v56, %v965_v55  ;;  %v967_v60 = vld [vmem:[%s2553_s22 + $0xd0] sm:$0xff]  ;;  %v968_v61 = vld [vmem:[%s2553_s22 + $0xd8] sm:$0xff] }
  0x1c   : > { %2317 = vmatmul.mubr.msk.bf16.gmra.mxu1 %vm553_vm1, %v976_v26  ;;  %v2437_v62 = vld [vmem:[%s2546_s18 + $0x68] sm:$0xff]   ;;  %v969_v63 = vld [vmem:[%s2553_s22 + $0xe0] sm:$0xff]  ;;  %v2438_v1 = vld [vmem:[%s2546_s18 + $0x70] sm:$0xff]   ;;  %v986_v2 = vpack.c.bf16 %v968_v61, %v967_v60 }
  0x1d   : > { %2320 = vmatprep.mubr.msk.bf16.mxu1 %vm553_vm1, %v977_v27  ;;  %v970_v0 = vld [vmem:[%s2553_s22 + $0xe8] sm:$0xff]  ;;  %v971_v4 = vld [vmem:[%s2553_s22 + $0xf0] sm:$0xff]  ;;  %v972_v5 = vld [vmem:[%s2553_s22 + $0xf8] sm:$0xff]  ;;  %s2969_s22 = scalar_lea.vmem %s3111_s12, %s2117_s15 }
  0x1e   : > { %v987_v3 = vpack.c.bf16 %v970_v0, %v969_v63  ;;  %v2439_v6 = vld [vmem:[%s2546_s18 + $0x78] sm:$0xff]   ;;  %v988_v7 = vpack.c.bf16 %v972_v5, %v971_v4  ;;  %v2640_v8 = vld [vmem:[%s3105_s6] ss:$0 sm:$0xff] }
  0x1f   : > { %v2645_v10 = vld [vmem:[%s3107_s8] ss:$0 sm:$0xff] }
  0x20   : > { %v2651_v14 = vld [vmem:[%s3106_s7] ss:$0 sm:$0xff] }
  0x21   : > { %2287 = vmatmul.mubr.msk.bf16.gmra.mxu0 %vm553_vm1, %v2429_v28  ;;  %v2657_v18 = vld [vmem:[%s3108_s9] ss:$0 sm:$0xff] }
  0x22   : > { %2290 = vmatprep.mubr.msk.bf16.mxu0 %vm553_vm1, %v2430_v33 }
  0x24   : > { %2321 = vmatmul.mubr.msk.bf16.gmra.mxu1 %vm553_vm1, %v978_v34 }
  0x25   : > { %2324 = vmatprep.mubr.msk.bf16.mxu1 %vm553_vm1, %v979_v35 }
  0x29   : > { %2291 = vmatmul.mubr.msk.bf16.gmra.mxu0 %vm553_vm1, %v2431_v38 }
  0x2a   : > { %2294 = vmatprep.mubr.msk.bf16.mxu0 %vm553_vm1, %v2432_v41 }
  0x2c   : > { %2325 = vmatmul.mubr.msk.bf16.gmra.mxu1 %vm553_vm1, %v980_v42 }
  0x2d   : > { %2328 = vmatprep.mubr.msk.bf16.mxu1 %vm553_vm1, %v981_v43 }
  0x31   : > { %2295 = vmatmul.mubr.msk.bf16.gmra.mxu0 %vm553_vm1, %v2433_v46 }
  0x32   : > { %2298 = vmatprep.mubr.msk.bf16.mxu0 %vm553_vm1, %v2434_v49 }
  0x34   : > { %2329 = vmatmul.mubr.msk.bf16.gmra.mxu1 %vm553_vm1, %v982_v50 }
  0x35   : > { %2332 = vmatprep.mubr.msk.bf16.mxu1 %vm553_vm1, %v983_v51 }
  0x39   : > { %2299 = vmatmul.mubr.msk.bf16.gmra.mxu0 %vm553_vm1, %v2435_v54 }
  0x3a   : > { %2302 = vmatprep.mubr.msk.bf16.mxu0 %vm553_vm1, %v2436_v57 }
  0x3c   : > { %2333 = vmatmul.mubr.msk.bf16.gmra.mxu1 %vm553_vm1, %v984_v58 }
  0x3d   : > { %2336 = vmatprep.mubr.msk.bf16.mxu1 %vm553_vm1, %v985_v59 }
  0x41   : > { %2303 = vmatmul.mubr.msk.bf16.gmra.mxu0 %vm553_vm1, %v2437_v62 }
  0x42   : > { %2306 = vmatprep.mubr.msk.bf16.mxu0 %vm553_vm1, %v2438_v1 }
  0x44   : > { %2337 = vmatmul.mubr.msk.bf16.gmra.mxu1 %vm553_vm1, %v986_v2 }
  0x45   : > { %2340 = vmatprep.mubr.msk.bf16.mxu1 %vm553_vm1, %v987_v3 }
  0x49   : > { %2307 = vmatmul.mubr.msk.bf16.gmra.mxu0 %vm553_vm1, %v2439_v6 }
  0x4c   : > { %2341 = vmatmul.mubr.msk.bf16.gmra.mxu1 %vm553_vm1, %v988_v7 }
  0xd1   : > { %v2280_v9 = vpop.f32.mrf.mxu0 }
  0xd2   : > { %v776_v11 = vmul.f32 %v2280_v9, %v2640_v8 }
  0xd3   : > { %v640_v13 = vpop.f32.mrf.mxu0 }
  0xd4   : > { %v2314_v12 = vpop.f32.mrf.mxu1  ;;  %v815_v19 = vadd.f32 %v2651_v14, %v776_v11  ;;  %v774_v23 = vmul.f32 %v2640_v8, %v640_v13 }
  0xd5   : > { %v1211_v15 = vmul.f32 %v2314_v12, %v2645_v10  ;;  %v2281_v17 = vpop.f32.mrf.mxu0 }
  0xd6   : > { %v1075_v16 = vpop.f32.mrf.mxu1  ;;  %v777_v20 = vmul.f32 %v2281_v17, %v2640_v8  ;;  %v879_v31 = vmul.f32 0.1, %v815_v19  ;;  %vm847_vm2 = vcmp.ge.f32.partialorder %v815_v19, 0.0  ;;  %v813_v35 = vadd.f32 %v2651_v14, %v774_v23 }
  0xd7   : > { %v643_v22 = vpop.f32.mrf.mxu0  ;;  %v1250_v24 = vadd.f32 %v2657_v18, %v1211_v15  ;;  %v1209_v25 = vmul.f32 %v2645_v10, %v1075_v16 }
  0xd8   : > { %v2315_v21 = vpop.f32.mrf.mxu1  ;;  %v816_v29 = vadd.f32 %v2651_v14, %v777_v20  ;;  %v775_v30 = vmul.f32 %v2640_v8, %v643_v22  ;;  %v2673_v44 = vsel %vm847_vm2, %v815_v19, %v879_v31  ;;  %vm845_vm5 = vcmp.ge.f32.partialorder %v813_v35, 0.0 }
  0xd9   : > { %v1212_v26 = vmul.f32 %v2315_v21, %v2645_v10  ;;  %v2284_v28 = vpop.f32.mrf.mxu0  ;;  %v1314_v38 = vmul.f32 0.1, %v1250_v24  ;;  %v1248_v39 = vadd.f32 %v2657_v18, %v1209_v25  ;;  %vm1282_vm3 = vcmp.ge.f32.partialorder %v1250_v24, 0.0 }
  0xda   : > { %v1078_v27 = vpop.f32.mrf.mxu1  ;;  %v780_v37 = vmul.f32 %v2284_v28, %v2640_v8  ;;  %v880_v42 = vmul.f32 0.1, %v816_v29  ;;  %v814_v43 = vadd.f32 %v2651_v14, %v775_v30  ;;  %vm848_vm4 = vcmp.ge.f32.partialorder %v816_v29, 0.0 }
  0xdb   : > { %v1210_v32 = vmul.f32 %v2645_v10, %v1078_v27  ;;  %v656_v34 = vpop.f32.mrf.mxu0  ;;  %v1251_v36 = vadd.f32 %v2657_v18, %v1212_v26  ;;  %v877_v49 = vmul.f32 0.1, %v813_v35  ;;  %v2677_v51 = vsel %vm1282_vm3, %v1250_v24, %v1314_v38 }
  0xdc   : > { %v2318_v33 = vpop.f32.mrf.mxu1  ;;  %v819_v50 = vadd.f32 %v2651_v14, %v780_v37  ;;  %vm1280_vm7 = vcmp.ge.f32.partialorder %v1248_v39, 0.0  ;;  %v778_v53 = vmul.f32 %v2640_v8, %v656_v34  ;;  %v1312_v56 = vmul.f32 0.1, %v1248_v39 }
  0xdd   : > { %v2285_v41 = vpop.f32.mrf.mxu0  ;;  %v1315_v45 = vmul.f32 0.1, %v1251_v36  ;;  %v1249_v46 = vadd.f32 %v2657_v18, %v1210_v32  ;;  %vm1283_vm6 = vcmp.ge.f32.partialorder %v1251_v36, 0.0  ;;  %v1215_v52 = vmul.f32 %v2318_v33, %v2645_v10 }
  0xde   : > { %v1091_v40 = vpop.f32.mrf.mxu1  ;;  %v912_v57 = vsel %vm848_vm4, %v816_v29, %v880_v42  ;;  %vm846_vm8 = vcmp.ge.f32.partialorder %v814_v43, 0.0  ;;  %v878_v58 = vmul.f32 0.1, %v814_v43  ;;  %v781_v62 = vmul.f32 %v2285_v41, %v2640_v8 }
  0xdf   : > { %v659_v48 = vpop.f32.mrf.mxu0  ;;  %v1347_v59 = vsel %vm1283_vm6, %v1251_v36, %v1315_v45  ;;  %v1313_v60 = vmul.f32 0.1, %v1249_v46  ;;  %v1213_v61 = vmul.f32 %v2645_v10, %v1091_v40  ;;  %vm1281_vm9 = vcmp.ge.f32.partialorder %v1249_v46, 0.0 }
  0xe0   : > { %v2319_v47 = vpop.f32.mrf.mxu1  ;;  %v883_v1 = vmul.f32 0.1, %v819_v50  ;;  %vm851_vm10 = vcmp.ge.f32.partialorder %v819_v50, 0.0  ;;  %v1254_v4 = vadd.f32 %v2657_v18, %v1215_v52  ;;  %v817_v5 = vadd.f32 %v2651_v14, %v778_v53 }
  0xe1   : > { %v2288_v55 = vpop.f32.mrf.mxu0  ;;  %v1216_v2 = vmul.f32 %v2319_v47, %v2645_v10  ;;  %v779_v6 = vmul.f32 %v2640_v8, %v659_v48  ;;  %v909_v11 = vsel %vm845_vm5, %v813_v35, %v877_v49  ;;  %v1344_v12 = vsel %vm1280_vm7, %v1248_v39, %v1312_v56 }
  0xe2   : > { %v1094_v54 = vpop.f32.mrf.mxu1  ;;  %v1377_v13 = vpack.c.bf16 %v912_v57, %v2673_v44  ;;  %v1394_v15 = vpack.c.bf16 %v1347_v59, %v2677_v51  ;;  %v910_v16 = vsel %vm846_vm8, %v814_v43, %v878_v58  ;;  %v1345_v17 = vsel %vm1281_vm9, %v1249_v46, %v1313_v60 }
  0xe3   : > { %v672_v0 = vpop.f32.mrf.mxu0  ;;  %v1214_v3 = vmul.f32 %v2645_v10, %v1094_v54  ;;  %v1252_v19 = vadd.f32 %v2657_v18, %v1213_v61  ;;  %v820_v20 = vadd.f32 %v2651_v14, %v781_v62  ;;  %v2697_v23 = vsel %vm851_vm10, %v819_v50, %v883_v1 }
  0xe4   : > { %v2322_v63 = vpop.f32.mrf.mxu1  ;;  %v1255_v24 = vadd.f32 %v2657_v18, %v1216_v2  ;;  %v784_v26 = vmul.f32 %v2288_v55, %v2640_v8  ;;  %vm1286_vm11 = vcmp.ge.f32.partialorder %v1254_v4, 0.0  ;;  %v1318_v27 = vmul.f32 0.1, %v1254_v4 }
  0xe5   : > { %v2289_v9 = vpop.f32.mrf.mxu0  ;;  %v1253_v25 = vadd.f32 %v2657_v18, %v1214_v3  ;;  %vm849_vm12 = vcmp.ge.f32.partialorder %v817_v5, 0.0  ;;  %v818_v28 = vadd.f32 %v2651_v14, %v779_v6  ;;  %v881_v31 = vmul.f32 0.1, %v817_v5 }
  0xe6   : > { %v1107_v7 = vpop.f32.mrf.mxu1  ;;  %v1219_v32 = vmul.f32 %v2322_v63, %v2645_v10  ;;  %v1393_v33 = vpack.c.bf16 %v1345_v17, %v1344_v12  ;;  %v1376_v34 = vpack.c.bf16 %v910_v16, %v909_v11  ;;  %vm1284_vm13 = vcmp.ge.f32.partialorder %v1252_v19, 0.0 }
  0xe7   : > { %v675_v22 = vpop.f32.mrf.mxu0  ;;  %v1316_v35 = vmul.f32 0.1, %v1252_v19  ;;  %v884_v36 = vmul.f32 0.1, %v820_v20  ;;  %v782_v37 = vmul.f32 %v2640_v8, %v672_v0  ;;  %vm852_vm14 = vcmp.ge.f32.partialorder %v820_v20, 0.0 }
  0xe8   : > { %v2323_v21 = vpop.f32.mrf.mxu1  ;;  %v1319_v40 = vmul.f32 0.1, %v1255_v24  ;;  %v1317_v41 = vmul.f32 0.1, %v1253_v25  ;;  %v823_v42 = vadd.f32 %v2651_v14, %v784_v26  ;;  %2346 = vmatprep.mubr.msk.bf16.mxu0 %vm553_vm1, %v1393_v33  ;;  %2380 = vmatprep.mubr.msk.bf16.mxu1 %vm553_vm1, %v1376_v34  ;;  %vm1287_vm15 = vcmp.ge.f32.partialorder %v1255_v24, 0.0 }
  0xe9   : > { %v2292_v30 = vpop.f32.mrf.mxu0  ;;  %v882_v43 = vmul.f32 0.1, %v818_v28  ;;  %vm1285_vm0 = vcmp.ge.f32.partialorder %v1253_v25, 0.0  ;;  %v1258_v44 = vadd.f32 %v2657_v18, %v1219_v32  ;;  %2347 = vmatmul.mubr.msk.bf16.vlgmr.msra.gmra.mxu0 %vm553_vm1, %v1394_v15  ;;  %2381 = vmatmul.mubr.msk.bf16.vlgmr.msra.gmra.mxu1 %vm553_vm1, %v1377_v13  ;;  %v1350_v47 = vsel %vm1286_vm11, %v1254_v4, %v1318_v27 }
  0xea   : > { %v1110_v29 = vpop.f32.mrf.mxu1  ;;  %v913_v48 = vsel %vm849_vm12, %v817_v5, %v881_v31  ;;  %vm850_vm2 = vcmp.ge.f32.partialorder %v818_v28, 0.0  ;;  %v1217_v49 = vmul.f32 %v2645_v10, %v1107_v7  ;;  %v1348_v50 = vsel %vm1284_vm13, %v1252_v19, %v1316_v35 }
  0xeb   : > { %v2705_v39 = vpop.f32.mrf.mxu0  ;;  %v916_v51 = vsel %vm852_vm14, %v820_v20, %v884_v36  ;;  %v821_v52 = vadd.f32 %v2651_v14, %v782_v37  ;;  %v785_v53 = vmul.f32 %v2289_v9, %v2640_v8  ;;  %v1351_v56 = vsel %vm1287_vm15, %v1255_v24, %v1319_v40 }
  0xec   : > { %v2326_v38 = vpop.f32.mrf.mxu1  ;;  %v1349_v57 = vsel %vm1285_vm0, %v1253_v25, %v1317_v41  ;;  %v887_v58 = vmul.f32 0.1, %v823_v42  ;;  %v1220_v59 = vmul.f32 %v2323_v21, %v2645_v10  ;;  %v914_v60 = vsel %vm850_vm2, %v818_v28, %v882_v43 }
  0xed   : > { %v2713_v46 = vpop.f32.mrf.mxu0  ;;  %vm855_vm3 = vcmp.ge.f32.partialorder %v823_v42, 0.0  ;;  %v1322_v61 = vmul.f32 0.1, %v1258_v44  ;;  %v783_v62 = vmul.f32 %v2640_v8, %v675_v22  ;;  %vm1290_vm4 = vcmp.ge.f32.partialorder %v1258_v44, 0.0 }
  0xee   : > { %v1123_v45 = vpop.f32.mrf.mxu1  ;;  %v1256_v1 = vadd.f32 %v2657_v18, %v1217_v49  ;;  %v1218_v2 = vmul.f32 %v2645_v10, %v1110_v29  ;;  %v788_v3 = vmul.f32 %v2292_v30, %v2640_v8  ;;  %v885_v4 = vmul.f32 0.1, %v821_v52 }
  0xef   : > { %v691_v55 = vpop.f32.mrf.mxu0  ;;  %v824_v5 = vadd.f32 %v2651_v14, %v785_v53  ;;  %v1223_v6 = vmul.f32 %v2326_v38, %v2645_v10  ;;  %v1395_v7 = vpack.c.bf16 %v1349_v57, %v1348_v50  ;;  %v2735_v12 = vsel %vm855_vm3, %v823_v42, %v887_v58 }
  0xf0   : > { %v2327_v54 = vpop.f32.mrf.mxu1  ;;  %vm853_vm5 = vcmp.ge.f32.partialorder %v821_v52, 0.0  ;;  %v1259_v13 = vadd.f32 %v2657_v18, %v1220_v59  ;;  %v1257_v15 = vadd.f32 %v2657_v18, %v1218_v2  ;;  %v2739_v16 = vsel %vm1290_vm4, %v1258_v44, %v1322_v61 }
  0xf1   : > { %v2726_v0 = vpop.f32.mrf.mxu0  ;;  %v822_v17 = vadd.f32 %v2651_v14, %v783_v62  ;;  %2350 = vmatprep.mubr.msk.bf16.mxu0 %vm553_vm1, %v1395_v7  ;;  %v1378_v19 = vpack.c.bf16 %v914_v60, %v913_v48  ;;  %v1396_v20 = vpack.c.bf16 %v1351_v56, %v1350_v47  ;;  %vm1288_vm6 = vcmp.ge.f32.partialorder %v1256_v1, 0.0 }
  0xf2   : > { %v1126_v63 = vpop.f32.mrf.mxu1  ;;  %v827_v24 = vadd.f32 %v2651_v14, %v788_v3  ;;  %v1262_v25 = vadd.f32 %v2657_v18, %v1223_v6  ;;  %v1379_v26 = vpack.c.bf16 %v916_v51, %v2697_v23  ;;  %v917_v27 = vsel %vm853_vm5, %v821_v52, %v885_v4 }
  0xf3   : > { %v2733_v11 = vpop.f32.mrf.mxu0  ;;  %v1320_v28 = vmul.f32 0.1, %v1256_v1  ;;  %vm856_vm7 = vcmp.ge.f32.partialorder %v824_v5, 0.0  ;;  %2384 = vmatprep.mubr.msk.bf16.mxu1 %vm553_vm1, %v1378_v19  ;;  %2351 = vmatmul.mubr.msk.bf16.gmra.mxu0 %vm553_vm1, %v1396_v20  ;;  %v786_v29 = vmul.f32 %v2640_v8, %v2705_v39  ;;  %v888_v32 = vmul.f32 0.1, %v824_v5 }
  0xf4   : > { %v2330_v9 = vpop.f32.mrf.mxu1  ;;  %vm1291_vm8 = vcmp.ge.f32.partialorder %v1259_v13, 0.0  ;;  %v1321_v33 = vmul.f32 0.1, %v1257_v15  ;;  %2385 = vmatmul.mubr.msk.bf16.gmra.mxu1 %vm553_vm1, %v1379_v26  ;;  %v1221_v23 = vmul.f32 %v2645_v10, %v1123_v45  ;;  %v1323_v34 = vmul.f32 0.1, %v1259_v13 }
  0xf5   : > { %v2745_v22 = vpop.f32.mrf.mxu0  ;;  %vm854_vm9 = vcmp.ge.f32.partialorder %v822_v17, 0.0  ;;  %v886_v35 = vmul.f32 0.1, %v822_v17  ;;  %vm1289_vm10 = vcmp.ge.f32.partialorder %v1257_v15, 0.0  ;;  %v891_v38 = vmul.f32 0.1, %v827_v24 }
  0xf6   : > { %v2743_v21 = vpop.f32.mrf.mxu1  ;;  %v1326_v39 = vmul.f32 0.1, %v1262_v25  ;;  %v789_v40 = vmul.f32 %v2713_v46, %v2640_v8  ;;  %v1224_v41 = vmul.f32 %v2327_v54, %v2645_v10  ;;  %vm859_vm11 = vcmp.ge.f32.partialorder %v827_v24, 0.0 }
  0xf7   : > { %v2756_v31 = vpop.f32.mrf.mxu0  ;;  %vm1294_vm12 = vcmp.ge.f32.partialorder %v1262_v25, 0.0  ;;  %v825_v42 = vadd.f32 %v2651_v14, %v786_v29  ;;  %v787_v43 = vmul.f32 %v2640_v8, %v691_v55  ;;  %v1352_v47 = vsel %vm1288_vm6, %v1256_v1, %v1320_v28 }
  0xf8   : > { %v2754_v30 = vpop.f32.mrf.mxu1  ;;  %v1353_v48 = vsel %vm1289_vm10, %v1257_v15, %v1321_v33  ;;  %v1260_v49 = vadd.f32 %v2657_v18, %v1221_v23  ;;  %v1222_v50 = vmul.f32 %v2645_v10, %v1126_v63  ;;  %v920_v46 = vsel %vm856_vm7, %v824_v5, %v888_v32 }
  0xf9   : > { %v2762_v37 = vpop.f32.mrf.mxu0  ;;  %v1355_v51 = vsel %vm1291_vm8, %v1259_v13, %v1323_v34  ;;  %v918_v52 = vsel %vm854_vm9, %v822_v17, %v886_v35  ;;  %v792_v53 = vmul.f32 %v2726_v0, %v2640_v8  ;;  %v2783_v55 = vsel %vm859_vm11, %v827_v24, %v891_v38 }
  0xfa   : > { %v2760_v36 = vpop.f32.mrf.mxu1  ;;  %v2785_v56 = vsel %vm1294_vm12, %v1262_v25, %v1326_v39  ;;  %v828_v57 = vadd.f32 %v2651_v14, %v789_v40  ;;  %v1263_v58 = vadd.f32 %v2657_v18, %v1224_v41  ;;  %vm857_vm13 = vcmp.ge.f32.partialorder %v825_v42, 0.0 }
  0xfb   : > { %v2771_v45 = vpop.f32.mrf.mxu0  ;;  %v826_v60 = vadd.f32 %v2651_v14, %v787_v43  ;;  %v1227_v61 = vmul.f32 %v2330_v9, %v2645_v10  ;;  %v1397_v62 = vpack.c.bf16 %v1353_v48, %v1352_v47  ;;  %v889_v63 = vmul.f32 0.1, %v825_v42 }
  0xfc   : > { %v2769_v44 = vpop.f32.mrf.mxu1  ;;  %vm1292_vm14 = vcmp.ge.f32.partialorder %v1260_v49, 0.0  ;;  %v1261_v0 = vadd.f32 %v2657_v18, %v1222_v50  ;;  %v1380_v1 = vpack.c.bf16 %v918_v52, %v917_v27  ;;  %v1324_v3 = vmul.f32 0.1, %v1260_v49 }
  0xfd   : > { %v2789_v59 = vpop.f32.mrf.mxu0  ;;  %v831_v4 = vadd.f32 %v2651_v14, %v792_v53  ;;  %v1266_v5 = vadd.f32 %v2657_v18, %v1227_v61  ;;  %2354 = vmatprep.mubr.msk.bf16.mxu0 %vm553_vm1, %v1397_v62  ;;  %v1398_v6 = vpack.c.bf16 %v1355_v51, %v2739_v16  ;;  %vm860_vm15 = vcmp.ge.f32.partialorder %v828_v57, 0.0 }
  0xfe   : > { %v2781_v54 = vpop.f32.mrf.mxu1  ;;  %2388 = vmatprep.mubr.msk.bf16.mxu1 %vm553_vm1, %v1380_v1  ;;  %v1381_v7 = vpack.c.bf16 %v920_v46, %v2735_v12  ;;  %v790_v9 = vmul.f32 %v2640_v8, %v2733_v11  ;;  %v1225_v13 = vmul.f32 %v2645_v10, %v2743_v21  ;;  %v892_v17 = vmul.f32 0.1, %v828_v57 }
  0xff   : > { %v2806_v15 = vpop.f32.mrf.mxu0  ;;  %vm1295_vm0 = vcmp.ge.f32.partialorder %v1263_v58, 0.0  ;;  %v1327_v19 = vmul.f32 0.1, %v1263_v58  ;;  %vm858_vm2 = vcmp.ge.f32.partialorder %v826_v60, 0.0  ;;  %2355 = vmatmul.mubr.msk.bf16.gmra.mxu0 %vm553_vm1, %v1398_v6  ;;  %v890_v16 = vmul.f32 0.1, %v826_v60 }
 0x100   : > { %v2794_v2 = vpop.f32.mrf.mxu1  ;;  %vm1293_vm3 = vcmp.ge.f32.partialorder %v1261_v0, 0.0  ;;  %v1325_v20 = vmul.f32 0.1, %v1261_v0  ;;  %2389 = vmatmul.mubr.msk.bf16.gmra.mxu1 %vm553_vm1, %v1381_v7  ;;  %v793_v12 = vmul.f32 %v2745_v22, %v2640_v8  ;;  %vm863_vm4 = vcmp.ge.f32.partialorder %v831_v4, 0.0 }
 0x101   : > { %v895_v21 = vmul.f32 0.1, %v831_v4  ;;  %v1330_v24 = vmul.f32 0.1, %v1266_v5  ;;  %v829_v25 = vadd.f32 %v2651_v14, %v790_v9  ;;  %vm1298_vm5 = vcmp.ge.f32.partialorder %v1266_v5, 0.0  ;;  %v2820_v29 = vpop.f32.mrf.mxu0 }
 0x102   : > { %v2812_v11 = vpop.f32.mrf.mxu1  ;;  %v1264_v26 = vadd.f32 %v2657_v18, %v1225_v13  ;;  %v1228_v27 = vmul.f32 %v2754_v30, %v2645_v10  ;;  %v1226_v28 = vmul.f32 %v2645_v10, %v2760_v36  ;;  %v921_v22 = vsel %vm857_vm13, %v825_v42, %v889_v63 }
 0x103   : > { %v1356_v32 = vsel %vm1292_vm14, %v1260_v49, %v1324_v3  ;;  %v924_v33 = vsel %vm860_vm15, %v828_v57, %v892_v17  ;;  %v791_v23 = vmul.f32 %v2640_v8, %v2756_v31  ;;  %v1359_v34 = vsel %vm1295_vm0, %v1263_v58, %v1327_v19  ;;  %v2841_v47 = vpop.f32.mrf.mxu0 }
 0x104   : > { %v1357_v35 = vsel %vm1293_vm3, %v1261_v0, %v1325_v20  ;;  %v832_v30 = vadd.f32 %v2651_v14, %v793_v12  ;;  %v796_v36 = vmul.f32 %v2762_v37, %v2640_v8  ;;  %v2338_v38 = vpop.f32.mrf.mxu1  ;;  %v922_v39 = vsel %vm858_vm2, %v826_v60, %v890_v16 }
 0x105   : > { %v2834_v40 = vsel %vm863_vm4, %v831_v4, %v895_v21  ;;  %v2837_v41 = vsel %vm1298_vm5, %v1266_v5, %v1330_v24  ;;  %vm861_vm6 = vcmp.ge.f32.partialorder %v829_v25, 0.0  ;;  %v893_v31 = vmul.f32 0.1, %v829_v25  ;;  %v2305_v63 = vpop.f32.mrf.mxu0 }
 0x106   : > { %vm1296_vm7 = vcmp.ge.f32.partialorder %v1264_v26, 0.0  ;;  %v1267_v42 = vadd.f32 %v2657_v18, %v1228_v27  ;;  %v1265_v43 = vadd.f32 %v2657_v18, %v1226_v28  ;;  %v1328_v48 = vmul.f32 0.1, %v1264_v26  ;;  %v1171_v53 = vpop.f32.mrf.mxu1 }
 0x107   : > { %v830_v37 = vadd.f32 %v2651_v14, %v791_v23  ;;  %v1231_v49 = vmul.f32 %v2769_v44, %v2645_v10  ;;  %v1399_v50 = vpack.c.bf16 %v1357_v35, %v1356_v32  ;;  %vm864_vm8 = vcmp.ge.f32.partialorder %v832_v30, 0.0  ;;  %v739_v17 = vpop.f32.mrf.mxu0 }
 0x108   : > { %v835_v46 = vadd.f32 %v2651_v14, %v796_v36  ;;  %v1382_v51 = vpack.c.bf16 %v922_v39, %v921_v22  ;;  %v1400_v52 = vpack.c.bf16 %v1359_v34, %v2785_v56  ;;  %v896_v57 = vmul.f32 0.1, %v832_v30  ;;  %v2339_v5 = vpop.f32.mrf.mxu1 }
 0x109   : > { %v1270_v58 = vadd.f32 %v2657_v18, %v1231_v49  ;;  %2358 = vmatprep.mubr.msk.bf16.mxu0 %vm553_vm1, %v1399_v50  ;;  %v1383_v60 = vpack.c.bf16 %v924_v33, %v2783_v55  ;;  %v794_v61 = vmul.f32 %v2640_v8, %v2771_v45  ;;  %vm1299_vm9 = vcmp.ge.f32.partialorder %v1267_v42, 0.0  ;;  %v2308_v33 = vpop.f32.mrf.mxu0 }
 0x10a   : > { %v1331_v44 = vmul.f32 0.1, %v1267_v42  ;;  %v1329_v62 = vmul.f32 0.1, %v1265_v43  ;;  %2392 = vmatprep.mubr.msk.bf16.mxu1 %vm553_vm1, %v1382_v51  ;;  %2359 = vmatmul.mubr.msk.bf16.gmra.mxu0 %vm553_vm1, %v1400_v52  ;;  %v1229_v56 = vmul.f32 %v2645_v10, %v2781_v54  ;;  %vm862_vm10 = vcmp.ge.f32.partialorder %v830_v37, 0.0 }
 0x10b   : > { %v894_v0 = vmul.f32 0.1, %v830_v37  ;;  %vm1297_vm11 = vcmp.ge.f32.partialorder %v1265_v43, 0.0  ;;  %2393 = vmatmul.mubr.msk.bf16.gmra.mxu1 %vm553_vm1, %v1383_v60  ;;  %v797_v55 = vmul.f32 %v2789_v59, %v2640_v8  ;;  %v899_v45 = vmul.f32 0.1, %v835_v46 }
 0x10c   : > { %v1334_v1 = vmul.f32 0.1, %v1270_v58  ;;  %v833_v3 = vadd.f32 %v2651_v14, %v794_v61  ;;  %v1232_v4 = vmul.f32 %v2794_v2, %v2645_v10  ;;  %v925_v6 = vsel %vm861_vm6, %v829_v25, %v893_v31  ;;  %v1174_v25 = vpop.f32.mrf.mxu1 }
 0x10d   : > { %vm867_vm12 = vcmp.ge.f32.partialorder %v835_v46, 0.0  ;;  %vm1302_vm13 = vcmp.ge.f32.partialorder %v1270_v58, 0.0  ;;  %v795_v54 = vmul.f32 %v2640_v8, %v2806_v15  ;;  %v1360_v7 = vsel %vm1296_vm7, %v1264_v26, %v1328_v48 }
 0x10e   : > { %v1361_v9 = vsel %vm1297_vm11, %v1265_v43, %v1329_v62  ;;  %v1268_v59 = vadd.f32 %v2657_v18, %v1229_v56  ;;  %v1230_v13 = vmul.f32 %v2645_v10, %v2812_v11  ;;  %v928_v19 = vsel %vm864_vm8, %v832_v30, %v896_v57  ;;  %v2893_v39 = vpop.f32.mrf.mxu1 }
 0x10f   : > { %v1363_v2 = vsel %vm1299_vm9, %v1267_v42, %v1331_v44  ;;  %v926_v16 = vsel %vm862_vm10, %v830_v37, %v894_v0  ;;  %v836_v20 = vadd.f32 %v2651_v14, %v797_v55  ;;  %v2874_v12 = vsel %vm867_vm12, %v835_v46, %v899_v45 }
 0x110   : > { %v2876_v15 = vsel %vm1302_vm13, %v1270_v58, %v1334_v1  ;;  %v897_v21 = vmul.f32 0.1, %v833_v3  ;;  %v1271_v24 = vadd.f32 %v2657_v18, %v1232_v4  ;;  %v834_v26 = vadd.f32 %v2651_v14, %v795_v54  ;;  %v1187_v57 = vpop.f32.mrf.mxu1 }
 0x111   : > { %v800_v11 = vmul.f32 %v2820_v29, %v2640_v8  ;;  %v1235_v27 = vmul.f32 %v2338_v38, %v2645_v10  ;;  %v1401_v28 = vpack.c.bf16 %v1361_v9, %v1360_v7  ;;  %vm865_vm14 = vcmp.ge.f32.partialorder %v833_v3, 0.0 }
 0x112   : > { %vm1300_vm15 = vcmp.ge.f32.partialorder %v1268_v59, 0.0  ;;  %v1269_v22 = vadd.f32 %v2657_v18, %v1230_v13  ;;  %v1384_v32 = vpack.c.bf16 %v926_v16, %v925_v6  ;;  %v1332_v23 = vmul.f32 0.1, %v1268_v59 }
 0x113   : > { %vm868_vm0 = vcmp.ge.f32.partialorder %v836_v20, 0.0  ;;  %2362 = vmatprep.mubr.msk.bf16.mxu0 %vm553_vm1, %v1401_v28  ;;  %v1402_v34 = vpack.c.bf16 %v1363_v2, %v2837_v41  ;;  %v1385_v35 = vpack.c.bf16 %v928_v19, %v2834_v40  ;;  %v839_v30 = vadd.f32 %v2651_v14, %v800_v11 }
 0x114   : > { %v1274_v29 = vadd.f32 %v2657_v18, %v1235_v27  ;;  %2396 = vmatprep.mubr.msk.bf16.mxu1 %vm553_vm1, %v1384_v32  ;;  %v798_v36 = vmul.f32 %v2640_v8, %v2841_v47  ;;  %v1233_v38 = vmul.f32 %v2645_v10, %v1171_v53  ;;  %v929_v31 = vsel %vm865_vm14, %v833_v3, %v897_v21  ;;  %v752_v47 = vpop.f32.mrf.mxu0 }
 0x115   : > { %v900_v42 = vmul.f32 0.1, %v836_v20  ;;  %vm1303_vm2 = vcmp.ge.f32.partialorder %v1271_v24, 0.0  ;;  %v898_v41 = vmul.f32 0.1, %v834_v26  ;;  %2363 = vmatmul.mubr.msk.bf16.gmra.mxu0 %vm553_vm1, %v1402_v34  ;;  %2397 = vmatmul.mubr.msk.bf16.gmra.mxu1 %vm553_vm1, %v1385_v35  ;;  %vm866_vm3 = vcmp.ge.f32.partialorder %v834_v26, 0.0 }
 0x116   : > { %v1333_v40 = vmul.f32 0.1, %v1269_v22  ;;  %v1272_v43 = vadd.f32 %v2657_v18, %v1233_v38  ;;  %v801_v48 = vmul.f32 %v2305_v63, %v2640_v8  ;;  %v1335_v37 = vmul.f32 0.1, %v1271_v24  ;;  %v2309_v63 = vpop.f32.mrf.mxu0 }
 0x117   : > { %vm1301_vm4 = vcmp.ge.f32.partialorder %v1269_v22, 0.0  ;;  %v799_v49 = vmul.f32 %v2640_v8, %v739_v17  ;;  %v1234_v50 = vmul.f32 %v2645_v10, %v1174_v25  ;;  %v1364_v46 = vsel %vm1300_vm15, %v1268_v59, %v1332_v23 }
 0x118   : > { %v903_v51 = vmul.f32 0.1, %v839_v30  ;;  %v1338_v52 = vmul.f32 0.1, %v1274_v29  ;;  %v837_v53 = vadd.f32 %v2651_v14, %v798_v36  ;;  %v930_v58 = vsel %vm866_vm3, %v834_v26, %v898_v41  ;;  %v755_v17 = vpop.f32.mrf.mxu0 }
 0x119   : > { %vm871_vm5 = vcmp.ge.f32.partialorder %v839_v30, 0.0  ;;  %vm1306_vm6 = vcmp.ge.f32.partialorder %v1274_v29, 0.0  ;;  %v1236_v60 = vmul.f32 %v2339_v5, %v2645_v10  ;;  %v1365_v61 = vsel %vm1301_vm4, %v1269_v22, %v1333_v40  ;;  %v2343_v5 = vpop.f32.mrf.mxu1 }
 0x11a   : > { %v1336_v44 = vmul.f32 0.1, %v1272_v43  ;;  %v840_v62 = vadd.f32 %v2651_v14, %v801_v48  ;;  %v1273_v56 = vadd.f32 %v2657_v18, %v1234_v50  ;;  %v932_v0 = vsel %vm868_vm0, %v836_v20, %v900_v42 }
 0x11b   : > { %v1367_v55 = vsel %vm1303_vm2, %v1271_v24, %v1335_v37  ;;  %vm1304_vm7 = vcmp.ge.f32.partialorder %v1272_v43, 0.0  ;;  %v838_v45 = vadd.f32 %v2651_v14, %v799_v49  ;;  %v2910_v1 = vsel %vm871_vm5, %v839_v30, %v903_v51  ;;  %v1190_v11 = vpop.f32.mrf.mxu1 }
 0x11c   : > { %v2912_v3 = vsel %vm1306_vm6, %v1274_v29, %v1338_v52  ;;  %vm869_vm8 = vcmp.ge.f32.partialorder %v837_v53, 0.0  ;;  %v1337_v4 = vmul.f32 0.1, %v1273_v56  ;;  %v1275_v6 = vadd.f32 %v2657_v18, %v1236_v60 }
 0x11d   : > { %vm1305_vm9 = vcmp.ge.f32.partialorder %v1273_v56, 0.0  ;;  %v1403_v54 = vpack.c.bf16 %v1365_v61, %v1364_v46  ;;  %v1386_v7 = vpack.c.bf16 %v930_v58, %v929_v31  ;;  %v901_v9 = vmul.f32 0.1, %v837_v53 }
 0x11e   : > { %v1368_v59 = vsel %vm1304_vm7, %v1272_v43, %v1336_v44  ;;  %vm872_vm10 = vcmp.ge.f32.partialorder %v840_v62, 0.0  ;;  %v904_v13 = vmul.f32 0.1, %v840_v62  ;;  %v902_v19 = vmul.f32 0.1, %v838_v45 }
 0x11f   : > { %v804_v2 = vmul.f32 %v2308_v33, %v2640_v8  ;;  %2366 = vmatprep.mubr.msk.bf16.mxu0 %vm553_vm1, %v1403_v54  ;;  %2400 = vmatprep.mubr.msk.bf16.mxu1 %vm553_vm1, %v1386_v7  ;;  %v1404_v16 = vpack.c.bf16 %v1367_v55, %v2876_v15  ;;  %v1387_v20 = vpack.c.bf16 %v932_v0, %v2874_v12  ;;  %v1339_v27 = vmul.f32 0.1, %v1275_v6 }
 0x120   : > { %v1369_v21 = vsel %vm1305_vm9, %v1273_v56, %v1337_v4  ;;  %v802_v24 = vmul.f32 %v2640_v8, %v752_v47  ;;  %v1237_v25 = vmul.f32 %v2645_v10, %v1187_v57  ;;  %v805_v26 = vmul.f32 %v2309_v63, %v2640_v8 }
 0x121   : > { %vm870_vm11 = vcmp.ge.f32.partialorder %v838_v45, 0.0  ;;  %2367 = vmatmul.mubr.msk.bf16.gmra.mxu0 %vm553_vm1, %v1404_v16  ;;  %2401 = vmatmul.mubr.msk.bf16.gmra.mxu1 %vm553_vm1, %v1387_v20  ;;  %v1240_v28 = vmul.f32 %v2343_v5, %v2645_v10  ;;  %v803_v15 = vmul.f32 %v2640_v8, %v755_v17  ;;  %vm1307_vm12 = vcmp.ge.f32.partialorder %v1275_v6, 0.0 }
 0x122   : > { %v1239_v12 = vmul.f32 %v2893_v39, %v2645_v10  ;;  %v841_v22 = vadd.f32 %v2651_v14, %v802_v24  ;;  %v1276_v32 = vadd.f32 %v2657_v18, %v1237_v25  ;;  %v844_v33 = vadd.f32 %v2651_v14, %v805_v26 }
 0x123   : > { %v842_v23 = vadd.f32 %v2651_v14, %v803_v15  ;;  %v1238_v34 = vmul.f32 %v2645_v10, %v1190_v11  ;;  %v1405_v35 = vpack.c.bf16 %v1369_v21, %v1368_v59  ;;  %v933_v30 = vsel %vm869_vm8, %v837_v53, %v901_v9 }
 0x124   : > { %v936_v29 = vsel %vm872_vm10, %v840_v62, %v904_v13  ;;  %v934_v8 = vsel %vm870_vm11, %v838_v45, %v902_v19  ;;  %v905_v36 = vmul.f32 0.1, %v841_v22  ;;  %v1371_v38 = vsel %vm1307_vm12, %v1275_v6, %v1339_v27  ;;  %v2954_v45 = vld [vmem:[%s3109_s10] ss:$0 sm:$0xff] }
 0x125   : > { %v843_v39 = vadd.f32 %v2651_v14, %v804_v2  ;;  %vm873_vm13 = vcmp.ge.f32.partialorder %v841_v22, 0.0  ;;  %v1279_v31 = vadd.f32 %v2657_v18, %v1240_v28  ;;  %2370 = vmatprep.mubr.msk.bf16.mxu0 %vm553_vm1, %v1405_v35  ;;  %v1278_v42 = vadd.f32 %v2657_v18, %v1239_v12 }
 0x126   : > { %vm1308_vm14 = vcmp.ge.f32.partialorder %v1276_v32, 0.0  ;;  %vm874_vm15 = vcmp.ge.f32.partialorder %v842_v23, 0.0  ;;  %v906_v10 = vmul.f32 0.1, %v842_v23  ;;  %v1340_v41 = vmul.f32 0.1, %v1276_v32 }
 0x127   : > { %v908_v40 = vmul.f32 0.1, %v844_v33  ;;  %v1277_v43 = vadd.f32 %v2657_v18, %v1238_v34  ;;  %v1388_v48 = vpack.c.bf16 %v934_v8, %v933_v30  ;;  %v937_v47 = vsel %vm873_vm13, %v841_v22, %v905_v36 }
 0x128   : > { %v938_v37 = vsel %vm874_vm15, %v842_v23, %v906_v10  ;;  %v1406_v49 = vpack.c.bf16 %v1371_v38, %v2912_v3  ;;  %v1389_v14 = vpack.c.bf16 %v936_v29, %v2910_v1  ;;  %v1343_v50 = vmul.f32 0.1, %v1279_v31  ;;  %v2959_v3 = vld [vmem:[%s3110_s11] ss:$0 sm:$0xff] }
 0x129   : > { %vm1309_vm0 = vcmp.ge.f32.partialorder %v1277_v43, 0.0  ;;  %v1341_v46 = vmul.f32 0.1, %v1277_v43  ;;  %2404 = vmatprep.mubr.msk.bf16.mxu1 %vm553_vm1, %v1388_v48  ;;  %v1390_v51 = vpack.c.bf16 %v938_v37, %v937_v47  ;;  %vm876_vm2 = vcmp.ge.f32.partialorder %v844_v33, 0.0 }
 0x12a   : > { %vm1311_vm3 = vcmp.ge.f32.partialorder %v1279_v31, 0.0  ;;  %2371 = vmatmul.mubr.msk.bf16.gmra.mxu0 %vm553_vm1, %v1406_v49  ;;  %2405 = vmatmul.mubr.msk.bf16.gmra.mxu1 %vm553_vm1, %v1389_v14  ;;  %v907_v18 = vmul.f32 0.1, %v843_v39  ;;  %v1342_v52 = vmul.f32 0.1, %v1278_v42  ;;  %v1372_v53 = vsel %vm1308_vm14, %v1276_v32, %v1340_v41 }
 0x12b   : > { %v1373_v57 = vsel %vm1309_vm0, %v1277_v43, %v1341_v46  ;;  %2408 = vmatprep.mubr.msk.bf16.mxu1 %vm553_vm1, %v1390_v51  ;;  %vm875_vm4 = vcmp.ge.f32.partialorder %v843_v39, 0.0  ;;  %vm1310_vm5 = vcmp.ge.f32.partialorder %v1278_v42, 0.0  ;;  %v940_v60 = vsel %vm876_vm2, %v844_v33, %v908_v40 }
 0x12c   : > { %v1407_v58 = vpack.c.bf16 %v1373_v57, %v1372_v53  ;;  %v1375_v61 = vsel %vm1311_vm3, %v1279_v31, %v1343_v50  ;;  %v939_v44 = vsel %vm875_vm4, %v843_v39, %v907_v18  ;;  %v1374_v62 = vsel %vm1310_vm5, %v1278_v42, %v1342_v52 }
 0x12d   : > { %v1408_v56 = vpack.c.bf16 %v1375_v61, %v1374_v62  ;;  %v1391_v63 = vpack.c.bf16 %v940_v60, %v939_v44 }
 0x12e   : > { %2374 = vmatprep.mubr.msk.bf16.mxu0 %vm553_vm1, %v1407_v58 }
 0x132   : > { %2375 = vmatmul.mubr.msk.bf16.gmra.mxu0 %vm553_vm1, %v1408_v56  ;;  %2409 = vmatmul.mubr.msk.bf16.gmra.mxu1 %vm553_vm1, %v1391_v63  ;;  %vm2008_vm1 = vcmask 64512  }
 0x1a9   : > { %v2348_v0 = vpop.f32.mrf.mxu0  ;;  %v2382_v55 = vpop.f32.mrf.mxu1 }
 0x1aa   : > { %v1716_v1 = vadd.f32 %v2382_v55, %v2348_v0 }
 0x1ab   : > { %v1495_v4 = vpop.f32.mrf.mxu0  ;;  %v1707_v5 = vpop.f32.mrf.mxu1 }
 0x1ac   : > { %v1843_v6 = vmul.f32 %v2954_v45, %v1716_v1  ;;  %v1708_v54 = vadd.f32 %v1707_v5, %v1495_v4 }
 0x1ad   : > { %v2349_v7 = vpop.f32.mrf.mxu0  ;;  %v2383_v9 = vpop.f32.mrf.mxu1 }
 0x1ae   : > { %v1882_v59 = vadd.f32 %v2959_v3, %v1843_v6  ;;  %v1841_v13 = vmul.f32 %v2954_v45, %v1708_v54  ;;  %v1719_v17 = vadd.f32 %v2383_v9, %v2349_v7 }
 0x1af   : > { %v1498_v19 = vpop.f32.mrf.mxu0  ;;  %v1710_v2 = vpop.f32.mrf.mxu1 }
 0x1b0   : > { %vm1914_vm6 = vcmp.ge.f32.partialorder %v1882_v59, 0.0  ;;  %v1946_v16 = vmul.f32 0.1, %v1882_v59  ;;  %v1880_v20 = vadd.f32 %v2959_v3, %v1841_v13  ;;  %v1844_v21 = vmul.f32 %v2954_v45, %v1719_v17 }
 0x1b1   : > { %v1711_v24 = vadd.f32 %v1710_v2, %v1498_v19 }
 0x1b2   : > { %v1978_v25 = vsel %vm1914_vm6, %v1882_v59, %v1946_v16  ;;  %vm1912_vm7 = vcmp.ge.f32.partialorder %v1880_v20, 0.0  ;;  %v1944_v26 = vmul.f32 0.1, %v1880_v20  ;;  %v1883_v11 = vadd.f32 %v2959_v3, %v1844_v21 }
 0x1b3   : > { %2011 = vst.msk [vmem:[%s2969_s22 + $0x10] sm:$0xff] %vm2008_vm1, %v1978_v25  ;;  %v1842_v27 = vmul.f32 %v2954_v45, %v1711_v24  ;;  %v2352_v28 = vpop.f32.mrf.mxu0 }
 0x1b4   : > { %v1976_v15 = vsel %vm1912_vm7, %v1880_v20, %v1944_v26  ;;  %vm1915_vm8 = vcmp.ge.f32.partialorder %v1883_v11, 0.0  ;;  %v1947_v12 = vmul.f32 0.1, %v1883_v11  ;;  %v2386_v22 = vpop.f32.mrf.mxu1 }
 0x1b5   : > { %2009 = vst.msk [vmem:[%s2969_s22] sm:$0xff] %vm2008_vm1, %v1976_v15  ;;  %v1881_v32 = vadd.f32 %v2959_v3, %v1842_v27  ;;  %v1732_v33 = vadd.f32 %v2386_v22, %v2352_v28  ;;  %v1511_v23 = vpop.f32.mrf.mxu0 }
 0x1b6   : > { %v1979_v34 = vsel %vm1915_vm8, %v1883_v11, %v1947_v12  ;;  %v1723_v35 = vpop.f32.mrf.mxu1 }
 0x1b7   : > { %2012 = vst.msk [vmem:[%s2969_s22 + $0x18] sm:$0xff] %vm2008_vm1, %v1979_v34  ;;  %vm1913_vm9 = vcmp.ge.f32.partialorder %v1881_v32, 0.0  ;;  %v1945_v30 = vmul.f32 0.1, %v1881_v32  ;;  %v1847_v29 = vmul.f32 %v2954_v45, %v1732_v33  ;;  %v1724_v8 = vadd.f32 %v1723_v35, %v1511_v23  ;;  %v2353_v36 = vpop.f32.mrf.mxu0 }
 0x1b8   : > { %v2387_v38 = vpop.f32.mrf.mxu1 }
 0x1b9   : > { %v1977_v39 = vsel %vm1913_vm9, %v1881_v32, %v1945_v30  ;;  %v1886_v31 = vadd.f32 %v2959_v3, %v1847_v29  ;;  %v1845_v42 = vmul.f32 %v2954_v45, %v1724_v8  ;;  %v1735_v10 = vadd.f32 %v2387_v38, %v2353_v36  ;;  %v1514_v41 = vpop.f32.mrf.mxu0 }
 0x1ba   : > { %2010 = vst.msk [vmem:[%s2969_s22 + $0x8] sm:$0xff] %vm2008_vm1, %v1977_v39  ;;  %v1726_v40 = vpop.f32.mrf.mxu1 }
 0x1bb   : > { %vm1918_vm10 = vcmp.ge.f32.partialorder %v1886_v31, 0.0  ;;  %v1950_v43 = vmul.f32 0.1, %v1886_v31  ;;  %v1884_v48 = vadd.f32 %v2959_v3, %v1845_v42  ;;  %v1848_v47 = vmul.f32 %v2954_v45, %v1735_v10 }
 0x1bc   : > { %v1727_v37 = vadd.f32 %v1726_v40, %v1514_v41 }
 0x1bd   : > { %v1982_v49 = vsel %vm1918_vm10, %v1886_v31, %v1950_v43  ;;  %vm1916_vm11 = vcmp.ge.f32.partialorder %v1884_v48, 0.0  ;;  %v1948_v14 = vmul.f32 0.1, %v1884_v48  ;;  %v1887_v50 = vadd.f32 %v2959_v3, %v1848_v47 }
 0x1be   : > { %2015 = vst.msk [vmem:[%s2969_s22 + $0x30] sm:$0xff] %vm2008_vm1, %v1982_v49  ;;  %v1846_v46 = vmul.f32 %v2954_v45, %v1727_v37 }
 0x1bf   : > { %v1980_v51 = vsel %vm1916_vm11, %v1884_v48, %v1948_v14  ;;  %vm1919_vm12 = vcmp.ge.f32.partialorder %v1887_v50, 0.0  ;;  %v1951_v18 = vmul.f32 0.1, %v1887_v50  ;;  %v2356_v52 = vpop.f32.mrf.mxu0 }
 0x1c0   : > { %2013 = vst.msk [vmem:[%s2969_s22 + $0x20] sm:$0xff] %vm2008_vm1, %v1980_v51  ;;  %v1885_v53 = vadd.f32 %v2959_v3, %v1846_v46  ;;  %v2390_v57 = vpop.f32.mrf.mxu1 }
 0x1c1   : > { %v1983_v58 = vsel %vm1919_vm12, %v1887_v50, %v1951_v18  ;;  %v1748_v60 = vadd.f32 %v2390_v57, %v2356_v52  ;;  %v1527_v61 = vpop.f32.mrf.mxu0 }
 0x1c2   : > { %2016 = vst.msk [vmem:[%s2969_s22 + $0x38] sm:$0xff] %vm2008_vm1, %v1983_v58  ;;  %vm1917_vm13 = vcmp.ge.f32.partialorder %v1885_v53, 0.0  ;;  %v1949_v44 = vmul.f32 0.1, %v1885_v53  ;;  %v1739_v62 = vpop.f32.mrf.mxu1 }
 0x1c3   : > { %v1851_v56 = vmul.f32 %v2954_v45, %v1748_v60  ;;  %v1740_v63 = vadd.f32 %v1739_v62, %v1527_v61  ;;  %v2357_v0 = vpop.f32.mrf.mxu0 }
 0x1c4   : > { %v1981_v55 = vsel %vm1917_vm13, %v1885_v53, %v1949_v44  ;;  %v2391_v1 = vpop.f32.mrf.mxu1 }
 0x1c5   : > { %2014 = vst.msk [vmem:[%s2969_s22 + $0x28] sm:$0xff] %vm2008_vm1, %v1981_v55  ;;  %v1890_v4 = vadd.f32 %v2959_v3, %v1851_v56  ;;  %v1849_v5 = vmul.f32 %v2954_v45, %v1740_v63  ;;  %v1751_v6 = vadd.f32 %v2391_v1, %v2357_v0  ;;  %v1530_v54 = vpop.f32.mrf.mxu0 }
 0x1c6   : > { %v1742_v7 = vpop.f32.mrf.mxu1 }
 0x1c7   : > { %vm1922_vm14 = vcmp.ge.f32.partialorder %v1890_v4, 0.0  ;;  %v1954_v9 = vmul.f32 0.1, %v1890_v4  ;;  %v1888_v59 = vadd.f32 %v2959_v3, %v1849_v5  ;;  %v1852_v13 = vmul.f32 %v2954_v45, %v1751_v6 }
 0x1c8   : > { %v1743_v17 = vadd.f32 %v1742_v7, %v1530_v54 }
 0x1c9   : > { %v1986_v19 = vsel %vm1922_vm14, %v1890_v4, %v1954_v9  ;;  %vm1920_vm15 = vcmp.ge.f32.partialorder %v1888_v59, 0.0  ;;  %v1952_v2 = vmul.f32 0.1, %v1888_v59  ;;  %v1891_v16 = vadd.f32 %v2959_v3, %v1852_v13 }
 0x1ca   : > { %2019 = vst.msk [vmem:[%s2969_s22 + $0x50] sm:$0xff] %vm2008_vm1, %v1986_v19  ;;  %v1850_v20 = vmul.f32 %v2954_v45, %v1743_v17  ;;  %v2360_v21 = vpop.f32.mrf.mxu0 }
 0x1cb   : > { %v1984_v24 = vsel %vm1920_vm15, %v1888_v59, %v1952_v2  ;;  %vm1923_vm0 = vcmp.ge.f32.partialorder %v1891_v16, 0.0  ;;  %v1955_v25 = vmul.f32 0.1, %v1891_v16  ;;  %v2394_v26 = vpop.f32.mrf.mxu1 }
 0x1cc   : > { %2017 = vst.msk [vmem:[%s2969_s22 + $0x40] sm:$0xff] %vm2008_vm1, %v1984_v24  ;;  %v1889_v11 = vadd.f32 %v2959_v3, %v1850_v20  ;;  %v1764_v27 = vadd.f32 %v2394_v26, %v2360_v21  ;;  %v1543_v28 = vpop.f32.mrf.mxu0 }
 0x1cd   : > { %v1987_v15 = vsel %vm1923_vm0, %v1891_v16, %v1955_v25  ;;  %v1755_v12 = vpop.f32.mrf.mxu1 }
 0x1ce   : > { %2020 = vst.msk [vmem:[%s2969_s22 + $0x58] sm:$0xff] %vm2008_vm1, %v1987_v15  ;;  %vm1921_vm2 = vcmp.ge.f32.partialorder %v1889_v11, 0.0  ;;  %v1953_v22 = vmul.f32 0.1, %v1889_v11  ;;  %v1855_v32 = vmul.f32 %v2954_v45, %v1764_v27  ;;  %v1756_v33 = vadd.f32 %v1755_v12, %v1543_v28  ;;  %v2361_v23 = vpop.f32.mrf.mxu0 }
 0x1cf   : > { %v2395_v34 = vpop.f32.mrf.mxu1 }
 0x1d0   : > { %v1985_v35 = vsel %vm1921_vm2, %v1889_v11, %v1953_v22  ;;  %v1894_v30 = vadd.f32 %v2959_v3, %v1855_v32  ;;  %v1853_v29 = vmul.f32 %v2954_v45, %v1756_v33  ;;  %v1767_v8 = vadd.f32 %v2395_v34, %v2361_v23  ;;  %v1546_v36 = vpop.f32.mrf.mxu0 }
 0x1d1   : > { %2018 = vst.msk [vmem:[%s2969_s22 + $0x48] sm:$0xff] %vm2008_vm1, %v1985_v35  ;;  %v1758_v38 = vpop.f32.mrf.mxu1 }
 0x1d2   : > { %vm1926_vm3 = vcmp.ge.f32.partialorder %v1894_v30, 0.0  ;;  %v1958_v39 = vmul.f32 0.1, %v1894_v30  ;;  %v1892_v31 = vadd.f32 %v2959_v3, %v1853_v29  ;;  %v1856_v42 = vmul.f32 %v2954_v45, %v1767_v8 }
 0x1d3   : > { %v1759_v10 = vadd.f32 %v1758_v38, %v1546_v36 }
 0x1d4   : > { %v1990_v41 = vsel %vm1926_vm3, %v1894_v30, %v1958_v39  ;;  %vm1924_vm4 = vcmp.ge.f32.partialorder %v1892_v31, 0.0  ;;  %v1956_v40 = vmul.f32 0.1, %v1892_v31  ;;  %v1895_v43 = vadd.f32 %v2959_v3, %v1856_v42 }
 0x1d5   : > { %2023 = vst.msk [vmem:[%s2969_s22 + $0x70] sm:$0xff] %vm2008_vm1, %v1990_v41  ;;  %v1854_v48 = vmul.f32 %v2954_v45, %v1759_v10  ;;  %v2364_v47 = vpop.f32.mrf.mxu0  ;;  %v2398_v37 = vpop.f32.mrf.mxu1 }
 0x1d6   : > { %v1988_v49 = vsel %vm1924_vm4, %v1892_v31, %v1956_v40  ;;  %vm1927_vm5 = vcmp.ge.f32.partialorder %v1895_v43, 0.0  ;;  %v1959_v14 = vmul.f32 0.1, %v1895_v43  ;;  %v1780_v50 = vadd.f32 %v2398_v37, %v2364_v47 }
 0x1d7   : > { %2021 = vst.msk [vmem:[%s2969_s22 + $0x60] sm:$0xff] %vm2008_vm1, %v1988_v49  ;;  %v1893_v46 = vadd.f32 %v2959_v3, %v1854_v48  ;;  %v1559_v51 = vpop.f32.mrf.mxu0  ;;  %v1771_v18 = vpop.f32.mrf.mxu1 }
 0x1d8   : > { %v1991_v52 = vsel %vm1927_vm5, %v1895_v43, %v1959_v14  ;;  %v1859_v53 = vmul.f32 %v2954_v45, %v1780_v50  ;;  %v1772_v57 = vadd.f32 %v1771_v18, %v1559_v51 }
 0x1d9   : > { %2024 = vst.msk [vmem:[%s2969_s22 + $0x78] sm:$0xff] %vm2008_vm1, %v1991_v52  ;;  %vm1925_vm6 = vcmp.ge.f32.partialorder %v1893_v46, 0.0  ;;  %v1957_v58 = vmul.f32 0.1, %v1893_v46  ;;  %v2365_v60 = vpop.f32.mrf.mxu0  ;;  %v2399_v61 = vpop.f32.mrf.mxu1 }
 0x1da   : > { %v1898_v44 = vadd.f32 %v2959_v3, %v1859_v53  ;;  %v1857_v62 = vmul.f32 %v2954_v45, %v1772_v57  ;;  %v1783_v56 = vadd.f32 %v2399_v61, %v2365_v60 }
 0x1db   : > { %v1989_v63 = vsel %vm1925_vm6, %v1893_v46, %v1957_v58  ;;  %v1562_v0 = vpop.f32.mrf.mxu0  ;;  %v1774_v55 = vpop.f32.mrf.mxu1 }
 0x1dc   : > { %2022 = vst.msk [vmem:[%s2969_s22 + $0x68] sm:$0xff] %vm2008_vm1, %v1989_v63  ;;  %vm1930_vm7 = vcmp.ge.f32.partialorder %v1898_v44, 0.0  ;;  %v1962_v1 = vmul.f32 0.1, %v1898_v44  ;;  %v1896_v4 = vadd.f32 %v2959_v3, %v1857_v62  ;;  %v1860_v5 = vmul.f32 %v2954_v45, %v1783_v56 }
 0x1dd   : > { %v1775_v6 = vadd.f32 %v1774_v55, %v1562_v0 }
 0x1de   : > { %v1994_v54 = vsel %vm1930_vm7, %v1898_v44, %v1962_v1  ;;  %vm1928_vm8 = vcmp.ge.f32.partialorder %v1896_v4, 0.0  ;;  %v1960_v7 = vmul.f32 0.1, %v1896_v4  ;;  %v1899_v9 = vadd.f32 %v2959_v3, %v1860_v5 }
 0x1df   : > { %2027 = vst.msk [vmem:[%s2969_s22 + $0x90] sm:$0xff] %vm2008_vm1, %v1994_v54  ;;  %v1858_v59 = vmul.f32 %v2954_v45, %v1775_v6 }
 0x1e0   : > { %v1992_v13 = vsel %vm1928_vm8, %v1896_v4, %v1960_v7  ;;  %vm1931_vm9 = vcmp.ge.f32.partialorder %v1899_v9, 0.0  ;;  %v1963_v17 = vmul.f32 0.1, %v1899_v9 }
 0x1e1   : > { %2025 = vst.msk [vmem:[%s2969_s22 + $0x80] sm:$0xff] %vm2008_vm1, %v1992_v13  ;;  %v1897_v19 = vadd.f32 %v2959_v3, %v1858_v59  ;;  %v2368_v2 = vpop.f32.mrf.mxu0  ;;  %v2402_v16 = vpop.f32.mrf.mxu1 }
 0x1e2   : > { %v1995_v20 = vsel %vm1931_vm9, %v1899_v9, %v1963_v17  ;;  %v1796_v21 = vadd.f32 %v2402_v16, %v2368_v2 }
 0x1e3   : > { %2028 = vst.msk [vmem:[%s2969_s22 + $0x98] sm:$0xff] %vm2008_vm1, %v1995_v20  ;;  %vm1929_vm10 = vcmp.ge.f32.partialorder %v1897_v19, 0.0  ;;  %v1961_v24 = vmul.f32 0.1, %v1897_v19  ;;  %v1575_v25 = vpop.f32.mrf.mxu0  ;;  %v1787_v26 = vpop.f32.mrf.mxu1 }
 0x1e4   : > { %v1863_v11 = vmul.f32 %v2954_v45, %v1796_v21  ;;  %v1788_v27 = vadd.f32 %v1787_v26, %v1575_v25 }
 0x1e5   : > { %v1993_v28 = vsel %vm1929_vm10, %v1897_v19, %v1961_v24  ;;  %v2369_v15 = vpop.f32.mrf.mxu0  ;;  %v2403_v12 = vpop.f32.mrf.mxu1 }
 0x1e6   : > { %2026 = vst.msk [vmem:[%s2969_s22 + $0x88] sm:$0xff] %vm2008_vm1, %v1993_v28  ;;  %v1902_v22 = vadd.f32 %v2959_v3, %v1863_v11  ;;  %v1861_v32 = vmul.f32 %v2954_v45, %v1788_v27  ;;  %v1799_v33 = vadd.f32 %v2403_v12, %v2369_v15 }
 0x1e7   : > { %v1578_v23 = vpop.f32.mrf.mxu0  ;;  %v1790_v34 = vpop.f32.mrf.mxu1 }
 0x1e8   : > { %vm1934_vm11 = vcmp.ge.f32.partialorder %v1902_v22, 0.0  ;;  %v1966_v35 = vmul.f32 0.1, %v1902_v22  ;;  %v1900_v30 = vadd.f32 %v2959_v3, %v1861_v32  ;;  %v1864_v29 = vmul.f32 %v2954_v45, %v1799_v33 }
 0x1e9   : > { %v1791_v8 = vadd.f32 %v1790_v34, %v1578_v23 }
 0x1ea   : > { %v1998_v36 = vsel %vm1934_vm11, %v1902_v22, %v1966_v35  ;;  %vm1932_vm12 = vcmp.ge.f32.partialorder %v1900_v30, 0.0  ;;  %v1964_v38 = vmul.f32 0.1, %v1900_v30  ;;  %v1903_v39 = vadd.f32 %v2959_v3, %v1864_v29  ;;  %v2372_v31 = vpop.f32.mrf.mxu0  ;;  %v2406_v42 = vpop.f32.mrf.mxu1 }
 0x1eb   : > { %2031 = vst.msk [vmem:[%s2969_s22 + $0xb0] sm:$0xff] %vm2008_vm1, %v1998_v36  ;;  %v1862_v10 = vmul.f32 %v2954_v45, %v1791_v8  ;;  %v1812_v41 = vadd.f32 %v2406_v42, %v2372_v31 }
 0x1ec   : > { %v1996_v40 = vsel %vm1932_vm12, %v1900_v30, %v1964_v38  ;;  %vm1935_vm13 = vcmp.ge.f32.partialorder %v1903_v39, 0.0  ;;  %v1967_v43 = vmul.f32 0.1, %v1903_v39  ;;  %v1591_v48 = vpop.f32.mrf.mxu0  ;;  %v1803_v47 = vpop.f32.mrf.mxu1 }
 0x1ed   : > { %2029 = vst.msk [vmem:[%s2969_s22 + $0xa0] sm:$0xff] %vm2008_vm1, %v1996_v40  ;;  %v1901_v37 = vadd.f32 %v2959_v3, %v1862_v10  ;;  %v1867_v49 = vmul.f32 %v2954_v45, %v1812_v41  ;;  %v1804_v14 = vadd.f32 %v1803_v47, %v1591_v48 }
 0x1ee   : > { %v1999_v50 = vsel %vm1935_vm13, %v1903_v39, %v1967_v43  ;;  %v2373_v46 = vpop.f32.mrf.mxu0  ;;  %v2407_v51 = vpop.f32.mrf.mxu1 }
 0x1ef   : > { %2032 = vst.msk [vmem:[%s2969_s22 + $0xb8] sm:$0xff] %vm2008_vm1, %v1999_v50  ;;  %vm1933_vm14 = vcmp.ge.f32.partialorder %v1901_v37, 0.0  ;;  %v1965_v18 = vmul.f32 0.1, %v1901_v37  ;;  %v1906_v52 = vadd.f32 %v2959_v3, %v1867_v49  ;;  %v1865_v53 = vmul.f32 %v2954_v45, %v1804_v14 }
 0x1f0   : > { %v1815_v57 = vadd.f32 %v2407_v51, %v2373_v46  ;;  %v1594_v58 = vpop.f32.mrf.mxu0  ;;  %v1806_v60 = vpop.f32.mrf.mxu1 }
 0x1f1   : > { %v1997_v61 = vsel %vm1933_vm14, %v1901_v37, %v1965_v18  ;;  %vm1938_vm15 = vcmp.ge.f32.partialorder %v1906_v52, 0.0  ;;  %v1970_v44 = vmul.f32 0.1, %v1906_v52  ;;  %v1904_v62 = vadd.f32 %v2959_v3, %v1865_v53 }
 0x1f2   : > { %2030 = vst.msk [vmem:[%s2969_s22 + $0xa8] sm:$0xff] %vm2008_vm1, %v1997_v61  ;;  %v1868_v56 = vmul.f32 %v2954_v45, %v1815_v57  ;;  %v1807_v63 = vadd.f32 %v1806_v60, %v1594_v58  ;;  %v2376_v0 = vpop.f32.mrf.mxu0  ;;  %v2410_v55 = vpop.f32.mrf.mxu1 }
 0x1f3   : > { %v2002_v1 = vsel %vm1938_vm15, %v1906_v52, %v1970_v44  ;;  %vm1936_vm0 = vcmp.ge.f32.partialorder %v1904_v62, 0.0  ;;  %v1968_v4 = vmul.f32 0.1, %v1904_v62  ;;  %v1828_v5 = vadd.f32 %v2410_v55, %v2376_v0 }
 0x1f4   : > { %2035 = vst.msk [vmem:[%s2969_s22 + $0xd0] sm:$0xff] %vm2008_vm1, %v2002_v1  ;;  %v1907_v6 = vadd.f32 %v2959_v3, %v1868_v56  ;;  %v1866_v54 = vmul.f32 %v2954_v45, %v1807_v63  ;;  %v1607_v7 = vpop.f32.mrf.mxu0  ;;  %v1819_v9 = vpop.f32.mrf.mxu1 }
 0x1f5   : > { %v2000_v59 = vsel %vm1936_vm0, %v1904_v62, %v1968_v4  ;;  %v1871_v13 = vmul.f32 %v2954_v45, %v1828_v5  ;;  %v1820_v17 = vadd.f32 %v1819_v9, %v1607_v7 }
 0x1f6   : > { %2033 = vst.msk [vmem:[%s2969_s22 + $0xc0] sm:$0xff] %vm2008_vm1, %v2000_v59  ;;  %vm1939_vm2 = vcmp.ge.f32.partialorder %v1907_v6, 0.0  ;;  %v1971_v19 = vmul.f32 0.1, %v1907_v6  ;;  %v1905_v2 = vadd.f32 %v2959_v3, %v1866_v54  ;;  %v2377_v16 = vpop.f32.mrf.mxu0  ;;  %v2411_v20 = vpop.f32.mrf.mxu1 }
 0x1f7   : > { %v1910_v21 = vadd.f32 %v2959_v3, %v1871_v13  ;;  %v1869_v24 = vmul.f32 %v2954_v45, %v1820_v17  ;;  %v1831_v25 = vadd.f32 %v2411_v20, %v2377_v16 }
 0x1f8   : > { %v2003_v26 = vsel %vm1939_vm2, %v1907_v6, %v1971_v19  ;;  %vm1937_vm3 = vcmp.ge.f32.partialorder %v1905_v2, 0.0  ;;  %v1969_v11 = vmul.f32 0.1, %v1905_v2  ;;  %v1610_v27 = vpop.f32.mrf.mxu0  ;;  %v1822_v28 = vpop.f32.mrf.mxu1 }
 0x1f9   : > { %2036 = vst.msk [vmem:[%s2969_s22 + $0xd8] sm:$0xff] %vm2008_vm1, %v2003_v26  ;;  %vm1942_vm4 = vcmp.ge.f32.partialorder %v1910_v21, 0.0  ;;  %v1974_v15 = vmul.f32 0.1, %v1910_v21  ;;  %v1908_v12 = vadd.f32 %v2959_v3, %v1869_v24  ;;  %v1872_v22 = vmul.f32 %v2954_v45, %v1831_v25 }
 0x1fa   : > { %v2001_v32 = vsel %vm1937_vm3, %v1905_v2, %v1969_v11  ;;  %v1823_v33 = vadd.f32 %v1822_v28, %v1610_v27 }
 0x1fb   : > { %2034 = vst.msk [vmem:[%s2969_s22 + $0xc8] sm:$0xff] %vm2008_vm1, %v2001_v32  ;;  %v2006_v23 = vsel %vm1942_vm4, %v1910_v21, %v1974_v15  ;;  %vm1940_vm5 = vcmp.ge.f32.partialorder %v1908_v12, 0.0  ;;  %v1972_v34 = vmul.f32 0.1, %v1908_v12  ;;  %v1911_v35 = vadd.f32 %v2959_v3, %v1872_v22 }
 0x1fc   : > { %2039 = vst.msk [vmem:[%s2969_s22 + $0xf0] sm:$0xff] %vm2008_vm1, %v2006_v23  ;;  %v1870_v30 = vmul.f32 %v2954_v45, %v1823_v33 }
 0x1fd   : > { %v2004_v29 = vsel %vm1940_vm5, %v1908_v12, %v1972_v34  ;;  %vm1943_vm6 = vcmp.ge.f32.partialorder %v1911_v35, 0.0  ;;  %v1975_v8 = vmul.f32 0.1, %v1911_v35 }
 0x1fe   : > { %2037 = vst.msk [vmem:[%s2969_s22 + $0xe0] sm:$0xff] %vm2008_vm1, %v2004_v29  ;;  %v1909_v36 = vadd.f32 %v2959_v3, %v1870_v30 }
 0x1ff   : > { %v2007_v38 = vsel %vm1943_vm6, %v1911_v35, %v1975_v8 }
 0x200   : > { %2040 = vst.msk [vmem:[%s2969_s22 + $0xf8] sm:$0xff] %vm2008_vm1, %v2007_v38  ;;  %vm1941_vm7 = vcmp.ge.f32.partialorder %v1909_v36, 0.0  ;;  %v1973_v39 = vmul.f32 0.1, %v1909_v36 }
 0x202   : > { %v2005_v31 = vsel %vm1941_vm7, %v1909_v36, %v1973_v39 }
 0x203   : > { %2038 = vst.msk [vmem:[%s2969_s22 + $0xe8] sm:$0xff] %vm2008_vm1, %v2005_v31 }
 0x204 PF: > { %s22_s21 = sadd.s32 1, %s2446_s21  }
 0x205   : > { %p19_p4 = scmp.ge.s32.totalorder %s22_s21, 4  }
 0x207   :  { %21 = sbr.rel (!%p19_p4) target bundleno = 1 (0x1), region = 101 }

// kernel: _lambda_.4
= control target key start
LH: loop header
LB: loop body
LE: loop exit
PB: predicated region body
PF: predicated region fallthrough
CT: control target
= control target key end

     0   :  { %s7054_s24 = smov 0   ;;  %s10091_s0 = inlined_call_operand.vmem [shape: bf16[2,256,4], index: 0, kind: input, shape index: {}]   ;;  %s10092_s1 = inlined_call_operand.vmem [shape: bf16[1,4,2], index: 1, kind: input, shape index: {}]   ;;  %s10093_s2 = inlined_call_operand.vmem [shape: f32[1,1,2], index: 2, kind: input, shape index: {}]   ;;  %s10094_s3 = inlined_call_operand.vmem [shape: f32[1,1,2], index: 3, kind: input, shape index: {}]   ;;  %s10095_s4 = inlined_call_operand.vmem [shape: bf16[1,18,4], index: 4, kind: input, shape index: {}]   ;;  %s10096_s5 = inlined_call_operand.vmem [shape: f32[1,1,4], index: 5, kind: input, shape index: {}]   ;;  %s10097_s6 = inlined_call_operand.vmem [shape: f32[1,1,4], index: 6, kind: input, shape index: {}]   ;;  %s10098_s7 = inlined_call_operand.vmem [shape: bf16[2,256,4], index: 7, kind: output, shape index: {}]  }
   0x1 LB: > { %s5955_s25 = sadd.s32 4294967295, %s7002_s24   ;;  %p5959_p0 = scmp.ge.s32.totalorder %s7002_s24, 1  ;;  %s7002_s24 = sphi %s7054_s24, %s17_s24  }
   0x2   : > { %p237_p1 = scmp.lt.s32.totalorder %s7002_s24, 3 }
   0x4   : > { %p238_p2 = pnand %p5959_p0, %p237_p1 }
   0x6   : > { %241 = sbr.rel (%p238_p2) target bundleno = 966 (0x3c6), region = 48 }
   0xb   : > { %v344_v0 = vld [vmem:[%s10092_s1] sm:$0x3]  ;;  %vm474_vm0 = vcmask 1041408   ;;  %p269_p3 = scmp.lt.s32.totalorder %s5955_s25, 1  ;;  %vm425_vm1 = vcmask 31744   ;;  %v7004_v18 = vmov 0.0   ;;  %v1002_v22 = vlaneseq }
   0xc   : > { %6199 = vmatprep.subr.msk.bf16.mxu0 %vm474_vm0, %v344_v0  ;;  %v476_v1 = vsel %vm474_vm0, %v344_v0, 0  ;;  %v847_v19 = vrot.slane %v7004_v18, 7  ;;  %vm846_vm2 = vcmask 1040384   ;;  %v7005_v20 = vmov 1983009808   ;;  %s7006_s13 = smov 2  }
   0xd   : > { %6126 = vmatpush3.bf16.msra.mxu0 %v476_v1  ;;  %s10299_s25 = smov (!%p269_p3, %s5955_s25), 1  ;;  %v1000_v21 = vunpack.c.l.s4 %v7005_v20  ;;  %v1003_v25 = vshrl.u32 %v1002_v22, 7  ;;  %v7145_v39 = vld [vmem:[%s10093_s2] ss:$0 sm:$0xff]  ;;  %vm2422_vm7 = vcmask 1046528   ;;  %vm2604_vm8 = vcmask 1045504  }
   0xe   : > { %s6054_s28 = sshll.u32 %s10299_s25, 7  ;;  %v930_v23 = vsel %vm846_vm2, 0.0, %v847_v19  ;;  %v1015_v28 = vcombine.high %v847_v19, %v847_v19  ;;  %v7150_v41 = vld [vmem:[%s10094_s3] ss:$0 sm:$0xff]  ;;  %s7007_s14 = smov 4  }
   0xf   : > { %s7075_s8 = scalar_lea.vmem %s10091_s0, %s6054_s28  ;;  %v1001_v24 = vunpack.c.0.s8 %v1000_v21  ;;  %v998_v26 = vcombine.high %v930_v23, %v930_v23  ;;  %s7008_s15 = smov 6  }
  0x10   : > { %v280_v2 = vld [vmem:[%s7075_s8] sm:$0xff]   ;;  %v282_v3 = vld [vmem:[%s7075_s8 + $0x8] sm:$0xff]   ;;  %v284_v4 = vld [vmem:[%s7075_s8 + $0x10] sm:$0xff]   ;;  %s7009_s16 = smov 8   ;;  %s7010_s17 = smov 10  }
  0x11   : > { %6127 = vmatprep.mubr.msk.bf16.mxu0 %vm425_vm1, %v280_v2  ;;  %v286_v5 = vld [vmem:[%s7075_s8 + $0x18] sm:$0xff]   ;;  %v288_v6 = vld [vmem:[%s7075_s8 + $0x20] sm:$0xff]   ;;  %v290_v7 = vld [vmem:[%s7075_s8 + $0x28] sm:$0xff]   ;;  %v7110_v27 = vsub.s32 %v1001_v24, %v1003_v25  ;;  %s7011_s18 = smov 12   ;;  %s7012_s19 = smov 14  }
  0x12   : > { %6128 = vmatmul.mubr.msk.bf16.vlgmr.msra.gmra.mxu0 %vm425_vm1, %v282_v3  ;;  %v292_v8 = vld [vmem:[%s7075_s8 + $0x30] sm:$0xff]   ;;  %v294_v9 = vld [vmem:[%s7075_s8 + $0x38] sm:$0xff]   ;;  %v296_v10 = vld [vmem:[%s7075_s8 + $0x40] sm:$0xff]   ;;  %s7013_s20 = smov 16  }
  0x13   : > { %6131 = vmatprep.mubr.msk.bf16.mxu0 %vm425_vm1, %v284_v4  ;;  %v298_v11 = vld [vmem:[%s7075_s8 + $0x48] sm:$0xff]   ;;  %v300_v12 = vld [vmem:[%s7075_s8 + $0x50] sm:$0xff]   ;;  %v302_v13 = vld [vmem:[%s7075_s8 + $0x58] sm:$0xff]   ;;  %v7113_v29 = vrot.slane %v930_v23, %v7110_v27  ;;  %v7116_v30 = vrot.slane %v998_v26, %v7110_v27  ;;  %v7119_v31 = vrot.slane %v847_v19, %v7110_v27  ;;  %v7122_v32 = vrot.slane %v1015_v28, %v7110_v27 }
  0x14   : > { %v304_v14 = vld [vmem:[%s7075_s8 + $0x60] sm:$0xff]   ;;  %v306_v15 = vld [vmem:[%s7075_s8 + $0x68] sm:$0xff]   ;;  %v308_v16 = vld [vmem:[%s7075_s8 + $0x70] sm:$0xff]  }
  0x15   : > { %v310_v17 = vld [vmem:[%s7075_s8 + $0x78] sm:$0xff]   ;;  %10161 = vst [vmem:[#allocation2_spill] sm:$0xff] %v7113_v29  ;;  %10162 = vst [vmem:[#allocation3_spill] sm:$0xff] %v7119_v31  ;;  %v7126_v33 = vcombine.high %v7113_v29, %v7113_v29  ;;  %v7130_v34 = vcombine.high %v7116_v30, %v7116_v30  ;;  %v7134_v35 = vcombine.high %v7119_v31, %v7119_v31 }
  0x16   : > { %10163 = vst [vmem:[#allocation4_spill] sm:$0xff] %v7122_v32  ;;  %v7154_v42 = vcombine.high %v7122_v32, %v7122_v32 }
  0x17   : > { %10164 = vst [vmem:[#allocation5_spill] sm:$0xff] %v7130_v34  ;;  %10165 = vst [vmem:[#allocation6_spill] sm:$0xff] %v7134_v35  ;;  %v1695_v45 = vcombine.low %v7113_v29, %v7126_v33  ;;  %v1696_v46 = vcombine.low %v7116_v30, %v7130_v34  ;;  %v1712_v50 = vcombine.low %v7119_v31, %v7134_v35 }
  0x18   : > { %10166 = vst [vmem:[#allocation7_spill] sm:$0xff] %v7154_v42  ;;  %v1713_v51 = vcombine.low %v7122_v32, %v7154_v42 }
  0x19   : > { %v1703_v56 = vrot.slane %v1695_v45, %v7110_v27  ;;  %v1710_v57 = vrot.slane %v1696_v46, %v7110_v27  ;;  %v1720_v0 = vrot.slane %v1712_v50, %v7110_v27 }
  0x1a   : > { %6132 = vmatmul.mubr.msk.bf16.gmra.mxu0 %vm425_vm1, %v286_v5  ;;  %v1727_v1 = vrot.slane %v1713_v51, %v7110_v27 }
  0x1b   : > { %6135 = vmatprep.mubr.msk.bf16.mxu0 %vm425_vm1, %v288_v6 }
  0x22   : > { %6136 = vmatmul.mubr.msk.bf16.gmra.mxu0 %vm425_vm1, %v290_v7  ;;  %v947_v7 = vsel %vm846_vm2, %v847_v19, 0.0 }
  0x23   : > { %6139 = vmatprep.mubr.msk.bf16.mxu0 %vm425_vm1, %v292_v8 }
  0x2a   : > { %6140 = vmatmul.mubr.msk.bf16.gmra.mxu0 %vm425_vm1, %v294_v9 }
  0x2b   : > { %6143 = vmatprep.mubr.msk.bf16.mxu0 %vm425_vm1, %v296_v10  ;;  %v7179_v10 = vcombine.low %v1703_v56, %v1710_v57 }
  0x2d   : > { %v2423_v22 = vrot.slane %v7179_v10, 1  ;;  %v2605_v24 = vrot.slane %v7179_v10, 2 }
  0x32   : > { %6144 = vmatmul.mubr.msk.bf16.gmra.mxu0 %vm425_vm1, %v298_v11 }
  0x33   : > { %6147 = vmatprep.mubr.msk.bf16.mxu0 %vm425_vm1, %v300_v12 }
  0x3a   : > { %6148 = vmatmul.mubr.msk.bf16.gmra.mxu0 %vm425_vm1, %v302_v13  ;;  %v7181_v13 = vcombine.low %v1720_v0, %v1727_v1 }
  0x3b   : > { %6151 = vmatprep.mubr.msk.bf16.mxu0 %vm425_vm1, %v304_v14 }
  0x3c   : > { %v2424_v23 = vrot.slane %v7181_v13, 1 }
  0x3e   : > { %v7206_v51 = vsel %vm2422_vm7, %v2423_v22, %v2424_v23 }
  0x42   : > { %6152 = vmatmul.mubr.msk.bf16.gmra.mxu0 %vm425_vm1, %v306_v15 }
  0x43   : > { %6155 = vmatprep.mubr.msk.bf16.mxu0 %vm425_vm1, %v308_v16 }
  0x4a   : > { %6156 = vmatmul.mubr.msk.bf16.gmra.mxu0 %vm425_vm1, %v310_v17  ;;  %v7186_v17 = vrot.slane %v947_v7, %v7110_v27 }
  0x4c   : > { %10167 = vst [vmem:[#allocation8_spill] sm:$0xff] %v7186_v17 }
  0xd2   : > { %v6129_v40 = vpop.f32.mrf.mxu0 }
  0xd3   : > { %v648_v43 = vmul.f32 %v6129_v40, %v7145_v39  ;;  %v2606_v40 = vrot.slane %v7181_v13, 2 }
  0xd4   : > { %v512_v44 = vpop.f32.mrf.mxu0 }
  0xd5   : > { %v687_v47 = vadd.f32 %v7150_v41, %v648_v43  ;;  %v646_v48 = vmul.f32 %v7145_v39, %v512_v44 }
  0xd6   : > { %v6130_v49 = vpop.f32.mrf.mxu0 }
  0xd7   : > { %vm719_vm3 = vcmp.ge.f32.partialorder %v687_v47, 0.0  ;;  %v751_v52 = vmul.f32 0.1, %v687_v47  ;;  %v685_v53 = vadd.f32 %v7150_v41, %v646_v48  ;;  %v649_v54 = vmul.f32 %v6130_v49, %v7145_v39 }
  0xd8   : > { %v515_v55 = vpop.f32.mrf.mxu0 }
  0xd9   : > { %v783_v58 = vsel %vm719_vm3, %v687_v47, %v751_v52  ;;  %vm717_vm4 = vcmp.ge.f32.partialorder %v685_v53, 0.0  ;;  %v749_v59 = vmul.f32 0.1, %v685_v53  ;;  %v688_v60 = vadd.f32 %v7150_v41, %v649_v54 }
  0xda   : > { %v852_v61 = vrot.slane %v783_v58, 7  ;;  %v647_v62 = vmul.f32 %v7145_v39, %v515_v55  ;;  %v6133_v63 = vpop.f32.mrf.mxu0 }
  0xdb   : > { %v781_v2 = vsel %vm717_vm4, %v685_v53, %v749_v59  ;;  %vm720_vm5 = vcmp.ge.f32.partialorder %v688_v60, 0.0  ;;  %v752_v3 = vmul.f32 0.1, %v688_v60  ;;  %v652_v9 = vmul.f32 %v6133_v63, %v7145_v39 }
  0xdc   : > { %v932_v4 = vsel %vm846_vm2, 0.0, %v852_v61  ;;  %v849_v5 = vrot.slane %v781_v2, 7  ;;  %v686_v6 = vadd.f32 %v7150_v41, %v647_v62  ;;  %v528_v21 = vpop.f32.mrf.mxu0  ;;  %v7216_v59 = vsel %vm2604_vm8, %v2605_v24, %v2606_v40 }
  0xdd   : > { %v784_v8 = vsel %vm720_vm5, %v688_v60, %v752_v3  ;;  %v1080_v14 = vcombine.high %v932_v4, %v932_v4  ;;  %v1087_v15 = vrot.slane %v932_v4, %v7110_v27  ;;  %v691_v20 = vadd.f32 %v7150_v41, %v652_v9 }
  0xde   : > { %v853_v11 = vrot.slane %v784_v8, 7  ;;  %vm718_vm6 = vcmp.ge.f32.partialorder %v686_v6, 0.0  ;;  %v750_v12 = vmul.f32 0.1, %v686_v6  ;;  %v931_v16 = vsel %vm846_vm2, 0.0, %v849_v5  ;;  %v6134_v50 = vpop.f32.mrf.mxu0 }
  0xdf   : > { %v1094_v25 = vrot.slane %v1080_v14, %v7110_v27  ;;  %v1039_v26 = vcombine.high %v931_v16, %v931_v16  ;;  %v1046_v28 = vrot.slane %v931_v16, %v7110_v27  ;;  %v1095_v43 = vcombine.high %v1087_v15, %v1087_v15 }
  0xe0   : > { %v854_v18 = vsel %vm846_vm2, %v852_v61, %v853_v11  ;;  %v7189_v19 = vsel %vm718_vm6, %v686_v6, %v750_v12  ;;  %vm723_vm9 = vcmp.ge.f32.partialorder %v691_v20, 0.0  ;;  %v755_v47 = vmul.f32 0.1, %v691_v20  ;;  %v531_v3 = vpop.f32.mrf.mxu0 }
  0xe1   : > { %v1104_v44 = vrot.slane %v854_v18, %v7110_v27  ;;  %v850_v45 = vrot.slane %v7189_v19, 7  ;;  %v1097_v46 = vcombine.high %v854_v18, %v854_v18  ;;  %v650_v48 = vmul.f32 %v7145_v39, %v528_v21 }
  0xe2   : > { %v1096_v52 = vcombine.high %v1094_v25, %v1094_v25  ;;  %v1053_v53 = vrot.slane %v1039_v26, %v7110_v27  ;;  %v1054_v54 = vcombine.high %v1046_v28, %v1046_v28  ;;  %v7210_v57 = vsel %vm723_vm9, %v691_v20, %v755_v47  ;;  %v6137_v24 = vpop.f32.mrf.mxu0 }
  0xe3   : > { %v851_v55 = vsel %vm846_vm2, %v849_v5, %v850_v45  ;;  %v1112_v56 = vcombine.high %v1104_v44, %v1104_v44  ;;  %v689_v58 = vadd.f32 %v7150_v41, %v650_v48  ;;  %v7218_v60 = vcombine.low %v1087_v15, %v1095_v43 }
  0xe4   : > { %v7221_v61 = vsel %vm846_vm2, %v853_v11, 0.0  ;;  %v1111_v62 = vrot.slane %v1097_v46, %v7110_v27  ;;  %v858_v63 = vrot.slane %v7210_v57, 7  ;;  %v1056_v0 = vcombine.high %v851_v55, %v851_v55 }
  0xe5   : > { %v1063_v1 = vrot.slane %v851_v55, %v7110_v27  ;;  %vm721_vm10 = vcmp.ge.f32.partialorder %v689_v58, 0.0  ;;  %v753_v2 = vmul.f32 0.1, %v689_v58  ;;  %v1780_v4 = vcombine.low %v1094_v25, %v1096_v52 }
  0xe6   : > { %v1729_v5 = vcombine.low %v7186_v17, %v1046_v28  ;;  %v1730_v6 = vcombine.low %v1054_v54, %v1053_v53  ;;  %v934_v7 = vsel %vm846_vm2, 0.0, %v858_v63  ;;  %v1781_v8 = vcombine.low %v1104_v44, %v1112_v56  ;;  %v7872_v17 = vld [vmem:[%s10094_s3] ss:$0 sm:$0xff] }
  0xe7   : > { %v1162_v9 = vcombine.high %v934_v7, %v934_v7  ;;  %v785_v11 = vsel %vm721_vm10, %v689_v58, %v753_v2  ;;  %v653_v12 = vmul.f32 %v6134_v50, %v7145_v39  ;;  %v1113_v14 = vcombine.high %v1111_v62, %v1111_v62 }
  0xe8   : > { %v1120_v15 = vrot.slane %v7221_v61, %v7110_v27  ;;  %v855_v16 = vrot.slane %v785_v11, 7  ;;  %v651_v18 = vmul.f32 %v7145_v39, %v531_v3  ;;  %v1055_v19 = vcombine.high %v1053_v53, %v1053_v53 }
  0xe9   : > { %v1070_v20 = vrot.slane %v1056_v0, %v7110_v27  ;;  %v1071_v21 = vcombine.high %v1063_v1, %v1063_v1  ;;  %v692_v22 = vadd.f32 %v7150_v41, %v653_v12  ;;  %v1788_v25 = vrot.slane %v1780_v4, %v7110_v27 }
  0xea   : > { %v1737_v26 = vrot.slane %v1729_v5, %v7110_v27  ;;  %v690_v28 = vadd.f32 %v7150_v41, %v651_v18  ;;  %v656_v43 = vmul.f32 %v6137_v24, %v7145_v39  ;;  %v1744_v44 = vrot.slane %v1730_v6, %v7110_v27  ;;  %v544_v5 = vpop.f32.mrf.mxu0 }
  0xeb   : > { %v1795_v46 = vrot.slane %v1781_v8, %v7110_v27  ;;  %v948_v47 = vsel %vm846_vm2, %v850_v45, 0.0  ;;  %v1176_v48 = vrot.slane %v1162_v9, %v7110_v27  ;;  %v7244_v50 = vcombine.low %v1111_v62, %v1113_v14 }
  0xec   : > { %v933_v52 = vsel %vm846_vm2, 0.0, %v855_v16  ;;  %vm724_vm11 = vcmp.ge.f32.partialorder %v692_v22, 0.0  ;;  %v756_v53 = vmul.f32 0.1, %v692_v22  ;;  %v1072_v54 = vcombine.high %v1070_v20, %v1070_v20 }
  0xed   : > { %v1746_v55 = vcombine.low %v1055_v19, %v1063_v1  ;;  %v1747_v56 = vcombine.low %v1071_v21, %v1070_v20  ;;  %vm722_vm12 = vcmp.ge.f32.partialorder %v690_v28, 0.0  ;;  %v1169_v58 = vrot.slane %v934_v7, %v7110_v27 }
  0xee   : > { %v7248_v61 = vsel %vm724_vm11, %v692_v22, %v756_v53  ;;  %v754_v0 = vmul.f32 0.1, %v690_v28  ;;  %v695_v2 = vadd.f32 %v7150_v41, %v656_v43  ;;  %v1079_v45 = vrot.slane %v948_v47, %v7110_v27 }
  0xef   : > { %v1178_v3 = vcombine.high %v1176_v48, %v1176_v48  ;;  %v1121_v62 = vcombine.high %v933_v52, %v933_v52  ;;  %v1128_v4 = vrot.slane %v933_v52, %v7110_v27  ;;  %v859_v6 = vrot.slane %v7248_v61, 7 }
  0xf0   : > { %v786_v8 = vsel %vm722_vm12, %v690_v28, %v754_v0  ;;  %vm727_vm13 = vcmp.ge.f32.partialorder %v695_v2, 0.0  ;;  %v759_v1 = vmul.f32 0.1, %v695_v2  ;;  %v1778_v7 = vrot.slane %v7218_v60, %v7110_v27  ;;  %v6138_v60 = vpop.f32.mrf.mxu0 }
  0xf1   : > { %v7256_v9 = vcombine.low %v1737_v26, %v1744_v44  ;;  %v7258_v11 = vcombine.low %v1788_v25, %v1795_v46  ;;  %v1761_v12 = vrot.slane %v1747_v56, %v7110_v27  ;;  %v1754_v14 = vrot.slane %v1746_v55, %v7110_v27 }
  0xf2   : > { %v1763_v18 = vcombine.low %v1072_v54, %v1079_v45  ;;  %v1177_v19 = vcombine.high %v1169_v58, %v1169_v58  ;;  %v1805_v20 = vrot.slane %v7244_v50, %v7110_v27  ;;  %v1849_v21 = vcombine.low %v1176_v48, %v1178_v3  ;;  %v547_v61 = vpop.f32.mrf.mxu0 }
  0xf3   : > { %v856_v22 = vrot.slane %v786_v8, 7  ;;  %v7264_v24 = vsel %vm727_vm13, %v695_v2, %v759_v1  ;;  %v654_v28 = vmul.f32 %v7145_v39, %v544_v5  ;;  %v7268_v26 = vrot.slane %v1121_v62, %v7110_v27 }
  0xf4   : > { %v1136_v25 = vcombine.high %v1128_v4, %v1128_v4  ;;  %v860_v43 = vsel %vm846_vm2, %v858_v63, %v859_v6  ;;  %v864_v44 = vrot.slane %v7264_v24, 7  ;;  %v7274_v46 = vcombine.low %v1754_v14, %v1761_v12 }
  0xf5   : > { %v857_v47 = vsel %vm846_vm2, %v855_v16, %v856_v22  ;;  %v693_v48 = vadd.f32 %v7150_v41, %v654_v28  ;;  %v657_v50 = vmul.f32 %v6138_v60, %v7145_v39  ;;  %v1771_v52 = vrot.slane %v1763_v18, %v7110_v27 }
  0xf6   : > { %v1848_v53 = vcombine.low %v1169_v58, %v1177_v19  ;;  %v1798_v54 = vcombine.low %v1120_v15, %v1128_v4  ;;  %v1138_v55 = vcombine.high %v857_v47, %v857_v47  ;;  %v1179_v56 = vcombine.high %v860_v43, %v860_v43 }
  0xf7   : > { %v936_v57 = vsel %vm846_vm2, 0.0, %v864_v44  ;;  %vm725_vm14 = vcmp.ge.f32.partialorder %v693_v48, 0.0  ;;  %v757_v63 = vmul.f32 0.1, %v693_v48  ;;  %v1863_v0 = vrot.slane %v1849_v21, %v7110_v27 }
  0xf8   : > { %v7285_v16 = vcombine.low %v1136_v25, %v7268_v26  ;;  %v1145_v2 = vrot.slane %v857_v47, %v7110_v27  ;;  %v1152_v45 = vrot.slane %v1138_v55, %v7110_v27  ;;  %v1186_v15 = vrot.slane %v860_v43, %v7110_v27 }
  0xf9   : > { %v1244_v58 = vcombine.high %v936_v57, %v936_v57  ;;  %v7290_v3 = vsel %vm725_vm14, %v693_v48, %v757_v63  ;;  %v696_v62 = vadd.f32 %v7150_v41, %v657_v50  ;;  %v7293_v4 = vcombine.low %v1771_v52, %v1778_v7 }
  0xfa   : > { %v1856_v5 = vrot.slane %v1848_v53, %v7110_v27  ;;  %v861_v8 = vrot.slane %v7290_v3, 7  ;;  %v655_v1 = vmul.f32 %v7145_v39, %v547_v61  ;;  %v1137_v12 = vcombine.high %v7268_v26, %v7268_v26 }
  0xfb   : > { %v1812_v14 = vrot.slane %v1798_v54, %v7110_v27  ;;  %v1193_v18 = vrot.slane %v1179_v56, %v7110_v27  ;;  %v950_v19 = vsel %vm846_vm2, %v856_v22, 0.0  ;;  %v1153_v28 = vcombine.high %v1145_v2, %v1145_v2 }
  0xfc   : > { %v7303_v21 = vcombine.low %v1856_v5, %v1863_v0  ;;  %v1154_v7 = vcombine.high %v1152_v45, %v1152_v45  ;;  %v1258_v60 = vrot.slane %v1244_v58, %v7110_v27  ;;  %v951_v43 = vsel %vm846_vm2, %v859_v6, 0.0 }
  0xfd   : > { %v1194_v47 = vcombine.high %v1186_v15, %v1186_v15  ;;  %vm728_vm15 = vcmp.ge.f32.partialorder %v696_v62, 0.0  ;;  %v1161_v26 = vrot.slane %v950_v19, %v7110_v27  ;;  %v935_v48 = vsel %vm846_vm2, 0.0, %v861_v8 }
  0xfe   : > { %v760_v22 = vmul.f32 0.1, %v696_v62  ;;  %v694_v50 = vadd.f32 %v7150_v41, %v655_v1  ;;  %v7314_v52 = vcombine.low %v1805_v20, %v1812_v14  ;;  %v1195_v53 = vcombine.high %v1193_v18, %v1193_v18 }
  0xff   : > { %v1251_v54 = vrot.slane %v936_v57, %v7110_v27  ;;  %v2426_v55 = vrot.slane %v7256_v9, 1  ;;  %v1831_v56 = vcombine.low %v1153_v28, %v1152_v45  ;;  %v1832_v6 = vcombine.low %v1154_v7, %v1161_v26 }
 0x100   : > { %v1260_v63 = vcombine.high %v1258_v60, %v1258_v60  ;;  %v7318_v61 = vsel %vm728_vm15, %v696_v62, %v760_v22  ;;  %v1202_v0 = vrot.slane %v951_v43, %v7110_v27  ;;  %v7321_v58 = vcombine.low %v1186_v15, %v1194_v47 }
 0x101   : > { %v1203_v5 = vcombine.high %v935_v48, %v935_v48  ;;  %v1210_v19 = vrot.slane %v935_v48, %v7110_v27  ;;  %v865_v20 = vrot.slane %v7318_v61, 7  ;;  %vm726_vm3 = vcmp.ge.f32.partialorder %v694_v50, 0.0 }
 0x102   : > { %v758_v1 = vmul.f32 0.1, %v694_v50  ;;  %v2427_v57 = vsel %vm2422_vm7, %v2424_v23, %v2426_v55  ;;  %v7328_v45 = vcombine.low %v1193_v18, %v1195_v53  ;;  %v7330_v14 = vcombine.low %v1137_v12, %v1145_v2 }
 0x103   : > { %v6219_v62 = vpack.i.bf16 %v2427_v57, %v7206_v51  ;;  %v2608_v15 = vrot.slane %v7256_v9, 2  ;;  %v1839_v28 = vrot.slane %v1831_v56, %v7110_v27  ;;  %v1846_v7 = vrot.slane %v1832_v6, %v7110_v27 }
 0x104   : > { %v1259_v43 = vcombine.high %v1251_v54, %v1251_v54  ;;  %v7336_v47 = vcombine.low %v1258_v60, %v1260_v63  ;;  %v790_v26 = vsel %vm726_vm3, %v694_v50, %v758_v1  ;;  %v2430_v2 = vrot.slane %v7293_v4, 1 }
 0x105   : > { %6220 = vrot.lane.b32.xlu0 %v6219_v62, %s7006_s13  ;;  %v2609_v23 = vsel %vm2604_vm8, %v2606_v40, %v2608_v15  ;;  %v2432_v51 = vrot.slane %v7258_v11, 1  ;;  %v7345_v12 = vrot.slane %v1203_v5, %v7110_v27  ;;  %v1218_v18 = vcombine.high %v1210_v19, %v1210_v19 }
 0x106   : > { %v866_v60 = vsel %vm846_vm2, %v864_v44, %v865_v20  ;;  %v862_v48 = vrot.slane %v790_v26, 7  ;;  %v6224_v22 = vpack.i.bf16 %v2609_v23, %v7216_v59  ;;  %v10100_v53 = vrot.slane %v7314_v52, 1 }
 0x107   : > { %v2433_v50 = vsel %vm2422_vm7, %v2430_v2, %v2432_v51  ;;  %v2428_v40 = vrot.slane %v7274_v46, 1  ;;  %v1873_v56 = vrot.slane %v7321_v58, %v7110_v27  ;;  %v1880_v6 = vrot.slane %v7328_v45, %v7110_v27 }
 0x108   : > { %v1829_v24 = vrot.slane %v7330_v14, %v7110_v27  ;;  %v1268_v44 = vrot.slane %v866_v60, %v7110_v27  ;;  %v7361_v63 = vcombine.low %v1839_v28, %v1846_v7  ;;  %v7363_v59 = vcombine.low %v1251_v54, %v1259_v43 }
 0x109   : > { %v7365_v61 = vcombine.low %v1202_v0, %v1210_v19  ;;  %6225 = vrot.lane.b32.xlu0 %v6224_v22, %s7007_s14  ;;  %v2435_v5 = vsel %vm2422_vm7, %v2432_v51, %v10100_v53  ;;  %vm2898_vm4 = vcmask 1044480   ;;  %v1219_v57 = vcombine.high %v7345_v12, %v7345_v12  ;;  %v6141_v19 = vpop.f32.mrf.mxu0 }
 0x10a   : > { %v863_v54 = vsel %vm846_vm2, %v861_v8, %v862_v48  ;;  %v6234_v0 = vpack.i.bf16 %v2435_v5, %v2433_v50  ;;  %v7379_v62 = vcombine.low %v1218_v18, %v7345_v12  ;;  %v1261_v28 = vcombine.high %v866_v60, %v866_v60 }
 0x10b   : > { %v2429_v7 = vsel %vm2422_vm7, %v2426_v55, %v2428_v40  ;;  %v2431_v43 = vsel %vm2422_vm7, %v2428_v40, %v2430_v2  ;;  %v1276_v26 = vcombine.high %v1268_v44, %v1268_v44  ;;  %v2610_v51 = vrot.slane %v7274_v46, 2  ;;  %v560_v5 = vpop.f32.mrf.mxu0 }
 0x10c   : > { %6235 = vrot.lane.b32.xlu1 %v6234_v0, %s7006_s13  ;;  %v6229_v23 = vpack.i.bf16 %v2431_v43, %v2429_v7  ;;  %v2612_v3 = vrot.slane %v7293_v4, 2  ;;  %v7387_v8 = vsel %vm846_vm2, %v862_v48, 0.0  ;;  %v1220_v22 = vcombine.high %v863_v54, %v863_v54 }
 0x10d   : > { %v7390_v18 = vrot.slane %v863_v54, %v7110_v27  ;;  %v2614_v60 = vrot.slane %v7258_v11, 2  ;;  %v2611_v55 = vsel %vm2604_vm8, %v2608_v15, %v2610_v51  ;;  %v10101_v50 = vrot.slane %v7314_v52, 2 }
 0x10e   : > { %6230 = vrot.lane.b32.xlu0 %v6229_v23, %s7006_s13  ;;  %v2613_v2 = vsel %vm2604_vm8, %v2610_v51, %v2612_v3  ;;  %v2902_v40 = vrot.slane %v7293_v4, 3  ;;  %v7401_v0 = vsel %vm846_vm2, %v865_v20, 0.0  ;;  %vm10148_vm5 = vcmask 1043456  }
 0x10f   : > { %v6239_v54 = vpack.i.bf16 %v2613_v2, %v2611_v55  ;;  %v2615_v7 = vsel %vm2604_vm8, %v2612_v3, %v2614_v60  ;;  %v7405_v43 = vrot.slane %v1261_v28, %v7110_v27  ;;  %v2617_v15 = vsel %vm2604_vm8, %v2614_v60, %v10101_v50 }
 0x110   : > { %v2904_v23 = vrot.slane %v7258_v11, 3  ;;  %v10099_v51 = vrot.slane %v7314_v52, 3  ;;  %v7412_v49 = vcombine.low %v1268_v44, %v1276_v26  ;;  %v7415_v20 = vrot.slane %v1220_v22, %v7110_v27  ;;  %v6142_v26 = vpop.f32.mrf.mxu0 }
 0x111   : > { %v1243_v3 = vrot.slane %v7387_v8, %v7110_v27  ;;  %6240 = vrot.lane.b32.xlu1 %v6239_v54, %s7007_s14  ;;  %v6244_v28 = vpack.i.bf16 %v2617_v15, %v2615_v7  ;;  %v1235_v55 = vcombine.high %v7390_v18, %v7390_v18  ;;  %v660_v44 = vmul.f32 %v6141_v19, %v7145_v39 }
 0x112   : > { %v2905_v60 = vsel %vm2898_vm4, %v2902_v40, %v2904_v23  ;;  %v2907_v2 = vsel %vm2898_vm4, %v2904_v23, %v10099_v51  ;;  %v1236_v22 = vcombine.high %v7415_v20, %v7415_v20  ;;  %v2900_v8 = vrot.slane %v7274_v46, 3 }
 0x113   : > { %6245 = vrot.lane.b32.xlu0 %v6244_v28, %s7007_s14  ;;  %v658_v7 = vmul.f32 %v7145_v39, %v560_v5  ;;  %v6264_v15 = vpack.i.bf16 %v2907_v2, %v2905_v60  ;;  %v699_v38 = vadd.f32 %v7150_v41, %v660_v44  ;;  %v2899_v37 = vrot.slane %v7256_v9, 3  ;;  %v563_v2 = vpop.f32.mrf.mxu0 }
 0x114   : > { %v2903_v19 = vsel %vm2898_vm4, %v2900_v8, %v2902_v40  ;;  %v3080_v36 = vrot.slane %v7256_v9, 4  ;;  %v3083_v51 = vrot.slane %v7293_v4, 4  ;;  %v3081_v60 = vrot.slane %v7274_v46, 4 }
 0x115   : > { %6255 = vrot.lane.b32.xlu1 %v6244_v28, %s7008_s15  ;;  %v697_v23 = vadd.f32 %v7150_v41, %v658_v7  ;;  %vm731_vm6 = vcmp.ge.f32.partialorder %v699_v38, 0.0  ;;  %v763_v53 = vmul.f32 0.1, %v699_v38  ;;  %v2901_v5 = vsel %vm2898_vm4, %v2899_v37, %v2900_v8 }
 0x116   : > { %v6259_v44 = vpack.i.bf16 %v2903_v19, %v2901_v5  ;;  %v661_v40 = vmul.f32 %v6142_v26, %v7145_v39  ;;  %v3084_v7 = vsel %vm10148_vm5, %v3081_v60, %v3083_v51  ;;  %v3085_v1 = vrot.slane %v7258_v11, 4 }
 0x117   : > { %6250 = vrot.lane.b32.xlu0 %v6239_v54, %s7008_s15  ;;  %vm729_vm9 = vcmp.ge.f32.partialorder %v697_v23, 0.0  ;;  %v761_v28 = vmul.f32 0.1, %v697_v23  ;;  %v795_v50 = vsel %vm731_vm6, %v699_v38, %v763_v53  ;;  %v3087_v48 = vrot.slane %v7314_v52, 4 }
 0x118   : > { %v870_v37 = vrot.slane %v795_v50, 7  ;;  %v700_v54 = vadd.f32 %v7150_v41, %v661_v40  ;;  %v659_v19 = vmul.f32 %v7145_v39, %v563_v2  ;;  %v3082_v38 = vsel %vm10148_vm5, %v3080_v36, %v3081_v60 }
 0x119   : > { %6265 = vrot.lane.b32.xlu1 %v6264_v15, %s7009_s16  ;;  %v7447_v8 = vsel %vm729_vm9, %v697_v23, %v761_v28  ;;  %v3086_v53 = vsel %vm10148_vm5, %v3083_v51, %v3085_v1  ;;  %v3088_v26 = vsel %vm10148_vm5, %v3085_v1, %v3087_v48  ;;  %v6269_v50 = vpack.i.bf16 %v3084_v7, %v3082_v38 }
 0x11a   : > { %v867_v5 = vrot.slane %v7447_v8, 7  ;;  %v938_v25 = vsel %vm846_vm2, 0.0, %v870_v37  ;;  %vm732_vm10 = vcmp.ge.f32.partialorder %v700_v54, 0.0  ;;  %v764_v15 = vmul.f32 0.1, %v700_v54 }
 0x11b   : > { %6260 = vrot.lane.b32.xlu0 %v6259_v44, %s7009_s16  ;;  %v1899_v23 = vcombine.low %v1219_v57, %v7390_v18  ;;  %v1900_v36 = vcombine.low %v1235_v55, %v7415_v20  ;;  %v698_v1 = vadd.f32 %v7150_v41, %v659_v19  ;;  %v1897_v60 = vrot.slane %v7379_v62, %v7110_v27 }
 0x11c   : > { %v937_v51 = vsel %vm846_vm2, 0.0, %v867_v5  ;;  %v1277_v2 = vcombine.high %v7405_v43, %v7405_v43  ;;  %v1284_v44 = vrot.slane %v7401_v0, %v7110_v27  ;;  %v6274_v12 = vpack.i.bf16 %v3088_v26, %v3086_v53 }
 0x11d   : > { %6270 = vrot.lane.b32.xlu1 %v6269_v50, %s7010_s17  ;;  %v1948_v57 = vrot.slane %v7412_v49, %v7110_v27  ;;  %v1916_v18 = vcombine.low %v1236_v22, %v1243_v3  ;;  %v1326_v20 = vcombine.high %v938_v25, %v938_v25  ;;  %v796_v55 = vsel %vm732_vm10, %v700_v54, %v764_v15 }
 0x11e   : > { %vm10144_vm11 = vcmask 1042432   ;;  %v1333_v28 = vrot.slane %v938_v25, %v7110_v27  ;;  %v1285_v62 = vcombine.high %v937_v51, %v937_v51  ;;  %v762_v40 = vmul.f32 0.1, %v698_v1 }
 0x11f   : > { %6275 = vrot.lane.b32.xlu0 %v6274_v12, %s7010_s17  ;;  %v1907_v7 = vrot.slane %v1899_v23, %v7110_v27  ;;  %v1914_v0 = vrot.slane %v1900_v36, %v7110_v27  ;;  %v1292_v19 = vrot.slane %v937_v51, %v7110_v27  ;;  %vm730_vm12 = vcmp.ge.f32.partialorder %v698_v1, 0.0 }
 0x120   : > { %v7488_v49 = vcombine.low %v1873_v56, %v1880_v6  ;;  %v10169_v25 = vrot.slane %v7285_v16, %v7110_v27  ;;  %v1931_v22 = vrot.slane %v7363_v59, %v7110_v27  ;;  %v871_v54 = vrot.slane %v796_v55, 7 }
 0x121   : > { %6280 = vrot.lane.b32.xlu1 %v6274_v12, %s7011_s18  ;;  %v10170_v58 = vrot.slane %v7365_v61, %v7110_v27  ;;  %v1950_v56 = vcombine.low %v7405_v43, %v1277_v2  ;;  %v1924_v14 = vrot.slane %v1916_v18, %v7110_v27  ;;  %v1340_v16 = vrot.slane %v1326_v20, %v7110_v27 }
 0x122   : > { %10168 = vst [vmem:[#allocation9_spill] sm:$0xff] %v7488_v49  ;;  %v7496_v3 = vcombine.low %v10169_v25, %v1829_v24  ;;  %v10172_v6 = vrot.slane %v7336_v47, %v7110_v27  ;;  %v1341_v59 = vcombine.high %v1333_v28, %v1333_v28  ;;  %v7515_v38 = vrot.slane %v1285_v62, %v7110_v27 }
 0x123   : > { %v7504_v45 = vcombine.low %v10170_v58, %v1897_v60  ;;  %v794_v53 = vsel %vm730_vm12, %v698_v1, %v762_v40  ;;  %v7517_v26 = vcombine.low %v1907_v7, %v1914_v0  ;;  %v1300_v61 = vcombine.high %v1292_v19, %v1292_v19 }
 0x124   : > { %v7512_v24 = vcombine.low %v10172_v6, %v1948_v57  ;;  %v1951_v50 = vcombine.low %v1284_v44, %v1292_v19  ;;  %v2438_v43 = vrot.slane %v7361_v63, 1  ;;  %v872_v15 = vsel %vm846_vm2, %v870_v37, %v871_v54 }
 0x125   : > { %10171 = vst [vmem:[#allocation10_spill] sm:$0xff] %v7504_v45  ;;  %10174 = vst [vmem:[#allocation12_spill] sm:$0xff] %v7517_v26  ;;  %v868_v23 = vrot.slane %v794_v53, 7  ;;  %v10103_v36 = vrot.slane %v7488_v49, 1  ;;  %v3375_v47 = vrot.slane %v7293_v4, 5  ;;  %v7523_v51 = vcombine.low %v1924_v14, %v1931_v22 }
 0x126   : > { %10173 = vst [vmem:[#allocation11_spill] sm:$0xff] %v7512_v24  ;;  %v1342_v60 = vcombine.high %v1340_v16, %v1340_v16  ;;  %v1958_v2 = vrot.slane %v1950_v56, %v7110_v27  ;;  %v2440_v1 = vrot.slane %v7303_v21, 1  ;;  %v7527_v12 = vcombine.low %v1333_v28, %v1341_v59 }
 0x127   : > { %10175 = vst [vmem:[#allocation13_spill] sm:$0xff] %v7523_v51  ;;  %v1301_v44 = vcombine.high %v7515_v38, %v7515_v38  ;;  %v7532_v57 = vsel %vm846_vm2, %v871_v54, 0.0  ;;  %v3376_v37 = vrot.slane %v7258_v11, 5  ;;  %v1965_v18 = vrot.slane %v1951_v50, %v7110_v27 }
 0x128   : > { %v7537_v20 = vcombine.low %v1300_v61, %v7515_v38  ;;  %v1343_v55 = vcombine.high %v872_v15, %v872_v15  ;;  %v2441_v62 = vsel %vm2422_vm7, %v2438_v43, %v2440_v1  ;;  %v1350_v40 = vrot.slane %v872_v15, %v7110_v27 }
 0x129   : > { %v869_v28 = vsel %vm846_vm2, %v867_v5, %v868_v23  ;;  %v2443_v7 = vsel %vm2422_vm7, %v2440_v1, %v10103_v36  ;;  %v3377_v0 = vsel %vm10144_vm11, %v3375_v47, %v3376_v37  ;;  %v3378_v25 = vrot.slane %v7314_v52, 5 }
 0x12a   : > { %v6299_v19 = vpack.i.bf16 %v2443_v7, %v2441_v62  ;;  %v2620_v22 = vrot.slane %v7361_v63, 2  ;;  %v2622_v54 = vrot.slane %v7303_v21, 2  ;;  %v7551_v58 = vcombine.low %v1340_v16, %v1342_v60  ;;  %v6145_v7 = vpop.f32.mrf.mxu0 }
 0x12b   : > { %v1302_v56 = vcombine.high %v869_v28, %v869_v28  ;;  %v3379_v14 = vsel %vm10144_vm11, %v3376_v37, %v3378_v25  ;;  %v10102_v59 = vrot.slane %v7488_v49, 2  ;;  %v3556_v16 = vrot.slane %v7293_v4, 6 }
 0x12c   : > { %6300 = vrot.lane.b32.xlu0 %v6299_v19, %s7006_s13  ;;  %v2623_v6 = vsel %vm2604_vm8, %v2620_v22, %v2622_v54  ;;  %v7564_v53 = vcombine.low %v1958_v2, %v1965_v18  ;;  %v1357_v61 = vrot.slane %v1343_v55, %v7110_v27  ;;  %v1358_v50 = vcombine.high %v1350_v40, %v1350_v40 }
 0x12d   : > { %v6284_v15 = vpack.i.bf16 %v3379_v14, %v3377_v0  ;;  %v2625_v47 = vsel %vm2604_vm8, %v2622_v54, %v10102_v59  ;;  %v3557_v60 = vrot.slane %v7258_v11, 6  ;;  %v3559_v1 = vrot.slane %v7314_v52, 6 }
 0x12e   : > { %10176 = vst [vmem:[#allocation14_spill] sm:$0xff] %v7564_v53  ;;  %v2618_v37 = vrot.slane %v7496_v3, 2  ;;  %v954_v2 = vsel %vm846_vm2, %v868_v23, 0.0  ;;  %v1316_v18 = vrot.slane %v1302_v56, %v7110_v27  ;;  %v7578_v55 = vpack.i.bf16 %v2625_v47, %v2623_v6 }
 0x12f   : > { %6285 = vrot.lane.b32.xlu1 %v6284_v15, %s7012_s19  ;;  %v3558_v0 = vsel %vm474_vm0, %v3556_v16, %v3557_v60  ;;  %v3560_v19 = vsel %vm474_vm0, %v3557_v60, %v3559_v1  ;;  %v2436_v14 = vrot.slane %v7496_v3, 1  ;;  %v1359_v59 = vcombine.high %v1357_v61, %v1357_v61 }
 0x130   : > { %v2621_v54 = vsel %vm2604_vm8, %v2618_v37, %v2620_v22  ;;  %v7586_v23 = vcombine.low %v1350_v40, %v1358_v50  ;;  %v1309_v56 = vrot.slane %v869_v28, %v7110_v27  ;;  %6310 = vrot.lane.b32.xlu0 %v7578_v55, %s7007_s14  ;;  %v6289_v6 = vpack.i.bf16 %v3560_v19, %v3558_v0  ;;  %v576_v50 = vpop.f32.mrf.mxu0 }
 0x131   : > { %v10177_v15 = vrot.slane %v7314_v52, 2  ;;  %v2439_v47 = vsel %vm2422_vm7, %v2436_v14, %v2438_v43  ;;  %v2908_v60 = vrot.slane %v7496_v3, 3  ;;  %v2910_v22 = vrot.slane %v7361_v63, 3 }
 0x132   : > { %v1317_v5 = vcombine.high %v1309_v56, %v1309_v56  ;;  %v1318_v36 = vcombine.high %v1316_v18, %v1316_v18  ;;  %v1325_v40 = vrot.slane %v954_v2, %v7110_v27  ;;  %v10178_v0 = vrot.slane %v7314_v52, 1  ;;  %v6146_v38 = vpop.f32.mrf.mxu0 }
 0x133   : > { %v2619_v16 = vsel %vm2604_vm8, %v10177_v15, %v2618_v37  ;;  %6290 = vrot.lane.b32.xlu1 %v6289_v6, %s7013_s20  ;;  %v2911_v37 = vsel %vm2898_vm4, %v2908_v60, %v2910_v22  ;;  %v3091_v43 = vrot.slane %v7361_v63, 4  ;;  %v664_v15 = vmul.f32 %v6145_v7, %v7145_v39 }
 0x134   : > { %v6314_v28 = vpack.i.bf16 %v2621_v54, %v2619_v16  ;;  %v2437_v19 = vsel %vm2422_vm7, %v10178_v0, %v2436_v14  ;;  %v2016_v62 = vrot.slane %v7551_v58, %v7110_v27  ;;  %v7607_v8 = vcombine.low %v1357_v61, %v1359_v59 }
 0x135   : > { %v6294_v54 = vpack.i.bf16 %v2439_v47, %v2437_v19  ;;  %v7615_v14 = vcombine.low %v1301_v44, %v1309_v56  ;;  %v10179_v6 = vrot.slane %v7314_v52, 3  ;;  %v3089_v16 = vrot.slane %v7496_v3, 4 }
 0x136   : > { %6315 = vrot.lane.b32.xlu0 %v6314_v28, %s7008_s15  ;;  %v703_v59 = vadd.f32 %v7150_v41, %v664_v15  ;;  %v7622_v61 = vcombine.low %v1317_v5, %v1316_v18  ;;  %v7624_v0 = vcombine.low %v1318_v36, %v1325_v40  ;;  %v662_v19 = vmul.f32 %v7145_v39, %v576_v50 }
 0x137   : > { %v2909_v7 = vsel %vm2898_vm4, %v10179_v6, %v2908_v60  ;;  %6295 = vrot.lane.b32.xlu1 %v6294_v54, %s7006_s13  ;;  %v3092_v44 = vsel %vm10148_vm5, %v3089_v16, %v3091_v43  ;;  %v10104_v56 = vrot.slane %v7361_v63, 5  ;;  %v3380_v15 = vrot.slane %v7496_v3, 5 }
 0x138   : > { %v6324_v47 = vpack.i.bf16 %v2911_v37, %v2909_v7  ;;  %vm735_vm13 = vcmp.ge.f32.partialorder %v703_v59, 0.0  ;;  %v767_v60 = vmul.f32 0.1, %v703_v59  ;;  %v701_v5 = vadd.f32 %v7150_v41, %v662_v19  ;;  %v579_v7 = vpop.f32.mrf.mxu0 }
 0x139   : > { %v665_v36 = vmul.f32 %v6146_v38, %v7145_v39  ;;  %v3090_v18 = vsel %vm10148_vm5, %v3087_v48, %v3089_v16  ;;  %v2912_v50 = vrot.slane %v7303_v21, 3  ;;  %v10106_v19 = vrot.slane %v7488_v49, 3 }
 0x13a   : > { %6325 = vrot.lane.b32.xlu0 %v6324_v47, %s7009_s16  ;;  %v7637_v40 = vsel %vm735_vm13, %v703_v59, %v767_v60  ;;  %v7641_v37 = vpack.i.bf16 %v3092_v44, %v3090_v18  ;;  %vm733_vm14 = vcmp.ge.f32.partialorder %v701_v5, 0.0  ;;  %v765_v6 = vmul.f32 0.1, %v701_v5 }
 0x13b   : > { %6305 = vrot.lane.b32.xlu1 %v6314_v28, %s7007_s14  ;;  %v10105_v54 = vrot.slane %v7637_v40, 7  ;;  %v3383_v47 = vsel %vm10144_vm11, %v3380_v15, %v10104_v56  ;;  %v10107_v48 = vrot.slane %v7361_v63, 6  ;;  %v704_v16 = vadd.f32 %v7150_v41, %v665_v36 }
 0x13c   : > { %v3381_v28 = vsel %vm10144_vm11, %v3378_v25, %v3380_v15  ;;  %v7658_v38 = vsel %vm733_vm14, %v701_v5, %v765_v6  ;;  %v3561_v44 = vrot.slane %v7496_v3, 6  ;;  %v2913_v18 = vsel %vm2898_vm4, %v2910_v22, %v2912_v50 }
 0x13d   : > { %v940_v59 = vsel %vm846_vm2, 0.0, %v10105_v54  ;;  %v873_v36 = vrot.slane %v7658_v38, 7  ;;  %v663_v56 = vmul.f32 %v7145_v39, %v579_v7  ;;  %v6334_v25 = vpack.i.bf16 %v3383_v47, %v3381_v28 }
 0x13e   : > { %6330 = vrot.lane.b32.xlu0 %v7641_v37, %s7011_s18  ;;  %v1415_v60 = vrot.slane %v940_v59, %v7110_v27  ;;  %vm736_vm15 = vcmp.ge.f32.partialorder %v704_v16, 0.0  ;;  %v768_v15 = vmul.f32 0.1, %v704_v16  ;;  %v3093_v54 = vrot.slane %v7303_v21, 4 }
 0x13f   : > { %6320 = vrot.lane.b32.xlu1 %v7578_v55, %s7008_s15  ;;  %v1408_v5 = vcombine.high %v940_v59, %v940_v59  ;;  %v2915_v6 = vsel %vm2898_vm4, %v2912_v50, %v10106_v19  ;;  %v3564_v22 = vsel %vm474_vm0, %v3561_v44, %v10107_v48  ;;  %v3095_v2 = vrot.slane %v7488_v49, 4 }
 0x140   : > { %v6344_v39 = vpack.i.bf16 %v2915_v6, %v2913_v18  ;;  %v939_v55 = vsel %vm846_vm2, 0.0, %v873_v36  ;;  %v3562_v7 = vsel %vm474_vm0, %v3559_v1, %v3561_v44  ;;  %v3094_v47 = vsel %vm10148_vm5, %v3091_v43, %v3093_v54 }
 0x141   : > { %v1423_v50 = vcombine.high %v1415_v60, %v1415_v60  ;;  %v1374_v28 = vrot.slane %v939_v55, %v7110_v27  ;;  %v800_v59 = vsel %vm736_vm15, %v704_v16, %v768_v15  ;;  %v702_v19 = vadd.f32 %v7150_v41, %v663_v56 }
 0x142   : > { %6335 = vrot.lane.b32.xlu0 %v6334_v25, %s7012_s19  ;;  %v2033_v25 = vrot.slane %v7607_v8, %v7110_v27  ;;  %v1982_v18 = vrot.slane %v7615_v14, %v7110_v27  ;;  %v6339_v6 = vpack.i.bf16 %v3564_v22, %v3562_v7  ;;  %v10112_v48 = vrot.slane %v7517_v26, 1  ;;  %v6955_v8 = vld [vmem:[%s10095_s4 + $0x8] ss:$0 sps:$4 sm:$0x11]  }
 0x143   : > { %6345 = vrot.lane.b32.xlu1 %v6344_v39, %s7009_s16  ;;  %v1422_v1 = vrot.slane %v1408_v5, %v7110_v27  ;;  %v1367_v43 = vcombine.high %v939_v55, %v939_v55  ;;  %v3096_v16 = vsel %vm10148_vm5, %v3093_v54, %v3095_v2  ;;  %v2444_v41 = vrot.slane %v7504_v45, 1  ;;  %6200 = vmatprep.subr.msk.bf16.mxu1 %vm846_vm2, %v6955_v8 }
 0x144   : > { %v1992_v14 = vrot.slane %v7622_v61, %v7110_v27  ;;  %v1999_v56 = vrot.slane %v7624_v0, %v7110_v27  ;;  %v877_v44 = vrot.slane %v800_v59, 7  ;;  %v6354_v15 = vpack.i.bf16 %v3096_v16, %v3094_v47 }
 0x145   : > { %v10180_v54 = vrot.slane %v7527_v12, %v7110_v27  ;;  %v7712_v22 = vcombine.low %v1415_v60, %v1423_v50  ;;  %v1382_v39 = vcombine.high %v1374_v28, %v1374_v28  ;;  %v766_v55 = vmul.f32 0.1, %v702_v19 }
 0x146   : > { %6340 = vrot.lane.b32.xlu0 %v6339_v6, %s7013_s20  ;;  %v10182_v61 = vrot.slane %v7586_v23, %v7110_v27  ;;  %vm734_vm3 = vcmp.ge.f32.partialorder %v702_v19, 0.0  ;;  %v2447_v12 = vsel %vm2422_vm7, %v2444_v41, %v10112_v48  ;;  %v10184_v58 = vrot.slane %v7537_v20, %v7110_v27 }
 0x147   : > { %v7710_v5 = vcombine.low %v10180_v54, %v2016_v62  ;;  %6355 = vrot.lane.b32.xlu1 %v6354_v15, %s7010_s17  ;;  %v1424_v60 = vcombine.high %v1422_v1, %v1422_v1  ;;  %v7730_v7 = vrot.slane %v1367_v43, %v7110_v27  ;;  %v10186_v23 = vrot.slane %v7488_v49, 1 }
 0x148   : > { %v7718_v0 = vcombine.low %v10182_v61, %v2033_v25  ;;  %v7727_v62 = vcombine.low %v10184_v58, %v1982_v18  ;;  %v7735_v50 = vcombine.low %v1992_v14, %v1999_v56  ;;  %v10188_v59 = vrot.slane %v7532_v57, %v7110_v27 }
 0x149   : > { %10181 = vst [vmem:[#allocation15_spill] sm:$0xff] %v7710_v5  ;;  %v2445_v47 = vsel %vm2422_vm7, %v10186_v23, %v2444_v41  ;;  %v10189_v6 = vrot.slane %v7637_v40, 7  ;;  %v2036_v16 = vcombine.low %v1382_v39, %v7730_v7  ;;  %v798_v41 = vsel %vm734_vm3, %v702_v19, %v766_v55 }
 0x14a   : > { %10183 = vst [vmem:[#allocation16_spill] sm:$0xff] %v7718_v0  ;;  %10185 = vst [vmem:[#allocation17_spill] sm:$0xff] %v7727_v62  ;;  %v2035_v25 = vcombine.low %v10188_v59, %v1374_v28  ;;  %6350 = vrot.lane.b32.xlu0 %v7641_v37, %s7010_s17  ;;  %v6374_v18 = vpack.i.bf16 %v2447_v12, %v2445_v47  ;;  %v2626_v8 = vrot.slane %v7504_v45, 2  ;;  %v2628_v57 = vrot.slane %v7517_v26, 2 }
 0x14b   : > { %10187 = vst [vmem:[#allocation18_spill] sm:$0xff] %v7735_v50  ;;  %v878_v20 = vsel %vm846_vm2, %v10189_v6, %v877_v44  ;;  %v3384_v40 = vrot.slane %v7303_v21, 5  ;;  %v7753_v28 = vcombine.low %v1422_v1, %v1424_v60  ;;  %v1383_v37 = vcombine.high %v7730_v7, %v7730_v7 }
 0x14c   : > { %v1432_v14 = vrot.slane %v878_v20, %v7110_v27  ;;  %6375 = vrot.lane.b32.xlu1 %v6374_v18, %s7006_s13  ;;  %v7758_v56 = vsel %vm846_vm2, %v877_v44, 0.0  ;;  %v1425_v54 = vcombine.high %v878_v20, %v878_v20  ;;  %v874_v19 = vrot.slane %v798_v41, 7  ;;  %v6149_v41 = vpop.f32.mrf.mxu0 }
 0x14d   : > { %v2629_v39 = vsel %vm2604_vm8, %v2626_v8, %v2628_v57  ;;  %v10190_v55 = vrot.slane %v7361_v63, 5  ;;  %v3386_v1 = vrot.slane %v7488_v49, 5  ;;  %v2043_v12 = vrot.slane %v2035_v25, %v7110_v27 }
 0x14e   : > { %6360 = vrot.lane.b32.xlu0 %v6354_v15, %s7011_s18  ;;  %v2050_v58 = vrot.slane %v2036_v16, %v7110_v27  ;;  %v10191_v44 = vrot.slane %v7488_v49, 2  ;;  %v3097_v15 = vrot.slane %v7504_v45, 4  ;;  %v1440_v23 = vcombine.high %v1432_v14, %v1432_v14 }
 0x14f   : > { %v3385_v61 = vsel %vm10144_vm11, %v10190_v55, %v3384_v40  ;;  %v3387_v59 = vsel %vm10144_vm11, %v3384_v40, %v3386_v1  ;;  %v10108_v6 = vrot.slane %v7517_v26, 4  ;;  %v7779_v18 = vrot.slane %v1425_v54, %v7110_v27 }
 0x150   : > { %v2627_v60 = vsel %vm2604_vm8, %v10191_v44, %v2626_v8  ;;  %v6364_v25 = vpack.i.bf16 %v3387_v59, %v3385_v61  ;;  %v3565_v16 = vrot.slane %v7303_v21, 6  ;;  %v875_v8 = vsel %vm846_vm2, %v873_v36, %v874_v19 }
 0x151   : > { %v6379_v47 = vpack.i.bf16 %v2629_v39, %v2627_v60  ;;  %v3100_v40 = vsel %vm10148_vm5, %v3097_v15, %v10108_v6  ;;  %v3567_v39 = vrot.slane %v7488_v49, 6  ;;  %v10109_v55 = vrot.slane %v7517_v26, 5 }
 0x152   : > { %6365 = vrot.lane.b32.xlu0 %v6364_v25, %s7012_s19  ;;  %v3098_v38 = vsel %vm10148_vm5, %v3095_v2, %v3097_v15  ;;  %v10192_v36 = vrot.slane %v7361_v63, 6  ;;  %v3388_v44 = vrot.slane %v7504_v45, 5  ;;  %v7801_v60 = vcombine.low %v2043_v12, %v2050_v58  ;;  %v592_v15 = vpop.f32.mrf.mxu0 }
 0x153   : > { %6380 = vrot.lane.b32.xlu1 %v6379_v47, %s7007_s14  ;;  %v7803_v59 = vcombine.low %v1432_v14, %v1440_v23  ;;  %v7805_v43 = vpack.i.bf16 %v3100_v40, %v3098_v38  ;;  %v3568_v54 = vsel %vm474_vm0, %v3565_v16, %v3567_v39  ;;  %v7809_v25 = vsel %vm846_vm2, %v874_v19, 0.0 }
 0x154   : > { %v3566_v61 = vsel %vm474_vm0, %v10192_v36, %v3565_v16  ;;  %10193 = vst [vmem:[#allocation19_spill] sm:$0xff] %v7801_v60  ;;  %v1384_v20 = vcombine.high %v875_v8, %v875_v8  ;;  %v3391_v2 = vsel %vm10144_vm11, %v3388_v44, %v10109_v55  ;;  %v10110_v14 = vrot.slane %v7517_v26, 6 }
 0x155   : > { %v6369_v6 = vpack.i.bf16 %v3568_v54, %v3566_v61  ;;  %v2918_v58 = vrot.slane %v7517_v26, 3  ;;  %v2630_v19 = vrot.slane %v7523_v51, 2  ;;  %v7822_v23 = vrot.slane %v875_v8, %v7110_v27 }
 0x156   : > { %v3389_v16 = vsel %vm10144_vm11, %v3386_v1, %v3388_v44  ;;  %v3569_v40 = vrot.slane %v7504_v45, 6  ;;  %v10111_v54 = vrot.slane %v7512_v24, 2  ;;  %v2916_v55 = vrot.slane %v7504_v45, 3  ;;  %v6150_v44 = vpop.f32.mrf.mxu0 }
 0x157   : > { %6390 = vrot.lane.b32.xlu1 %v7805_v43, %s7011_s18  ;;  %6370 = vrot.lane.b32.xlu0 %v6369_v6, %s7013_s20  ;;  %v6394_v61 = vpack.i.bf16 %v3391_v2, %v3389_v16  ;;  %v7834_v8 = vrot.slane %v1384_v20, %v7110_v27  ;;  %v2920_v6 = vrot.slane %v7523_v51, 3  ;;  %v2631_v2 = vsel %vm2604_vm8, %v2628_v57, %v2630_v19  ;;  %v7851_v16 = vld [vmem:[%s10093_s2] ss:$0 sm:$0xff] }
 0x158   : > { %v3572_v1 = vsel %vm474_vm0, %v3569_v40, %v10110_v14  ;;  %v2919_v38 = vsel %vm2898_vm4, %v2916_v55, %v2918_v58  ;;  %v2633_v20 = vsel %vm2604_vm8, %v2630_v19, %v10111_v54  ;;  %v668_v14 = vmul.f32 %v7851_v16, %v6149_v41 }
 0x159   : > { %v7860_v36 = vcombine.low %v1383_v37, %v7822_v23  ;;  %v3570_v57 = vsel %vm474_vm0, %v3567_v39, %v3569_v40  ;;  %v666_v19 = vmul.f32 %v7851_v16, %v592_v15  ;;  %v10194_v12 = vrot.slane %v7488_v49, 3 }
 0x15a   : > { %v6399_v54 = vpack.i.bf16 %v3572_v1, %v3570_v57  ;;  %v10116_v48 = vrot.slane %v7512_v24, 3  ;;  %v707_v7 = vadd.f32 %v7872_v17, %v668_v14  ;;  %v2921_v39 = vsel %vm2898_vm4, %v2918_v58, %v2920_v6 }
 0x15b   : > { %6395 = vrot.lane.b32.xlu1 %v6394_v61, %s7012_s19  ;;  %v1399_v61 = vcombine.high %v7822_v23, %v7822_v23  ;;  %6385 = vrot.lane.b32.xlu0 %v6379_v47, %s7008_s15  ;;  %v2917_v41 = vsel %vm2898_vm4, %v10194_v12, %v2916_v55  ;;  %v7875_v47 = vpack.i.bf16 %v2633_v20, %v2631_v2  ;;  %v595_v23 = vpop.f32.mrf.mxu0  ;;  %v2448_v12 = vrot.slane %v7523_v51, 1 }
 0x15c   : > { %v6404_v37 = vpack.i.bf16 %v2919_v38, %v2917_v41  ;;  %v705_v15 = vadd.f32 %v7872_v17, %v666_v19  ;;  %vm739_vm6 = vcmp.ge.f32.partialorder %v707_v7, 0.0  ;;  %v771_v55 = vmul.f32 0.1, %v707_v7 }
 0x15d   : > { %v2450_v40 = vrot.slane %v7512_v24, 1  ;;  %v3101_v38 = vrot.slane %v7523_v51, 4  ;;  %v669_v1 = vmul.f32 %v7851_v16, %v6150_v44  ;;  %v2923_v58 = vsel %vm2898_vm4, %v2920_v6, %v10116_v48 }
 0x15e   : > { %vm737_vm9 = vcmp.ge.f32.partialorder %v705_v15, 0.0  ;;  %v769_v14 = vmul.f32 0.1, %v705_v15  ;;  %v803_v2 = vsel %vm739_vm6, %v707_v7, %v771_v55  ;;  %v667_v20 = vmul.f32 %v7851_v16, %v595_v23 }
 0x15f   : > { %6400 = vrot.lane.b32.xlu1 %v6399_v54, %s7013_s20  ;;  %6405 = vrot.lane.b32.xlu0 %v6404_v37, %s7009_s16  ;;  %v10117_v54 = vrot.slane %v7512_v24, 4  ;;  %v882_v57 = vrot.slane %v803_v2, 7  ;;  %v708_v41 = vadd.f32 %v7872_v17, %v669_v1  ;;  %v10195_v37 = vrot.slane %v7517_v26, 1 }
 0x160   : > { %v801_v19 = vsel %vm737_vm9, %v705_v15, %v769_v14  ;;  %v2451_v42 = vsel %vm2422_vm7, %v2448_v12, %v2450_v40  ;;  %v706_v6 = vadd.f32 %v7872_v17, %v667_v20  ;;  %v6429_v7 = vpack.i.bf16 %v2923_v58, %v2921_v39 }
 0x161   : > { %v2449_v44 = vsel %vm2422_vm7, %v10195_v37, %v2448_v12  ;;  %v879_v32 = vrot.slane %v801_v19, 7  ;;  %v942_v15 = vsel %vm846_vm2, 0.0, %v882_v57  ;;  %vm740_vm10 = vcmp.ge.f32.partialorder %v708_v41, 0.0 }
 0x162   : > { %v772_v23 = vmul.f32 0.1, %v708_v41  ;;  %v10196_v55 = vrot.slane %v7517_v26, 4  ;;  %v3104_v1 = vsel %vm10148_vm5, %v3101_v38, %v10117_v54  ;;  %v2452_v12 = vrot.slane %v7564_v53, 1 }
 0x163   : > { %6425 = vrot.lane.b32.xlu1 %v7875_v47, %s7008_s15  ;;  %6410 = vrot.lane.b32.xlu0 %v7805_v43, %s7010_s17  ;;  %v10118_v2 = vrot.slane %v7727_v62, 1  ;;  %v6414_v20 = vpack.i.bf16 %v2451_v42, %v2449_v44  ;;  %vm738_vm12 = vcmp.ge.f32.partialorder %v706_v6, 0.0  ;;  %v770_v43 = vmul.f32 0.1, %v706_v6 }
 0x164   : > { %v3102_v14 = vsel %vm10148_vm5, %v10196_v55, %v3101_v38  ;;  %v804_v19 = vsel %vm740_vm10, %v708_v41, %v772_v23  ;;  %v1400_v39 = vcombine.high %v7834_v8, %v7834_v8  ;;  %v1490_v58 = vcombine.high %v942_v15, %v942_v15 }
 0x165   : > { %v941_v37 = vsel %vm846_vm2, 0.0, %v879_v32  ;;  %v883_v55 = vrot.slane %v804_v19, 7  ;;  %v10197_v38 = vcombine.high %v7779_v18, %v7779_v18  ;;  %v7920_v42 = vcombine.low %v1399_v61, %v7834_v8 }
 0x166   : > { %v1497_v41 = vrot.slane %v942_v15, %v7110_v27  ;;  %v6434_v44 = vpack.i.bf16 %v3104_v1, %v3102_v14  ;;  %v802_v23 = vsel %vm738_vm12, %v706_v6, %v770_v43  ;;  %v2453_v54 = vsel %vm2422_vm7, %v2450_v40, %v2452_v12 }
 0x167   : > { %6430 = vrot.lane.b32.xlu1 %v6429_v7, %s7009_s16  ;;  %v7917_v48 = vcombine.low %v7779_v18, %v10197_v38  ;;  %6415 = vrot.lane.b32.xlu0 %v6414_v20, %s7006_s13  ;;  %v884_v7 = vsel %vm846_vm2, %v882_v57, %v883_v55  ;;  %v2455_v19 = vsel %vm2422_vm7, %v2452_v12, %v10118_v2  ;;  %v880_v12 = vrot.slane %v802_v23, 7 }
 0x168   : > { %v10198_v18 = vrot.slane %v7803_v59, %v7110_v27  ;;  %v10199_v8 = vrot.slane %v7753_v28, %v7110_v27  ;;  %v1449_v15 = vcombine.high %v941_v37, %v941_v37  ;;  %v1507_v20 = vcombine.high %v884_v7, %v884_v7 }
 0x169   : > { %v10201_v40 = vrot.slane %v7809_v25, %v7110_v27  ;;  %v1504_v14 = vrot.slane %v1490_v58, %v7110_v27  ;;  %v1456_v1 = vrot.slane %v941_v37, %v7110_v27  ;;  %v1505_v59 = vcombine.high %v1497_v41, %v1497_v41 }
 0x16a   : > { %v7935_v61 = vcombine.low %v10199_v8, %v10198_v18  ;;  %v6454_v43 = vpack.i.bf16 %v2455_v19, %v2453_v54  ;;  %v1514_v38 = vrot.slane %v884_v7, %v7110_v27  ;;  %v1521_v25 = vrot.slane %v1507_v20, %v7110_v27 }
 0x16b   : > { %v7942_v6 = vcombine.low %v1400_v39, %v10201_v40  ;;  %6435 = vrot.lane.b32.xlu1 %v6434_v44, %s7010_s17  ;;  %6420 = vrot.lane.b32.xlu0 %v7875_v47, %s7007_s14  ;;  %v2634_v39 = vrot.slane %v7564_v53, 2  ;;  %v10119_v58 = vrot.slane %v7727_v62, 2  ;;  %v1463_v37 = vrot.slane %v1449_v15, %v7110_v27  ;;  %v6153_v40 = vpop.f32.mrf.mxu0 }
 0x16c   : > { %10200 = vst [vmem:[#allocation20_spill] sm:$0xff] %v7935_v61  ;;  %v881_v18 = vsel %vm846_vm2, %v879_v32, %v880_v12  ;;  %v3392_v8 = vrot.slane %v7523_v51, 5  ;;  %v1506_v47 = vcombine.high %v1504_v14, %v1504_v14  ;;  %v1464_v23 = vcombine.high %v1456_v1, %v1456_v1 }
 0x16d   : > { %v7963_v7 = vcombine.low %v1497_v41, %v1505_v59  ;;  %v10202_v19 = vrot.slane %v7758_v56, %v7110_v27  ;;  %v10203_v32 = vrot.slane %v7512_v24, 2  ;;  %v2637_v2 = vsel %vm2604_vm8, %v2634_v39, %v10119_v58 }
 0x16e   : > { %v7978_v54 = vsel %vm846_vm2, %v883_v55, 0.0  ;;  %v1522_v41 = vcombine.high %v1514_v38, %v1514_v38  ;;  %v1523_v59 = vcombine.high %v1521_v25, %v1521_v25  ;;  %v1465_v56 = vcombine.high %v1463_v37, %v1463_v37 }
 0x16f   : > { %6455 = vrot.lane.b32.xlu1 %v6454_v43, %s7006_s13  ;;  %v7968_v15 = vcombine.low %v10202_v19, %v1456_v1  ;;  %6440 = vrot.lane.b32.xlu0 %v6434_v44, %s7011_s18  ;;  %v2635_v20 = vsel %vm2604_vm8, %v10203_v32, %v2634_v39  ;;  %v1466_v43 = vcombine.high %v881_v18, %v881_v18  ;;  %v10204_v19 = vrot.slane %v7517_v26, 5 }
 0x170   : > { %v6459_v1 = vpack.i.bf16 %v2637_v2, %v2635_v20  ;;  %v3394_v57 = vrot.slane %v7512_v24, 5  ;;  %v7984_v32 = vcombine.low %v1504_v14, %v1506_v47  ;;  %v7986_v28 = vcombine.low %v1464_v23, %v1463_v37  ;;  %v608_v47 = vpop.f32.mrf.mxu0 }
 0x171   : > { %v3393_v44 = vsel %vm10144_vm11, %v10204_v19, %v3392_v8  ;;  %v7989_v39 = vsel %vm846_vm2, %v880_v12, 0.0  ;;  %v3105_v55 = vrot.slane %v7564_v53, 4  ;;  %v1473_v58 = vrot.slane %v881_v18, %v7110_v27 }
 0x172   : > { %v3395_v2 = vsel %vm10144_vm11, %v3392_v8, %v3394_v57  ;;  %v10122_v20 = vrot.slane %v7727_v62, 4  ;;  %v3573_v19 = vrot.slane %v7523_v51, 6  ;;  %v7997_v35 = vcombine.low %v1514_v38, %v1522_v41 }
 0x173   : > { %6460 = vrot.lane.b32.xlu1 %v6459_v1, %s7007_s14  ;;  %v7999_v14 = vcombine.low %v1521_v25, %v1523_v59  ;;  %v8002_v37 = vrot.slane %v1466_v43, %v7110_v27  ;;  %v6444_v12 = vpack.i.bf16 %v3395_v2, %v3393_v44  ;;  %v10205_v23 = vrot.slane %v7512_v24, 4 }
 0x174   : > { %v3108_v8 = vsel %vm10148_vm5, %v3105_v55, %v10122_v20  ;;  %v10206_v31 = vrot.slane %v7517_v26, 6  ;;  %v3575_v25 = vrot.slane %v7512_v24, 6  ;;  %v1489_v41 = vrot.slane %v7989_v39, %v7110_v27 }
 0x175   : > { %v3106_v18 = vsel %vm10148_vm5, %v10205_v23, %v3105_v55  ;;  %6445 = vrot.lane.b32.xlu0 %v6444_v12, %s7012_s19  ;;  %v3396_v43 = vrot.slane %v7564_v53, 5  ;;  %v10125_v44 = vrot.slane %v7727_v62, 5  ;;  %v1481_v2 = vcombine.high %v1473_v58, %v1473_v58 }
 0x176   : > { %v3574_v38 = vsel %vm474_vm0, %v10206_v31, %v3573_v19  ;;  %v8017_v59 = vpack.i.bf16 %v3108_v8, %v3106_v18  ;;  %v3576_v55 = vsel %vm474_vm0, %v3573_v19, %v3575_v25  ;;  %v3577_v23 = vrot.slane %v7564_v53, 6  ;;  %v6154_v8 = vpop.f32.mrf.mxu0 }
 0x177   : > { %v10126_v31 = vrot.slane %v7727_v62, 6  ;;  %v8024_v20 = vcombine.low %v1465_v56, %v1473_v58  ;;  %v6449_v39 = vpack.i.bf16 %v3576_v55, %v3574_v38  ;;  %v3397_v12 = vsel %vm10144_vm11, %v3394_v57, %v3396_v43  ;;  %v8032_v34 = vpop.permute.xlu0 %6220 }
 0x178   : > { %6470 = vrot.lane.b32.xlu1 %v8017_v59, %s7011_s18  ;;  %v3399_v18 = vsel %vm10144_vm11, %v3396_v43, %v10125_v44  ;;  %v1482_v19 = vcombine.high %v8002_v37, %v8002_v37  ;;  %v3578_v58 = vsel %vm474_vm0, %v3575_v25, %v3577_v23  ;;  %v672_v56 = vmul.f32 %v7851_v16, %v6153_v40 }
 0x179   : > { %v6474_v26 = vpack.i.bf16 %v3399_v18, %v3397_v12  ;;  %6450 = vrot.lane.b32.xlu0 %v6449_v39, %s7013_s20  ;;  %v3580_v57 = vsel %vm474_vm0, %v3577_v23, %v10126_v31  ;;  %v2924_v38 = vrot.slane %v7564_v53, 3  ;;  %v10130_v43 = vrot.slane %v7727_v62, 3  ;;  %v611_v31 = vpop.f32.mrf.mxu0 }
 0x17a   : > { %v670_v55 = vmul.f32 %v7851_v16, %v608_v47  ;;  %v711_v44 = vadd.f32 %v7872_v17, %v672_v56  ;;  %v2638_v12 = vrot.slane %v7735_v50, 2  ;;  %v673_v40 = vmul.f32 %v7851_v16, %v6154_v8 }
 0x17b   : > { %v10207_v39 = vrot.slane %v7512_v24, 3  ;;  %v2927_v18 = vsel %vm2898_vm4, %v2924_v38, %v10130_v43  ;;  %v8057_v56 = vpop.permute.xlu0 %6225  ;;  %v2137_v53 = vcombine.low %v1481_v2, %v8002_v37  ;;  %v6479_v25 = vpack.i.bf16 %v3580_v57, %v3578_v58 }
 0x17c   : > { %6475 = vrot.lane.b32.xlu1 %v6474_v26, %s7012_s19  ;;  %v709_v47 = vadd.f32 %v7872_v17, %v670_v55  ;;  %vm743_vm13 = vcmp.ge.f32.partialorder %v711_v44, 0.0  ;;  %v775_v8 = vmul.f32 0.1, %v711_v44  ;;  %v10209_v43 = vrot.slane %v7710_v5, 2 }
 0x17d   : > { %v2925_v23 = vsel %vm2898_vm4, %v10207_v39, %v2924_v38  ;;  %6465 = vrot.lane.b32.xlu0 %v6459_v1, %s7008_s15  ;;  %v712_v39 = vadd.f32 %v7872_v17, %v673_v40  ;;  %v10208_v38 = vrot.slane %v7727_v62, 2  ;;  %v671_v37 = vmul.f32 %v7851_v16, %v611_v31 }
 0x17e   : > { %v6484_v26 = vpack.i.bf16 %v2927_v18, %v2925_v23  ;;  %vm741_vm14 = vcmp.ge.f32.partialorder %v709_v47, 0.0  ;;  %v773_v24 = vmul.f32 0.1, %v709_v47  ;;  %v807_v51 = vsel %vm743_vm13, %v711_v44, %v775_v8  ;;  %v8069_v2 = vpop.permute.xlu1 %6235 }
 0x17f   : > { %v2639_v55 = vsel %vm2604_vm8, %v10208_v38, %v2638_v12  ;;  %v2641_v49 = vsel %vm2604_vm8, %v2638_v12, %v10209_v43  ;;  %v888_v1 = vrot.slane %v807_v51, 7  ;;  %vm744_vm15 = vcmp.ge.f32.partialorder %v712_v39, 0.0 }
 0x180   : > { %6480 = vrot.lane.b32.xlu1 %v6479_v25, %s7013_s20  ;;  %v805_v58 = vsel %vm741_vm14, %v709_v47, %v773_v24  ;;  %v776_v57 = vmul.f32 0.1, %v712_v39  ;;  %v2118_v44 = vrot.slane %v7968_v15, %v7110_v27  ;;  %v2138_v40 = vcombine.low %v1482_v19, %v1489_v41  ;;  %v8075_v8 = vpop.permute.xlu0 %6230 }
 0x181   : > { %v885_v23 = vrot.slane %v805_v58, 7  ;;  %v710_v18 = vadd.f32 %v7872_v17, %v671_v37  ;;  %v2162_v16 = vrot.slane %v7963_v7, %v7110_v27  ;;  %v944_v31 = vsel %vm846_vm2, 0.0, %v888_v1  ;;  %6485 = vrot.lane.b32.xlu0 %v6484_v26, %s7009_s16 }
 0x182   : > { %v8081_v51 = vpack.i.bf16 %v2641_v49, %v2639_v55  ;;  %v808_v24 = vsel %vm744_vm15, %v712_v39, %v776_v57  ;;  %v2169_v43 = vrot.slane %v7984_v32, %v7110_v27  ;;  %v2128_v15 = vrot.slane %v7986_v28, %v7110_v27 }
 0x183   : > { %v2179_v17 = vrot.slane %v7997_v35, %v7110_v27  ;;  %v2186_v41 = vrot.slane %v7999_v14, %v7110_v27  ;;  %v2135_v7 = vrot.slane %v8024_v20, %v7110_v27  ;;  %v2145_v19 = vrot.slane %v2137_v53, %v7110_v27  ;;  %v8096_v12 = vpop.permute.xlu1 %6240 }
 0x184   : > { %6505 = vrot.lane.b32.xlu1 %v8081_v51, %s7008_s15  ;;  %v889_v49 = vrot.slane %v808_v24, 7  ;;  %v2152_v32 = vrot.slane %v2138_v40, %v7110_v27  ;;  %v1572_v28 = vcombine.high %v944_v31, %v944_v31  ;;  %v943_v25 = vsel %vm846_vm2, 0.0, %v885_v23 }
 0x185   : > { %v774_v35 = vmul.f32 0.1, %v710_v18  ;;  %v10210_v14 = vrot.slane %v7920_v42, %v7110_v27  ;;  %v10211_v20 = vrot.slane %v7860_v36, %v7110_v27  ;;  %v10213_v53 = vrot.slane %v7712_v22, %v7110_v27  ;;  %6490 = vrot.lane.b32.xlu0 %v8017_v59, %s7010_s17  ;;  %v8129_v37 = vpop.permute.xlu0 %6245 }
 0x186   : > { %v10214_v26 = vrot.slane %v7942_v6, %v7110_v27  ;;  %v1530_v38 = vrot.slane %v7978_v54, %v7110_v27  ;;  %vm742_vm3 = vcmp.ge.f32.partialorder %v710_v18, 0.0  ;;  %v8120_v42 = vcombine.low %v2162_v16, %v2169_v43 }
 0x187   : > { %v8106_v47 = vcombine.low %v10211_v20, %v10210_v14  ;;  %v10216_v36 = vrot.slane %v7917_v48, %v7110_v27  ;;  %v1579_v22 = vrot.slane %v944_v31, %v7110_v27  ;;  %v1538_v6 = vrot.slane %v943_v25, %v7110_v27 }
 0x188   : > { %v8114_v39 = vcombine.low %v10214_v26, %v10213_v53  ;;  %v8131_v58 = vcombine.low %v2179_v17, %v2186_v41  ;;  %v8133_v54 = vcombine.low %v2128_v15, %v2135_v7  ;;  %v1531_v57 = vcombine.high %v943_v25, %v943_v25  ;;  %v8143_v41 = vpop.permute.xlu1 %6255 }
 0x189   : > { %10212 = vst [vmem:[#allocation21_spill] sm:$0xff] %v8106_v47  ;;  %v8125_v55 = vcombine.low %v10216_v36, %v2118_v44  ;;  %v890_v59 = vsel %vm846_vm2, %v888_v1, %v889_v49  ;;  %v8136_v40 = vcombine.low %v2145_v19, %v2152_v32  ;;  %v1586_v16 = vrot.slane %v1572_v28, %v7110_v27  ;;  %v8155_v36 = vpop.permute.xlu0 %6250 }
 0x18a   : > { %10215 = vst [vmem:[#allocation22_spill] sm:$0xff] %v8114_v39  ;;  %10217 = vst [vmem:[#allocation23_spill] sm:$0xff] %v8131_v58  ;;  %v806_v48 = vsel %vm742_vm3, %v710_v18, %v774_v35  ;;  %v2928_v44 = vrot.slane %v7735_v50, 3  ;;  %v1596_v31 = vrot.slane %v890_v59, %v7110_v27  ;;  %v6223_v43 = vunpack.i.h.bf16 %v8032_v34 }
 0x18b   : > { %10218 = vst [vmem:[#allocation24_spill] sm:$0xff] %v8133_v54  ;;  %v886_v24 = vrot.slane %v806_v48, 7  ;;  %v10134_v17 = vrot.slane %v7710_v5, 3  ;;  %v1587_v15 = vcombine.high %v1579_v22, %v1579_v22  ;;  %v1546_v7 = vcombine.high %v1538_v6, %v1538_v6 }
 0x18c   : > { %v1589_v25 = vcombine.high %v890_v59, %v890_v59  ;;  %vm3737_vm6 = vcmask 15360   ;;  %v6222_v1 = vunpack.i.l.bf16 %v8032_v34  ;;  %v1545_v19 = vrot.slane %v1531_v57, %v7110_v27 }
 0x18d   : > { %v2188_v18 = vcombine.low %v1530_v38, %v1538_v6  ;;  %v8148_v32 = vsel %vm846_vm2, %v889_v49, 0.0  ;;  %v887_v28 = vsel %vm846_vm2, %v885_v23, %v886_v24  ;;  %v1588_v35 = vcombine.high %v1586_v16, %v1586_v16 }
 0x18e   : > { %v1548_v14 = vcombine.high %v887_v28, %v887_v28  ;;  %v1555_v20 = vrot.slane %v887_v28, %v7110_v27  ;;  %v10219_v53 = vrot.slane %v7727_v62, 3  ;;  %v1604_v59 = vcombine.high %v1596_v31, %v1596_v31 }
 0x18f   : > { %v2931_v34 = vsel %vm2898_vm4, %v2928_v44, %v10134_v17  ;;  %v2456_v49 = vrot.slane %v7735_v50, 1  ;;  %v2458_v38 = vrot.slane %v7710_v5, 1  ;;  %v8162_v23 = vcombine.low %v1579_v22, %v1587_v15  ;;  %v8171_v17 = vpop.permute.xlu1 %6265 }
 0x190   : > { %v2929_v26 = vsel %vm2898_vm4, %v10219_v53, %v2928_v44  ;;  %v2189_v6 = vcombine.low %v1546_v7, %v1545_v19  ;;  %v1603_v57 = vrot.slane %v1589_v25, %v7110_v27  ;;  %v1547_v28 = vcombine.high %v1545_v19, %v1545_v19 }
 0x191   : > { %v6509_v53 = vpack.i.bf16 %v2931_v34, %v2929_v26  ;;  %v10220_v54 = vrot.slane %v7727_v62, 1  ;;  %v2459_v44 = vsel %vm2422_vm7, %v2456_v49, %v2458_v38  ;;  %v960_v45 = vsel %vm846_vm2, %v886_v24, 0.0 }
 0x192   : > { %v1562_v22 = vrot.slane %v1548_v14, %v7110_v27  ;;  %v1563_v15 = vcombine.high %v1555_v20, %v1555_v20  ;;  %v2239_v25 = vcombine.low %v1586_v16, %v1588_v35  ;;  %v2240_v58 = vcombine.low %v1596_v31, %v1604_v59  ;;  %v8183_v14 = vpop.permute.xlu0 %6260 }
 0x193   : > { %v2457_v29 = vsel %vm2422_vm7, %v10220_v54, %v2456_v49  ;;  %6510 = vrot.lane.b32.xlu1 %v6509_v53, %s7009_s16  ;;  %v3109_v19 = vrot.slane %v7735_v50, 4  ;;  %v3111_v26 = vrot.slane %v7710_v5, 4  ;;  %v2237_v54 = vrot.slane %v8162_v23, %v7110_v27 }
 0x194   : > { %v6494_v7 = vpack.i.bf16 %v2459_v44, %v2457_v29  ;;  %v2196_v34 = vrot.slane %v2188_v18, %v7110_v27  ;;  %v2203_v49 = vrot.slane %v2189_v6, %v7110_v27  ;;  %v1605_v24 = vcombine.high %v1603_v57, %v1603_v57 }
 0x195   : > { %v1571_v29 = vrot.slane %v960_v45, %v7110_v27  ;;  %v2205_v16 = vcombine.low %v1547_v28, %v1555_v20  ;;  %v10221_v31 = vrot.slane %v7727_v62, 4  ;;  %v3112_v59 = vsel %vm10148_vm5, %v3109_v19, %v3111_v26  ;;  %v8197_v20 = vpop.permute.xlu1 %6270 }
 0x196   : > { %6495 = vrot.lane.b32.xlu0 %v6494_v7, %s7006_s13  ;;  %v1564_v53 = vcombine.high %v1562_v22, %v1562_v22  ;;  %v2206_v18 = vcombine.low %v1563_v15, %v1562_v22  ;;  %v2247_v6 = vrot.slane %v2239_v25, %v7110_v27  ;;  %v2254_v7 = vrot.slane %v2240_v58, %v7110_v27  ;;  %v8217_v25 = vpop.permute.xlu0 %6275 }
 0x197   : > { %v3110_v35 = vsel %vm10148_vm5, %v10221_v31, %v3109_v19  ;;  %v3739_v48 = vsel %vm3737_vm6, %v7181_v13, %v6223_v43  ;;  %v2460_v45 = vrot.slane %v7718_v0, 1  ;;  %v3738_v28 = vsel %vm3737_vm6, %v7179_v10, %v6222_v1 }
 0x198   : > { %v6514_v44 = vpack.i.bf16 %v3112_v59, %v3110_v35  ;;  %v6228_v31 = vunpack.i.h.bf16 %v8057_v56  ;;  %v6227_v19 = vunpack.i.l.bf16 %v8057_v56  ;;  %v2462_v58 = vrot.slane %v7801_v60, 1 }
 0x199   : > { %v8207_v22 = vcombine.low %v2196_v34, %v2203_v49  ;;  %v8209_v13 = vcombine.low %v1603_v57, %v1605_v24  ;;  %v2213_v43 = vrot.slane %v2205_v16, %v7110_v27  ;;  %v2461_v15 = vsel %vm2422_vm7, %v2458_v38, %v2460_v45 }
 0x19a   : > { %6515 = vrot.lane.b32.xlu1 %v6514_v44, %s7010_s17  ;;  %6500 = vrot.lane.b32.xlu0 %v8081_v51, %s7007_s14  ;;  %v2220_v10 = vrot.slane %v2206_v18, %v7110_v27  ;;  %v2222_v1 = vcombine.low %v1564_v53, %v1571_v29  ;;  %v2463_v56 = vsel %vm2422_vm7, %v2460_v45, %v2462_v58  ;;  %v2642_v34 = vrot.slane %v7718_v0, 2 }
 0x19b   : > { %v8219_v51 = vcombine.low %v2247_v6, %v2254_v7  ;;  %v6534_v35 = vpack.i.bf16 %v2463_v56, %v2461_v15  ;;  %v2644_v57 = vrot.slane %v7801_v60, 2  ;;  %v8224_v49 = vsel %vm425_vm1, %v3738_v28, %v6227_v19  ;;  %v8241_v6 = vpop.permute.xlu1 %6280 }
 0x19c   : > { %v8227_v38 = vsel %vm425_vm1, %v3739_v48, %v6228_v31  ;;  %v6238_v24 = vunpack.i.h.bf16 %v8069_v2  ;;  %v6233_v29 = vunpack.i.h.bf16 %v8075_v8  ;;  %v10222_v16 = vrot.slane %v7710_v5, 2 }
 0x19d   : > { %v2645_v53 = vsel %vm2604_vm8, %v2642_v34, %v2644_v57  ;;  %v3400_v18 = vrot.slane %v7735_v50, 5  ;;  %v3402_v48 = vrot.slane %v7710_v5, 5  ;;  %v8243_v7 = vcombine.low %v2213_v43, %v2220_v10 }
 0x19e   : > { %6520 = vrot.lane.b32.xlu0 %v6514_v44, %s7011_s18  ;;  %6535 = vrot.lane.b32.xlu1 %v6534_v35, %s7006_s13  ;;  %v2643_v59 = vsel %vm2604_vm8, %v10222_v16, %v2642_v34  ;;  %v2230_v44 = vrot.slane %v2222_v1, %v7110_v27  ;;  %v6237_v45 = vunpack.i.l.bf16 %v8069_v2  ;;  %v6232_v28 = vunpack.i.l.bf16 %v8075_v8  ;;  %v8258_v1 = vpop.permute.xlu0 %6300 }
 0x19f   : > { %v6539_v31 = vpack.i.bf16 %v2645_v53, %v2643_v59  ;;  %v10223_v19 = vrot.slane %v7727_v62, 5  ;;  %v3403_v56 = vsel %vm10144_vm11, %v3400_v18, %v3402_v48  ;;  %v3113_v35 = vrot.slane %v7718_v0, 4 }
 0x1a0   : > { %v3743_v34 = vsel %vm3737_vm6, %v7258_v11, %v6238_v24  ;;  %v3741_v43 = vsel %vm3737_vm6, %v7274_v46, %v6233_v29  ;;  %v10139_v2 = vrot.slane %v7801_v60, 4  ;;  %v6243_v8 = vunpack.i.h.bf16 %v8096_v12 }
 0x1a1   : > { %v3401_v15 = vsel %vm10144_vm11, %v10223_v19, %v3400_v18  ;;  %v6242_v16 = vunpack.i.l.bf16 %v8096_v12  ;;  %v6248_v59 = vunpack.i.h.bf16 %v8129_v37  ;;  %v3114_v11 = vsel %vm10148_vm5, %v3111_v26, %v3113_v35 }
 0x1a2   : > { %v6524_v10 = vpack.i.bf16 %v3403_v56, %v3401_v15  ;;  %6540 = vrot.lane.b32.xlu1 %v6539_v31, %s7007_s14  ;;  %v6247_v24 = vunpack.i.l.bf16 %v8129_v37  ;;  %v3116_v46 = vsel %vm10148_vm5, %v3113_v35, %v10139_v2  ;;  %v3581_v29 = vrot.slane %v7735_v50, 6  ;;  %v8281_v37 = vpop.permute.xlu1 %6285 }
 0x1a3   : > { %v3583_v12 = vrot.slane %v7710_v5, 6  ;;  %v3742_v53 = vsel %vm3737_vm6, %v7293_v4, %v6237_v45  ;;  %v3740_v18 = vsel %vm3737_vm6, %v7256_v9, %v6232_v28  ;;  %v6257_v26 = vunpack.i.l.bf16 %v8143_v41 }
 0x1a4   : > { %6525 = vrot.lane.b32.xlu0 %v6524_v10, %s7012_s19  ;;  %v8279_v19 = vpack.i.bf16 %v3116_v46, %v3114_v11  ;;  %vm3810_vm9 = vcmask 48128   ;;  %v10224_v15 = vrot.slane %v7727_v62, 6  ;;  %v3404_v10 = vrot.slane %v7718_v0, 5  ;;  %v8297_v11 = vpop.permute.xlu0 %6310 }
 0x1a5   : > { %v3584_v35 = vsel %vm474_vm0, %v3581_v29, %v3583_v12  ;;  %v8291_v4 = vcombine.low %v2230_v44, %v2237_v54  ;;  %v3777_v9 = vsel %vm425_vm1, %v3741_v43, %v6243_v8  ;;  %v10138_v28 = vrot.slane %v7801_v60, 5 }
 0x1a6   : > { %v3582_v56 = vsel %vm474_vm0, %v10224_v15, %v3581_v29  ;;  %6550 = vrot.lane.b32.xlu1 %v8279_v19, %s7011_s18  ;;  %v3776_v46 = vsel %vm425_vm1, %v3740_v18, %v6242_v16  ;;  %v8301_v29 = vsel %vm425_vm1, %v3742_v53, %v6247_v24  ;;  %v8304_v15 = vsel %vm425_vm1, %v3743_v34, %v6248_v59  ;;  %v8314_v16 = vpop.permute.xlu1 %6290 }
 0x1a7   : > { %v6529_v45 = vpack.i.bf16 %v3584_v35, %v3582_v56  ;;  %v3405_v23 = vsel %vm10144_vm11, %v3402_v48, %v3404_v10  ;;  %v6258_v54 = vunpack.i.h.bf16 %v8143_v41  ;;  %v3813_v44 = vsel %vm3810_vm9, %v3776_v46, %v6257_v26 }
 0x1a8   : > { %v3407_v43 = vsel %vm10144_vm11, %v3404_v10, %v10138_v28  ;;  %v3585_v8 = vrot.slane %v7718_v0, 6  ;;  %v6253_v24 = vunpack.i.h.bf16 %v8155_v36  ;;  %v6252_v34 = vunpack.i.l.bf16 %v8155_v36  ;;  %v8321_v18 = vpop.permute.xlu0 %6315 }
 0x1a9   : > { %6530 = vrot.lane.b32.xlu0 %v6529_v45, %s7013_s20  ;;  %v6554_v59 = vpack.i.bf16 %v3407_v43, %v3405_v23  ;;  %v10137_v48 = vrot.slane %v7801_v60, 6  ;;  %vm3847_vm10 = vcmask 64512   ;;  %v6268_v41 = vunpack.i.h.bf16 %v8171_v17 }
 0x1aa   : > { %v3586_v53 = vsel %vm474_vm0, %v3583_v12, %v3585_v8  ;;  %v6267_v26 = vunpack.i.l.bf16 %v8171_v17  ;;  %v2932_v36 = vrot.slane %v7718_v0, 3  ;;  %v10142_v35 = vrot.slane %v7801_v60, 3  ;;  %v8334_v17 = vpop.permute.xlu1 %6295 }
 0x1ab   : > { %6555 = vrot.lane.b32.xlu1 %v6554_v59, %s7012_s19  ;;  %v3588_v56 = vsel %vm474_vm0, %v3585_v8, %v10137_v48  ;;  %v6263_v10 = vunpack.i.h.bf16 %v8183_v14  ;;  %v6262_v45 = vunpack.i.l.bf16 %v8183_v14  ;;  %v2466_v46 = vrot.slane %v8114_v39, 1 }
 0x1ac   : > { %v6559_v12 = vpack.i.bf16 %v3588_v56, %v3586_v53  ;;  %v10225_v23 = vrot.slane %v7710_v5, 3  ;;  %v2935_v8 = vsel %vm2898_vm4, %v2932_v36, %v10142_v35  ;;  %v2468_v59 = vrot.slane %v7935_v61, 1  ;;  %v8349_v28 = vpop.permute.xlu0 %6325 }
 0x1ad   : > { %6545 = vrot.lane.b32.xlu0 %v6539_v31, %s7008_s15  ;;  %v10141_v48 = vrot.slane %v8125_v55, 1  ;;  %v3814_v14 = vsel %vm3810_vm9, %v3777_v9, %v6258_v54  ;;  %v3812_v31 = vsel %vm3810_vm9, %v8227_v38, %v6253_v24  ;;  %v3811_v53 = vsel %vm3810_vm9, %v8224_v49, %v6252_v34 }
 0x1ae   : > { %v2933_v43 = vsel %vm2898_vm4, %v10225_v23, %v2932_v36  ;;  %v8352_v23 = vsel %vm3847_vm10, %v3813_v44, %v6267_v26  ;;  %v8355_v36 = vsel %vm3847_vm10, %v3814_v14, %v6268_v41  ;;  %v2469_v2 = vsel %vm2422_vm7, %v2466_v46, %v2468_v59  ;;  %v8366_v44 = vpop.permute.xlu1 %6305 }
 0x1af   : > { %v6564_v56 = vpack.i.bf16 %v2935_v8, %v2933_v43  ;;  %6560 = vrot.lane.b32.xlu1 %v6559_v12, %s7013_s20  ;;  %v2471_v38 = vsel %vm2422_vm7, %v2468_v59, %v10141_v48  ;;  %v3848_v9 = vsel %vm3847_vm10, %v3811_v53, %v6262_v45  ;;  %v3849_v49 = vsel %vm3847_vm10, %v3812_v31, %v6263_v10 }
 0x1b0   : > { %vm3884_vm12 = vcmask 80896   ;;  %v6273_v54 = vunpack.i.h.bf16 %v8197_v20  ;;  %v6579_v24 = vpack.i.bf16 %v2471_v38, %v2469_v2  ;;  %v2648_v34 = vrot.slane %v8114_v39, 2  ;;  %v8374_v43 = vpop.permute.xlu0 %6330 }
 0x1b1   : > { %6565 = vrot.lane.b32.xlu0 %v6564_v56, %s7009_s16  ;;  %v2650_v41 = vrot.slane %v7935_v61, 2  ;;  %v10140_v26 = vrot.slane %v8125_v55, 2  ;;  %v6272_v12 = vunpack.i.l.bf16 %v8197_v20  ;;  %v6277_v45 = vunpack.i.l.bf16 %v8217_v25 }
 0x1b2   : > { %v2464_v10 = vrot.slane %v8106_v47, 1  ;;  %v6283_v8 = vunpack.i.h.bf16 %v8241_v6  ;;  %v2646_v14 = vrot.slane %v8106_v47, 2  ;;  %v6282_v20 = vunpack.i.l.bf16 %v8241_v6  ;;  %v8391_v38 = vpop.permute.xlu1 %6320 }
 0x1b3   : > { %6580 = vrot.lane.b32.xlu1 %v6579_v24, %s7006_s13  ;;  %v2651_v2 = vsel %vm2604_vm8, %v2648_v34, %v2650_v41  ;;  %v2653_v59 = vsel %vm2604_vm8, %v2650_v41, %v10140_v26  ;;  %v6288_v31 = vunpack.i.h.bf16 %v8281_v37  ;;  %v6287_v24 = vunpack.i.l.bf16 %v8281_v37 }
 0x1b4   : > { %v2465_v53 = vsel %vm2422_vm7, %v2462_v58, %v2464_v10  ;;  %v2467_v56 = vsel %vm2422_vm7, %v2464_v10, %v2466_v46  ;;  %v6589_v41 = vpack.i.bf16 %v2653_v59, %v2651_v2  ;;  %v2647_v6 = vsel %vm2604_vm8, %v2644_v57, %v2646_v14  ;;  %v8401_v5 = vpop.permute.xlu0 %6335 }
 0x1b5   : > { %6570 = vrot.lane.b32.xlu0 %v8279_v19, %s7010_s17  ;;  %v2649_v26 = vsel %vm2604_vm8, %v2646_v14, %v2648_v34  ;;  %v3886_v48 = vsel %vm3884_vm12, %v3849_v49, %v6273_v54  ;;  %v6293_v19 = vunpack.i.h.bf16 %v8314_v16  ;;  %v6292_v35 = vunpack.i.l.bf16 %v8314_v16 }
 0x1b6   : > { %v6574_v58 = vpack.i.bf16 %v2467_v56, %v2465_v53  ;;  %v3885_v46 = vsel %vm3884_vm12, %v3848_v9, %v6272_v12  ;;  %vm3921_vm13 = vcmask 97280   ;;  %vm3958_vm14 = vcmask 113664   ;;  %v8409_v16 = vpop.permute.xlu1 %6345 }
 0x1b7   : > { %6590 = vrot.lane.b32.xlu1 %v6589_v41, %s7007_s14  ;;  %vm3995_vm15 = vcmask 130048   ;;  %v6302_v57 = vunpack.i.l.bf16 %v8258_v1  ;;  %v6594_v37 = vpack.i.bf16 %v2649_v26, %v2647_v6  ;;  %v3922_v49 = vsel %vm3921_vm13, %v3885_v46, %v6282_v20 }
 0x1b8   : > { %v3923_v54 = vsel %vm3921_vm13, %v3886_v48, %v6283_v8  ;;  %v3959_v34 = vsel %vm3958_vm14, %v3922_v49, %v6287_v24  ;;  %vm4062_vm3 = vcmask 146432   ;;  %v2936_v2 = vrot.slane %v8106_v47, 3  ;;  %v8417_v26 = vpop.permute.xlu0 %6340 }
 0x1b9   : > { %6575 = vrot.lane.b32.xlu0 %v6574_v58, %s7006_s13  ;;  %v3960_v9 = vsel %vm3958_vm14, %v3923_v54, %v6288_v31  ;;  %v3996_v12 = vsel %vm3995_vm15, %v3959_v34, %v6292_v35  ;;  %v10147_v59 = vrot.slane %v8114_v39, 3  ;;  %v6278_v14 = vunpack.i.h.bf16 %v8217_v25 }
 0x1ba   : > { %v3997_v10 = vsel %vm3995_vm15, %v3960_v9, %v6293_v19  ;;  %v6303_v48 = vunpack.i.h.bf16 %v8258_v1  ;;  %v6312_v8 = vunpack.i.l.bf16 %v8297_v11  ;;  %v8425_v35 = vsel %vm3884_vm12, %v8352_v23, %v6277_v45  ;;  %v8435_v1 = vpop.permute.xlu1 %6355 }
 0x1bb   : > { %6595 = vrot.lane.b32.xlu1 %v6594_v37, %s7008_s15  ;;  %v4032_v20 = vpack.c.bf16 %v3997_v10, %v3996_v12  ;;  %v6313_v31 = vunpack.i.h.bf16 %v8297_v11  ;;  %v10226_v53 = vrot.slane %v7801_v60, 3  ;;  %v2939_v25 = vsel %vm2898_vm4, %v2936_v2, %v10147_v59 }
 0x1bc   : > { %v6318_v24 = vunpack.i.h.bf16 %v8321_v18  ;;  %v6317_v6 = vunpack.i.l.bf16 %v8321_v18  ;;  %v6298_v23 = vunpack.i.h.bf16 %v8334_v17  ;;  %v3746_v45 = vsel %vm3737_vm6, %v7361_v63, %v6302_v57  ;;  %v8445_v46 = vpop.permute.xlu0 %6350 }
 0x1bd   : > { %6585 = vrot.lane.b32.xlu0 %v6594_v37, %s7007_s14  ;;  %v2937_v56 = vsel %vm2898_vm4, %v10226_v53, %v2936_v2  ;;  %6163 = vmatprep.mubr.msk.bf16.mxu1 %vm4062_vm3, %v4032_v20  ;;  %v3117_v19 = vrot.slane %v8106_v47, 4  ;;  %v3119_v58 = vrot.slane %v8114_v39, 4  ;;  %v3888_v37 = vsel %vm3884_vm12, %v8355_v36, %v6278_v14  ;;  %v6956_v2 = vld [vmem:[%s10095_s4] sm:$0xff]  }
 0x1be   : > { %v6604_v11 = vpack.i.bf16 %v2939_v25, %v2937_v56  ;;  %v3747_v18 = vsel %vm3737_vm6, %v7303_v21, %v6303_v48  ;;  %v8452_v49 = vsel %vm425_vm1, %v3746_v45, %v6312_v8  ;;  %v6297_v54 = vunpack.i.l.bf16 %v8334_v17  ;;  %v8465_v9 = vpop.permute.xlu1 %6375  ;;  %v6157_v56 = vpop.f32.mrf.mxu0 }
 0x1bf   : > { %v8457_v63 = vsel %vm425_vm1, %v3747_v18, %v6313_v31  ;;  %v6327_v57 = vunpack.i.l.bf16 %v8349_v28  ;;  %v10227_v34 = vrot.slane %v7801_v60, 4  ;;  %v3120_v21 = vsel %vm10148_vm5, %v3117_v19, %v3119_v58  ;;  %v6975_v31 = vld [vmem:[%s10095_s4 + $0x8] ss:$0 sps:$4 sm:$0x11]  }
 0x1c0   : > { %6605 = vrot.lane.b32.xlu1 %v6604_v11, %s7009_s16  ;;  %v8469_v17 = vsel %vm3810_vm9, %v8304_v15, %v6318_v24  ;;  %v3815_v12 = vsel %vm3810_vm9, %v8301_v29, %v6317_v6  ;;  %v8475_v10 = vsel %vm3737_vm6, %v7496_v3, %v6298_v23  ;;  %v6333_v14 = vunpack.i.h.bf16 %v8374_v43  ;;  %v8483_v15 = vpop.permute.xlu0 %6360 }
 0x1c1   : > { %6600 = vrot.lane.b32.xlu0 %v6589_v41, %s7008_s15  ;;  %v3118_v36 = vsel %vm10148_vm5, %v10227_v34, %v3117_v19  ;;  %v3121_v48 = vrot.slane %v7935_v61, 4  ;;  %v10146_v8 = vrot.slane %v8125_v55, 4  ;;  %v8487_v29 = vsel %vm3737_vm6, %v7314_v52, %v6297_v54 }
 0x1c2   : > { %v6609_v41 = vpack.i.bf16 %v3120_v21, %v3118_v36  ;;  %v3408_v3 = vrot.slane %v8106_v47, 5  ;;  %v3410_v20 = vrot.slane %v8114_v39, 5  ;;  %v4118_v53 = vsel %vm846_vm2, %v6975_v31, 0 }
 0x1c3   : > { %v6328_v25 = vunpack.i.h.bf16 %v8349_v28  ;;  %v8498_v24 = vsel %vm3847_vm10, %v3815_v12, %v6327_v57  ;;  %v3122_v52 = vsel %vm10148_vm5, %v3119_v58, %v3121_v48  ;;  %v3124_v6 = vsel %vm10148_vm5, %v3121_v48, %v10146_v8  ;;  %6160 = vmatpush3.bf16.msra.mxu1 %v4118_v53 }
 0x1c4   : > { %6610 = vrot.lane.b32.xlu1 %v6609_v41, %s7010_s17  ;;  %v6332_v23 = vunpack.i.l.bf16 %v8374_v43  ;;  %v8506_v11 = vpack.i.bf16 %v3124_v6, %v3122_v52  ;;  %v10228_v45 = vrot.slane %v7801_v60, 5  ;;  %v3411_v18 = vsel %vm10144_vm11, %v3408_v3, %v3410_v20  ;;  %6161 = vmatprep.subr.bf16.mxu1 %v6956_v2  ;;  %v8528_v48 = vpop.permute.xlu0 %6365 }
 0x1c5   : > { %6615 = vrot.lane.b32.xlu0 %v6609_v41, %s7011_s18  ;;  %v6308_v54 = vunpack.i.h.bf16 %v8366_v44  ;;  %v3925_v58 = vsel %vm3921_vm13, %v3888_v37, %v6333_v14  ;;  %v3412_v34 = vrot.slane %v7935_v61, 5  ;;  %v8515_v36 = vpop.permute.xlu1 %6380  ;;  %v6338_v43 = vunpack.i.h.bf16 %v8401_v5  ;;  %v8525_v41 = vld [vmem:[%s10093_s2] ss:$0 sm:$0xff]  ;;  %v624_v14 = vpop.f32.mrf.mxu0 }
 0x1c6   : > { %v3409_v19 = vsel %vm10144_vm11, %v10228_v45, %v3408_v3  ;;  %v6337_v21 = vunpack.i.l.bf16 %v8401_v5  ;;  %v10145_v12 = vrot.slane %v8125_v55, 5  ;;  %v676_v37 = vmul.f32 %v8525_v41, %v6157_v56  ;;  %v8544_v45 = vld [vmem:[%s10094_s3] ss:$0 sm:$0xff] }
 0x1c7   : > { %v6624_v57 = vpack.i.bf16 %v3411_v18, %v3409_v19  ;;  %v6343_v3 = vunpack.i.h.bf16 %v8417_v26  ;;  %v3413_v5 = vsel %vm10144_vm11, %v3410_v20, %v3412_v34  ;;  %v3589_v31 = vrot.slane %v8106_v47, 6  ;;  %6162 = vmatpush3.bf16.msra.mxu1 %v6956_v2 }
 0x1c8   : > { %6620 = vrot.lane.b32.xlu1 %v8506_v11, %s7011_s18  ;;  %v3591_v53 = vrot.slane %v8114_v39, 6  ;;  %v3924_v52 = vsel %vm3921_vm13, %v8425_v35, %v6332_v23  ;;  %v6342_v6 = vunpack.i.l.bf16 %v8417_v26  ;;  %v3415_v56 = vsel %vm10144_vm11, %v3412_v34, %v10145_v12 }
 0x1c9   : > { %6625 = vrot.lane.b32.xlu0 %v6624_v57, %s7012_s19  ;;  %v715_v20 = vadd.f32 %v8544_v45, %v676_v37  ;;  %v6629_v19 = vpack.i.bf16 %v3415_v56, %v3413_v5  ;;  %v10229_v18 = vrot.slane %v7801_v60, 6  ;;  %v674_v26 = vmul.f32 %v8525_v41, %v624_v14  ;;  %v8552_v23 = vpop.permute.xlu1 %6390  ;;  %v8555_v8 = vpop.permute.xlu0 %6370  ;;  %v10236_v60 = vld [vmem:[#allocation9_spill] sm:$0xff] }
 0x1ca   : > { %v3592_v35 = vsel %vm474_vm0, %v3589_v31, %v3591_v53  ;;  %v3962_v57 = vsel %vm3958_vm14, %v3925_v58, %v6338_v43  ;;  %v3961_v37 = vsel %vm3958_vm14, %v3924_v52, %v6337_v21  ;;  %v6158_v14 = vpop.f32.mrf.mxu0  ;;  %v10149_v58 = vrot.slane %v8125_v55, 6 }
 0x1cb   : > { %v3590_v2 = vsel %vm474_vm0, %v10229_v18, %v3589_v31  ;;  %vm747_vm11 = vcmp.ge.f32.partialorder %v715_v20, 0.0  ;;  %v779_v34 = vmul.f32 0.1, %v715_v20  ;;  %v3999_v5 = vsel %vm3995_vm15, %v3962_v57, %v6343_v3 }
 0x1cc   : > { %v6634_v12 = vpack.i.bf16 %v3592_v35, %v3590_v2  ;;  %6630 = vrot.lane.b32.xlu1 %v6629_v19, %s7012_s19  ;;  %v713_v56 = vadd.f32 %v8544_v45, %v674_v26  ;;  %v3593_v31 = vrot.slane %v7935_v61, 6  ;;  %v3998_v18 = vsel %vm3995_vm15, %v3961_v37, %v6342_v6 }
 0x1cd   : > { %v811_v59 = vsel %vm747_vm11, %v715_v20, %v779_v34  ;;  %v677_v43 = vmul.f32 %v8525_v41, %v6158_v14  ;;  %v6307_v21 = vunpack.i.l.bf16 %v8366_v44  ;;  %v8567_v19 = vpop.permute.xlu1 %6395  ;;  %v6322_v2 = vunpack.i.l.bf16 %v8391_v38  ;;  %v8575_v20 = vpop.permute.xlu0 %6385 }
 0x1ce   : > { %6635 = vrot.lane.b32.xlu0 %v6634_v12, %s7013_s20  ;;  %v894_v52 = vrot.slane %v811_v59, 7  ;;  %vm745_vm5 = vcmp.ge.f32.partialorder %v713_v56, 0.0  ;;  %v777_v3 = vmul.f32 0.1, %v713_v56  ;;  %v3594_v35 = vsel %vm474_vm0, %v3591_v53, %v3593_v31 }
 0x1cf   : > { %v3596_v6 = vsel %vm474_vm0, %v3593_v31, %v10149_v58  ;;  %v716_v12 = vadd.f32 %v8544_v45, %v677_v43  ;;  %v4033_v34 = vpack.c.bf16 %v3999_v5, %v3998_v18  ;;  %v3853_v37 = vsel %vm3847_vm10, %v8469_v17, %v6328_v25 }
 0x1d0   : > { %v946_v26 = vsel %vm846_vm2, 0.0, %v894_v52  ;;  %v8578_v57 = vsel %vm745_vm5, %v713_v56, %v777_v3  ;;  %v6639_v59 = vpack.i.bf16 %v3596_v6, %v3594_v35  ;;  %v6323_v53 = vunpack.i.h.bf16 %v8391_v38 }
 0x1d1   : > { %v6347_v14 = vunpack.i.l.bf16 %v8409_v16  ;;  %vm748_vm11 = vcmp.ge.f32.partialorder %v716_v12, 0.0  ;;  %v3781_v31 = vsel %vm425_vm1, %v8475_v10, %v6308_v54  ;;  %v1654_v43 = vcombine.high %v946_v26, %v946_v26  ;;  %6164 = vmatmul.mubr.msk.bf16.vlgmr.msra.gmra.mxu1 %vm4062_vm3, %v4033_v34  ;;  %v8593_v28 = vpop.permute.xlu1 %6400  ;;  %v8600_v10 = vpop.permute.xlu0 %6405 }
 0x1d2   : > { %v10150_v56 = vrot.slane %v8578_v57, 7  ;;  %6640 = vrot.lane.b32.xlu1 %v6639_v59, %s7013_s20  ;;  %v780_v5 = vmul.f32 0.1, %v716_v12  ;;  %v3780_v38 = vsel %vm425_vm1, %v8487_v29, %v6307_v21  ;;  %v6348_v17 = vunpack.i.h.bf16 %v8409_v16 }
 0x1d3   : > { %v6357_v44 = vunpack.i.l.bf16 %v8435_v1  ;;  %v2940_v25 = vrot.slane %v7935_v61, 3  ;;  %v3817_v54 = vsel %vm3810_vm9, %v3780_v38, %v6322_v2  ;;  %v1661_v18 = vrot.slane %v946_v26, %v7110_v27 }
 0x1d4   : > { %v6358_v3 = vunpack.i.h.bf16 %v8435_v1  ;;  %v812_v35 = vsel %vm748_vm11, %v716_v12, %v780_v5  ;;  %v3818_v6 = vsel %vm3810_vm9, %v3781_v31, %v6323_v53  ;;  %v3854_v29 = vsel %vm3847_vm10, %v3817_v54, %v6347_v14 }
 0x1d5   : > { %v895_v21 = vrot.slane %v812_v35, 7  ;;  %v10152_v16 = vrot.slane %v8125_v55, 3  ;;  %v1668_v59 = vrot.slane %v1654_v43, %v7110_v27  ;;  %v945_v34 = vsel %vm846_vm2, 0.0, %v10150_v56  ;;  %v8615_v1 = vpop.permute.xlu1 %6425  ;;  %v8625_v5 = vpop.permute.xlu0 %6410 }
 0x1d6   : > { %v6353_v2 = vunpack.i.h.bf16 %v8445_v46  ;;  %v6352_v26 = vunpack.i.l.bf16 %v8445_v46  ;;  %v3855_v12 = vsel %vm3847_vm10, %v3818_v6, %v6348_v17  ;;  %v8619_v53 = vsel %vm3884_vm12, %v3854_v29, %v6357_v44  ;;  %v627_v35 = vpop.f32.mrf.mxu0 }
 0x1d7   : > { %v896_v14 = vsel %vm846_vm2, %v894_v52, %v895_v21  ;;  %v10230_v31 = vrot.slane %v8114_v39, 3  ;;  %v1669_v38 = vcombine.high %v1661_v18, %v1661_v18  ;;  %v8628_v54 = vsel %vm3884_vm12, %v3855_v12, %v6358_v3 }
 0x1d8   : > { %v1620_v46 = vrot.slane %v945_v34, %v7110_v27  ;;  %v2264_v17 = vrot.slane %v8209_v13, %v7110_v27  ;;  %v1613_v44 = vcombine.high %v945_v34, %v945_v34  ;;  %v1671_v6 = vcombine.high %v896_v14, %v896_v14 }
 0x1d9   : > { %v2941_v43 = vsel %vm2898_vm4, %v10230_v31, %v2940_v25  ;;  %v10231_v52 = vcombine.low %v7126_v33, %v7116_v30  ;;  %v2943_v31 = vsel %vm2898_vm4, %v2940_v25, %v10152_v16  ;;  %v1670_v3 = vcombine.high %v1668_v59, %v1668_v59  ;;  %v8645_v56 = vpop.permute.xlu1 %6430  ;;  %v8653_v25 = vpop.permute.xlu0 %6415 }
 0x1da   : > { %v3889_v12 = vsel %vm3884_vm12, %v8498_v24, %v6352_v26  ;;  %v3890_v58 = vsel %vm3884_vm12, %v3853_v37, %v6353_v2  ;;  %v6644_v13 = vpack.i.bf16 %v2943_v31, %v2941_v43  ;;  %v10232_v34 = vrot.slane %v8148_v32, %v7110_v27 }
 0x1db   : > { %v8637_v29 = vrot.slane %v10231_v52, %v7110_v27  ;;  %v963_v30 = vsel %vm846_vm2, %v895_v21, 0.0  ;;  %v6378_v33 = vunpack.i.h.bf16 %v8465_v9  ;;  %v675_v52 = vmul.f32 %v8525_v41, %v627_v35  ;;  %v10234_v35 = vld [vmem:[#allocation10_spill] sm:$0xff] }
 0x1dc   : > { %v2257_v39 = vcombine.low %v10232_v34, %v1620_v46  ;;  %v2307_v16 = vcombine.low %v1661_v18, %v1669_v38  ;;  %v1628_v61 = vcombine.high %v1620_v46, %v1620_v46  ;;  %v1678_v24 = vrot.slane %v896_v14, %v7110_v27  ;;  %6645 = vrot.lane.b32.xlu0 %v6644_v13, %s7009_s16  ;;  %v10233_v38 = vld [vmem:[#allocation23_spill] sm:$0xff] }
 0x1dd   : > { %v6377_v37 = vunpack.i.l.bf16 %v8465_v9  ;;  %v8659_v2 = vrot.slane %v1613_v44, %v7110_v27  ;;  %v1685_v32 = vrot.slane %v1671_v6, %v7110_v27  ;;  %v714_v21 = vadd.f32 %v8544_v45, %v675_v52  ;;  %v8667_v46 = vpop.permute.xlu1 %6435  ;;  %v8674_v45 = vpop.permute.xlu0 %6420 }
 0x1de   : > { %v2476_v26 = vrot.slane %v8120_v42, 1  ;;  %v2308_v41 = vcombine.low %v1668_v59, %v1670_v3  ;;  %v1694_v43 = vrot.slane %v963_v30, %v7110_v27  ;;  %v2474_v18 = vrot.slane %v8136_v40, 1 }
 0x1df   : > { %v10158_v14 = vrot.slane %v10233_v38, 1  ;;  %v2271_v9 = vrot.slane %v2257_v39, %v7110_v27  ;;  %v8672_v44 = vsel %vm3737_vm6, %v10234_v35, %v6378_v33  ;;  %vm746_vm5 = vcmp.ge.f32.partialorder %v714_v21, 0.0  ;;  %v10235_v35 = vld [vmem:[#allocation2_spill] sm:$0xff] }
 0x1e0   : > { %v778_v6 = vmul.f32 0.1, %v714_v21  ;;  %v8677_v59 = vcombine.low %v1628_v61, %v8659_v2  ;;  %v1686_v31 = vcombine.high %v1678_v24, %v1678_v24  ;;  %v2477_v3 = vsel %vm2422_vm7, %v2474_v18, %v2476_v26  ;;  %6650 = vrot.lane.b32.xlu0 %v8506_v11, %s7010_s17 }
 0x1e1   : > { %v2479_v13 = vsel %vm2422_vm7, %v2476_v26, %v10158_v14  ;;  %v1687_v34 = vcombine.high %v1685_v32, %v1685_v32  ;;  %v2315_v33 = vrot.slane %v2307_v16, %v7110_v27  ;;  %v2322_v52 = vrot.slane %v2308_v41, %v7110_v27  ;;  %v8692_v0 = vpop.permute.xlu1 %6455 }
 0x1e2   : > { %v810_v39 = vsel %vm746_vm5, %v714_v21, %v778_v6  ;;  %v6659_v30 = vpack.i.bf16 %v2479_v13, %v2477_v3  ;;  %v8686_v47 = vcombine.low %v1694_v43, %v10235_v35  ;;  %v8690_v61 = vsel %vm3737_vm6, %v10236_v60, %v6377_v37  ;;  %v8706_v6 = vpop.permute.xlu0 %6440 }
 0x1e3   : > { %v1629_v50 = vcombine.high %v8659_v2, %v8659_v2  ;;  %v6363_v26 = vunpack.i.h.bf16 %v8483_v15  ;;  %v6362_v21 = vunpack.i.l.bf16 %v8483_v15  ;;  %v2658_v16 = vrot.slane %v8120_v42, 2 }
 0x1e4   : > { %6660 = vrot.lane.b32.xlu1 %v6659_v30, %s7006_s13  ;;  %v8702_v41 = vcombine.low %v1678_v24, %v1686_v31  ;;  %v892_v60 = vrot.slane %v810_v39, 7  ;;  %v2656_v37 = vrot.slane %v8136_v40, 2  ;;  %v10159_v43 = vrot.slane %v10233_v38, 2 }
 0x1e5   : > { %v8708_v2 = vcombine.low %v2264_v17, %v2271_v9  ;;  %v8712_v3 = vcombine.low %v1685_v32, %v1687_v34  ;;  %v6368_v11 = vunpack.i.h.bf16 %v8528_v48  ;;  %v8715_v13 = vcombine.low %v2315_v33, %v2322_v52  ;;  %v10238_v52 = vld [vmem:[#allocation24_spill] sm:$0xff] }
 0x1e6   : > { %v2349_v24 = vrot.slane %v8686_v47, %v7110_v27  ;;  %v2659_v31 = vsel %vm2604_vm8, %v2656_v37, %v2658_v16  ;;  %v2661_v39 = vsel %vm2604_vm8, %v2658_v16, %v10159_v43  ;;  %v3926_v17 = vsel %vm3921_vm13, %v3889_v12, %v6362_v21  ;;  %v8735_v16 = vpop.permute.xlu1 %6460 }
 0x1e7   : > { %v3927_v9 = vsel %vm3921_vm13, %v3890_v58, %v6363_v26  ;;  %v6367_v32 = vunpack.i.l.bf16 %v8528_v48  ;;  %v8726_v34 = vpack.i.bf16 %v2661_v39, %v2659_v31  ;;  %v2332_v30 = vrot.slane %v8702_v41, %v7110_v27 }
 0x1e8   : > { %v10237_v33 = vrot.slane %v8578_v57, 7  ;;  %v2472_v35 = vrot.slane %v10238_v52, 1  ;;  %v6373_v14 = vunpack.i.h.bf16 %v8555_v8  ;;  %v2339_v58 = vrot.slane %v8712_v3, %v7110_v27 }
 0x1e9   : > { %v3964_v12 = vsel %vm3958_vm14, %v3927_v9, %v6368_v11  ;;  %6670 = vrot.lane.b32.xlu1 %v8726_v34, %s7007_s14  ;;  %v6372_v57 = vunpack.i.l.bf16 %v8555_v8  ;;  %v10239_v21 = vrot.slane %v8125_v55, 1  ;;  %v2654_v39 = vrot.slane %v10238_v52, 2 }
 0x1ea   : > { %v893_v47 = vsel %vm846_vm2, %v10237_v33, %v892_v60  ;;  %v2475_v31 = vsel %vm2422_vm7, %v2472_v35, %v2474_v18  ;;  %v8749_v33 = vpop.permute.xlu0 %6445  ;;  %v3963_v11 = vsel %vm3958_vm14, %v3926_v17, %v6367_v32  ;;  %v6393_v9 = vunpack.i.h.bf16 %v8552_v23 }
 0x1eb   : > { %v1630_v26 = vcombine.high %v893_v47, %v893_v47  ;;  %v2473_v41 = vsel %vm2422_vm7, %v10239_v21, %v2472_v35  ;;  %v1637_v3 = vrot.slane %v893_v47, %v7110_v27  ;;  %v4000_v8 = vsel %vm3995_vm15, %v3963_v11, %v6372_v57 }
 0x1ec   : > { %v6654_v43 = vpack.i.bf16 %v2475_v31, %v2473_v41  ;;  %v4001_v15 = vsel %vm3995_vm15, %v3964_v12, %v6373_v14  ;;  %v10240_v48 = vrot.slane %v8125_v55, 2  ;;  %v2657_v18 = vsel %vm2604_vm8, %v2654_v39, %v2656_v37 }
 0x1ed   : > { %v6382_v35 = vunpack.i.l.bf16 %v8515_v36  ;;  %v6392_v62 = vunpack.i.l.bf16 %v8552_v23  ;;  %v6398_v32 = vunpack.i.h.bf16 %v8567_v19  ;;  %v962_v47 = vsel %vm846_vm2, %v892_v60, 0.0 }
 0x1ee   : > { %v2655_v21 = vsel %vm2604_vm8, %v10240_v48, %v2654_v39  ;;  %6655 = vrot.lane.b32.xlu0 %v6654_v43, %s7006_s13  ;;  %v1644_v57 = vrot.slane %v1630_v26, %v7110_v27  ;;  %v6397_v14 = vunpack.i.l.bf16 %v8567_v19  ;;  %v2944_v12 = vrot.slane %v10238_v52, 3  ;;  %v8768_v48 = vpop.permute.xlu1 %6470  ;;  %v8772_v43 = vpop.permute.xlu0 %6450 }
 0x1ef   : > { %v6674_v17 = vpack.i.bf16 %v2657_v18, %v2655_v21  ;;  %v1645_v37 = vcombine.high %v1637_v3, %v1637_v3  ;;  %v2946_v23 = vrot.slane %v8136_v40, 3  ;;  %v4034_v41 = vpack.c.bf16 %v4001_v15, %v4000_v8 }
 0x1f0   : > { %v2274_v31 = vcombine.low %v1629_v50, %v1637_v3  ;;  %v3929_v60 = vsel %vm3921_vm13, %v8628_v54, %v6393_v9  ;;  %v10241_v26 = vrot.slane %v8125_v55, 3  ;;  %v6403_v39 = vunpack.i.h.bf16 %v8593_v28 }
 0x1f1   : > { %6675 = vrot.lane.b32.xlu1 %v6674_v17, %s7008_s15  ;;  %v3928_v11 = vsel %vm3921_vm13, %v8619_v53, %v6392_v62  ;;  %v3966_v21 = vsel %vm3958_vm14, %v3929_v60, %v6398_v32  ;;  %v2947_v50 = vsel %vm2898_vm4, %v2944_v12, %v2946_v23  ;;  %6167 = vmatprep.mubr.msk.bf16.mxu1 %vm4062_vm3, %v4034_v41  ;;  %v6402_v54 = vunpack.i.l.bf16 %v8593_v28 }
 0x1f2   : > { %v2945_v19 = vsel %vm2898_vm4, %v10241_v26, %v2944_v12  ;;  %6665 = vrot.lane.b32.xlu0 %v6674_v17, %s7007_s14  ;;  %v3965_v15 = vsel %vm3958_vm14, %v3928_v11, %v6397_v14  ;;  %v4003_v9 = vsel %vm3995_vm15, %v3966_v21, %v6403_v39  ;;  %v3125_v8 = vrot.slane %v10238_v52, 4  ;;  %v8805_v41 = vpop.permute.xlu1 %6475 }
 0x1f3   : > { %v6684_v3 = vpack.i.bf16 %v2947_v50, %v2945_v19  ;;  %v8793_v62 = vcombine.low %v2349_v24, %v8637_v29  ;;  %v4002_v53 = vsel %vm3995_vm15, %v3965_v15, %v6402_v54  ;;  %v3127_v18 = vrot.slane %v8136_v40, 4 }
 0x1f4   : > { %v8797_v17 = vcombine.low %v2332_v30, %v2339_v58  ;;  %v1653_v32 = vrot.slane %v962_v47, %v7110_v27  ;;  %v2288_v28 = vrot.slane %v2274_v31, %v7110_v27  ;;  %v10242_v14 = vrot.slane %v8125_v55, 4  ;;  %v8812_v47 = vpop.permute.xlu0 %6465 }
 0x1f5   : > { %6685 = vrot.lane.b32.xlu1 %v6684_v3, %s7009_s16  ;;  %vm10243_vm2 = vcmask 1043456   ;;  %v1646_v29 = vcombine.high %v1644_v57, %v1644_v57  ;;  %v8807_v24 = vcombine.low %v1645_v37, %v1644_v57  ;;  %v4035_v58 = vpack.c.bf16 %v4003_v9, %v4002_v53 }
 0x1f6   : > { %v3126_v12 = vsel %vm10243_vm2, %v10242_v14, %v3125_v8  ;;  %6680 = vrot.lane.b32.xlu0 %v8726_v34, %s7008_s15  ;;  %vm10244_vm11 = vmmov %vm10243_vm2  ;;  %v3784_v31 = vsel %vm425_vm1, %v8690_v61, %v6382_v35  ;;  %v10245_v60 = vunpack.i.h.bf16 %v8515_v36  ;;  %v6388_v19 = vunpack.i.h.bf16 %v8575_v20  ;;  %v8850_v53 = vpop.permute.xlu1 %6480 }
 0x1f7   : > { %v3128_v30 = vsel %vm10244_vm11, %v3125_v8, %v3127_v18  ;;  %v6387_v37 = vunpack.i.l.bf16 %v8575_v20  ;;  %6168 = vmatmul.mubr.msk.bf16.gmra.mxu1 %vm4062_vm3, %v4035_v58  ;;  %v3129_v34 = vrot.slane %v8120_v42, 4  ;;  %v3131_v39 = vrot.slane %v10233_v38, 4  ;;  %vm10247_vm5 = vmmov %vm10243_vm2 }
 0x1f8   : > { %v3785_v26 = vsel %vm425_vm1, %v8672_v44, %v10245_v60  ;;  %v6689_v57 = vpack.i.bf16 %v3128_v30, %v3126_v12  ;;  %v10246_v11 = vrot.slane %v8677_v59, %v7110_v27  ;;  %v6408_v36 = vunpack.i.h.bf16 %v8600_v10  ;;  %v8858_v14 = vpop.permute.xlu0 %6485 }
 0x1f9   : > { %v3416_v44 = vrot.slane %v10238_v52, 5  ;;  %v3418_v35 = vrot.slane %v8136_v40, 5  ;;  %v8834_v20 = vcombine.low %v1646_v29, %v1653_v32  ;;  %v3130_v50 = vsel %vm10247_vm5, %v3127_v18, %v3129_v34 }
 0x1fa   : > { %v8828_v61 = vcombine.low %v10246_v11, %v2288_v28  ;;  %6690 = vrot.lane.b32.xlu1 %v6689_v57, %s7010_s17  ;;  %6695 = vrot.lane.b32.xlu0 %v6689_v57, %s7011_s18  ;;  %v3132_v59 = vsel %vm10243_vm2, %v3129_v34, %v3131_v39  ;;  %v6407_v54 = vunpack.i.l.bf16 %v8600_v10  ;;  %v6428_v15 = vunpack.i.h.bf16 %v8615_v1 }
 0x1fb   : > { %v8845_v3 = vpack.i.bf16 %v3132_v59, %v3130_v50  ;;  %v10248_v9 = vrot.slane %v8125_v55, 5  ;;  %vm10249_vm11 = vcmask 1042432   ;;  %v3820_v32 = vsel %vm3810_vm9, %v8457_v63, %v6388_v19 }
 0x1fc   : > { %v3819_v18 = vsel %vm3810_vm9, %v8452_v49, %v6387_v37  ;;  %vm10250_vm5 = vmmov %vm10249_vm11  ;;  %v3420_v10 = vrot.slane %v8120_v42, 5  ;;  %v3857_v12 = vsel %vm3847_vm10, %v3820_v32, %v6408_v36  ;;  %v6427_v29 = vunpack.i.l.bf16 %v8615_v1 }
 0x1fd   : > { %v3417_v8 = vsel %vm10249_vm11, %v10248_v9, %v3416_v44  ;;  %v3419_v28 = vsel %vm10250_vm5, %v3416_v44, %v3418_v35  ;;  %v3422_v58 = vrot.slane %v10233_v38, 5  ;;  %v6413_v63 = vunpack.i.h.bf16 %v8625_v5  ;;  %vm10251_vm2 = vmmov %vm10250_vm5 }
 0x1fe   : > { %6700 = vrot.lane.b32.xlu1 %v8845_v3, %s7011_s18  ;;  %v6704_v30 = vpack.i.bf16 %v3419_v28, %v3417_v8  ;;  %v3421_v49 = vsel %vm10251_vm2, %v3418_v35, %v3420_v10  ;;  %v3597_v60 = vrot.slane %v10238_v52, 6  ;;  %v3599_v19 = vrot.slane %v8136_v40, 6  ;;  %vm10252_vm11 = vmmov %vm10251_vm2  ;;  %v8891_v28 = vpop.permute.xlu0 %6490 }
 0x1ff   : > { %v3856_v57 = vsel %vm3847_vm10, %v3819_v18, %v6407_v54  ;;  %v3822_v37 = vsel %vm3810_vm9, %v3785_v26, %v6428_v15  ;;  %v6412_v1 = vunpack.i.l.bf16 %v8625_v5  ;;  %v3423_v34 = vsel %vm10252_vm11, %v3420_v10, %v3422_v58  ;;  %v8884_v15 = vpop.permute.xlu1 %6505 }
 0x200   : > { %6705 = vrot.lane.b32.xlu0 %v6704_v30, %s7012_s19  ;;  %v6433_v11 = vunpack.i.h.bf16 %v8645_v56  ;;  %v6709_v36 = vpack.i.bf16 %v3423_v34, %v3421_v49  ;;  %v10253_v44 = vrot.slane %v8125_v55, 6  ;;  %v3600_v50 = vsel %vm474_vm0, %v3597_v60, %v3599_v19 }
 0x201   : > { %v3821_v59 = vsel %vm3810_vm9, %v3784_v31, %v6427_v29  ;;  %v3601_v5 = vrot.slane %v8120_v42, 6  ;;  %v3603_v54 = vrot.slane %v10233_v38, 6  ;;  %v3894_v9 = vsel %vm3884_vm12, %v3857_v12, %v6413_v63 }
 0x202   : > { %v3598_v35 = vsel %vm474_vm0, %v10253_v44, %v3597_v60  ;;  %v6432_v8 = vunpack.i.l.bf16 %v8645_v56  ;;  %6710 = vrot.lane.b32.xlu1 %v6709_v36, %s7012_s19  ;;  %v2948_v32 = vrot.slane %v8120_v42, 3  ;;  %v2950_v18 = vrot.slane %v10233_v38, 3 }
 0x203   : > { %v6714_v26 = vpack.i.bf16 %v3600_v50, %v3598_v35  ;;  %v3893_v31 = vsel %vm3884_vm12, %v3856_v57, %v6412_v1  ;;  %v6418_v10 = vunpack.i.h.bf16 %v8653_v25  ;;  %v3602_v29 = vsel %vm474_vm0, %v3599_v19, %v3601_v5 }
 0x204   : > { %v3604_v56 = vsel %vm474_vm0, %v3601_v5, %v3603_v54  ;;  %v3859_v12 = vsel %vm3847_vm10, %v3822_v37, %v6433_v11  ;;  %v6417_v30 = vunpack.i.l.bf16 %v8653_v25  ;;  %v2949_v49 = vsel %vm2898_vm4, %v2946_v23, %v2948_v32 }
 0x205   : > { %6715 = vrot.lane.b32.xlu0 %v6714_v26, %s7013_s20  ;;  %v6719_v63 = vpack.i.bf16 %v3604_v56, %v3602_v29  ;;  %v2951_v60 = vsel %vm2898_vm4, %v2948_v32, %v2950_v18  ;;  %v6443_v57 = vunpack.i.h.bf16 %v8706_v6  ;;  %v6442_v1 = vunpack.i.l.bf16 %v8706_v6  ;;  %v8918_v6 = vpop.permute.xlu1 %6510 }
 0x206   : > { %v2662_v19 = vrot.slane %v8207_v22, 2  ;;  %v3858_v34 = vsel %vm3847_vm10, %v3821_v59, %v6432_v8  ;;  %v6724_v37 = vpack.i.bf16 %v2951_v60, %v2949_v49  ;;  %v2664_v11 = vrot.slane %v8243_v7, 2 }
 0x207   : > { %6720 = vrot.lane.b32.xlu1 %v6719_v63, %s7013_s20  ;;  %v10254_v36 = vrot.slane %v10233_v38, 2  ;;  %v6448_v23 = vunpack.i.h.bf16 %v8749_v33  ;;  %v6447_v35 = vunpack.i.l.bf16 %v8749_v33  ;;  %v2952_v50 = vrot.slane %v8207_v22, 3 }
 0x208   : > { %v6438_v26 = vunpack.i.h.bf16 %v8667_v46  ;;  %v6437_v59 = vunpack.i.l.bf16 %v8667_v46  ;;  %v2665_v5 = vsel %vm2604_vm8, %v2662_v19, %v2664_v11  ;;  %v2954_v8 = vrot.slane %v8243_v7, 3  ;;  %v8927_v32 = vpop.permute.xlu0 %6495 }
 0x209   : > { %v2663_v44 = vsel %vm2604_vm8, %v10254_v36, %v2662_v19  ;;  %6725 = vrot.lane.b32.xlu0 %v6724_v37, %s7009_s16  ;;  %v3931_v33 = vsel %vm3921_vm13, %v3894_v9, %v6443_v57  ;;  %v3930_v29 = vsel %vm3921_vm13, %v3893_v31, %v6442_v1  ;;  %v2953_v63 = vsel %vm2898_vm4, %v2950_v18, %v2952_v50 }
 0x20a   : > { %v6744_v56 = vpack.i.bf16 %v2665_v5, %v2663_v44  ;;  %v3967_v49 = vsel %vm3958_vm14, %v3930_v29, %v6447_v35  ;;  %v3968_v46 = vsel %vm3958_vm14, %v3931_v33, %v6448_v23  ;;  %v2955_v60 = vsel %vm2898_vm4, %v2952_v50, %v2954_v8 }
 0x20b   : > { %v2480_v19 = vrot.slane %v8207_v22, 1  ;;  %v6473_v37 = vunpack.i.h.bf16 %v8768_v48  ;;  %v2482_v9 = vrot.slane %v8243_v7, 1  ;;  %v6453_v31 = vunpack.i.h.bf16 %v8772_v43 }
 0x20c   : > { %6745 = vrot.lane.b32.xlu1 %v6744_v56, %s7008_s15  ;;  %v6452_v18 = vunpack.i.l.bf16 %v8772_v43  ;;  %v6749_v57 = vpack.i.bf16 %v2955_v60, %v2953_v63  ;;  %v6472_v1 = vunpack.i.l.bf16 %v8768_v48  ;;  %v10255_v36 = vrot.slane %v10233_v38, 1  ;;  %v8950_v35 = vpop.permute.xlu1 %6515  ;;  %v8952_v50 = vpop.permute.xlu0 %6500 }
 0x20d   : > { %6730 = vrot.lane.b32.xlu0 %v8845_v3, %s7010_s17  ;;  %v3133_v23 = vrot.slane %v8207_v22, 4  ;;  %v2483_v5 = vsel %vm2422_vm7, %v2480_v19, %v2482_v9  ;;  %v4005_v33 = vsel %vm3995_vm15, %v3968_v46, %v6453_v31  ;;  %v3135_v3 = vrot.slane %v8243_v7, 4 }
 0x20e   : > { %v2481_v44 = vsel %vm2422_vm7, %v10255_v36, %v2480_v19  ;;  %v4004_v43 = vsel %vm3995_vm15, %v3967_v49, %v6452_v18  ;;  %vm10256_vm5 = vcmask 1043456   ;;  %v6478_v60 = vunpack.i.h.bf16 %v8805_v41 }
 0x20f   : > { %v6734_v29 = vpack.i.bf16 %v2483_v5, %v2481_v44  ;;  %v4036_v48 = vpack.c.bf16 %v4005_v33, %v4004_v43  ;;  %v3134_v63 = vsel %vm10256_vm5, %v3131_v39, %v3133_v23  ;;  %v3896_v36 = vsel %vm3884_vm12, %v3859_v12, %v6438_v26  ;;  %vm10257_vm2 = vmmov %vm10256_vm5 }
 0x210   : > { %v6423_v21 = vunpack.i.h.bf16 %v8674_v45  ;;  %6750 = vrot.lane.b32.xlu1 %v6749_v57, %s7009_s16  ;;  %v3136_v49 = vsel %vm10257_vm2, %v3133_v23, %v3135_v3  ;;  %v6477_v46 = vunpack.i.l.bf16 %v8805_v41  ;;  %v3895_v19 = vsel %vm3884_vm12, %v3858_v34, %v6437_v59  ;;  %v8975_v26 = vpop.permute.xlu0 %6520  ;;  %v8980_v34 = vpop.permute.xlu1 %6535  ;;  %vm10262_vm5 = vmmov %vm10252_vm11 }
 0x211   : > { %v6422_v31 = vunpack.i.l.bf16 %v8674_v45  ;;  %v3933_v39 = vsel %vm3921_vm13, %v3896_v36, %v6473_v37  ;;  %6735 = vrot.lane.b32.xlu0 %v6734_v29, %s7006_s13  ;;  %v2484_v12 = vrot.slane %v8291_v4, 1  ;;  %6171 = vmatprep.mubr.msk.bf16.mxu1 %vm4062_vm3, %v4036_v48  ;;  %v3932_v18 = vsel %vm3921_vm13, %v3895_v19, %v6472_v1  ;;  %v10258_v48 = vld [vmem:[#allocation13_spill] sm:$0xff] }
 0x212   : > { %v6754_v57 = vpack.i.bf16 %v3136_v49, %v3134_v63  ;;  %v2486_v44 = vrot.slane %v8219_v51, 1  ;;  %v6483_v41 = vunpack.i.h.bf16 %v8850_v53  ;;  %v3970_v45 = vsel %vm3958_vm14, %v3933_v39, %v6478_v60  ;;  %v10259_v60 = vld [vmem:[#allocation12_spill] sm:$0xff] }
 0x213   : > { %v2485_v59 = vsel %vm2422_vm7, %v2482_v9, %v2484_v12  ;;  %v6482_v37 = vunpack.i.l.bf16 %v8850_v53  ;;  %v6458_v23 = vunpack.i.h.bf16 %v8692_v0  ;;  %v3969_v5 = vsel %vm3958_vm14, %v3932_v18, %v6477_v46 }
 0x214   : > { %6755 = vrot.lane.b32.xlu1 %v6754_v57, %s7010_s17  ;;  %v2487_v1 = vsel %vm2422_vm7, %v2484_v12, %v2486_v44  ;;  %v4007_v43 = vsel %vm3995_vm15, %v3970_v45, %v6483_v41  ;;  %v6457_v33 = vunpack.i.l.bf16 %v8692_v0  ;;  %v2666_v53 = vrot.slane %v8291_v4, 2  ;;  %v9005_v46 = vpop.permute.xlu1 %6540  ;;  %v10261_v45 = vld [vmem:[#allocation11_spill] sm:$0xff] }
 0x215   : > { %6740 = vrot.lane.b32.xlu0 %v6744_v56, %s7007_s14  ;;  %v4006_v9 = vsel %vm3995_vm15, %v3969_v5, %v6482_v37  ;;  %v2668_v29 = vrot.slane %v8219_v51, 2  ;;  %v3751_v63 = vsel %vm3737_vm6, %v10258_v48, %v6418_v10  ;;  %v3750_v36 = vsel %vm3737_vm6, %v10259_v60, %v6417_v30 }
 0x216   : > { %v6774_v49 = vpack.i.bf16 %v2487_v1, %v2485_v59  ;;  %v4037_v0 = vpack.c.bf16 %v4007_v43, %v4006_v9  ;;  %v2667_v56 = vsel %vm2604_vm8, %v2664_v11, %v2666_v53  ;;  %v3424_v39 = vrot.slane %v8207_v22, 5  ;;  %v9014_v10 = vpop.permute.xlu0 %6525  ;;  %v10260_v11 = vld [vmem:[#allocation14_spill] sm:$0xff] }
 0x217   : > { %v2669_v19 = vsel %vm2604_vm8, %v2666_v53, %v2668_v29  ;;  %v2305_v25 = vrot.slane %v8834_v20, %v7110_v27  ;;  %v3786_v30 = vsel %vm425_vm1, %v3750_v36, %v6422_v31  ;;  %v3787_v12 = vsel %vm425_vm1, %v3751_v63, %v6423_v21 }
 0x218   : > { %6775 = vrot.lane.b32.xlu1 %v6774_v49, %s7006_s13  ;;  %v3426_v18 = vrot.slane %v8243_v7, 5  ;;  %6172 = vmatmul.mubr.msk.bf16.gmra.mxu1 %vm4062_vm3, %v4037_v0  ;;  %v3753_v41 = vsel %vm3737_vm6, %v10260_v11, %v6458_v23  ;;  %v3752_v59 = vsel %vm3737_vm6, %v10261_v45, %v6457_v33  ;;  %v3425_v31 = vsel %vm10252_vm11, %v3422_v58, %v3424_v39  ;;  %v9035_v9 = vpop.permute.xlu1 %6550  ;;  %vm10263_vm11 = vmmov %vm10257_vm2 }
 0x219   : > { %6760 = vrot.lane.b32.xlu0 %v6754_v57, %s7011_s18  ;;  %v3137_v21 = vrot.slane %v8291_v4, 4  ;;  %v6463_v37 = vunpack.i.h.bf16 %v8735_v16  ;;  %v6779_v5 = vpack.i.bf16 %v2669_v19, %v2667_v56  ;;  %v3139_v43 = vrot.slane %v8219_v51, 4 }
 0x21a   : > { %v3427_v1 = vsel %vm10262_vm5, %v3424_v39, %v3426_v18  ;;  %v6462_v23 = vunpack.i.l.bf16 %v8735_v16  ;;  %v6468_v33 = vunpack.i.h.bf16 %v8812_v47  ;;  %v6467_v53 = vunpack.i.l.bf16 %v8812_v47 }
 0x21b   : > { %v6764_v57 = vpack.i.bf16 %v3427_v1, %v3425_v31  ;;  %v3138_v58 = vsel %vm10257_vm2, %v3135_v3, %v3137_v21  ;;  %v3140_v48 = vsel %vm10263_vm11, %v3137_v21, %v3139_v43  ;;  %v3605_v63 = vrot.slane %v8207_v22, 6  ;;  %v9049_v16 = vpop.permute.xlu0 %6530  ;;  %vm10264_vm2 = vmmov %vm10262_vm5 }
 0x21c   : > { %6780 = vrot.lane.b32.xlu1 %v6779_v5, %s7007_s14  ;;  %v3607_v60 = vrot.slane %v8243_v7, 6  ;;  %v6488_v36 = vunpack.i.h.bf16 %v8858_v14  ;;  %v6487_v49 = vunpack.i.l.bf16 %v8858_v14  ;;  %v6508_v3 = vunpack.i.h.bf16 %v8884_v15 }
 0x21d   : > { %6765 = vrot.lane.b32.xlu0 %v6764_v57, %s7012_s19  ;;  %v9055_v47 = vpack.i.bf16 %v3140_v48, %v3138_v58  ;;  %v3606_v0 = vsel %vm474_vm0, %v3603_v54, %v3605_v63  ;;  %v3428_v19 = vrot.slane %v8291_v4, 5  ;;  %v3430_v39 = vrot.slane %v8219_v51, 5  ;;  %v9066_v21 = vpop.permute.xlu1 %6555 }
 0x21e   : > { %v3608_v56 = vsel %vm474_vm0, %v3605_v63, %v3607_v60  ;;  %v3788_v11 = vsel %vm425_vm1, %v3752_v59, %v6462_v23  ;;  %v3789_v14 = vsel %vm425_vm1, %v3753_v41, %v6463_v37  ;;  %v6507_v45 = vunpack.i.l.bf16 %v8884_v15 }
 0x21f   : > { %v6769_v31 = vpack.i.bf16 %v3608_v56, %v3606_v0  ;;  %v3824_v1 = vsel %vm3810_vm9, %v3787_v12, %v6468_v33  ;;  %v3823_v57 = vsel %vm3810_vm9, %v3786_v30, %v6467_v53  ;;  %v3429_v54 = vsel %vm10262_vm5, %v3426_v18, %v3428_v19  ;;  %v9076_v23 = vpop.permute.xlu0 %6545  ;;  %vm10274_vm5 = vmmov %vm10263_vm11 }
 0x220   : > { %6790 = vrot.lane.b32.xlu1 %v9055_v47, %s7011_s18  ;;  %v3431_v59 = vsel %vm10264_vm2, %v3428_v19, %v3430_v39  ;;  %v3860_v15 = vsel %vm3847_vm10, %v3823_v57, %v6487_v49  ;;  %v3861_v41 = vsel %vm3847_vm10, %v3824_v1, %v6488_v36  ;;  %v6493_v37 = vunpack.i.h.bf16 %v8891_v28  ;;  %v10266_v1 = vld [vmem:[#allocation3_spill] sm:$0xff]  ;;  %vm10275_vm2 = vmmov %vm10274_vm5 }
 0x221   : > { %v6492_v12 = vunpack.i.l.bf16 %v8891_v28  ;;  %6770 = vrot.lane.b32.xlu0 %v6769_v31, %s7013_s20  ;;  %v3826_v30 = vsel %vm3810_vm9, %v3789_v14, %v6508_v3  ;;  %v6794_v33 = vpack.i.bf16 %v3431_v59, %v3429_v54  ;;  %v3609_v18 = vrot.slane %v8291_v4, 6  ;;  %v9089_v36 = vpop.permute.xlu1 %6560  ;;  %v10265_v31 = vld [vmem:[#allocation5_spill] sm:$0xff]  ;;  %v10268_v59 = vld [vmem:[#allocation6_spill] sm:$0xff] }
 0x222   : > { %v3611_v58 = vrot.slane %v8219_v51, 6  ;;  %v3825_v53 = vsel %vm3810_vm9, %v3788_v11, %v6507_v45  ;;  %v6513_v48 = vunpack.i.h.bf16 %v8918_v6  ;;  %v2956_v63 = vrot.slane %v8291_v4, 3 }
 0x223   : > { %v6512_v49 = vunpack.i.l.bf16 %v8918_v6  ;;  %v3610_v28 = vsel %vm474_vm0, %v3607_v60, %v3609_v18  ;;  %v2958_v0 = vrot.slane %v8219_v51, 3  ;;  %v3897_v56 = vsel %vm3884_vm12, %v3860_v15, %v6492_v12  ;;  %v9105_v14 = vpop.permute.xlu0 %6565  ;;  %v10269_v15 = vld [vmem:[#allocation4_spill] sm:$0xff] }
 0x224   : > { %6795 = vrot.lane.b32.xlu1 %v6794_v33, %s7012_s19  ;;  %v3612_v3 = vsel %vm474_vm0, %v3609_v18, %v3611_v58  ;;  %v3898_v19 = vsel %vm3884_vm12, %v3861_v41, %v6493_v37  ;;  %v6518_v11 = vunpack.i.h.bf16 %v8950_v35  ;;  %v2957_v6 = vsel %vm2898_vm4, %v2954_v8, %v2956_v63  ;;  %v10271_v33 = vld [vmem:[#allocation7_spill] sm:$0xff]  ;;  %v10272_v18 = vld [vmem:[#allocation8_spill] sm:$0xff] }
 0x225   : > { %6785 = vrot.lane.b32.xlu0 %v6779_v5, %s7008_s15  ;;  %v6799_v60 = vpack.i.bf16 %v3612_v3, %v3610_v28  ;;  %v2959_v45 = vsel %vm2898_vm4, %v2956_v63, %v2958_v0  ;;  %v10267_v57 = vcombine.low %v10265_v31, %v10266_v1  ;;  %v10270_v5 = vcombine.low %v10268_v59, %v10269_v15  ;;  %v9124_v3 = vpop.permute.xlu1 %6580 }
 0x226   : > { %v3863_v37 = vsel %vm3847_vm10, %v3826_v30, %v6513_v48  ;;  %v6804_v8 = vpack.i.bf16 %v2959_v45, %v2957_v6  ;;  %v6522_v12 = vunpack.i.l.bf16 %v8975_v26  ;;  %v10273_v28 = vcombine.low %v10271_v33, %v10272_v18 }
 0x227   : > { %v2366_v54 = vrot.slane %v10267_v57, %v7110_v27  ;;  %v2373_v41 = vrot.slane %v10270_v5, %v7110_v27  ;;  %v3862_v31 = vsel %vm3847_vm10, %v3825_v53, %v6512_v49  ;;  %v6523_v1 = vunpack.i.h.bf16 %v8975_v26  ;;  %v9146_v5 = vpop.permute.xlu0 %6570 }
 0x228   : > { %v2382_v63 = vrot.slane %v10273_v28, %v7110_v27  ;;  %6800 = vrot.lane.b32.xlu1 %v6799_v60, %s7013_s20  ;;  %v3151_v30 = vrot.slane %v8793_v62, 4  ;;  %v6498_v48 = vunpack.i.h.bf16 %v8927_v32  ;;  %v6517_v6 = vunpack.i.l.bf16 %v8950_v35 }
 0x229   : > { %v9129_v57 = vcombine.low %v2366_v54, %v2373_v41  ;;  %6805 = vrot.lane.b32.xlu0 %v6804_v8, %s7009_s16  ;;  %v6527_v59 = vunpack.i.l.bf16 %v9014_v10  ;;  %v3900_v53 = vsel %vm3884_vm12, %v3863_v37, %v6518_v11  ;;  %v6528_v60 = vunpack.i.h.bf16 %v9014_v10 }
 0x22a   : > { %v9136_v45 = vsel %vm10263_vm11, %v2382_v63, 0.0  ;;  %v3934_v54 = vsel %vm3921_vm13, %v3897_v56, %v6522_v12  ;;  %v2670_v15 = vrot.slane %v8708_v2, 2  ;;  %v2672_v35 = vrot.slane %v8828_v61, 2  ;;  %v9163_v12 = vpop.permute.xlu1 %6590  ;;  %vm10276_vm11 = vmmov %vm10275_vm2 }
 0x22b   : > { %v3262_v49 = vrot.slane %v9129_v57, 4  ;;  %v3264_v26 = vrot.slane %v9136_v45, 4  ;;  %v3935_v41 = vsel %vm3921_vm13, %v3898_v19, %v6523_v1  ;;  %v3971_v8 = vsel %vm3958_vm14, %v3934_v54, %v6527_v59 }
 0x22c   : > { %v2671_v10 = vsel %vm2604_vm8, %v2668_v29, %v2670_v15  ;;  %v2673_v56 = vsel %vm2604_vm8, %v2670_v15, %v2672_v35  ;;  %v2488_v19 = vrot.slane %v8708_v2, 1  ;;  %v3972_v18 = vsel %vm3958_vm14, %v3935_v41, %v6528_v60 }
 0x22d   : > { %v3263_v11 = vsel %vm10274_vm5, %v3151_v30, %v3262_v49  ;;  %v3265_v37 = vsel %vm10275_vm2, %v3262_v49, %v3264_v26  ;;  %6810 = vrot.lane.b32.xlu0 %v9055_v47, %s7010_s17  ;;  %v6553_v28 = vunpack.i.h.bf16 %v9035_v9  ;;  %v6552_v63 = vunpack.i.l.bf16 %v9035_v9  ;;  %vm10277_vm5 = vmmov %vm10275_vm2 }
 0x22e   : > { %v6814_v33 = vpack.i.bf16 %v3265_v37, %v3263_v11  ;;  %v2490_v47 = vrot.slane %v8828_v61, 1  ;;  %v2489_v29 = vsel %vm2422_vm7, %v2486_v44, %v2488_v19  ;;  %v6533_v1 = vunpack.i.h.bf16 %v9049_v16  ;;  %v9184_v37 = vpop.permute.xlu0 %6575 }
 0x22f   : > { %v6532_v59 = vunpack.i.l.bf16 %v9049_v16  ;;  %v2960_v49 = vrot.slane %v8708_v2, 3  ;;  %v6829_v26 = vpack.i.bf16 %v2673_v56, %v2671_v10  ;;  %v2962_v9 = vrot.slane %v8828_v61, 3 }
 0x230   : > { %6815 = vrot.lane.b32.xlu1 %v6814_v33, %s7011_s18  ;;  %v2491_v60 = vsel %vm2422_vm7, %v2488_v19, %v2490_v47  ;;  %v6558_v54 = vunpack.i.h.bf16 %v9066_v21  ;;  %v4009_v44 = vsel %vm3995_vm15, %v3972_v18, %v6533_v1  ;;  %v6557_v11 = vunpack.i.l.bf16 %v9066_v21 }
 0x231   : > { %v6819_v15 = vpack.i.bf16 %v2491_v60, %v2489_v29  ;;  %v4008_v41 = vsel %vm3995_vm15, %v3971_v8, %v6532_v59  ;;  %v3899_v16 = vsel %vm3884_vm12, %v3862_v31, %v6517_v6  ;;  %v2961_v10 = vsel %vm2898_vm4, %v2958_v0, %v2960_v49  ;;  %v9199_v31 = vpop.permute.xlu1 %6595 }
 0x232   : > { %v4038_v33 = vpack.c.bf16 %v4009_v44, %v4008_v41  ;;  %v2963_v56 = vsel %vm2898_vm4, %v2960_v49, %v2962_v9  ;;  %v6497_v19 = vunpack.i.l.bf16 %v8927_v32  ;;  %v6502_v8 = vunpack.i.l.bf16 %v8952_v50 }
 0x233   : > { %v3937_v21 = vsel %vm3921_vm13, %v3900_v53, %v6553_v28  ;;  %v3936_v18 = vsel %vm3921_vm13, %v3899_v16, %v6552_v63  ;;  %6820 = vrot.lane.b32.xlu0 %v6819_v15, %s7006_s13  ;;  %v3141_v0 = vrot.slane %v8708_v2, 4  ;;  %v3143_v6 = vrot.slane %v8828_v61, 4 }
 0x234   : > { %6830 = vrot.lane.b32.xlu1 %v6829_v26, %s7008_s15  ;;  %6175 = vmatprep.mubr.msk.bf16.mxu1 %vm4062_vm3, %v4038_v33  ;;  %v6563_v29 = vunpack.i.h.bf16 %v9089_v36  ;;  %v6562_v1 = vunpack.i.l.bf16 %v9089_v36  ;;  %v6834_v59 = vpack.i.bf16 %v2963_v56, %v2961_v10  ;;  %v3973_v49 = vsel %vm3958_vm14, %v3936_v18, %v6557_v11 }
 0x235   : > { %v3974_v53 = vsel %vm3958_vm14, %v3937_v21, %v6558_v54  ;;  %v3142_v28 = vsel %vm10276_vm11, %v3139_v43, %v3141_v0  ;;  %v3144_v63 = vsel %vm10277_vm5, %v3141_v0, %v3143_v6  ;;  %v6503_v41 = vunpack.i.h.bf16 %v8952_v50  ;;  %v9221_v43 = vpop.permute.xlu0 %6585  ;;  %v10279_v50 = vld [vmem:[#allocation17_spill] sm:$0xff]  ;;  %v9238_v20 = vpop.permute.xlu1 %6605 }
 0x236   : > { %v4010_v60 = vsel %vm3995_vm15, %v3973_v49, %v6562_v1  ;;  %v4011_v15 = vsel %vm3995_vm15, %v3974_v53, %v6563_v29  ;;  %v6538_v36 = vunpack.i.h.bf16 %v8980_v34  ;;  %v2676_v44 = vrot.slane %v8715_v13, 2 }
 0x237   : > { %6825 = vrot.lane.b32.xlu0 %v6829_v26, %s7007_s14  ;;  %v4039_v54 = vpack.c.bf16 %v4011_v15, %v4010_v60  ;;  %v10278_v11 = vrot.slane %v8807_v24, %v7110_v27  ;;  %v3754_v33 = vsel %vm3737_vm6, %v10279_v50, %v6497_v19  ;;  %v2786_v10 = vrot.slane %v8797_v17, 2  ;;  %v10280_v24 = vld [vmem:[#allocation18_spill] sm:$0xff]  ;;  %v10284_v50 = vld [vmem:[#allocation15_spill] sm:$0xff] }
 0x238   : > { %6835 = vrot.lane.b32.xlu1 %v6834_v59, %s7009_s16  ;;  %v2788_v26 = vrot.slane %v8793_v62, 2  ;;  %v6839_v56 = vpack.i.bf16 %v3144_v63, %v3142_v28  ;;  %v3432_v21 = vrot.slane %v8708_v2, 5  ;;  %v3434_v18 = vrot.slane %v8828_v61, 5  ;;  %v10281_v59 = vld [vmem:[#allocation16_spill] sm:$0xff] }
 0x239   : > { %v9229_v16 = vcombine.low %v10278_v11, %v2305_v25  ;;  %6176 = vmatmul.mubr.msk.bf16.gmra.mxu1 %vm4062_vm3, %v4039_v54  ;;  %v3755_v25 = vsel %vm3737_vm6, %v10280_v24, %v6498_v48  ;;  %v3790_v19 = vsel %vm425_vm1, %v3754_v33, %v6502_v8  ;;  %v2787_v0 = vsel %vm2604_vm8, %v2676_v44, %v2786_v10 }
 0x23a   : > { %v2789_v29 = vsel %vm2604_vm8, %v2786_v10, %v2788_v26  ;;  %v3791_v1 = vsel %vm425_vm1, %v3755_v25, %v6503_v41  ;;  %v3757_v49 = vsel %vm3737_vm6, %v10281_v59, %v6538_v36  ;;  %v6537_v53 = vunpack.i.l.bf16 %v8980_v34  ;;  %v9266_v36 = vpop.permute.xlu0 %6600 }
 0x23b   : > { %6845 = vrot.lane.b32.xlu0 %v6839_v56, %s7011_s18  ;;  %v2966_v32 = vrot.slane %v8715_v13, 3  ;;  %v6543_v48 = vunpack.i.h.bf16 %v9005_v46  ;;  %v6542_v8 = vunpack.i.l.bf16 %v9005_v46  ;;  %vm10282_vm2 = vcmask 1042432  }
 0x23c   : > { %6840 = vrot.lane.b32.xlu1 %v6839_v56, %s7010_s17  ;;  %v3433_v28 = vsel %vm10282_vm2, %v3430_v39, %v3432_v21  ;;  %vm10283_vm11 = vmmov %vm10282_vm2  ;;  %v6859_v60 = vpack.i.bf16 %v2789_v29, %v2787_v0  ;;  %v2968_v15 = vrot.slane %v8797_v17, 3  ;;  %v2970_v41 = vrot.slane %v8793_v62, 3 }
 0x23d   : > { %v3435_v63 = vsel %vm10283_vm11, %v3432_v21, %v3434_v18  ;;  %v6548_v54 = vunpack.i.h.bf16 %v9076_v23  ;;  %v6547_v46 = vunpack.i.l.bf16 %v9076_v23  ;;  %v3613_v11 = vrot.slane %v8708_v2, 6  ;;  %v6611_v23 = vpop.permute.xlu1 %6610  ;;  %vm10285_vm2 = vmmov %vm10277_vm5 }
 0x23e   : > { %v6849_v34 = vpack.i.bf16 %v3435_v63, %v3433_v28  ;;  %v3615_v39 = vrot.slane %v8828_v61, 6  ;;  %v3756_v33 = vsel %vm3737_vm6, %v10284_v50, %v6537_v53  ;;  %v6567_v10 = vunpack.i.l.bf16 %v9105_v14 }
 0x23f   : > { %v2969_v26 = vsel %vm2898_vm4, %v2966_v32, %v2968_v15  ;;  %v2971_v56 = vsel %vm2898_vm4, %v2968_v15, %v2970_v41  ;;  %v3792_v21 = vsel %vm425_vm1, %v3756_v33, %v6542_v8  ;;  %v6568_v24 = vunpack.i.h.bf16 %v9105_v14 }
 0x240   : > { %6860 = vrot.lane.b32.xlu1 %v6859_v60, %s7008_s15  ;;  %6850 = vrot.lane.b32.xlu0 %v6849_v34, %s7012_s19  ;;  %v3614_v25 = vsel %vm474_vm0, %v3611_v58, %v3613_v11  ;;  %v3616_v0 = vsel %vm474_vm0, %v3613_v11, %v3615_v39  ;;  %v6572_v29 = vunpack.i.l.bf16 %v9146_v5  ;;  %v6864_v59 = vpack.i.bf16 %v2971_v56, %v2969_v26  ;;  %v6616_v11 = vpop.permute.xlu0 %6615 }
 0x241   : > { %v6854_v53 = vpack.i.bf16 %v3616_v0, %v3614_v25  ;;  %v3147_v28 = vrot.slane %v8715_v13, 4  ;;  %v3793_v63 = vsel %vm425_vm1, %v3757_v49, %v6543_v48  ;;  %v3828_v8 = vsel %vm3810_vm9, %v3791_v1, %v6548_v54  ;;  %v6621_v50 = vpop.permute.xlu1 %6620 }
 0x242   : > { %v3827_v14 = vsel %vm3810_vm9, %v3790_v19, %v6547_v46  ;;  %v3149_v60 = vrot.slane %v8797_v17, 4  ;;  %v6573_v34 = vunpack.i.h.bf16 %v9146_v5  ;;  %v2492_v15 = vrot.slane %v9229_v16, 1 }
 0x243   : > { %v3864_v58 = vsel %vm3847_vm10, %v3827_v14, %v6567_v10  ;;  %v2494_v41 = vrot.slane %v8715_v13, 1  ;;  %v6598_v1 = vunpack.i.h.bf16 %v9199_v31  ;;  %v6597_v48 = vunpack.i.l.bf16 %v9199_v31 }
 0x244   : > { %6865 = vrot.lane.b32.xlu1 %v6864_v59, %s7009_s16  ;;  %6855 = vrot.lane.b32.xlu0 %v6854_v53, %s7013_s20  ;;  %v3150_v49 = vsel %vm10277_vm5, %v3147_v28, %v3149_v60  ;;  %v3152_v19 = vsel %vm10285_vm2, %v3149_v60, %v3151_v30  ;;  %v3865_v5 = vsel %vm3847_vm10, %v3828_v8, %v6568_v24  ;;  %v6608_v26 = vunpack.i.h.bf16 %v9238_v20  ;;  %v6626_v60 = vpop.permute.xlu0 %6625  ;;  %vm10289_vm5 = vmmov %vm10285_vm2 }
 0x245   : > { %v3901_v54 = vsel %vm3884_vm12, %v3864_v58, %v6572_v29  ;;  %v6869_v46 = vpack.i.bf16 %v3152_v19, %v3150_v49  ;;  %v2493_v33 = vsel %vm2422_vm7, %v2490_v47, %v2492_v15  ;;  %v2495_v10 = vsel %vm2422_vm7, %v2492_v15, %v2494_v41  ;;  %vm10286_vm7 = vmmov %vm10283_vm11  ;;  %v6631_v19 = vpop.permute.xlu1 %6630 }
 0x246   : > { %v6607_v30 = vunpack.i.l.bf16 %v9238_v20  ;;  %v3902_v56 = vsel %vm3884_vm12, %v3865_v5, %v6573_v34  ;;  %v3438_v31 = vrot.slane %v8715_v13, 5  ;;  %v3440_v24 = vrot.slane %v8797_v17, 5  ;;  %vm10287_vm11 = vmmov %vm10286_vm7 }
 0x247   : > { %v3442_v25 = vrot.slane %v8793_v62, 5  ;;  %v3830_v47 = vsel %vm3810_vm9, %v3793_v63, %v6598_v1  ;;  %v3829_v0 = vsel %vm3810_vm9, %v3792_v21, %v6597_v48  ;;  %v6884_v29 = vpack.i.bf16 %v2495_v10, %v2493_v33 }
 0x248   : > { %6870 = vrot.lane.b32.xlu1 %v6869_v46, %s7010_s17  ;;  %6875 = vrot.lane.b32.xlu0 %v6869_v46, %s7011_s18  ;;  %v2674_v59 = vrot.slane %v9229_v16, 2  ;;  %v3441_v20 = vsel %vm10286_vm7, %v3438_v31, %v3440_v24  ;;  %v6613_v8 = vunpack.i.h.bf16 %v6611_v23  ;;  %v6612_v14 = vunpack.i.l.bf16 %v6611_v23 }
 0x249   : > { %v3443_v53 = vsel %vm10287_vm11, %v3440_v24, %v3442_v25  ;;  %v3866_v58 = vsel %vm3847_vm10, %v3829_v0, %v6607_v30  ;;  %v3867_v34 = vsel %vm3847_vm10, %v3830_v47, %v6608_v26  ;;  %v6618_v49 = vunpack.i.h.bf16 %v6616_v11  ;;  %v6636_v0 = vpop.permute.xlu0 %6635 }
 0x24a   : > { %v6879_v15 = vpack.i.bf16 %v3443_v53, %v3441_v20  ;;  %v2675_v21 = vsel %vm2604_vm8, %v2672_v35, %v2674_v59  ;;  %v2677_v63 = vsel %vm2604_vm8, %v2674_v59, %v2676_v44  ;;  %v3903_v41 = vsel %vm3884_vm12, %v3866_v58, %v6612_v14  ;;  %vm10288_vm8 = vmmov %vm10285_vm2 }
 0x24b   : > { %v3904_v23 = vsel %vm3884_vm12, %v3867_v34, %v6613_v8  ;;  %v6889_v1 = vpack.i.bf16 %v2677_v63, %v2675_v21  ;;  %v6617_v48 = vunpack.i.l.bf16 %v6616_v11  ;;  %v3145_v5 = vrot.slane %v9229_v16, 4  ;;  %v6641_v8 = vpop.permute.xlu1 %6640  ;;  %vm10290_vm2 = vmmov %vm10286_vm7 }
 0x24c   : > { %6885 = vrot.lane.b32.xlu1 %v6884_v29, %s7006_s13  ;;  %6880 = vrot.lane.b32.xlu0 %v6879_v15, %s7012_s19  ;;  %v3939_v35 = vsel %vm3921_vm13, %v3902_v56, %v6618_v49  ;;  %v6623_v46 = vunpack.i.h.bf16 %v6621_v50  ;;  %v6622_v33 = vunpack.i.l.bf16 %v6621_v50  ;;  %v2964_v10 = vrot.slane %v9229_v16, 3  ;;  %vm10291_vm7 = vmmov %vm10290_vm2 }
 0x24d   : > { %v3938_v44 = vsel %vm3921_vm13, %v3901_v54, %v6617_v48  ;;  %v3146_v26 = vsel %vm10288_vm8, %v3143_v6, %v3145_v5  ;;  %v3148_v30 = vsel %vm10289_vm5, %v3145_v5, %v3147_v28  ;;  %v6628_v24 = vunpack.i.h.bf16 %v6626_v60  ;;  %vm10293_vm11 = vmmov %vm10290_vm2 }
 0x24e   : > { %v6899_v11 = vpack.i.bf16 %v3148_v30, %v3146_v26  ;;  %v3940_v47 = vsel %vm3921_vm13, %v3903_v41, %v6622_v33  ;;  %v3941_v56 = vsel %vm3921_vm13, %v3904_v23, %v6623_v46  ;;  %v2965_v50 = vsel %vm2898_vm4, %v2962_v9, %v2964_v10  ;;  %v9375_v48 = vpop.permute.xlu0 %6645 }
 0x24f   : > { %v2967_v6 = vsel %vm2898_vm4, %v2964_v10, %v2966_v32  ;;  %v6627_v28 = vunpack.i.l.bf16 %v6626_v60  ;;  %v3976_v54 = vsel %vm3958_vm14, %v3939_v35, %v6628_v24  ;;  %v3436_v29 = vrot.slane %v9229_v16, 5  ;;  %vm10292_vm4 = vmmov %vm10290_vm2 }
 0x250   : > { %6890 = vrot.lane.b32.xlu1 %v6889_v1, %s7007_s14  ;;  %6895 = vrot.lane.b32.xlu0 %v6889_v1, %s7008_s15  ;;  %v6919_v59 = vpack.i.bf16 %v2967_v6, %v2965_v50  ;;  %v6633_v20 = vunpack.i.h.bf16 %v6631_v19  ;;  %v6632_v53 = vunpack.i.l.bf16 %v6631_v19  ;;  %v6638_v34 = vunpack.i.h.bf16 %v6636_v0 }
 0x251   : > { %v3975_v14 = vsel %vm3958_vm14, %v3938_v44, %v6627_v28  ;;  %v3437_v9 = vsel %vm10290_vm2, %v3434_v18, %v3436_v29  ;;  %v3439_v58 = vsel %vm10291_vm7, %v3436_v29, %v3438_v31  ;;  %v6637_v21 = vunpack.i.l.bf16 %v6636_v0 }
 0x252   : > { %v6904_v32 = vpack.i.bf16 %v3439_v58, %v3437_v9  ;;  %v3977_v60 = vsel %vm3958_vm14, %v3940_v47, %v6632_v53  ;;  %v3978_v15 = vsel %vm3958_vm14, %v3941_v56, %v6633_v20  ;;  %v4013_v63 = vsel %vm3995_vm15, %v3976_v54, %v6638_v34 }
 0x253   : > { %v3617_v41 = vrot.slane %v9229_v16, 6  ;;  %v3619_v23 = vrot.slane %v8715_v13, 6  ;;  %v6643_v18 = vunpack.i.h.bf16 %v6641_v8  ;;  %v4012_v31 = vsel %vm3995_vm15, %v3975_v14, %v6637_v21 }
 0x254   : > { %6900 = vrot.lane.b32.xlu1 %v6899_v11, %s7011_s18  ;;  %6920 = vrot.lane.b32.xlu0 %v6919_v59, %s7009_s16  ;;  %v6642_v49 = vunpack.i.l.bf16 %v6641_v8  ;;  %v3621_v19 = vrot.slane %v8797_v17, 6  ;;  %v3623_v1 = vrot.slane %v8793_v62, 6  ;;  %v4040_v5 = vpack.c.bf16 %v4013_v63, %v4012_v31 }
 0x255   : > { %v3618_v35 = vsel %vm474_vm0, %v3615_v39, %v3617_v41  ;;  %v3620_v46 = vsel %vm474_vm0, %v3617_v41, %v3619_v23  ;;  %v4015_v33 = vsel %vm3995_vm15, %v3978_v15, %v6643_v18  ;;  %v3444_v30 = vrot.slane %v9129_v57, 5  ;;  %v10294_v18 = vld [vmem:[#allocation19_spill] sm:$0xff] }
 0x256   : > { %v4014_v13 = vsel %vm3995_vm15, %v3977_v60, %v6642_v49  ;;  %v3622_v10 = vsel %vm474_vm0, %v3619_v23, %v3621_v19  ;;  %v3624_v17 = vsel %vm474_vm0, %v3621_v19, %v3623_v1  ;;  %v9386_v44 = vpop.permute.xlu1 %6660  ;;  %6179 = vmatprep.mubr.msk.bf16.mxu1 %vm4062_vm3, %v4040_v5  ;;  %v6909_v39 = vpack.i.bf16 %v3620_v46, %v3618_v35  ;;  %v10297_v46 = vld [vmem:[#allocation22_spill] sm:$0xff] }
 0x257   : > { %v4041_v26 = vpack.c.bf16 %v4015_v33, %v4014_v13  ;;  %v3446_v24 = vrot.slane %v9136_v45, 5  ;;  %v6929_v47 = vpack.i.bf16 %v3624_v17, %v3622_v10  ;;  %v3445_v56 = vsel %vm10292_vm4, %v3442_v25, %v3444_v30 }
 0x258   : > { %6905 = vrot.lane.b32.xlu1 %v6904_v32, %s7012_s19  ;;  %6925 = vrot.lane.b32.xlu0 %v6899_v11, %s7010_s17  ;;  %v6651_v11 = vpop.permute.xlu0 %6650  ;;  %v3625_v6 = vrot.slane %v9129_v57, 6  ;;  %v3627_v28 = vrot.slane %v9136_v45, 6  ;;  %v6577_v45 = vunpack.i.l.bf16 %v9184_v37  ;;  %v6578_v14 = vunpack.i.h.bf16 %v9184_v37 }
 0x259   : > { %6180 = vmatmul.mubr.msk.bf16.gmra.mxu1 %vm4062_vm3, %v4041_v26  ;;  %v3447_v50 = vsel %vm10293_vm11, %v3444_v30, %v3446_v24  ;;  %v6587_v9 = vunpack.i.l.bf16 %v9221_v43  ;;  %v6583_v58 = vunpack.i.h.bf16 %v9124_v3  ;;  %v6582_v34 = vunpack.i.l.bf16 %v9124_v3  ;;  %v10295_v3 = vld [vmem:[#allocation21_spill] sm:$0xff] }
 0x25a   : > { %v6914_v0 = vpack.i.bf16 %v3447_v50, %v3445_v56  ;;  %v3626_v29 = vsel %vm474_vm0, %v3623_v1, %v3625_v6  ;;  %v3628_v62 = vsel %vm474_vm0, %v3625_v6, %v3627_v28  ;;  %v6588_v32 = vunpack.i.h.bf16 %v9221_v43 }
 0x25b   : > { %v9401_v54 = vpop.permute.xlu1 %6670  ;;  %v6934_v59 = vpack.i.bf16 %v3628_v62, %v3626_v29  ;;  %v6602_v60 = vunpack.i.l.bf16 %v9266_v36  ;;  %v6603_v21 = vunpack.i.h.bf16 %v9266_v36  ;;  %v6647_v63 = vunpack.i.l.bf16 %v9375_v48  ;;  %v10296_v36 = vld [vmem:[#allocation20_spill] sm:$0xff] }
 0x25c   : > { %6910 = vrot.lane.b32.xlu1 %v6909_v39, %s7013_s20  ;;  %6930 = vrot.lane.b32.xlu0 %v6929_v47, %s7013_s20  ;;  %v6593_v23 = vunpack.i.h.bf16 %v9163_v12  ;;  %v6592_v37 = vunpack.i.l.bf16 %v9163_v12  ;;  %v3758_v31 = vsel %vm3737_vm6, %v10294_v18, %v6577_v45  ;;  %v6648_v49 = vunpack.i.h.bf16 %v9375_v48 }
 0x25d   : > { %v3759_v43 = vsel %vm3737_vm6, %v10295_v3, %v6578_v14  ;;  %v3794_v19 = vsel %vm425_vm1, %v3758_v31, %v6587_v9  ;;  %v6653_v1 = vunpack.i.h.bf16 %v6651_v11  ;;  %v6652_v5 = vunpack.i.l.bf16 %v6651_v11 }
 0x25e   : > { %v3761_v35 = vsel %vm3737_vm6, %v10296_v36, %v6583_v58  ;;  %v3760_v33 = vsel %vm3737_vm6, %v10297_v46, %v6582_v34  ;;  %v3795_v12 = vsel %vm425_vm1, %v3759_v43, %v6588_v32  ;;  %v3831_v13 = vsel %vm3810_vm9, %v3794_v19, %v6602_v60 }
 0x25f   : > { %v3832_v48 = vsel %vm3810_vm9, %v3795_v12, %v6603_v21  ;;  %v3868_v17 = vsel %vm3847_vm10, %v3831_v13, %v6647_v63  ;;  %v3796_v11 = vsel %vm425_vm1, %v3760_v33, %v6592_v37  ;;  %vm5867_vm7 = vcmask 27648  }
 0x260   : > { %6915 = vrot.lane.b32.xlu1 %v6914_v0, %s7012_s19  ;;  %v9406_v25 = vpop.permute.xlu0 %6655  ;;  %v3869_v30 = vsel %vm3847_vm10, %v3832_v48, %v6648_v49  ;;  %v3797_v0 = vsel %vm425_vm1, %v3761_v35, %v6593_v23  ;;  %v3905_v6 = vsel %vm3884_vm12, %v3868_v17, %v6652_v5  ;;  %s9642_s19 = scalar_lea.vmem %s10098_s7, %s6054_s28 }
 0x261   : > { %v3906_v28 = vsel %vm3884_vm12, %v3869_v30, %v6653_v1 }
 0x263   : > { %v6676_v20 = vpop.permute.xlu1 %6675 }
 0x264   : > { %6935 = vrot.lane.b32.xlu1 %v6934_v59, %s7013_s20  ;;  %v9409_v53 = vpop.permute.xlu0 %6665  ;;  %v6678_v26 = vunpack.i.h.bf16 %v6676_v20  ;;  %v6677_v39 = vunpack.i.l.bf16 %v6676_v20 }
 0x266   : > { %v3834_v20 = vsel %vm3810_vm9, %v3797_v0, %v6678_v26  ;;  %v3833_v14 = vsel %vm3810_vm9, %v3796_v11, %v6677_v39  ;;  %v6662_v0 = vunpack.i.l.bf16 %v9386_v44 }
 0x267   : > { %v6686_v8 = vpop.permute.xlu1 %6685 }
 0x268   : > { %v9411_v57 = vpop.permute.xlu0 %6680  ;;  %v6687_v24 = vunpack.i.l.bf16 %v6686_v8  ;;  %v6688_v29 = vunpack.i.h.bf16 %v6686_v8 }
 0x26a   : > { %v3870_v32 = vsel %vm3847_vm10, %v3833_v14, %v6687_v24  ;;  %v3871_v31 = vsel %vm3847_vm10, %v3834_v20, %v6688_v29  ;;  %v6657_v29 = vunpack.i.l.bf16 %v9406_v25  ;;  %v6667_v20 = vunpack.i.l.bf16 %v9409_v53 }
 0x26c   : > { %v6691_v15 = vpop.permute.xlu1 %6690  ;;  %v6696_v41 = vpop.permute.xlu0 %6695 }
 0x26d   : > { %v6698_v47 = vunpack.i.h.bf16 %v6696_v41  ;;  %v6697_v56 = vunpack.i.l.bf16 %v6696_v41  ;;  %v6692_v62 = vunpack.i.l.bf16 %v6691_v15  ;;  %v6693_v9 = vunpack.i.h.bf16 %v6691_v15 }
 0x26f   : > { %v3943_v60 = vsel %vm3921_vm13, %v3906_v28, %v6698_v47  ;;  %v3942_v21 = vsel %vm3921_vm13, %v3905_v6, %v6697_v56  ;;  %v3907_v49 = vsel %vm3884_vm12, %v3870_v32, %v6692_v62  ;;  %v3908_v43 = vsel %vm3884_vm12, %v3871_v31, %v6693_v9 }
 0x270   : > { %v6701_v10 = vpop.permute.xlu1 %6700  ;;  %v6663_v6 = vunpack.i.h.bf16 %v9386_v44  ;;  %v6672_v28 = vunpack.i.l.bf16 %v9401_v54  ;;  %v3764_v9 = vsel %vm3737_vm6, %v8136_v40, %v6662_v0  ;;  %v6682_v44 = vunpack.i.l.bf16 %v9411_v57 }
 0x271   : > { %v6702_v58 = vunpack.i.l.bf16 %v6701_v10  ;;  %v6703_v63 = vunpack.i.h.bf16 %v6701_v10 }
 0x272   : > { %v6706_v50 = vpop.permute.xlu0 %6705  ;;  %v3800_v32 = vsel %vm425_vm1, %v3764_v9, %v6672_v28 }
 0x273   : > { %v6708_v59 = vunpack.i.h.bf16 %v6706_v50  ;;  %v6707_v45 = vunpack.i.l.bf16 %v6706_v50  ;;  %v3944_v19 = vsel %vm3921_vm13, %v3907_v49, %v6702_v58  ;;  %v3945_v35 = vsel %vm3921_vm13, %v3908_v43, %v6703_v63 }
 0x274   : > { %v6711_v34 = vpop.permute.xlu1 %6710  ;;  %v6668_v58 = vunpack.i.h.bf16 %v9409_v53 }
 0x275   : > { %v6713_v23 = vunpack.i.h.bf16 %v6711_v34  ;;  %v6712_v8 = vunpack.i.l.bf16 %v6711_v34  ;;  %v3979_v15 = vsel %vm3958_vm14, %v3942_v21, %v6707_v45  ;;  %v3980_v3 = vsel %vm3958_vm14, %v3943_v60, %v6708_v59 }
 0x276   : > { %v6673_v59 = vunpack.i.h.bf16 %v9401_v54  ;;  %v6658_v45 = vunpack.i.h.bf16 %v9406_v25  ;;  %v3765_v34 = vsel %vm3737_vm6, %v8120_v42, %v6663_v6  ;;  %v6683_v60 = vunpack.i.h.bf16 %v9411_v57 }
 0x277   : > { %v6716_v41 = vpop.permute.xlu0 %6715  ;;  %v3981_v13 = vsel %vm3958_vm14, %v3944_v19, %v6712_v8  ;;  %v3982_v10 = vsel %vm3958_vm14, %v3945_v35, %v6713_v23  ;;  %v3762_v25 = vsel %vm3737_vm6, %v8125_v55, %v6657_v29  ;;  %v9510_v35 = vld [vmem:[%s10096_s5] ss:$0 sm:$0xff] }
 0x278   : > { %v6718_v37 = vunpack.i.h.bf16 %v6716_v41  ;;  %v6717_v18 = vunpack.i.l.bf16 %v6716_v41  ;;  %v3801_v53 = vsel %vm425_vm1, %v3765_v34, %v6673_v59  ;;  %v3763_v23 = vsel %vm3737_vm6, %v10238_v52, %v6658_v45 }
 0x279   : > { %v6721_v36 = vpop.permute.xlu1 %6720  ;;  %v3798_v42 = vsel %vm425_vm1, %v3762_v25, %v6667_v20  ;;  %v3799_v57 = vsel %vm425_vm1, %v3763_v23, %v6668_v58 }
 0x27a   : > { %v4016_v1 = vsel %vm3995_vm15, %v3979_v15, %v6717_v18  ;;  %v4017_v5 = vsel %vm3995_vm15, %v3980_v3, %v6718_v37  ;;  %v6723_v33 = vunpack.i.h.bf16 %v6721_v36  ;;  %v6722_v12 = vunpack.i.l.bf16 %v6721_v36 }
 0x27b   : > { %v4042_v46 = vpack.c.bf16 %v4017_v5, %v4016_v1  ;;  %v6726_v48 = vpop.permute.xlu0 %6725  ;;  %v3835_v18 = vsel %vm3810_vm9, %v3798_v42, %v6682_v44  ;;  %v3836_v49 = vsel %vm3810_vm9, %v3799_v57, %v6683_v60  ;;  %v9540_v42 = vld [vmem:[%s7075_s8] sm:$0xff]  }
 0x27c   : > { %v4018_v17 = vsel %vm3995_vm15, %v3981_v13, %v6722_v12  ;;  %v4019_v26 = vsel %vm3995_vm15, %v3982_v10, %v6723_v33  ;;  %v6727_v54 = vunpack.i.l.bf16 %v6726_v48  ;;  %v6728_v21 = vunpack.i.h.bf16 %v6726_v48 }
 0x27d   : > { %6183 = vmatprep.mubr.msk.bf16.mxu1 %vm4062_vm3, %v4042_v46  ;;  %v4043_v39 = vpack.c.bf16 %v4019_v26, %v4018_v17 }
 0x27e   : > { %v9462_v30 = vpop.permute.xlu1 %6745  ;;  %v3872_v15 = vsel %vm3847_vm10, %v3835_v18, %v6727_v54  ;;  %v3873_v19 = vsel %vm3847_vm10, %v3836_v49, %v6728_v21 }
 0x27f   : > { %v6731_v24 = vpop.permute.xlu0 %6730  ;;  %6184 = vmatmul.mubr.msk.bf16.gmra.mxu1 %vm4062_vm3, %v4043_v39  ;;  %v6747_v63 = vunpack.i.l.bf16 %v9462_v30  ;;  %v6748_v52 = vunpack.i.h.bf16 %v9462_v30 }
 0x280   : > { %v6732_v41 = vunpack.i.l.bf16 %v6731_v24  ;;  %v6733_v8 = vunpack.i.h.bf16 %v6731_v24  ;;  %v9521_v24 = vld [vmem:[%s10097_s6] ss:$0 sm:$0xff] }
 0x281   : > { %v3837_v1 = vsel %vm3810_vm9, %v3800_v32, %v6747_v63  ;;  %v3838_v58 = vsel %vm3810_vm9, %v3801_v53, %v6748_v52 }
 0x282   : > { %v9465_v47 = vpop.permute.xlu1 %6750  ;;  %v3909_v5 = vsel %vm3884_vm12, %v3872_v15, %v6732_v41  ;;  %v3910_v46 = vsel %vm3884_vm12, %v3873_v19, %v6733_v8  ;;  %v312_v8 = vunpack.c.l.bf16 %v9540_v42 }
 0x283   : > { %v9467_v56 = vpop.permute.xlu0 %6735  ;;  %v6753_v33 = vunpack.i.h.bf16 %v9465_v47  ;;  %v6752_v12 = vunpack.i.l.bf16 %v9465_v47 }
 0x285   : > { %v3874_v44 = vsel %vm3847_vm10, %v3837_v1, %v6752_v12  ;;  %v3875_v60 = vsel %vm3847_vm10, %v3838_v58, %v6753_v33 }
 0x286   : > { %v9469_v50 = vpop.permute.xlu1 %6755 }
 0x287   : > { %v9471_v11 = vpop.permute.xlu0 %6740  ;;  %v6758_v13 = vunpack.i.h.bf16 %v9469_v50  ;;  %v6757_v0 = vunpack.i.l.bf16 %v9469_v50 }
 0x289   : > { %v3911_v41 = vsel %vm3884_vm12, %v3874_v44, %v6757_v0  ;;  %v3912_v23 = vsel %vm3884_vm12, %v3875_v60, %v6758_v13  ;;  %v313_v13 = vunpack.c.h.bf16 %v9540_v42  ;;  %v6737_v60 = vunpack.i.l.bf16 %v9467_v56 }
 0x28a   : > { %v9477_v62 = vpop.permute.xlu1 %6775 }
 0x28b   : > { %v6761_v14 = vpop.permute.xlu0 %6760 }
 0x28c   : > { %v6763_v55 = vunpack.i.h.bf16 %v6761_v14  ;;  %v6762_v31 = vunpack.i.l.bf16 %v6761_v14 }
 0x28e   : > { %v9493_v40 = vpop.permute.xlu1 %6780  ;;  %v3947_v48 = vsel %vm3921_vm13, %v3910_v46, %v6763_v55  ;;  %v3946_v17 = vsel %vm3921_vm13, %v3909_v5, %v6762_v31 }
 0x28f   : > { %v6766_v37 = vpop.permute.xlu0 %6765 }
 0x290   : > { %v6768_v3 = vunpack.i.h.bf16 %v6766_v37  ;;  %v6767_v43 = vunpack.i.l.bf16 %v6766_v37 }
 0x291   : > { %v6165_v30 = vpop.f32.mrf.mxu1 }
 0x292   : > { %v6791_v36 = vpop.permute.xlu1 %6790  ;;  %v3983_v6 = vsel %vm3958_vm14, %v3946_v17, %v6767_v43  ;;  %v3984_v47 = vsel %vm3958_vm14, %v3947_v48, %v6768_v3  ;;  %v4306_v28 = vmul.f32 %v6165_v30, %v9510_v35 }
 0x293   : > { %v6771_v10 = vpop.permute.xlu0 %6770  ;;  %v6793_v29 = vunpack.i.h.bf16 %v6791_v36  ;;  %v6792_v59 = vunpack.i.l.bf16 %v6791_v36  ;;  %v4154_v9 = vpop.f32.mrf.mxu1 }
 0x294   : > { %v6773_v26 = vunpack.i.h.bf16 %v6771_v10  ;;  %v6772_v39 = vunpack.i.l.bf16 %v6771_v10  ;;  %v4349_v32 = vadd.f32 %v9521_v24, %v4306_v28  ;;  %v4304_v21 = vmul.f32 %v9510_v35, %v4154_v9  ;;  %v9556_v10 = vld [vmem:[%s7075_s8 + $0x8] sm:$0xff]  }
 0x295   : > { %v6166_v63 = vpop.f32.mrf.mxu1  ;;  %v3949_v37 = vsel %vm3921_vm13, %v3912_v23, %v6793_v29  ;;  %v3948_v57 = vsel %vm3921_vm13, %v3911_v41, %v6792_v59  ;;  %v314_v48 = vunpack.c.l.bf16 %v9556_v10  ;;  %v315_v17 = vunpack.c.h.bf16 %v9556_v10 }
 0x296   : > { %v4020_v45 = vsel %vm3995_vm15, %v3983_v6, %v6772_v39  ;;  %v4021_v20 = vsel %vm3995_vm15, %v3984_v47, %v6773_v26  ;;  %v6796_v14 = vpop.permute.xlu1 %6795  ;;  %vm4385_vm0 = vcmp.ge.f32.partialorder %v4349_v32, 0.0  ;;  %v4421_v53 = vmul.f32 0.1, %v4349_v32  ;;  %v9561_v39 = vld [vmem:[%s7075_s8 + $0x10] sm:$0xff]  }
 0x297   : > { %v4044_v50 = vpack.c.bf16 %v4021_v20, %v4020_v45  ;;  %v9531_v34 = vpop.permute.xlu0 %6785  ;;  %v6798_v54 = vunpack.i.h.bf16 %v6796_v14  ;;  %v6797_v25 = vunpack.i.l.bf16 %v6796_v14  ;;  %v4347_v55 = vadd.f32 %v9521_v24, %v4304_v21  ;;  %v4157_v31 = vpop.f32.mrf.mxu1 }
 0x298   : > { %v4457_v43 = vsel %vm4385_vm0, %v4349_v32, %v4421_v53  ;;  %v4307_v19 = vmul.f32 %v6166_v63, %v9510_v35  ;;  %v4305_v36 = vmul.f32 %v9510_v35, %v4157_v31  ;;  %v316_v30 = vunpack.c.l.bf16 %v9561_v39 }
 0x299   : > { %6187 = vmatprep.mubr.msk.bf16.mxu1 %vm4062_vm3, %v4044_v50  ;;  %v3985_v52 = vsel %vm3958_vm14, %v3948_v57, %v6797_v25  ;;  %v3986_v1 = vsel %vm3958_vm14, %v3949_v37, %v6798_v54  ;;  %v4561_v5 = vcombine.high %v4457_v43, %v4457_v43  ;;  %vm4383_vm8 = vcmp.ge.f32.partialorder %v4347_v55, 0.0  ;;  %v9577_v50 = vld [vmem:[%s7075_s8 + $0x18] sm:$0xff]  }
 0x29a   : > { %v6801_v18 = vpop.permute.xlu1 %6800  ;;  %v4419_v12 = vmul.f32 0.1, %v4347_v55  ;;  %v4568_v6 = vrot.slane %v4457_v43, %v7110_v27  ;;  %v4350_v28 = vadd.f32 %v9521_v24, %v4307_v19  ;;  %v6738_v29 = vunpack.i.h.bf16 %v9467_v56 }
 0x29b   : > { %v6803_v49 = vunpack.i.h.bf16 %v6801_v18  ;;  %v6802_v15 = vunpack.i.l.bf16 %v6801_v18  ;;  %v9546_v3 = vpop.permute.xlu0 %6805  ;;  %v4575_v59 = vrot.slane %v4561_v5, %v7110_v27  ;;  %v317_v14 = vunpack.c.h.bf16 %v9561_v39 }
 0x29c   : > { %v4455_v47 = vsel %vm4383_vm8, %v4347_v55, %v4419_v12  ;;  %vm4386_vm5 = vcmp.ge.f32.partialorder %v4350_v28, 0.0  ;;  %v4422_v58 = vmul.f32 0.1, %v4350_v28  ;;  %v4348_v44 = vadd.f32 %v9521_v24, %v4305_v36 }
 0x29d   : > { %v4022_v46 = vsel %vm3995_vm15, %v3985_v52, %v6802_v15  ;;  %v4023_v33 = vsel %vm3995_vm15, %v3986_v1, %v6803_v49  ;;  %v4527_v45 = vcombine.high %v4455_v47, %v4455_v47  ;;  %v4534_v20 = vrot.slane %v4455_v47, %v7110_v27 }
 0x29e   : > { %v4045_v26 = vpack.c.bf16 %v4023_v33, %v4022_v46  ;;  %v318_v32 = vunpack.c.l.bf16 %v9577_v50  ;;  %v6743_v54 = vunpack.i.h.bf16 %v9471_v11  ;;  %v6742_v25 = vunpack.i.l.bf16 %v9471_v11 }
 0x29f   : > { %v9564_v0 = vpop.permute.xlu0 %6810  ;;  %v4576_v21 = vcombine.high %v4568_v6, %v4568_v6  ;;  %v4541_v63 = vrot.slane %v4527_v45, %v7110_v27  ;;  %v4542_v41 = vcombine.high %v4534_v20, %v4534_v20  ;;  %v4458_v23 = vsel %vm4386_vm5, %v4350_v28, %v4422_v58 }
 0x2a0   : > { %6188 = vmatmul.mubr.msk.bf16.gmra.mxu1 %vm4062_vm3, %v4045_v26  ;;  %v3767_v53 = vsel %vm3737_vm6, %v8207_v22, %v6738_v29  ;;  %v6778_v37 = vunpack.i.h.bf16 %v9477_v62  ;;  %v6777_v57 = vunpack.i.l.bf16 %v9477_v62  ;;  %v4577_v18 = vcombine.high %v4575_v59, %v4575_v59 }
 0x2a1   : > { %v4543_v31 = vcombine.high %v4541_v63, %v4541_v63  ;;  %v5131_v49 = vcombine.low %v4534_v20, %v4542_v41  ;;  %v9593_v11 = vrot.slane %v4458_v23, %v7110_v27  ;;  %v4420_v15 = vmul.f32 0.1, %v4348_v44 }
 0x2a2   : > { %v9573_v9 = vpop.permute.xlu1 %6815  ;;  %v3766_v43 = vsel %vm3737_vm6, %v10233_v38, %v6737_v60  ;;  %v6782_v22 = vunpack.i.l.bf16 %v9493_v40  ;;  %v6788_v19 = vunpack.i.h.bf16 %v9531_v34  ;;  %vm4384_vm2 = vcmp.ge.f32.partialorder %v4348_v44, 0.0 }
 0x2a3   : > { %v3802_v62 = vsel %vm425_vm1, %v3766_v43, %v6742_v25  ;;  %v3803_v52 = vsel %vm425_vm1, %v3767_v53, %v6743_v54  ;;  %v5165_v1 = vcombine.low %v4576_v21, %v4575_v59  ;;  %v5132_v5 = vcombine.low %v4541_v63, %v4543_v31 }
 0x2a4   : > { %v3769_v36 = vsel %vm3737_vm6, %v8291_v4, %v6778_v37  ;;  %v3768_v46 = vsel %vm3737_vm6, %v8243_v7, %v6777_v57  ;;  %v6783_v33 = vunpack.i.h.bf16 %v9493_v40  ;;  %v6787_v38 = vunpack.i.l.bf16 %v9531_v34 }
 0x2a5   : > { %v9590_v56 = vpop.permute.xlu0 %6820  ;;  %v5139_v6 = vrot.slane %v5131_v49, %v7110_v27  ;;  %v5146_v47 = vrot.slane %v5132_v5, %v7110_v27  ;;  %v5166_v28 = vcombine.low %v4577_v18, %v9593_v11  ;;  %v4456_v29 = vsel %vm4384_vm2, %v4348_v44, %v4420_v15 }
 0x2a6   : > { %v9588_v55 = vpop.permute.xlu1 %6830  ;;  %v9615_v4 = vsel %vm425_vm1, %v3768_v46, %v6782_v22  ;;  %v3840_v7 = vsel %vm3810_vm9, %v3803_v52, %v6788_v19  ;;  %v6808_v40 = vunpack.i.h.bf16 %v9546_v3  ;;  %v6807_v34 = vunpack.i.l.bf16 %v9546_v3 }
 0x2a7   : > { %v5173_v59 = vrot.slane %v5165_v1, %v7110_v27  ;;  %v5147_v45 = vcombine.low %v5139_v6, %v5146_v47  ;;  %v5180_v20 = vrot.slane %v5166_v28, %v7110_v27  ;;  %v4544_v58 = vcombine.high %v4456_v29, %v4456_v29 }
 0x2a8   : > { %v3839_v60 = vsel %vm3810_vm9, %v3802_v62, %v6787_v38  ;;  %v6813_v54 = vunpack.i.h.bf16 %v9564_v0  ;;  %v6812_v44 = vunpack.i.l.bf16 %v9564_v0  ;;  %v4578_v25 = vcombine.high %v4458_v23, %v4458_v23 }
 0x2a9   : > { %v9609_v26 = vpop.permute.xlu0 %6825  ;;  %v5707_v63 = vadd.f32 %v5147_v45, %v312_v8  ;;  %v5181_v41 = vcombine.low %v5173_v59, %v5180_v20  ;;  %v4551_v53 = vrot.slane %v4456_v29, %v7110_v27  ;;  %v4558_v37 = vrot.slane %v4544_v58, %v7110_v27 }
 0x2aa   : > { %v9607_v12 = vpop.permute.xlu1 %6835  ;;  %v3805_v57 = vsel %vm425_vm1, %v3769_v36, %v6783_v33  ;;  %v3876_v18 = vsel %vm3847_vm10, %v3839_v60, %v6807_v34  ;;  %v3877_v31 = vsel %vm3847_vm10, %v3840_v7, %v6808_v40  ;;  %v6818_v0 = vunpack.i.h.bf16 %v9573_v9 }
 0x2ab   : > { %v6056_v23 = vpack.c.bf16 %v5707_v63, %v5707_v63  ;;  %v5709_v49 = vadd.f32 %v5181_v41, %v314_v48  ;;  %v4559_v15 = vcombine.high %v4551_v53, %v4551_v53  ;;  %v4560_v8 = vcombine.high %v4558_v37, %v4558_v37 }
 0x2ac   : > { %v6817_v43 = vunpack.i.l.bf16 %v9573_v9  ;;  %v3913_v22 = vsel %vm3884_vm12, %v3876_v18, %v6812_v44  ;;  %v9647_v19 = vrot.slane %v4578_v25, %v7110_v27  ;;  %v4593_v48 = vcombine.high %v9593_v11, %v9593_v11 }
 0x2ad   : > { %v6846_v3 = vpop.permute.xlu0 %6845  ;;  %v3914_v62 = vsel %vm3884_vm12, %v3877_v31, %v6813_v54  ;;  %5868 = vst.msk [vmem:[%s9642_s19] sm:$0xf] %vm5867_vm7, %v6056_v23  ;;  %v6058_v52 = vpack.c.bf16 %v5709_v49, %v5709_v49  ;;  %v5148_v5 = vcombine.low %v4551_v53, %v4559_v15  ;;  %v5149_v36 = vcombine.low %v4558_v37, %v4560_v8 }
 0x2ae   : > { %v9625_v21 = vpop.permute.xlu1 %6840  ;;  %v6833_v33 = vunpack.i.h.bf16 %v9588_v55  ;;  %v6832_v38 = vunpack.i.l.bf16 %v9588_v55  ;;  %v6848_v6 = vunpack.i.h.bf16 %v6846_v3  ;;  %v6847_v47 = vunpack.i.l.bf16 %v6846_v3 }
 0x2af   : > { %5870 = vst.msk [vmem:[%s9642_s19 + $0x8] sm:$0xf] %vm5867_vm7, %v6058_v52  ;;  %v5156_v11 = vrot.slane %v5148_v5, %v7110_v27  ;;  %v5163_v28 = vrot.slane %v5149_v36, %v7110_v27  ;;  %v6823_v40 = vunpack.i.h.bf16 %v9590_v56  ;;  %v6822_v34 = vunpack.i.l.bf16 %v9590_v56 }
 0x2b0   : > { %v6838_v59 = vunpack.i.h.bf16 %v9607_v12  ;;  %v9666_v45 = vcombine.low %v4593_v48, %v9647_v19  ;;  %v6837_v55 = vunpack.i.l.bf16 %v9607_v12  ;;  %v6828_v20 = vunpack.i.h.bf16 %v9609_v26 }
 0x2b1   : > { %v6827_v58 = vunpack.i.l.bf16 %v9609_v26  ;;  %v5164_v60 = vcombine.low %v5156_v11, %v5163_v28  ;;  %v3951_v25 = vsel %vm3921_vm13, %v3914_v62, %v6848_v6  ;;  %v3950_v63 = vsel %vm3921_vm13, %v3913_v22, %v6847_v47 }
 0x2b2   : > { %v9654_v1 = vpop.permute.xlu1 %6860  ;;  %v6851_v46 = vpop.permute.xlu0 %6850  ;;  %v6842_v41 = vunpack.i.l.bf16 %v9625_v21  ;;  %v3842_v26 = vsel %vm3810_vm9, %v3805_v57, %v6833_v33  ;;  %v6843_v18 = vunpack.i.h.bf16 %v9625_v21  ;;  %v3841_v49 = vsel %vm3810_vm9, %v9615_v4, %v6832_v38 }
 0x2b3   : > { %v6853_v29 = vunpack.i.h.bf16 %v6851_v46  ;;  %v6852_v7 = vunpack.i.l.bf16 %v6851_v46  ;;  %v5708_v53 = vadd.f32 %v5164_v60, %v313_v13  ;;  %v3771_v42 = vsel %vm3737_vm6, %v8708_v2, %v6823_v40 }
 0x2b4   : > { %v3770_v21 = vsel %vm3737_vm6, %v8219_v51, %v6822_v34  ;;  %v3878_v57 = vsel %vm3847_vm10, %v3841_v49, %v6837_v55  ;;  %v3879_v48 = vsel %vm3847_vm10, %v3842_v26, %v6838_v59  ;;  %v5190_v62 = vrot.slane %v9666_v45, %v7110_v27 }
 0x2b5   : > { %v3987_v12 = vsel %vm3958_vm14, %v3950_v63, %v6852_v7  ;;  %v3988_v37 = vsel %vm3958_vm14, %v3951_v25, %v6853_v29  ;;  %v6057_v13 = vpack.c.bf16 %v5708_v53, %v5708_v53  ;;  %v3806_v52 = vsel %vm425_vm1, %v3770_v21, %v6827_v58 }
 0x2b6   : > { %v9671_v54 = vpop.permute.xlu1 %6865  ;;  %v6856_v44 = vpop.permute.xlu0 %6855  ;;  %v3807_v2 = vsel %vm425_vm1, %v3771_v42, %v6828_v20  ;;  %v9701_v5 = vsel %vm3884_vm12, %v3878_v57, %v6842_v41  ;;  %v3916_v36 = vsel %vm3884_vm12, %v3879_v48, %v6843_v18  ;;  %v6863_v46 = vunpack.i.h.bf16 %v9654_v1 }
 0x2b7   : > { %v6858_v56 = vunpack.i.h.bf16 %v6856_v44  ;;  %v6857_v3 = vunpack.i.l.bf16 %v6856_v44  ;;  %v6169_v4 = vpop.f32.mrf.mxu1  ;;  %5869 = vst.msk [vmem:[%s9642_s19 + $0x4] sm:$0xf] %vm5867_vm7, %v6057_v13  ;;  %v6862_v33 = vunpack.i.l.bf16 %v9654_v1  ;;  %v4594_v6 = vcombine.high %v9647_v19, %v9647_v19 }
 0x2b8   : > { %v4310_v51 = vmul.f32 %v6169_v4, %v9510_v35  ;;  %v6868_v47 = vunpack.i.h.bf16 %v9671_v54  ;;  %v6867_v11 = vunpack.i.l.bf16 %v9671_v54 }
 0x2b9   : > { %v4024_v31 = vsel %vm3995_vm15, %v3987_v12, %v6857_v3  ;;  %v4025_v23 = vsel %vm3995_vm15, %v3988_v37, %v6858_v56  ;;  %v4170_v38 = vpop.f32.mrf.mxu1 }
 0x2ba   : > { %v4046_v15 = vpack.c.bf16 %v4025_v23, %v4024_v31  ;;  %v9688_v8 = vpop.permute.xlu1 %6870  ;;  %v9690_v22 = vpop.permute.xlu0 %6875  ;;  %v4353_v29 = vadd.f32 %v9521_v24, %v4310_v51  ;;  %v4308_v7 = vmul.f32 %v9510_v35, %v4170_v38 }
 0x2bb   : > { %v6873_v40 = vunpack.i.h.bf16 %v9688_v8  ;;  %v6872_v34 = vunpack.i.l.bf16 %v9688_v8  ;;  %v6170_v20 = vpop.f32.mrf.mxu1  ;;  %v6878_v58 = vunpack.i.h.bf16 %v9690_v22  ;;  %v6877_v60 = vunpack.i.l.bf16 %v9690_v22 }
 0x2bc   : > { %6191 = vmatprep.mubr.msk.bf16.mxu1 %vm4062_vm3, %v4046_v15  ;;  %vm4389_vm4 = vcmp.ge.f32.partialorder %v4353_v29, 0.0  ;;  %v4425_v54 = vmul.f32 0.1, %v4353_v29  ;;  %v4351_v56 = vadd.f32 %v9521_v24, %v4308_v7  ;;  %v4311_v37 = vmul.f32 %v6170_v20, %v9510_v35 }
 0x2bd   : > { %v4173_v3 = vpop.f32.mrf.mxu1 }
 0x2be   : > { %v6886_v28 = vpop.permute.xlu1 %6885  ;;  %v9718_v1 = vpop.permute.xlu0 %6880  ;;  %v4461_v12 = vsel %vm4389_vm4, %v4353_v29, %v4425_v54  ;;  %v4309_v26 = vmul.f32 %v9510_v35, %v4173_v3  ;;  %vm4387_vm11 = vcmp.ge.f32.partialorder %v4351_v56, 0.0  ;;  %v4423_v15 = vmul.f32 0.1, %v4351_v56 }
 0x2bf   : > { %v6888_v59 = vunpack.i.h.bf16 %v6886_v28  ;;  %v6887_v55 = vunpack.i.l.bf16 %v6886_v28  ;;  %v6883_v25 = vunpack.i.h.bf16 %v9718_v1  ;;  %v6882_v63 = vunpack.i.l.bf16 %v9718_v1 }
 0x2c0   : > { %v4628_v23 = vcombine.high %v4461_v12, %v4461_v12 }
 0x2c1   : > { %v3773_v44 = vsel %vm3737_vm6, %v9229_v16, %v6888_v59  ;;  %v3772_v41 = vsel %vm3737_vm6, %v8828_v61, %v6887_v55  ;;  %v4635_v16 = vrot.slane %v4461_v12, %v7110_v27 }
 0x2c2   : > { %v6891_v53 = vpop.permute.xlu1 %6890  ;;  %v6896_v49 = vpop.permute.xlu0 %6895  ;;  %v4642_v57 = vrot.slane %v4628_v23, %v7110_v27 }
 0x2c3   : > { %v6893_v18 = vunpack.i.h.bf16 %v6891_v53  ;;  %v6892_v31 = vunpack.i.l.bf16 %v6891_v53  ;;  %v6898_v42 = vunpack.i.h.bf16 %v6896_v49  ;;  %v6897_v13 = vunpack.i.l.bf16 %v6896_v49 }
 0x2c4   : > { %v4643_v48 = vcombine.high %v4635_v16, %v4635_v16  ;;  %v4644_v55 = vcombine.high %v4642_v57, %v4642_v57  ;;  %v4352_v49 = vadd.f32 %v9521_v24, %v4309_v26 }
 0x2c5   : > { %v3808_v21 = vsel %vm425_vm1, %v3772_v41, %v6892_v31  ;;  %v3809_v61 = vsel %vm425_vm1, %v3773_v44, %v6893_v18  ;;  %v3844_v38 = vsel %vm3810_vm9, %v3807_v2, %v6898_v42  ;;  %v3843_v28 = vsel %vm3810_vm9, %v3806_v52, %v6897_v13 }
 0x2c6   : > { %v3845_v4 = vsel %vm3810_vm9, %v3808_v21, %v6862_v33  ;;  %v3846_v51 = vsel %vm3810_vm9, %v3809_v61, %v6863_v46  ;;  %v6901_v29 = vpop.permute.xlu1 %6900  ;;  %v9745_v20 = vcombine.low %v4635_v16, %v4643_v48  ;;  %v6921_v54 = vpop.permute.xlu0 %6920  ;;  %v4459_v44 = vsel %vm4387_vm11, %v4351_v56, %v4423_v15 }
 0x2c7   : > { %v9740_v7 = vsel %vm3847_vm10, %v3845_v4, %v6867_v11  ;;  %v9743_v59 = vsel %vm3847_vm10, %v3846_v51, %v6868_v47  ;;  %v6903_v33 = vunpack.i.h.bf16 %v6901_v29  ;;  %v6902_v3 = vunpack.i.l.bf16 %v6901_v29 }
 0x2c8   : > { %v4354_v46 = vadd.f32 %v9521_v24, %v4311_v37  ;;  %v5231_v52 = vrot.slane %v9745_v20, %v7110_v27  ;;  %v4595_v2 = vcombine.high %v4459_v44, %v4459_v44  ;;  %v4602_v11 = vrot.slane %v4459_v44, %v7110_v27 }
 0x2c9   : > { %v6923_v41 = vunpack.i.h.bf16 %v6921_v54  ;;  %v3953_v47 = vsel %vm3921_vm13, %v3916_v36, %v6903_v33  ;;  %v3952_v53 = vsel %vm3921_vm13, %v9701_v5, %v6902_v3  ;;  %v6922_v31 = vunpack.i.l.bf16 %v6921_v54 }
 0x2ca   : > { %vm4390_vm1 = vcmp.ge.f32.partialorder %v4354_v46, 0.0  ;;  %v4426_v12 = vmul.f32 0.1, %v4354_v46  ;;  %v6906_v18 = vpop.permute.xlu1 %6905  ;;  %v4609_v56 = vrot.slane %v4595_v2, %v7110_v27  ;;  %v5183_v37 = vcombine.low %v4594_v6, %v4602_v11  ;;  %v6926_v13 = vpop.permute.xlu0 %6925 }
 0x2cb   : > { %v3881_v23 = vsel %vm3847_vm10, %v3844_v38, %v6923_v41  ;;  %v6908_v42 = vunpack.i.h.bf16 %v6906_v18  ;;  %v6907_v36 = vunpack.i.l.bf16 %v6906_v18  ;;  %v3880_v57 = vsel %vm3847_vm10, %v3843_v28, %v6922_v31 }
 0x2cc   : > { %v4462_v16 = vsel %vm4390_vm1, %v4354_v46, %v4426_v12  ;;  %v4610_v15 = vcombine.high %v4609_v56, %v4609_v56  ;;  %v5197_v5 = vrot.slane %v5183_v37, %v7110_v27  ;;  %vm4388_vm6 = vcmp.ge.f32.partialorder %v4352_v49, 0.0 }
 0x2cd   : > { %v4645_v21 = vcombine.high %v4462_v16, %v4462_v16  ;;  %v4652_v61 = vrot.slane %v4462_v16, %v7110_v27  ;;  %v4424_v19 = vmul.f32 0.1, %v4352_v49  ;;  %v3989_v6 = vsel %vm3958_vm14, %v3952_v53, %v6907_v36 }
 0x2ce   : > { %v6911_v48 = vpop.permute.xlu1 %6910  ;;  %v5198_v26 = vcombine.low %v5190_v62, %v5197_v5  ;;  %v5199_v4 = vcombine.low %v4609_v56, %v4610_v15  ;;  %v3990_v44 = vsel %vm3958_vm14, %v3953_v47, %v6908_v42  ;;  %v6928_v33 = vunpack.i.h.bf16 %v6926_v13  ;;  %v6931_v41 = vpop.permute.xlu0 %6930 }
 0x2cf   : > { %v9769_v51 = vrot.slane %v4645_v21, %v7110_v27  ;;  %v4660_v38 = vcombine.high %v4652_v61, %v4652_v61  ;;  %v5233_v29 = vcombine.low %v4644_v55, %v4652_v61  ;;  %v4460_v54 = vsel %vm4388_vm6, %v4352_v49, %v4424_v19 }
 0x2d0   : > { %v5207_v28 = vrot.slane %v5199_v4, %v7110_v27  ;;  %v5710_v3 = vadd.f32 %v5198_v26, %v315_v17  ;;  %v4611_v45 = vcombine.high %v4460_v54, %v4460_v54  ;;  %v4618_v2 = vrot.slane %v4460_v54, %v7110_v27 }
 0x2d1   : > { %v5234_v46 = vcombine.low %v4660_v38, %v9769_v51  ;;  %v5241_v62 = vrot.slane %v5233_v29, %v7110_v27  ;;  %v6927_v11 = vunpack.i.l.bf16 %v6926_v13  ;;  %v3918_v55 = vsel %vm3884_vm12, %v3881_v23, %v6928_v33 }
 0x2d2   : > { %v6916_v53 = vpop.permute.xlu1 %6915  ;;  %v6059_v47 = vpack.c.bf16 %v5710_v3, %v5710_v3  ;;  %v4625_v18 = vrot.slane %v4611_v45, %v7110_v27  ;;  %v3955_v10 = vsel %vm3921_vm13, %v3918_v55, %v6878_v58  ;;  %v4626_v17 = vcombine.high %v4618_v2, %v4618_v2 }
 0x2d3   : > { %v5248_v12 = vrot.slane %v5234_v46, %v7110_v27  ;;  %v3917_v56 = vsel %vm3884_vm12, %v3880_v57, %v6927_v11  ;;  %v6913_v37 = vunpack.i.h.bf16 %v6911_v48  ;;  %v6912_v31 = vunpack.i.l.bf16 %v6911_v48 }
 0x2d4   : > { %5871 = vst.msk [vmem:[%s9642_s19 + $0xc] sm:$0xf] %vm5867_vm7, %v6059_v47  ;;  %v4627_v23 = vcombine.high %v4625_v18, %v4625_v18  ;;  %v3954_v49 = vsel %vm3921_vm13, %v3917_v56, %v6877_v60  ;;  %v6933_v42 = vunpack.i.h.bf16 %v6931_v41  ;;  %v5200_v36 = vcombine.low %v4618_v2, %v4626_v17 }
 0x2d5   : > { %v5249_v16 = vcombine.low %v5241_v62, %v5248_v12  ;;  %v4026_v13 = vsel %vm3995_vm15, %v3989_v6, %v6912_v31  ;;  %v4027_v15 = vsel %vm3995_vm15, %v3990_v44, %v6913_v37  ;;  %v6932_v58 = vunpack.i.l.bf16 %v6931_v41 }
 0x2d6   : > { %v5216_v21 = vcombine.low %v4625_v18, %v4627_v23  ;;  %v4047_v61 = vpack.c.bf16 %v4027_v15, %v4026_v13  ;;  %v3991_v57 = vsel %vm3958_vm14, %v3954_v49, %v6882_v63  ;;  %v5214_v22 = vrot.slane %v5200_v36, %v7110_v27  ;;  %v6936_v48 = vpop.permute.xlu1 %6935 }
 0x2d7   : > { %v5713_v5 = vadd.f32 %v5249_v16, %v318_v32  ;;  %v3992_v60 = vsel %vm3958_vm14, %v3955_v10, %v6883_v25  ;;  %v4028_v19 = vsel %vm3995_vm15, %v3991_v57, %v6932_v58  ;;  %v6918_v6 = vunpack.i.h.bf16 %v6916_v53 }
 0x2d8   : > { %v5224_v32 = vrot.slane %v5216_v21, %v7110_v27  ;;  %v4029_v4 = vsel %vm3995_vm15, %v3992_v60, %v6933_v42  ;;  %v6917_v38 = vunpack.i.l.bf16 %v6916_v53  ;;  %6192 = vmatmul.mubr.msk.bf16.gmra.mxu1 %vm4062_vm3, %v4047_v61  ;;  %v6173_v63 = vpop.f32.mrf.mxu1  ;;  %v5215_v29 = vcombine.low %v5207_v28, %v5214_v22 }
 0x2d9   : > { %v6062_v26 = vpack.c.bf16 %v5713_v5, %v5713_v5  ;;  %v4048_v54 = vpack.c.bf16 %v4029_v4, %v4028_v19  ;;  %v3919_v1 = vsel %vm3884_vm12, %v9740_v7, %v6872_v34  ;;  %v3920_v25 = vsel %vm3884_vm12, %v9743_v59, %v6873_v40 }
 0x2da   : > { %v5232_v44 = vcombine.low %v5224_v32, %v5231_v52  ;;  %v3956_v33 = vsel %vm3921_vm13, %v3919_v1, %v6817_v43  ;;  %v3957_v28 = vsel %vm3921_vm13, %v3920_v25, %v6818_v0  ;;  %v6938_v34 = vunpack.i.h.bf16 %v6936_v48  ;;  %v4186_v7 = vpop.f32.mrf.mxu1 }
 0x2db   : > { %5874 = vst.msk [vmem:[%s9642_s19 + $0x18] sm:$0xf] %vm5867_vm7, %v6062_v26  ;;  %v5711_v8 = vadd.f32 %v5215_v29, %v316_v30  ;;  %v3993_v40 = vsel %vm3958_vm14, %v3956_v33, %v6917_v38  ;;  %v3994_v59 = vsel %vm3958_vm14, %v3957_v28, %v6918_v6  ;;  %v6937_v20 = vunpack.i.l.bf16 %v6936_v48  ;;  %6195 = vmatprep.mubr.msk.bf16.mxu1 %vm4062_vm3, %v4048_v54  ;;  %v6982_v6 = vld [vmem:[%s7075_s8 + $0x20] sm:$0xff]  }
 0x2dc   : > { %v5712_v43 = vadd.f32 %v5232_v44, %v317_v14  ;;  %v4031_v9 = vsel %vm3995_vm15, %v3994_v59, %v6938_v34  ;;  %v4314_v0 = vmul.f32 %v6173_v63, %v9510_v35  ;;  %v4312_v52 = vmul.f32 %v9510_v35, %v4186_v7  ;;  %v6174_v3 = vpop.f32.mrf.mxu1 }
 0x2dd   : > { %v6060_v30 = vpack.c.bf16 %v5711_v8, %v5711_v8  ;;  %v4030_v46 = vsel %vm3995_vm15, %v3993_v40, %v6937_v20  ;;  %v4661_v37 = vcombine.high %v9769_v51, %v9769_v51  ;;  %v319_v61 = vunpack.c.h.bf16 %v9577_v50 }
 0x2de   : > { %v6061_v45 = vpack.c.bf16 %v5712_v43, %v5712_v43  ;;  %v4049_v62 = vpack.c.bf16 %v4031_v9, %v4030_v46  ;;  %v4357_v2 = vadd.f32 %v9521_v24, %v4314_v0  ;;  %v4355_v11 = vadd.f32 %v9521_v24, %v4312_v52  ;;  %v4189_v55 = vpop.f32.mrf.mxu1 }
 0x2df   : > { %5872 = vst.msk [vmem:[%s9642_s19 + $0x10] sm:$0xf] %vm5867_vm7, %v6060_v30  ;;  %v4313_v39 = vmul.f32 %v9510_v35, %v4189_v55  ;;  %v321_v48 = vunpack.c.h.bf16 %v6982_v6  ;;  %v4315_v63 = vmul.f32 %v6174_v3, %v9510_v35  ;;  %v320_v44 = vunpack.c.l.bf16 %v6982_v6 }
 0x2e0   : > { %5873 = vst.msk [vmem:[%s9642_s19 + $0x14] sm:$0xf] %vm5867_vm7, %v6061_v45  ;;  %6196 = vmatmul.mubr.msk.bf16.gmra.mxu1 %vm4062_vm3, %v4049_v62  ;;  %vm4393_vm9 = vcmp.ge.f32.partialorder %v4357_v2, 0.0  ;;  %v4429_v14 = vmul.f32 0.1, %v4357_v2  ;;  %vm4391_vm10 = vcmp.ge.f32.partialorder %v4355_v11, 0.0 }
 0x2e1   : > { %v4427_v41 = vmul.f32 0.1, %v4355_v11  ;;  %v4356_v53 = vadd.f32 %v9521_v24, %v4313_v39  ;;  %v4358_v8 = vadd.f32 %v9521_v24, %v4315_v63 }
 0x2e2   : > { %v4465_v47 = vsel %vm4393_vm9, %v4357_v2, %v4429_v14 }
 0x2e3   : > { %v4463_v12 = vsel %vm4391_vm10, %v4355_v11, %v4427_v41  ;;  %v4695_v18 = vcombine.high %v4465_v47, %v4465_v47  ;;  %v4702_v10 = vrot.slane %v4465_v47, %v7110_v27  ;;  %vm4392_vm12 = vcmp.ge.f32.partialorder %v4356_v53, 0.0 }
 0x2e4   : > { %v4662_v17 = vcombine.high %v4463_v12, %v4463_v12  ;;  %v4669_v56 = vrot.slane %v4463_v12, %v7110_v27  ;;  %v4428_v31 = vmul.f32 0.1, %v4356_v53  ;;  %v4430_v43 = vmul.f32 0.1, %v4358_v8 }
 0x2e5   : > { %v4709_v16 = vrot.slane %v4695_v18, %v7110_v27  ;;  %v4710_v23 = vcombine.high %v4702_v10, %v4702_v10  ;;  %vm4394_vm13 = vcmp.ge.f32.partialorder %v4358_v8, 0.0 }
 0x2e6   : > { %v4676_v49 = vrot.slane %v4662_v17, %v7110_v27  ;;  %v4677_v42 = vcombine.high %v4669_v56, %v4669_v56  ;;  %v5250_v36 = vcombine.low %v4661_v37, %v4669_v56  ;;  %v4464_v13 = vsel %vm4392_vm12, %v4356_v53, %v4428_v31 }
 0x2e7   : > { %v4711_v15 = vcombine.high %v4709_v16, %v4709_v16  ;;  %v5284_v58 = vcombine.low %v4702_v10, %v4710_v23  ;;  %v4678_v21 = vcombine.high %v4464_v13, %v4464_v13  ;;  %v4685_v57 = vrot.slane %v4464_v13, %v7110_v27 }
 0x2e8   : > { %v5251_v5 = vcombine.low %v4677_v42, %v4676_v49  ;;  %v5258_v22 = vrot.slane %v5250_v36, %v7110_v27  ;;  %v4466_v0 = vsel %vm4394_vm13, %v4358_v8, %v4430_v43 }
 0x2e9   : > { %v5285_v51 = vcombine.low %v4709_v16, %v4711_v15  ;;  %v4692_v19 = vrot.slane %v4678_v21, %v7110_v27  ;;  %v4693_v26 = vcombine.high %v4685_v57, %v4685_v57  ;;  %v5292_v32 = vrot.slane %v5284_v58, %v7110_v27 }
 0x2ea   : > { %v5265_v60 = vrot.slane %v5251_v5, %v7110_v27  ;;  %v4712_v30 = vcombine.high %v4466_v0, %v4466_v0  ;;  %v4719_v46 = vrot.slane %v4466_v0, %v7110_v27 }
 0x2eb   : > { %v5299_v4 = vrot.slane %v5285_v51, %v7110_v27  ;;  %v4694_v50 = vcombine.high %v4692_v19, %v4692_v19  ;;  %v5267_v29 = vcombine.low %v4685_v57, %v4693_v26  ;;  %v6983_v51 = vld [vmem:[%s7075_s8 + $0x28] sm:$0xff]  }
 0x2ec   : > { %v5266_v38 = vcombine.low %v5258_v22, %v5265_v60  ;;  %v4726_v41 = vrot.slane %v4712_v30, %v7110_v27  ;;  %v4727_v53 = vcombine.high %v4719_v46, %v4719_v46  ;;  %v322_v22 = vunpack.c.l.bf16 %v6983_v51 }
 0x2ed   : > { %v5300_v54 = vcombine.low %v5292_v32, %v5299_v4  ;;  %v5268_v25 = vcombine.low %v4692_v19, %v4694_v50  ;;  %v5275_v34 = vrot.slane %v5267_v29, %v7110_v27  ;;  %v323_v0 = vunpack.c.h.bf16 %v6983_v51 }
 0x2ee   : > { %v5714_v1 = vadd.f32 %v5266_v38, %v319_v61  ;;  %v5301_v42 = vcombine.low %v4727_v53, %v4726_v41  ;;  %v4728_v36 = vcombine.high %v4726_v41, %v4726_v41 }
 0x2ef   : > { %v5716_v33 = vadd.f32 %v5300_v54, %v321_v48  ;;  %v5282_v7 = vrot.slane %v5268_v25, %v7110_v27 }
 0x2f0   : > { %v6063_v28 = vpack.c.bf16 %v5714_v1, %v5714_v1  ;;  %v5309_v6 = vrot.slane %v5301_v42, %v7110_v27  ;;  %v6984_v1 = vld [vmem:[%s7075_s8 + $0x30] sm:$0xff]  }
 0x2f1   : > { %v6065_v40 = vpack.c.bf16 %v5716_v33, %v5716_v33  ;;  %v5283_v59 = vcombine.low %v5275_v34, %v5282_v7  ;;  %v325_v25 = vunpack.c.h.bf16 %v6984_v1 }
 0x2f2   : > { %5875 = vst.msk [vmem:[%s9642_s19 + $0x1c] sm:$0xf] %vm5867_vm7, %v6063_v28 }
 0x2f3   : > { %5877 = vst.msk [vmem:[%s9642_s19 + $0x24] sm:$0xf] %vm5867_vm7, %v6065_v40  ;;  %v5715_v20 = vadd.f32 %v5283_v59, %v320_v44 }
 0x2f5   : > { %v6064_v9 = vpack.c.bf16 %v5715_v20, %v5715_v20 }
 0x2f7   : > { %5876 = vst.msk [vmem:[%s9642_s19 + $0x20] sm:$0xf] %vm5867_vm7, %v6064_v9 }
 0x2f9   : > { %v6177_v52 = vpop.f32.mrf.mxu1 }
 0x2fa   : > { %v4318_v3 = vmul.f32 %v6177_v52, %v9510_v35 }
 0x2fb   : > { %v4202_v45 = vpop.f32.mrf.mxu1 }
 0x2fc   : > { %v4361_v62 = vadd.f32 %v9521_v24, %v4318_v3  ;;  %v4316_v2 = vmul.f32 %v9510_v35, %v4202_v45 }
 0x2fd   : > { %v6178_v11 = vpop.f32.mrf.mxu1 }
 0x2fe   : > { %vm4397_vm14 = vcmp.ge.f32.partialorder %v4361_v62, 0.0  ;;  %v4433_v55 = vmul.f32 0.1, %v4361_v62  ;;  %v4359_v39 = vadd.f32 %v9521_v24, %v4316_v2  ;;  %v4319_v14 = vmul.f32 %v6178_v11, %v9510_v35 }
 0x2ff   : > { %v4205_v47 = vpop.f32.mrf.mxu1 }
 0x300   : > { %v4469_v12 = vsel %vm4397_vm14, %v4361_v62, %v4433_v55  ;;  %vm4395_vm15 = vcmp.ge.f32.partialorder %v4359_v39, 0.0  ;;  %v4431_v18 = vmul.f32 0.1, %v4359_v39  ;;  %v4362_v10 = vadd.f32 %v9521_v24, %v4319_v14 }
 0x301   : > { %v4762_v17 = vcombine.high %v4469_v12, %v4469_v12  ;;  %v4317_v56 = vmul.f32 %v9510_v35, %v4205_v47  ;;  %v4769_v21 = vrot.slane %v4469_v12, %v7110_v27  ;;  %v324_v62 = vunpack.c.l.bf16 %v6984_v1 }
 0x302   : > { %v4467_v37 = vsel %vm4395_vm15, %v4359_v39, %v4431_v18  ;;  %vm4398_vm3 = vcmp.ge.f32.partialorder %v4362_v10, 0.0  ;;  %v4434_v31 = vmul.f32 0.1, %v4362_v10 }
 0x303   : > { %v4776_v16 = vrot.slane %v4762_v17, %v7110_v27  ;;  %v4729_v23 = vcombine.high %v4467_v37, %v4467_v37  ;;  %v4736_v49 = vrot.slane %v4467_v37, %v7110_v27  ;;  %v4360_v15 = vadd.f32 %v9521_v24, %v4317_v56 }
 0x304   : > { %v9879_v13 = vsel %vm4398_vm3, %v4362_v10, %v4434_v31  ;;  %v4777_v50 = vcombine.high %v4769_v21, %v4769_v21 }
 0x305   : > { %v4778_v58 = vcombine.high %v4776_v16, %v4776_v16  ;;  %v4743_v5 = vrot.slane %v4729_v23, %v7110_v27  ;;  %v5302_v61 = vcombine.low %v4728_v36, %v4736_v49  ;;  %v4786_v57 = vrot.slane %v9879_v13, %v7110_v27 }
 0x306   : > { %vm4396_vm0 = vcmp.ge.f32.partialorder %v4360_v15, 0.0  ;;  %v4744_v60 = vcombine.high %v4736_v49, %v4736_v49  ;;  %v4432_v19 = vmul.f32 0.1, %v4360_v15  ;;  %v5336_v59 = vcombine.low %v4769_v21, %v4777_v50 }
 0x307   : > { %v5352_v48 = vcombine.low %v4776_v16, %v4778_v58  ;;  %v5316_v26 = vrot.slane %v5302_v61, %v7110_v27  ;;  %v4794_v32 = vcombine.high %v4786_v57, %v4786_v57  ;;  %v4745_v38 = vcombine.high %v4743_v5, %v4743_v5  ;;  %v9919_v61 = vld [vmem:[%s10096_s5] ss:$0 sm:$0xff] }
 0x308   : > { %v4468_v4 = vsel %vm4396_vm0, %v4360_v15, %v4432_v19  ;;  %v5318_v44 = vcombine.low %v4744_v60, %v4743_v5  ;;  %v5350_v2 = vrot.slane %v5336_v59, %v7110_v27  ;;  %v4779_v10 = vcombine.high %v9879_v13, %v9879_v13 }
 0x309   : > { %v5317_v63 = vcombine.low %v5309_v6, %v5316_v26  ;;  %v5353_v29 = vcombine.low %v4786_v57, %v4794_v32  ;;  %v4746_v54 = vcombine.high %v4468_v4, %v4468_v4  ;;  %v4753_v33 = vrot.slane %v4468_v4, %v7110_v27  ;;  %v6986_v6 = vld [vmem:[%s7075_s8 + $0x38] sm:$0xff]   ;;  %v9928_v4 = vld [vmem:[%s10097_s6] ss:$0 sm:$0xff] }
 0x30a   : > { %v5360_v28 = vrot.slane %v5352_v48, %v7110_v27  ;;  %v5326_v52 = vrot.slane %v5318_v44, %v7110_v27  ;;  %v4793_v42 = vrot.slane %v4779_v10, %v7110_v27  ;;  %v326_v48 = vunpack.c.l.bf16 %v6986_v6 }
 0x30b   : > { %v5717_v34 = vadd.f32 %v5317_v63, %v322_v22  ;;  %v5367_v7 = vrot.slane %v5353_v29, %v7110_v27  ;;  %v4760_v8 = vrot.slane %v4746_v54, %v7110_v27  ;;  %v5319_v40 = vcombine.low %v4745_v38, %v4753_v33  ;;  %v6988_v33 = vld [vmem:[%s7075_s8 + $0x40] sm:$0xff]  }
 0x30c   : > { %v4795_v26 = vcombine.high %v4793_v42, %v4793_v42 }
 0x30d   : > { %v6066_v20 = vpack.c.bf16 %v5717_v34, %v5717_v34  ;;  %v5368_v43 = vcombine.low %v5360_v28, %v5367_v7  ;;  %v4761_v9 = vcombine.high %v4760_v8, %v4760_v8  ;;  %v5333_v3 = vrot.slane %v5319_v40, %v7110_v27 }
 0x30e   : > { %v328_v28 = vunpack.c.l.bf16 %v6988_v33 }
 0x30f   : > { %5878 = vst.msk [vmem:[%s9642_s19 + $0x28] sm:$0xf] %vm5867_vm7, %v6066_v20  ;;  %v5720_v30 = vadd.f32 %v5368_v43, %v325_v25  ;;  %v5335_v46 = vcombine.low %v4760_v8, %v4761_v9  ;;  %v5334_v45 = vcombine.low %v5326_v52, %v5333_v3 }
 0x311   : > { %v6069_v11 = vpack.c.bf16 %v5720_v30, %v5720_v30  ;;  %v5343_v55 = vrot.slane %v5335_v46, %v7110_v27  ;;  %v5718_v39 = vadd.f32 %v5334_v45, %v323_v0 }
 0x313   : > { %5881 = vst.msk [vmem:[%s9642_s19 + $0x34] sm:$0xf] %vm5867_vm7, %v6069_v11  ;;  %v5351_v14 = vcombine.low %v5343_v55, %v5350_v2  ;;  %v6067_v41 = vpack.c.bf16 %v5718_v39, %v5718_v39 }
 0x315   : > { %v5719_v53 = vadd.f32 %v5351_v14, %v324_v62  ;;  %5879 = vst.msk [vmem:[%s9642_s19 + $0x2c] sm:$0xf] %vm5867_vm7, %v6067_v41 }
 0x317   : > { %v6068_v47 = vpack.c.bf16 %v5719_v53, %v5719_v53 }
 0x319   : > { %5880 = vst.msk [vmem:[%s9642_s19 + $0x30] sm:$0xf] %vm5867_vm7, %v6068_v47  ;;  %v6181_v12 = vpop.f32.mrf.mxu1 }
 0x31a   : > { %v4322_v18 = vmul.f32 %v6181_v12, %v9510_v35  ;;  %v329_v12 = vunpack.c.h.bf16 %v6988_v33 }
 0x31b   : > { %v4218_v17 = vpop.f32.mrf.mxu1 }
 0x31c   : > { %v4365_v56 = vadd.f32 %v9521_v24, %v4322_v18  ;;  %v4320_v37 = vmul.f32 %v9510_v35, %v4218_v17 }
 0x31d   : > { %v6182_v31 = vpop.f32.mrf.mxu1 }
 0x31e   : > { %vm4401_vm8 = vcmp.ge.f32.partialorder %v4365_v56, 0.0  ;;  %v4437_v16 = vmul.f32 0.1, %v4365_v56  ;;  %v4363_v23 = vadd.f32 %v9521_v24, %v4320_v37  ;;  %v4323_v49 = vmul.f32 %v6182_v31, %v9510_v35 }
 0x31f   : > { %v4221_v36 = vpop.f32.mrf.mxu1  ;;  %v327_v31 = vunpack.c.h.bf16 %v6986_v6 }
 0x320   : > { %v4473_v15 = vsel %vm4401_vm8, %v4365_v56, %v4437_v16  ;;  %vm4399_vm5 = vcmp.ge.f32.partialorder %v4363_v23, 0.0  ;;  %v4435_v58 = vmul.f32 0.1, %v4363_v23  ;;  %v4366_v13 = vadd.f32 %v9521_v24, %v4323_v49 }
 0x321   : > { %v4829_v5 = vcombine.high %v4473_v15, %v4473_v15  ;;  %v4836_v21 = vrot.slane %v4473_v15, %v7110_v27  ;;  %v4321_v57 = vmul.f32 %v9919_v61, %v4221_v36 }
 0x322   : > { %v4471_v35 = vsel %vm4399_vm5, %v4363_v23, %v4435_v58  ;;  %vm4402_vm2 = vcmp.ge.f32.partialorder %v4366_v13, 0.0  ;;  %v4438_v51 = vmul.f32 0.1, %v4366_v13 }
 0x323   : > { %v4843_v22 = vrot.slane %v4829_v5, %v7110_v27  ;;  %v4844_v60 = vcombine.high %v4836_v21, %v4836_v21  ;;  %v4796_v19 = vcombine.high %v4471_v35, %v4471_v35  ;;  %v4803_v24 = vrot.slane %v4471_v35, %v7110_v27 }
 0x324   : > { %v4474_v32 = vsel %vm4402_vm2, %v4366_v13, %v4438_v51  ;;  %v4364_v38 = vadd.f32 %v9928_v4, %v4321_v57 }
 0x325   : > { %v4845_v50 = vcombine.high %v4843_v22, %v4843_v22  ;;  %v5403_v63 = vcombine.low %v4836_v21, %v4844_v60  ;;  %v4810_v29 = vrot.slane %v4796_v19, %v7110_v27  ;;  %v4811_v54 = vcombine.high %v4803_v24, %v4803_v24 }
 0x326   : > { %v5369_v1 = vcombine.low %v4795_v26, %v4803_v24  ;;  %v4846_v25 = vcombine.high %v4474_v32, %v4474_v32  ;;  %v4853_v44 = vrot.slane %v4474_v32, %v7110_v27  ;;  %vm4400_vm4 = vcmp.ge.f32.partialorder %v4364_v38, 0.0 }
 0x327   : > { %v5404_v34 = vcombine.low %v4843_v22, %v4845_v50  ;;  %v5370_v7 = vcombine.low %v4811_v54, %v4810_v29  ;;  %v4436_v8 = vmul.f32 0.1, %v4364_v38  ;;  %v5411_v40 = vrot.slane %v5403_v63, %v7110_v27 }
 0x328   : > { %v5377_v59 = vrot.slane %v5369_v1, %v7110_v27  ;;  %v4860_v20 = vrot.slane %v4846_v25, %v7110_v27  ;;  %v4861_v43 = vcombine.high %v4853_v44, %v4853_v44  ;;  %v4812_v3 = vcombine.high %v4810_v29, %v4810_v29 }
 0x329   : > { %v5418_v9 = vrot.slane %v5404_v34, %v7110_v27  ;;  %v5384_v0 = vrot.slane %v5370_v7, %v7110_v27  ;;  %v4472_v52 = vsel %vm4400_vm4, %v4364_v38, %v4436_v8 }
 0x32a   : > { %v4862_v30 = vcombine.high %v4860_v20, %v4860_v20  ;;  %v5420_v46 = vcombine.low %v4853_v44, %v4861_v43  ;;  %v4813_v45 = vcombine.high %v4472_v52, %v4472_v52  ;;  %v4820_v62 = vrot.slane %v4472_v52, %v7110_v27 }
 0x32b   : > { %v5419_v2 = vcombine.low %v5411_v40, %v5418_v9  ;;  %v5385_v11 = vcombine.low %v5377_v59, %v5384_v0 }
 0x32c   : > { %v5421_v55 = vcombine.low %v4860_v20, %v4862_v30  ;;  %v4827_v39 = vrot.slane %v4813_v45, %v7110_v27  ;;  %v4828_v14 = vcombine.high %v4820_v62, %v4820_v62  ;;  %v5386_v47 = vcombine.low %v4812_v3, %v4820_v62 }
 0x32d   : > { %v5723_v41 = vadd.f32 %v5419_v2, %v328_v28  ;;  %v5721_v53 = vadd.f32 %v5385_v11, %v326_v48  ;;  %v5428_v18 = vrot.slane %v5420_v46, %v7110_v27  ;;  %v9967_v46 = vld [vmem:[%s7075_s8 + $0x50] sm:$0xff]  }
 0x32e   : > { %v5435_v10 = vrot.slane %v5421_v55, %v7110_v27  ;;  %v5387_v17 = vcombine.low %v4828_v14, %v4827_v39  ;;  %v5394_v23 = vrot.slane %v5386_v47, %v7110_v27  ;;  %v332_v45 = vunpack.c.l.bf16 %v9967_v46  ;;  %v6990_v14 = vld [vmem:[%s7075_s8 + $0x48] sm:$0xff]  }
 0x32f   : > { %v6072_v56 = vpack.c.bf16 %v5723_v41, %v5723_v41  ;;  %v6070_v37 = vpack.c.bf16 %v5721_v53, %v5721_v53  ;;  %v330_v41 = vunpack.c.l.bf16 %v6990_v14 }
 0x330   : > { %v5436_v16 = vcombine.low %v5428_v18, %v5435_v10  ;;  %v5401_v49 = vrot.slane %v5387_v17, %v7110_v27 }
 0x331   : > { %5884 = vst.msk [vmem:[%s9642_s19 + $0x40] sm:$0xf] %vm5867_vm7, %v6072_v56  ;;  %5882 = vst.msk [vmem:[%s9642_s19 + $0x38] sm:$0xf] %vm5867_vm7, %v6070_v37 }
 0x332   : > { %v5724_v42 = vadd.f32 %v5436_v16, %v329_v12  ;;  %v5402_v36 = vcombine.low %v5394_v23, %v5401_v49  ;;  %v331_v16 = vunpack.c.h.bf16 %v6990_v14 }
 0x334   : > { %v6073_v15 = vpack.c.bf16 %v5724_v42, %v5724_v42  ;;  %v5722_v58 = vadd.f32 %v5402_v36, %v327_v31 }
 0x336   : > { %5885 = vst.msk [vmem:[%s9642_s19 + $0x44] sm:$0xf] %vm5867_vm7, %v6073_v15  ;;  %v6071_v13 = vpack.c.bf16 %v5722_v58, %v5722_v58 }
 0x338   : > { %5883 = vst.msk [vmem:[%s9642_s19 + $0x3c] sm:$0xf] %vm5867_vm7, %v6071_v13 }
 0x33f   : > { %v6185_v5 = vpop.f32.mrf.mxu1 }
 0x340   : > { %v4326_v21 = vmul.f32 %v9919_v61, %v6185_v5 }
 0x341   : > { %v4234_v57 = vpop.f32.mrf.mxu1 }
 0x342   : > { %v4369_v35 = vadd.f32 %v9928_v4, %v4326_v21  ;;  %v4324_v51 = vmul.f32 %v9919_v61, %v4234_v57 }
 0x343   : > { %v6186_v22 = vpop.f32.mrf.mxu1 }
 0x344   : > { %vm4405_vm11 = vcmp.ge.f32.partialorder %v4369_v35, 0.0  ;;  %v4441_v60 = vmul.f32 0.1, %v4369_v35  ;;  %v4367_v19 = vadd.f32 %v9928_v4, %v4324_v51  ;;  %v4327_v24 = vmul.f32 %v9919_v61, %v6186_v22 }
 0x345   : > { %v4237_v6 = vpop.f32.mrf.mxu1 }
 0x346   : > { %v4477_v48 = vsel %vm4405_vm11, %v4369_v35, %v4441_v60  ;;  %vm4403_vm1 = vcmp.ge.f32.partialorder %v4367_v19, 0.0  ;;  %v4439_v26 = vmul.f32 0.1, %v4367_v19  ;;  %v4370_v32 = vadd.f32 %v9928_v4, %v4327_v24 }
 0x347   : > { %v4897_v38 = vcombine.high %v4477_v48, %v4477_v48  ;;  %v4325_v50 = vmul.f32 %v9919_v61, %v4237_v6  ;;  %v4904_v53 = vrot.slane %v4477_v48, %v7110_v27 }
 0x348   : > { %v4475_v63 = vsel %vm4403_vm1, %v4367_v19, %v4439_v26  ;;  %vm4406_vm6 = vcmp.ge.f32.partialorder %v4370_v32, 0.0  ;;  %v4442_v29 = vmul.f32 0.1, %v4370_v32 }
 0x349   : > { %v4911_v54 = vrot.slane %v4897_v38, %v7110_v27  ;;  %v4863_v1 = vcombine.high %v4475_v63, %v4475_v63  ;;  %v4870_v25 = vrot.slane %v4475_v63, %v7110_v27  ;;  %v4368_v44 = vadd.f32 %v9928_v4, %v4325_v50 }
 0x34a   : > { %v4478_v33 = vsel %vm4406_vm6, %v4370_v32, %v4442_v29 }
 0x34b   : > { %v4912_v28 = vcombine.high %v4911_v54, %v4911_v54  ;;  %v4877_v34 = vrot.slane %v4863_v1, %v7110_v27  ;;  %v4878_v7 = vcombine.high %v4870_v25, %v4870_v25  ;;  %v4920_v8 = vrot.slane %v4478_v33, %v7110_v27 }
 0x34c   : > { %vm4404_vm9 = vcmp.ge.f32.partialorder %v4368_v44, 0.0  ;;  %v4440_v40 = vmul.f32 0.1, %v4368_v44  ;;  %v4913_v21 = vcombine.high %v4478_v33, %v4478_v33 }
 0x34d   : > { %v5471_v59 = vcombine.low %v4911_v54, %v4912_v28  ;;  %v4928_v20 = vcombine.high %v4920_v8, %v4920_v8  ;;  %v4879_v9 = vcombine.high %v4877_v34, %v4877_v34  ;;  %v5437_v52 = vcombine.low %v4878_v7, %v4877_v34 }
 0x34e   : > { %v4476_v43 = vsel %vm4404_vm9, %v4368_v44, %v4440_v40  ;;  %v4927_v51 = vrot.slane %v4913_v21, %v7110_v27 }
 0x34f   : > { %v4880_v0 = vcombine.high %v4476_v43, %v4476_v43  ;;  %v5472_v3 = vcombine.low %v4920_v8, %v4928_v20  ;;  %v4887_v30 = vrot.slane %v4476_v43, %v7110_v27  ;;  %v5479_v2 = vrot.slane %v5471_v59, %v7110_v27 }
 0x350   : > { %v5445_v12 = vrot.slane %v5437_v52, %v7110_v27  ;;  %v4929_v32 = vcombine.high %v4927_v51, %v4927_v51 }
 0x351   : > { %v4894_v62 = vrot.slane %v4880_v0, %v7110_v27  ;;  %v5486_v11 = vrot.slane %v5472_v3, %v7110_v27  ;;  %v4895_v55 = vcombine.high %v4887_v30, %v4887_v30  ;;  %v5438_v39 = vcombine.low %v4879_v9, %v4887_v30 }
 0x352   : > { %v5488_v44 = vcombine.low %v4927_v51, %v4929_v32  ;;  %v333_v9 = vunpack.c.h.bf16 %v9967_v46 }
 0x353   : > { %v4896_v47 = vcombine.high %v4894_v62, %v4894_v62  ;;  %v5487_v18 = vcombine.low %v5479_v2, %v5486_v11  ;;  %v5452_v10 = vrot.slane %v5438_v39, %v7110_v27  ;;  %v5454_v17 = vcombine.low %v4895_v55, %v4894_v62 }
 0x354   : > { %v5496_v3 = vrot.slane %v5488_v44, %v7110_v27 }
 0x355   : > { %v5455_v56 = vcombine.low %v4896_v47, %v4904_v53  ;;  %v5727_v37 = vadd.f32 %v5487_v18, %v332_v45  ;;  %v5453_v31 = vcombine.low %v5445_v12, %v5452_v10  ;;  %v5462_v23 = vrot.slane %v5454_v17, %v7110_v27 }
 0x357   : > { %v5469_v49 = vrot.slane %v5455_v56, %v7110_v27  ;;  %v6076_v42 = vpack.c.bf16 %v5727_v37, %v5727_v37  ;;  %v5725_v36 = vadd.f32 %v5453_v31, %v330_v41  ;;  %v10006_v56 = vld [vmem:[%s7075_s8 + $0x60] sm:$0xff]  }
 0x358   : > { %v336_v37 = vunpack.c.l.bf16 %v10006_v56 }
 0x359   : > { %v5470_v15 = vcombine.low %v5462_v23, %v5469_v49  ;;  %5888 = vst.msk [vmem:[%s9642_s19 + $0x50] sm:$0xf] %vm5867_vm7, %v6076_v42  ;;  %v6074_v58 = vpack.c.bf16 %v5725_v36, %v5725_v36 }
 0x35b   : > { %v5726_v13 = vadd.f32 %v5470_v15, %v331_v16  ;;  %5886 = vst.msk [vmem:[%s9642_s19 + $0x48] sm:$0xf] %vm5867_vm7, %v6074_v58  ;;  %v6992_v58 = vld [vmem:[%s7075_s8 + $0x58] sm:$0xff]  }
 0x35d   : > { %v6075_v5 = vpack.c.bf16 %v5726_v13, %v5726_v13  ;;  %v334_v13 = vunpack.c.l.bf16 %v6992_v58 }
 0x35f   : > { %5887 = vst.msk [vmem:[%s9642_s19 + $0x4c] sm:$0xf] %vm5867_vm7, %v6075_v5 }
 0x360   : > { %v6189_v57 = vpop.f32.mrf.mxu1 }
 0x361   : > { %v4330_v35 = vmul.f32 %v9919_v61, %v6189_v57 }
 0x362   : > { %v4250_v22 = vpop.f32.mrf.mxu1 }
 0x363   : > { %v4373_v60 = vadd.f32 %v9928_v4, %v4330_v35  ;;  %v4328_v19 = vmul.f32 %v9919_v61, %v4250_v22  ;;  %v335_v22 = vunpack.c.h.bf16 %v6992_v58 }
 0x364   : > { %v6190_v24 = vpop.f32.mrf.mxu1 }
 0x365   : > { %vm4409_vm10 = vcmp.ge.f32.partialorder %v4373_v60, 0.0  ;;  %v4445_v6 = vmul.f32 0.1, %v4373_v60  ;;  %v4371_v48 = vadd.f32 %v9928_v4, %v4328_v19  ;;  %v4331_v26 = vmul.f32 %v9919_v61, %v6190_v24 }
 0x366   : > { %v4253_v38 = vpop.f32.mrf.mxu1 }
 0x367   : > { %v4481_v50 = vsel %vm4409_vm10, %v4373_v60, %v4445_v6  ;;  %vm4407_vm12 = vcmp.ge.f32.partialorder %v4371_v48, 0.0  ;;  %v4443_v63 = vmul.f32 0.1, %v4371_v48  ;;  %v4374_v29 = vadd.f32 %v9928_v4, %v4331_v26 }
 0x368   : > { %v4329_v54 = vmul.f32 %v9919_v61, %v4253_v38  ;;  %v4964_v33 = vcombine.high %v4481_v50, %v4481_v50  ;;  %v4971_v7 = vrot.slane %v4481_v50, %v7110_v27 }
 0x369   : > { %v4479_v1 = vsel %vm4407_vm12, %v4371_v48, %v4443_v63  ;;  %vm4410_vm13 = vcmp.ge.f32.partialorder %v4374_v29, 0.0  ;;  %v4446_v25 = vmul.f32 0.1, %v4374_v29 }
 0x36a   : > { %v4930_v28 = vcombine.high %v4479_v1, %v4479_v1  ;;  %v4937_v34 = vrot.slane %v4479_v1, %v7110_v27  ;;  %v4372_v40 = vadd.f32 %v9928_v4, %v4329_v54  ;;  %v4978_v30 = vrot.slane %v4964_v33, %v7110_v27 }
 0x36b   : > { %v4482_v8 = vsel %vm4410_vm13, %v4374_v29, %v4446_v25  ;;  %v4979_v2 = vcombine.high %v4971_v7, %v4971_v7 }
 0x36c   : > { %v4944_v59 = vrot.slane %v4930_v28, %v7110_v27  ;;  %v4945_v20 = vcombine.high %v4937_v34, %v4937_v34  ;;  %v4980_v43 = vcombine.high %v4482_v8, %v4482_v8  ;;  %v4987_v0 = vrot.slane %v4482_v8, %v7110_v27 }
 0x36d   : > { %vm4408_vm14 = vcmp.ge.f32.partialorder %v4372_v40, 0.0  ;;  %v4444_v52 = vmul.f32 0.1, %v4372_v40  ;;  %v5523_v31 = vcombine.low %v4979_v2, %v4978_v30 }
 0x36e   : > { %v5489_v45 = vcombine.low %v4937_v34, %v4945_v20  ;;  %v4994_v62 = vrot.slane %v4980_v43, %v7110_v27  ;;  %v4946_v11 = vcombine.high %v4944_v59, %v4944_v59  ;;  %v4995_v55 = vcombine.high %v4987_v0, %v4987_v0 }
 0x36f   : > { %v4480_v39 = vsel %vm4408_vm14, %v4372_v40, %v4444_v52  ;;  %v5537_v60 = vrot.slane %v5523_v31, %v7110_v27 }
 0x370   : > { %v5503_v14 = vrot.slane %v5489_v45, %v7110_v27  ;;  %v4996_v41 = vcombine.high %v4994_v62, %v4994_v62  ;;  %v4947_v46 = vcombine.high %v4480_v39, %v4480_v39  ;;  %v4954_v53 = vrot.slane %v4480_v39, %v7110_v27 }
 0x371   : > { %v5539_v47 = vcombine.low %v4987_v0, %v4995_v55 }
 0x372   : > { %v5504_v12 = vcombine.low %v5496_v3, %v5503_v14  ;;  %v5540_v18 = vcombine.low %v4994_v62, %v4996_v41  ;;  %v4961_v10 = vrot.slane %v4947_v46, %v7110_v27  ;;  %v4962_v17 = vcombine.high %v4954_v53, %v4954_v53 }
 0x373   : > { %v5547_v16 = vrot.slane %v5539_v47, %v7110_v27  ;;  %v5505_v23 = vcombine.low %v4946_v11, %v4954_v53 }
 0x374   : > { %v5728_v49 = vadd.f32 %v5504_v12, %v333_v9  ;;  %v5554_v42 = vrot.slane %v5540_v18, %v7110_v27  ;;  %v4963_v36 = vcombine.high %v4961_v10, %v4961_v10  ;;  %v5506_v15 = vcombine.low %v4962_v17, %v4961_v10 }
 0x375   : > { %v5513_v5 = vrot.slane %v5505_v23, %v7110_v27  ;;  %v6993_v23 = vld [vmem:[%s7075_s8 + $0x68] sm:$0xff]  }
 0x376   : > { %v6077_v21 = vpack.c.bf16 %v5728_v49, %v5728_v49  ;;  %v5555_v57 = vcombine.low %v5547_v16, %v5554_v42  ;;  %v5520_v35 = vrot.slane %v5506_v15, %v7110_v27  ;;  %v5522_v51 = vcombine.low %v4963_v36, %v4971_v7 }
 0x377   : > { %v337_v16 = vunpack.c.h.bf16 %v10006_v56  ;;  %v339_v49 = vunpack.c.h.bf16 %v6993_v23 }
 0x378   : > { %5889 = vst.msk [vmem:[%s9642_s19 + $0x54] sm:$0xf] %vm5867_vm7, %v6077_v21  ;;  %v5731_v19 = vadd.f32 %v5555_v57, %v336_v37  ;;  %v5521_v24 = vcombine.low %v5513_v5, %v5520_v35  ;;  %v5530_v6 = vrot.slane %v5522_v51, %v7110_v27 }
 0x37a   : > { %v6080_v48 = vpack.c.bf16 %v5731_v19, %v5731_v19  ;;  %v5538_v26 = vcombine.low %v5530_v6, %v5537_v60  ;;  %v5729_v32 = vadd.f32 %v5521_v24, %v334_v13 }
 0x37c   : > { %5892 = vst.msk [vmem:[%s9642_s19 + $0x60] sm:$0xf] %vm5867_vm7, %v6080_v48  ;;  %v5730_v38 = vadd.f32 %v5538_v26, %v335_v22  ;;  %v6078_v50 = vpack.c.bf16 %v5729_v32, %v5729_v32 }
 0x37e   : > { %v6079_v63 = vpack.c.bf16 %v5730_v38, %v5730_v38  ;;  %5890 = vst.msk [vmem:[%s9642_s19 + $0x58] sm:$0xf] %vm5867_vm7, %v6078_v50 }
 0x380   : > { %5891 = vst.msk [vmem:[%s9642_s19 + $0x5c] sm:$0xf] %vm5867_vm7, %v6079_v63 }
 0x398   : > { %v6193_v29 = vpop.f32.mrf.mxu1 }
 0x399   : > { %v4334_v54 = vmul.f32 %v9919_v61, %v6193_v29 }
 0x39a   : > { %v4266_v1 = vpop.f32.mrf.mxu1 }
 0x39b   : > { %v4377_v25 = vadd.f32 %v9928_v4, %v4334_v54  ;;  %v4332_v44 = vmul.f32 %v9919_v61, %v4266_v1 }
 0x39c   : > { %v6194_v33 = vpop.f32.mrf.mxu1 }
 0x39d   : > { %vm4413_vm15 = vcmp.ge.f32.partialorder %v4377_v25, 0.0  ;;  %v4449_v28 = vmul.f32 0.1, %v4377_v25  ;;  %v4375_v34 = vadd.f32 %v9928_v4, %v4332_v44  ;;  %v4335_v7 = vmul.f32 %v9919_v61, %v6194_v33 }
 0x39e   : > { %v4269_v8 = vpop.f32.mrf.mxu1 }
 0x39f   : > { %v4485_v40 = vsel %vm4413_vm15, %v4377_v25, %v4449_v28  ;;  %vm4411_vm3 = vcmp.ge.f32.partialorder %v4375_v34, 0.0  ;;  %v4447_v59 = vmul.f32 0.1, %v4375_v34  ;;  %v4378_v20 = vadd.f32 %v9928_v4, %v4335_v7 }
 0x3a0   : > { %v5031_v43 = vcombine.high %v4485_v40, %v4485_v40  ;;  %v5038_v9 = vrot.slane %v4485_v40, %v7110_v27  ;;  %v4333_v0 = vmul.f32 %v9919_v61, %v4269_v8  ;;  %v6197_v52 = vpop.f32.mrf.mxu1  ;;  %v338_v7 = vunpack.c.l.bf16 %v6993_v23 }
 0x3a1   : > { %v4483_v3 = vsel %vm4411_vm3, %v4375_v34, %v4447_v59  ;;  %vm4414_vm0 = vcmp.ge.f32.partialorder %v4378_v20, 0.0  ;;  %v4450_v30 = vmul.f32 0.1, %v4378_v20  ;;  %v4338_v45 = vmul.f32 %v9919_v61, %v6197_v52 }
 0x3a2   : > { %v5045_v62 = vrot.slane %v5031_v43, %v7110_v27  ;;  %v5046_v2 = vcombine.high %v5038_v9, %v5038_v9  ;;  %v4997_v11 = vcombine.high %v4483_v3, %v4483_v3  ;;  %v5004_v55 = vrot.slane %v4483_v3, %v7110_v27  ;;  %v4282_v39 = vpop.f32.mrf.mxu1 }
 0x3a3   : > { %v4486_v14 = vsel %vm4414_vm0, %v4378_v20, %v4450_v30  ;;  %v4376_v41 = vadd.f32 %v9928_v4, %v4333_v0  ;;  %v4381_v46 = vadd.f32 %v9928_v4, %v4338_v45  ;;  %v4336_v53 = vmul.f32 %v9919_v61, %v4282_v39 }
 0x3a4   : > { %v5590_v47 = vcombine.low %v5046_v2, %v5045_v62  ;;  %v5011_v12 = vrot.slane %v4997_v11, %v7110_v27  ;;  %v5012_v18 = vcombine.high %v5004_v55, %v5004_v55  ;;  %v5047_v10 = vcombine.high %v5045_v62, %v5045_v62  ;;  %v6198_v26 = vpop.f32.mrf.mxu1 }
 0x3a5   : > { %v5048_v17 = vcombine.high %v4486_v14, %v4486_v14  ;;  %v5055_v37 = vrot.slane %v4486_v14, %v7110_v27  ;;  %vm4412_vm8 = vcmp.ge.f32.partialorder %v4376_v41, 0.0  ;;  %v4448_v31 = vmul.f32 0.1, %v4376_v41  ;;  %v6994_v14 = vld [vmem:[%s7075_s8 + $0x70] sm:$0xff]  }
 0x3a6   : > { %v5013_v42 = vcombine.high %v5011_v12, %v5011_v12  ;;  %v5556_v36 = vcombine.low %v5004_v55, %v5012_v18  ;;  %vm4417_vm5 = vcmp.ge.f32.partialorder %v4381_v46, 0.0  ;;  %v4453_v13 = vmul.f32 0.1, %v4381_v46  ;;  %v4285_v34 = vpop.f32.mrf.mxu1 }
 0x3a7   : > { %v5591_v15 = vcombine.low %v5047_v10, %v5055_v37  ;;  %v4484_v58 = vsel %vm4412_vm8, %v4376_v41, %v4448_v31  ;;  %v5598_v5 = vrot.slane %v5590_v47, %v7110_v27  ;;  %v5062_v22 = vrot.slane %v5048_v17, %v7110_v27 }
 0x3a8   : > { %v5557_v21 = vcombine.low %v5011_v12, %v5013_v42  ;;  %v5014_v57 = vcombine.high %v4484_v58, %v4484_v58  ;;  %v5021_v35 = vrot.slane %v4484_v58, %v7110_v27  ;;  %v5564_v51 = vrot.slane %v5556_v36, %v7110_v27 }
 0x3a9   : > { %v5605_v56 = vrot.slane %v5591_v15, %v7110_v27  ;;  %v4379_v60 = vadd.f32 %v9928_v4, %v4336_v53  ;;  %v4489_v48 = vsel %vm4417_vm5, %v4381_v46, %v4453_v13  ;;  %v5063_v44 = vcombine.high %v5062_v22, %v5062_v22 }
 0x3aa   : > { %v5571_v19 = vrot.slane %v5557_v21, %v7110_v27  ;;  %v5028_v24 = vrot.slane %v5014_v57, %v7110_v27  ;;  %v5029_v6 = vcombine.high %v5021_v35, %v5021_v35  ;;  %v5098_v54 = vcombine.high %v4489_v48, %v4489_v48 }
 0x3ab   : > { %v5606_v32 = vcombine.low %v5598_v5, %v5605_v56  ;;  %vm4415_vm2 = vcmp.ge.f32.partialorder %v4379_v60, 0.0  ;;  %v4451_v1 = vmul.f32 0.1, %v4379_v60  ;;  %v4339_v28 = vmul.f32 %v9919_v61, %v6198_v26 }
 0x3ac   : > { %v5572_v38 = vcombine.low %v5564_v51, %v5571_v19  ;;  %v5030_v50 = vcombine.high %v5028_v24, %v5028_v24  ;;  %v5573_v63 = vcombine.low %v5029_v6, %v5028_v24  ;;  %v5112_v3 = vrot.slane %v5098_v54, %v7110_v27  ;;  %v6995_v24 = vld [vmem:[%s7075_s8 + $0x78] sm:$0xff]  }
 0x3ad   : > { %v5734_v29 = vadd.f32 %v5606_v32, %v339_v49  ;;  %v4487_v59 = vsel %vm4415_vm2, %v4379_v60, %v4451_v1  ;;  %v4337_v30 = vmul.f32 %v9919_v61, %v4285_v34  ;;  %v5607_v45 = vcombine.low %v5062_v22, %v5063_v44 }
 0x3ae   : > { %v5732_v25 = vadd.f32 %v5572_v38, %v337_v16  ;;  %v5574_v33 = vcombine.low %v5030_v50, %v5038_v9  ;;  %v5581_v40 = vrot.slane %v5573_v63, %v7110_v27  ;;  %v5064_v0 = vcombine.high %v4487_v59, %v4487_v59 }
 0x3af   : > { %v6083_v8 = vpack.c.bf16 %v5734_v29, %v5734_v29  ;;  %v5071_v52 = vrot.slane %v4487_v59, %v7110_v27  ;;  %v4382_v9 = vadd.f32 %v9928_v4, %v4339_v28  ;;  %v4380_v39 = vadd.f32 %v9928_v4, %v4337_v30 }
 0x3b0   : > { %v6081_v20 = vpack.c.bf16 %v5732_v25, %v5732_v25  ;;  %v5588_v43 = vrot.slane %v5574_v33, %v7110_v27  ;;  %v5078_v11 = vrot.slane %v5064_v0, %v7110_v27  ;;  %v340_v41 = vunpack.c.l.bf16 %v6994_v14 }
 0x3b1   : > { %5895 = vst.msk [vmem:[%s9642_s19 + $0x6c] sm:$0xf] %vm5867_vm7, %v6083_v8  ;;  %v5079_v2 = vcombine.high %v5071_v52, %v5071_v52  ;;  %vm4418_vm4 = vcmp.ge.f32.partialorder %v4382_v9, 0.0  ;;  %v4454_v55 = vmul.f32 0.1, %v4382_v9  ;;  %v5105_v53 = vrot.slane %v4489_v48, %v7110_v27 }
 0x3b2   : > { %5893 = vst.msk [vmem:[%s9642_s19 + $0x64] sm:$0xf] %vm5867_vm7, %v6081_v20  ;;  %v5589_v62 = vcombine.low %v5581_v40, %v5588_v43  ;;  %v5114_v61 = vcombine.high %v5112_v3, %v5112_v3  ;;  %vm4416_vm11 = vcmp.ge.f32.partialorder %v4380_v39, 0.0  ;;  %v4452_v18 = vmul.f32 0.1, %v4380_v39 }
 0x3b3   : > { %v5608_v47 = vcombine.low %v5071_v52, %v5079_v2  ;;  %v4490_v12 = vsel %vm4418_vm4, %v4382_v9, %v4454_v55  ;;  %v5615_v10 = vrot.slane %v5607_v45, %v7110_v27  ;;  %v5080_v16 = vcombine.high %v5078_v11, %v5078_v11 }
 0x3b4   : > { %v5733_v46 = vadd.f32 %v5589_v62, %v338_v7  ;;  %v5115_v31 = vcombine.high %v4490_v12, %v4490_v12  ;;  %v5122_v4 = vrot.slane %v4490_v12, %v7110_v27  ;;  %v4488_v23 = vsel %vm4416_vm11, %v4380_v39, %v4452_v18 }
 0x3b5   : > { %v5622_v37 = vrot.slane %v5608_v47, %v7110_v27  ;;  %v5113_v49 = vcombine.high %v5105_v53, %v5105_v53  ;;  %v5081_v15 = vcombine.high %v4488_v23, %v4488_v23  ;;  %v5088_v5 = vrot.slane %v4488_v23, %v7110_v27 }
 0x3b6   : > { %v6082_v17 = vpack.c.bf16 %v5733_v46, %v5733_v46  ;;  %v5129_v36 = vrot.slane %v5115_v31, %v7110_v27  ;;  %v5130_v58 = vcombine.high %v5122_v4, %v5122_v4  ;;  %v5658_v13 = vcombine.low %v5114_v61, %v5122_v4 }
 0x3b7   : > { %v5623_v42 = vcombine.low %v5615_v10, %v5622_v37  ;;  %v5095_v57 = vrot.slane %v5081_v15, %v7110_v27  ;;  %v5624_v35 = vcombine.low %v5078_v11, %v5080_v16  ;;  %v5096_v22 = vcombine.high %v5088_v5, %v5088_v5 }
 0x3b8   : > { %5894 = vst.msk [vmem:[%s9642_s19 + $0x68] sm:$0xf] %vm5867_vm7, %v6082_v17  ;;  %v5659_v51 = vcombine.low %v5130_v58, %v5129_v36  ;;  %v5642_v56 = vcombine.low %v5113_v49, %v5112_v3  ;;  %v343_v6 = vunpack.c.h.bf16 %v6995_v24  ;;  %v5666_v48 = vrot.slane %v5658_v13, %v7110_v27 }
 0x3b9   : > { %v5735_v21 = vadd.f32 %v5623_v42, %v340_v41  ;;  %v5097_v19 = vcombine.high %v5095_v57, %v5095_v57  ;;  %v5625_v32 = vcombine.low %v5088_v5, %v5096_v22  ;;  %v341_v50 = vunpack.c.h.bf16 %v6994_v14 }
 0x3ba   : > { %v5673_v26 = vrot.slane %v5659_v51, %v7110_v27  ;;  %v5632_v63 = vrot.slane %v5624_v35, %v7110_v27  ;;  %v342_v1 = vunpack.c.l.bf16 %v6995_v24  ;;  %v5656_v25 = vrot.slane %v5642_v56, %v7110_v27 }
 0x3bb   : > { %v6084_v60 = vpack.c.bf16 %v5735_v21, %v5735_v21  ;;  %v5641_v38 = vcombine.low %v5097_v19, %v5105_v53  ;;  %v5639_v54 = vrot.slane %v5625_v32, %v7110_v27 }
 0x3bc   : > { %v5674_v29 = vcombine.low %v5666_v48, %v5673_v26 }
 0x3bd   : > { %5896 = vst.msk [vmem:[%s9642_s19 + $0x70] sm:$0xf] %vm5867_vm7, %v6084_v60  ;;  %v5649_v44 = vrot.slane %v5641_v38, %v7110_v27  ;;  %v5640_v28 = vcombine.low %v5632_v63, %v5639_v54 }
 0x3be   : > { %v5738_v33 = vadd.f32 %v5674_v29, %v343_v6 }
 0x3bf   : > { %v5657_v34 = vcombine.low %v5649_v44, %v5656_v25  ;;  %v5736_v8 = vadd.f32 %v5640_v28, %v341_v50 }
 0x3c0   : > { %v6087_v7 = vpack.c.bf16 %v5738_v33, %v5738_v33 }
 0x3c1   : > { %v5737_v40 = vadd.f32 %v5657_v34, %v342_v1  ;;  %v6085_v59 = vpack.c.bf16 %v5736_v8, %v5736_v8 }
 0x3c2   : > { %5899 = vst.msk [vmem:[%s9642_s19 + $0x7c] sm:$0xf] %vm5867_vm7, %v6087_v7 }
 0x3c3   : > { %v6086_v20 = vpack.c.bf16 %v5737_v40, %v5737_v40  ;;  %5897 = vst.msk [vmem:[%s9642_s19 + $0x74] sm:$0xf] %vm5867_vm7, %v6085_v59 }
 0x3c5   : > { %5898 = vst.msk [vmem:[%s9642_s19 + $0x78] sm:$0xf] %vm5867_vm7, %v6086_v20 }
 0x3c6 PF: > { %s17_s24 = sadd.s32 1, %s7002_s24  }
 0x3c7   : > { %p14_p4 = scmp.ge.s32.totalorder %s17_s24, 4  }
 0x3c9   :  { %16 = sbr.rel (!%p14_p4) target bundleno = 1 (0x1), region = 78 }

</bundles_post_ra>
